<compile_context>
chip_gen: v6e
topology: v6e:2x2x1
jax: 0.10.0
libtpu: 0.0.40
codegen_flags: <defaults>
</compile_context>

<pallas_src>
import functools

import jax
import jax.numpy as jnp
from jax.experimental import pallas as pl
from jax.experimental.pallas import tpu as pltpu


def _cdcm2_kernel(x_ref, wt_ref, bias_ref, o_ref, *, tap_starts, Lout):
    """One grid step, all batches folded onto the lane axis.

    x_ref   : (Cin, Xtot)    bf16  zero-padded relu(x), flattened
                                   Xtot = N*Hp*Wp + 2*p0 (guard columns so every
                                   tap window has the full output length)
    wt_ref  : (T, Cout, Cin) bf16  folded tap weights  W_t' = W_t @ W1
    bias_ref: (Cout, Lout)   f32   precomputed bias boundary field
    o_ref   : (Cout, Lout)   f32   output in padded-flat coordinates; the wrapper
                                   extracts the valid pixels (layout plumbing)
    """
    # Initialize the accumulator (the output block itself) with the bias field,
    # then accumulate one MXU matmul per tap.  Every tap operand is a static
    # lane-window view of the padded input -- no scatters, no masked stores.
    o_ref[...] = bias_ref[...]
    for t, s in enumerate(tap_starts):
        o_ref[...] += jnp.dot(wt_ref[t], x_ref[:, s:s + Lout],
                              preferred_element_type=jnp.float32)


def cdcm2_forward(x_nchw, w1, b1, w_d5, w_d7, w_d1, w_d3):
    """x_nchw : (N, Cin, H, W) float32
       w1     : (Cout, Cin, 1, 1)   conv1 weight
       b1     : (Cout,)             conv1 bias
       w_d*   : (Cout, Cout, 3, 3)  dilated 3x3 conv weights (dilation 5,7,1,3)
    """
    N, Cin, H, W = x_nchw.shape
    Cout = w1.shape[0]
    assert w1.shape == (Cout, Cin, 1, 1)
    for w in (w_d5, w_d7, w_d1, w_d3):
        assert w.shape == (Cout, Cout, 3, 3)

    dils = (5, 7, 1, 3)
    P = max(dils)                     # one shared halo covers all dilations
    Hp, Wp = H + 2 * P, W + 2 * P
    HpWp = Hp * Wp
    p0 = P * Wp + P                   # flat padded offset of pixel (0, 0)
    Lout = N * HpWp                   # lane width of every tap matmul / output
    Xtot = Lout + 2 * p0              # padded input incl. front/back guards
    hiprec = jax.lax.Precision.HIGHEST

    # ---- fold conv1 (1x1) into the dilated-conv taps -----------------------
    # Merge taps that share a spatial offset (the four dilation centers).
    w1m = w1.reshape(Cout, Cin).astype(jnp.float32)
    off_to_w = {}
    for wd, d in zip((w_d5, w_d7, w_d1, w_d3), dils):
        wd = wd.astype(jnp.float32)
        for kh in range(3):
            for kw in range(3):
                off = ((kh - 1) * d, (kw - 1) * d)
                if off in off_to_w:
                    off_to_w[off] = off_to_w[off] + wd[:, :, kh, kw]
                else:
                    off_to_w[off] = wd[:, :, kh, kw]
    offsets = tuple(off_to_w.keys())
    T = len(offsets)                                               # 33
    w_taps = jnp.stack([off_to_w[o] for o in offsets], axis=0)     # (T,Cout,Cout)
    w_fold = jnp.einsum('toc,ci->toi', w_taps, w1m,
                        precision=hiprec)                          # (T,Cout,Cin)
    tap_starts = tuple(int(p0 + oh * Wp + ow) for (oh, ow) in offsets)

    # ---- exact bias boundary-correction field -------------------------------
    # conv1's bias pushed through the dilated convs: each tap contributes
    # W_t @ b1 only where it lands on a real (non-pad) y pixel.
    tb = jnp.einsum('toc,c->to', w_taps, b1.astype(jnp.float32),
                    precision=hiprec)                              # (T, Cout)
    hh = jnp.arange(Hp)[:, None]
    ww = jnp.arange(Wp)[None, :]
    ind = jnp.stack(
        [((hh + oh >= P) & (hh + oh < P + H) &
          (ww + ow >= P) & (ww + ow < P + W)) for (oh, ow) in offsets]
    ).astype(jnp.float32)                                          # (T, Hp, Wp)
    bias_field = jnp.einsum('to,thw->ohw', tb, ind,
                            precision=hiprec).reshape(Cout, HpWp)
    bias_flat = jnp.tile(bias_field, (1, N))                       # (Cout, Lout)

    # ---- layout plumbing: relu + zero-pad + flatten (lane-dense input) ------
    xr = jnp.maximum(x_nchw, 0.0).astype(jnp.float32)
    xr = jnp.transpose(xr, (1, 0, 2, 3))                 # (Cin, N, H, W)
    xr = jnp.pad(xr, ((0, 0), (0, 0), (P, P), (P, P)))   # (Cin, N, Hp, Wp)
    xr = xr.reshape(Cin, Lout)
    xr = jnp.pad(xr, ((0, 0), (p0, p0)))                 # (Cin, Xtot) guards
    xr = xr.astype(jnp.bfloat16)
    wt = w_fold.astype(jnp.bfloat16)

    kernel = functools.partial(_cdcm2_kernel, tap_starts=tap_starts, Lout=Lout)

    out_flat = pl.pallas_call(
        kernel,
        out_shape=jax.ShapeDtypeStruct((Cout, Lout), jnp.float32),
        grid_spec=pltpu.PrefetchScalarGridSpec(
            num_scalar_prefetch=0,
            grid=(1,),
            in_specs=[
                pl.BlockSpec((Cin, Xtot), lambda i: (0, 0)),
                pl.BlockSpec((T, Cout, Cin), lambda i: (0, 0, 0)),
                pl.BlockSpec((Cout, Lout), lambda i: (0, 0)),
            ],
            out_specs=pl.BlockSpec((Cout, Lout), lambda i: (0, 0)),
        ),
        compiler_params=pltpu.CompilerParams(
            dimension_semantics=("arbitrary",)),
    )(xr, wt, bias_flat)

    # Extract the valid pixels (free wrapper-side reshape/slice/transpose).
    out = out_flat.reshape(Cout, N, Hp, Wp)[:, :, P:P + H, P:P + W]
    return jnp.transpose(out, (1, 0, 2, 3)).astype(x_nchw.dtype)


def reference_forward(x, w1, b1, w_d5, w_d7, w_d1, w_d3):
    dn = ("NCHW", "OIHW", "NCHW")
    hp = jax.lax.Precision.HIGHEST
    xr = jnp.maximum(x, 0.0)
    y = jax.lax.conv_general_dilated(
        xr, w1, (1, 1), ((0, 0), (0, 0)), dimension_numbers=dn, precision=hp)
    y = y + b1[None, :, None, None]

    def dconv(w, d):
        return jax.lax.conv_general_dilated(
            y, w, (1, 1), ((d, d), (d, d)), rhs_dilation=(d, d),
            dimension_numbers=dn, precision=hp)

    return dconv(w_d5, 5) + dconv(w_d7, 7) + dconv(w_d1, 1) + dconv(w_d3, 3)


if __name__ == "__main__":
    # CDCM2(in_channels=8, out_channels=16) on a (2, 8, 16, 16) input.
    N, Cin, Cout, H, W = 2, 8, 16, 16, 16

    key = jax.random.PRNGKey(0)
    kx, k1, kb, k5, k7, kd1, k3 = jax.random.split(key, 7)

    x = jax.random.normal(kx, (N, Cin, H, W), dtype=jnp.float32)
    w1 = 0.1 * jax.random.normal(k1, (Cout, Cin, 1, 1), dtype=jnp.float32)
    b1 = 0.1 * jax.random.normal(kb, (Cout,), dtype=jnp.float32)
    w_d5 = 0.1 * jax.random.normal(k5, (Cout, Cout, 3, 3), dtype=jnp.float32)
    w_d7 = 0.1 * jax.random.normal(k7, (Cout, Cout, 3, 3), dtype=jnp.float32)
    w_d1 = 0.1 * jax.random.normal(kd1, (Cout, Cout, 3, 3), dtype=jnp.float32)
    w_d3 = 0.1 * jax.random.normal(k3, (Cout, Cout, 3, 3), dtype=jnp.float32)

    out = jax.block_until_ready(
        cdcm2_forward(x, w1, b1, w_d5, w_d7, w_d1, w_d3))
    ref = jax.block_until_ready(
        reference_forward(x, w1, b1, w_d5, w_d7, w_d1, w_d3))

    assert out.shape == (N, Cout, H, W), out.shape
    max_err = float(jnp.max(jnp.abs(out - ref)))
    # bf16 MXU operands (f32 accumulation) -> relaxed tolerance vs the f32
    # HIGHEST-precision reference, per the performance review.
    assert jnp.allclose(out, ref, atol=5e-2, rtol=5e-2), max_err
    print("KERNEL_OK")
</pallas_src>

<mosaic_0001>
module attributes {stable_mosaic.version = 11 : i64} {
  func.func @_cdcm2_kernel(%arg0: i32, %arg1: memref<8x2234xbf16, #tpu.memory_space<vmem>>, %arg2: memref<33x16x8xbf16, #tpu.memory_space<vmem>>, %arg3: memref<16x1800xf32, #tpu.memory_space<vmem>>, %arg4: memref<16x1800xf32, #tpu.memory_space<vmem>>) attributes {dimension_semantics = [#tpu.dimension_semantics<arbitrary>], iteration_bounds = array<i64: 1>, scalar_prefetch = 0 : i64, scratch_operands = 0 : i64, tpu.core_type = #tpu.core_type<tc>, window_params = [{pipeline_mode = #tpu.pipeline_mode<synchronous>, transform_indices = @transform_0, window_bounds = array<i64: 8, 2234>}, {pipeline_mode = #tpu.pipeline_mode<synchronous>, transform_indices = @transform_1, window_bounds = array<i64: 33, 16, 8>}, {pipeline_mode = #tpu.pipeline_mode<synchronous>, transform_indices = @transform_2, window_bounds = array<i64: 16, 1800>}, {pipeline_mode = #tpu.pipeline_mode<synchronous>, transform_indices = @transform_3, window_bounds = array<i64: 16, 1800>}]} {
    %c0 = arith.constant 0 : index
    %c0_0 = arith.constant 0 : index
    %0 = vector.load %arg3[%c0, %c0_0] : memref<16x1800xf32, #tpu.memory_space<vmem>>, vector<16x1800xf32>
    %c0_1 = arith.constant 0 : index
    %c0_2 = arith.constant 0 : index
    %1 = vector.load %arg4[%c0_1, %c0_2] : memref<16x1800xf32, #tpu.memory_space<vmem>>, vector<16x1800xf32>
    tpu.vector_store %arg4[%c0_1, %c0_2], %0 {strides = array<i32>} : memref<16x1800xf32, #tpu.memory_space<vmem>>, vector<16x1800xf32>,
    %c0_3 = arith.constant 0 : index
    %c0_4 = arith.constant 0 : index
    %2 = vector.load %arg4[%c0_3, %c0_4] : memref<16x1800xf32, #tpu.memory_space<vmem>>, vector<16x1800xf32>
    %c0_5 = arith.constant 0 : index
    %c0_6 = arith.constant 0 : index
    %c0_7 = arith.constant 0 : index
    %3 = vector.load %arg2[%c0_5, %c0_6, %c0_7] : memref<33x16x8xbf16, #tpu.memory_space<vmem>>, vector<1x16x8xbf16>
    %4 = vector.shape_cast %3 : vector<1x16x8xbf16> to vector<16x8xbf16>
    %c0_8 = arith.constant 0 : index
    %c62 = arith.constant 62 : index
    %5 = vector.load %arg1[%c0_8, %c62] : memref<8x2234xbf16, #tpu.memory_space<vmem>>, vector<8x1800xbf16>
    %cst = arith.constant dense<0.000000e+00> : vector<16x1800xf32>
    %6 = tpu.matmul %4, %5, %cst {dimension_numbers = #tpu.dot_dimension_numbers<[1], [0], [0], [1], [0, 0, 1, 1], [], []>} : vector<16x8xbf16>, vector<8x1800xbf16>, vector<16x1800xf32> -> vector<16x1800xf32>
    %7 = arith.addf %2, %6 : vector<16x1800xf32>
    %c0_9 = arith.constant 0 : index
    %c0_10 = arith.constant 0 : index
    %8 = vector.load %arg4[%c0_9, %c0_10] : memref<16x1800xf32, #tpu.memory_space<vmem>>, vector<16x1800xf32>
    tpu.vector_store %arg4[%c0_9, %c0_10], %7 {strides = array<i32>} : memref<16x1800xf32, #tpu.memory_space<vmem>>, vector<16x1800xf32>,
    %c0_11 = arith.constant 0 : index
    %c0_12 = arith.constant 0 : index
    %9 = vector.load %arg4[%c0_11, %c0_12] : memref<16x1800xf32, #tpu.memory_space<vmem>>, vector<16x1800xf32>
    %c1 = arith.constant 1 : index
    %c0_13 = arith.constant 0 : index
    %c0_14 = arith.constant 0 : index
    %10 = vector.load %arg2[%c1, %c0_13, %c0_14] : memref<33x16x8xbf16, #tpu.memory_space<vmem>>, vector<1x16x8xbf16>
    %11 = vector.shape_cast %10 : vector<1x16x8xbf16> to vector<16x8xbf16>
    %c0_15 = arith.constant 0 : index
    %c67 = arith.constant 67 : index
    %12 = vector.load %arg1[%c0_15, %c67] : memref<8x2234xbf16, #tpu.memory_space<vmem>>, vector<8x1800xbf16>
    %cst_16 = arith.constant dense<0.000000e+00> : vector<16x1800xf32>
    %13 = tpu.matmul %11, %12, %cst_16 {dimension_numbers = #tpu.dot_dimension_numbers<[1], [0], [0], [1], [0, 0, 1, 1], [], []>} : vector<16x8xbf16>, vector<8x1800xbf16>, vector<16x1800xf32> -> vector<16x1800xf32>
    %14 = arith.addf %9, %13 : vector<16x1800xf32>
    %c0_17 = arith.constant 0 : index
    %c0_18 = arith.constant 0 : index
    %15 = vector.load %arg4[%c0_17, %c0_18] : memref<16x1800xf32, #tpu.memory_space<vmem>>, vector<16x1800xf32>
    tpu.vector_store %arg4[%c0_17, %c0_18], %14 {strides = array<i32>} : memref<16x1800xf32, #tpu.memory_space<vmem>>, vector<16x1800xf32>,
    %c0_19 = arith.constant 0 : index
    %c0_20 = arith.constant 0 : index
    %16 = vector.load %arg4[%c0_19, %c0_20] : memref<16x1800xf32, #tpu.memory_space<vmem>>, vector<16x1800xf32>
    %c2 = arith.constant 2 : index
    %c0_21 = arith.constant 0 : index
    %c0_22 = arith.constant 0 : index
    %17 = vector.load %arg2[%c2, %c0_21, %c0_22] : memref<33x16x8xbf16, #tpu.memory_space<vmem>>, vector<1x16x8xbf16>
    %18 = vector.shape_cast %17 : vector<1x16x8xbf16> to vector<16x8xbf16>
    %c0_23 = arith.constant 0 : index
    %c72 = arith.constant 72 : index
    %19 = vector.load %arg1[%c0_23, %c72] : memref<8x2234xbf16, #tpu.memory_space<vmem>>, vector<8x1800xbf16>
    %cst_24 = arith.constant dense<0.000000e+00> : vector<16x1800xf32>
    %20 = tpu.matmul %18, %19, %cst_24 {dimension_numbers = #tpu.dot_dimension_numbers<[1], [0], [0], [1], [0, 0, 1, 1], [], []>} : vector<16x8xbf16>, vector<8x1800xbf16>, vector<16x1800xf32> -> vector<16x1800xf32>
    %21 = arith.addf %16, %20 : vector<16x1800xf32>
    %c0_25 = arith.constant 0 : index
    %c0_26 = arith.constant 0 : index
    %22 = vector.load %arg4[%c0_25, %c0_26] : memref<16x1800xf32, #tpu.memory_space<vmem>>, vector<16x1800xf32>
    tpu.vector_store %arg4[%c0_25, %c0_26], %21 {strides = array<i32>} : memref<16x1800xf32, #tpu.memory_space<vmem>>, vector<16x1800xf32>,
    %c0_27 = arith.constant 0 : index
    %c0_28 = arith.constant 0 : index
    %23 = vector.load %arg4[%c0_27, %c0_28] : memref<16x1800xf32, #tpu.memory_space<vmem>>, vector<16x1800xf32>
    %c3 = arith.constant 3 : index
    %c0_29 = arith.constant 0 : index
    %c0_30 = arith.constant 0 : index
    %24 = vector.load %arg2[%c3, %c0_29, %c0_30] : memref<33x16x8xbf16, #tpu.memory_space<vmem>>, vector<1x16x8xbf16>
    %25 = vector.shape_cast %24 : vector<1x16x8xbf16> to vector<16x8xbf16>
    %c0_31 = arith.constant 0 : index
    %c212 = arith.constant 212 : index
    %26 = vector.load %arg1[%c0_31, %c212] : memref<8x2234xbf16, #tpu.memory_space<vmem>>, vector<8x1800xbf16>
    %cst_32 = arith.constant dense<0.000000e+00> : vector<16x1800xf32>
    %27 = tpu.matmul %25, %26, %cst_32 {dimension_numbers = #tpu.dot_dimension_numbers<[1], [0], [0], [1], [0, 0, 1, 1], [], []>} : vector<16x8xbf16>, vector<8x1800xbf16>, vector<16x1800xf32> -> vector<16x1800xf32>
    %28 = arith.addf %23, %27 : vector<16x1800xf32>
    %c0_33 = arith.constant 0 : index
    %c0_34 = arith.constant 0 : index
    %29 = vector.load %arg4[%c0_33, %c0_34] : memref<16x1800xf32, #tpu.memory_space<vmem>>, vector<16x1800xf32>
    tpu.vector_store %arg4[%c0_33, %c0_34], %28 {strides = array<i32>} : memref<16x1800xf32, #tpu.memory_space<vmem>>, vector<16x1800xf32>,
    %c0_35 = arith.constant 0 : index
    %c0_36 = arith.constant 0 : index
    %30 = vector.load %arg4[%c0_35, %c0_36] : memref<16x1800xf32, #tpu.memory_space<vmem>>, vector<16x1800xf32>
    %c4 = arith.constant 4 : index
    %c0_37 = arith.constant 0 : index
    %c0_38 = arith.constant 0 : index
    %31 = vector.load %arg2[%c4, %c0_37, %c0_38] : memref<33x16x8xbf16, #tpu.memory_space<vmem>>, vector<1x16x8xbf16>
    %32 = vector.shape_cast %31 : vector<1x16x8xbf16> to vector<16x8xbf16>
    %c0_39 = arith.constant 0 : index
    %c217 = arith.constant 217 : index
    %33 = vector.load %arg1[%c0_39, %c217] : memref<8x2234xbf16, #tpu.memory_space<vmem>>, vector<8x1800xbf16>
    %cst_40 = arith.constant dense<0.000000e+00> : vector<16x1800xf32>
    %34 = tpu.matmul %32, %33, %cst_40 {dimension_numbers = #tpu.dot_dimension_numbers<[1], [0], [0], [1], [0, 0, 1, 1], [], []>} : vector<16x8xbf16>, vector<8x1800xbf16>, vector<16x1800xf32> -> vector<16x1800xf32>
    %35 = arith.addf %30, %34 : vector<16x1800xf32>
    %c0_41 = arith.constant 0 : index
    %c0_42 = arith.constant 0 : index
    %36 = vector.load %arg4[%c0_41, %c0_42] : memref<16x1800xf32, #tpu.memory_space<vmem>>, vector<16x1800xf32>
    tpu.vector_store %arg4[%c0_41, %c0_42], %35 {strides = array<i32>} : memref<16x1800xf32, #tpu.memory_space<vmem>>, vector<16x1800xf32>,
    %c0_43 = arith.constant 0 : index
    %c0_44 = arith.constant 0 : index
    %37 = vector.load %arg4[%c0_43, %c0_44] : memref<16x1800xf32, #tpu.memory_space<vmem>>, vector<16x1800xf32>
    %c5 = arith.constant 5 : index
    %c0_45 = arith.constant 0 : index
    %c0_46 = arith.constant 0 : index
    %38 = vector.load %arg2[%c5, %c0_45, %c0_46] : memref<33x16x8xbf16, #tpu.memory_space<vmem>>, vector<1x16x8xbf16>
    %39 = vector.shape_cast %38 : vector<1x16x8xbf16> to vector<16x8xbf16>
    %c0_47 = arith.constant 0 : index
    %c222 = arith.constant 222 : index
    %40 = vector.load %arg1[%c0_47, %c222] : memref<8x2234xbf16, #tpu.memory_space<vmem>>, vector<8x1800xbf16>
    %cst_48 = arith.constant dense<0.000000e+00> : vector<16x1800xf32>
    %41 = tpu.matmul %39, %40, %cst_48 {dimension_numbers = #tpu.dot_dimension_numbers<[1], [0], [0], [1], [0, 0, 1, 1], [], []>} : vector<16x8xbf16>, vector<8x1800xbf16>, vector<16x1800xf32> -> vector<16x1800xf32>
    %42 = arith.addf %37, %41 : vector<16x1800xf32>
    %c0_49 = arith.constant 0 : index
    %c0_50 = arith.constant 0 : index
    %43 = vector.load %arg4[%c0_49, %c0_50] : memref<16x1800xf32, #tpu.memory_space<vmem>>, vector<16x1800xf32>
    tpu.vector_store %arg4[%c0_49, %c0_50], %42 {strides = array<i32>} : memref<16x1800xf32, #tpu.memory_space<vmem>>, vector<16x1800xf32>,
    %c0_51 = arith.constant 0 : index
    %c0_52 = arith.constant 0 : index
    %44 = vector.load %arg4[%c0_51, %c0_52] : memref<16x1800xf32, #tpu.memory_space<vmem>>, vector<16x1800xf32>
    %c6 = arith.constant 6 : index
    %c0_53 = arith.constant 0 : index
    %c0_54 = arith.constant 0 : index
    %45 = vector.load %arg2[%c6, %c0_53, %c0_54] : memref<33x16x8xbf16, #tpu.memory_space<vmem>>, vector<1x16x8xbf16>
    %46 = vector.shape_cast %45 : vector<1x16x8xbf16> to vector<16x8xbf16>
    %c0_55 = arith.constant 0 : index
    %c362 = arith.constant 362 : index
    %47 = vector.load %arg1[%c0_55, %c362] : memref<8x2234xbf16, #tpu.memory_space<vmem>>, vector<8x1800xbf16>
    %cst_56 = arith.constant dense<0.000000e+00> : vector<16x1800xf32>
    %48 = tpu.matmul %46, %47, %cst_56 {dimension_numbers = #tpu.dot_dimension_numbers<[1], [0], [0], [1], [0, 0, 1, 1], [], []>} : vector<16x8xbf16>, vector<8x1800xbf16>, vector<16x1800xf32> -> vector<16x1800xf32>
    %49 = arith.addf %44, %48 : vector<16x1800xf32>
    %c0_57 = arith.constant 0 : index
    %c0_58 = arith.constant 0 : index
    %50 = vector.load %arg4[%c0_57, %c0_58] : memref<16x1800xf32, #tpu.memory_space<vmem>>, vector<16x1800xf32>
    tpu.vector_store %arg4[%c0_57, %c0_58], %49 {strides = array<i32>} : memref<16x1800xf32, #tpu.memory_space<vmem>>, vector<16x1800xf32>,
    %c0_59 = arith.constant 0 : index
    %c0_60 = arith.constant 0 : index
    %51 = vector.load %arg4[%c0_59, %c0_60] : memref<16x1800xf32, #tpu.memory_space<vmem>>, vector<16x1800xf32>
    %c7 = arith.constant 7 : index
    %c0_61 = arith.constant 0 : index
    %c0_62 = arith.constant 0 : index
    %52 = vector.load %arg2[%c7, %c0_61, %c0_62] : memref<33x16x8xbf16, #tpu.memory_space<vmem>>, vector<1x16x8xbf16>
    %53 = vector.shape_cast %52 : vector<1x16x8xbf16> to vector<16x8xbf16>
    %c0_63 = arith.constant 0 : index
    %c367 = arith.constant 367 : index
    %54 = vector.load %arg1[%c0_63, %c367] : memref<8x2234xbf16, #tpu.memory_space<vmem>>, vector<8x1800xbf16>
    %cst_64 = arith.constant dense<0.000000e+00> : vector<16x1800xf32>
    %55 = tpu.matmul %53, %54, %cst_64 {dimension_numbers = #tpu.dot_dimension_numbers<[1], [0], [0], [1], [0, 0, 1, 1], [], []>} : vector<16x8xbf16>, vector<8x1800xbf16>, vector<16x1800xf32> -> vector<16x1800xf32>
    %56 = arith.addf %51, %55 : vector<16x1800xf32>
    %c0_65 = arith.constant 0 : index
    %c0_66 = arith.constant 0 : index
    %57 = vector.load %arg4[%c0_65, %c0_66] : memref<16x1800xf32, #tpu.memory_space<vmem>>, vector<16x1800xf32>
    tpu.vector_store %arg4[%c0_65, %c0_66], %56 {strides = array<i32>} : memref<16x1800xf32, #tpu.memory_space<vmem>>, vector<16x1800xf32>,
    %c0_67 = arith.constant 0 : index
    %c0_68 = arith.constant 0 : index
    %58 = vector.load %arg4[%c0_67, %c0_68] : memref<16x1800xf32, #tpu.memory_space<vmem>>, vector<16x1800xf32>
    %c8 = arith.constant 8 : index
    %c0_69 = arith.constant 0 : index
    %c0_70 = arith.constant 0 : index
    %59 = vector.load %arg2[%c8, %c0_69, %c0_70] : memref<33x16x8xbf16, #tpu.memory_space<vmem>>, vector<1x16x8xbf16>
    %60 = vector.shape_cast %59 : vector<1x16x8xbf16> to vector<16x8xbf16>
    %c0_71 = arith.constant 0 : index
    %c372 = arith.constant 372 : index
    %61 = vector.load %arg1[%c0_71, %c372] : memref<8x2234xbf16, #tpu.memory_space<vmem>>, vector<8x1800xbf16>
    %cst_72 = arith.constant dense<0.000000e+00> : vector<16x1800xf32>
    %62 = tpu.matmul %60, %61, %cst_72 {dimension_numbers = #tpu.dot_dimension_numbers<[1], [0], [0], [1], [0, 0, 1, 1], [], []>} : vector<16x8xbf16>, vector<8x1800xbf16>, vector<16x1800xf32> -> vector<16x1800xf32>
    %63 = arith.addf %58, %62 : vector<16x1800xf32>
    %c0_73 = arith.constant 0 : index
    %c0_74 = arith.constant 0 : index
    %64 = vector.load %arg4[%c0_73, %c0_74] : memref<16x1800xf32, #tpu.memory_space<vmem>>, vector<16x1800xf32>
    tpu.vector_store %arg4[%c0_73, %c0_74], %63 {strides = array<i32>} : memref<16x1800xf32, #tpu.memory_space<vmem>>, vector<16x1800xf32>,
    %c0_75 = arith.constant 0 : index
    %c0_76 = arith.constant 0 : index
    %65 = vector.load %arg4[%c0_75, %c0_76] : memref<16x1800xf32, #tpu.memory_space<vmem>>, vector<16x1800xf32>
    %c9 = arith.constant 9 : index
    %c0_77 = arith.constant 0 : index
    %c0_78 = arith.constant 0 : index
    %66 = vector.load %arg2[%c9, %c0_77, %c0_78] : memref<33x16x8xbf16, #tpu.memory_space<vmem>>, vector<1x16x8xbf16>
    %67 = vector.shape_cast %66 : vector<1x16x8xbf16> to vector<16x8xbf16>
    %c0_79 = arith.constant 0 : index
    %c0_80 = arith.constant 0 : index
    %68 = vector.load %arg1[%c0_79, %c0_80] : memref<8x2234xbf16, #tpu.memory_space<vmem>>, vector<8x1800xbf16>
    %cst_81 = arith.constant dense<0.000000e+00> : vector<16x1800xf32>
    %69 = tpu.matmul %67, %68, %cst_81 {dimension_numbers = #tpu.dot_dimension_numbers<[1], [0], [0], [1], [0, 0, 1, 1], [], []>} : vector<16x8xbf16>, vector<8x1800xbf16>, vector<16x1800xf32> -> vector<16x1800xf32>
    %70 = arith.addf %65, %69 : vector<16x1800xf32>
    %c0_82 = arith.constant 0 : index
    %c0_83 = arith.constant 0 : index
    %71 = vector.load %arg4[%c0_82, %c0_83] : memref<16x1800xf32, #tpu.memory_space<vmem>>, vector<16x1800xf32>
    tpu.vector_store %arg4[%c0_82, %c0_83], %70 {strides = array<i32>} : memref<16x1800xf32, #tpu.memory_space<vmem>>, vector<16x1800xf32>,
    %c0_84 = arith.constant 0 : index
    %c0_85 = arith.constant 0 : index
    %72 = vector.load %arg4[%c0_84, %c0_85] : memref<16x1800xf32, #tpu.memory_space<vmem>>, vector<16x1800xf32>
    %c10 = arith.constant 10 : index
    %c0_86 = arith.constant 0 : index
    %c0_87 = arith.constant 0 : index
    %73 = vector.load %arg2[%c10, %c0_86, %c0_87] : memref<33x16x8xbf16, #tpu.memory_space<vmem>>, vector<1x16x8xbf16>
    %74 = vector.shape_cast %73 : vector<1x16x8xbf16> to vector<16x8xbf16>
    %c0_88 = arith.constant 0 : index
    %c7_89 = arith.constant 7 : index
    %75 = vector.load %arg1[%c0_88, %c7_89] : memref<8x2234xbf16, #tpu.memory_space<vmem>>, vector<8x1800xbf16>
    %cst_90 = arith.constant dense<0.000000e+00> : vector<16x1800xf32>
    %76 = tpu.matmul %74, %75, %cst_90 {dimension_numbers = #tpu.dot_dimension_numbers<[1], [0], [0], [1], [0, 0, 1, 1], [], []>} : vector<16x8xbf16>, vector<8x1800xbf16>, vector<16x1800xf32> -> vector<16x1800xf32>
    %77 = arith.addf %72, %76 : vector<16x1800xf32>
    %c0_91 = arith.constant 0 : index
    %c0_92 = arith.constant 0 : index
    %78 = vector.load %arg4[%c0_91, %c0_92] : memref<16x1800xf32, #tpu.memory_space<vmem>>, vector<16x1800xf32>
    tpu.vector_store %arg4[%c0_91, %c0_92], %77 {strides = array<i32>} : memref<16x1800xf32, #tpu.memory_space<vmem>>, vector<16x1800xf32>,
    %c0_93 = arith.constant 0 : index
    %c0_94 = arith.constant 0 : index
    %79 = vector.load %arg4[%c0_93, %c0_94] : memref<16x1800xf32, #tpu.memory_space<vmem>>, vector<16x1800xf32>
    %c11 = arith.constant 11 : index
    %c0_95 = arith.constant 0 : index
    %c0_96 = arith.constant 0 : index
    %80 = vector.load %arg2[%c11, %c0_95, %c0_96] : memref<33x16x8xbf16, #tpu.memory_space<vmem>>, vector<1x16x8xbf16>
    %81 = vector.shape_cast %80 : vector<1x16x8xbf16> to vector<16x8xbf16>
    %c0_97 = arith.constant 0 : index
    %c14 = arith.constant 14 : index
    %82 = vector.load %arg1[%c0_97, %c14] : memref<8x2234xbf16, #tpu.memory_space<vmem>>, vector<8x1800xbf16>
    %cst_98 = arith.constant dense<0.000000e+00> : vector<16x1800xf32>
    %83 = tpu.matmul %81, %82, %cst_98 {dimension_numbers = #tpu.dot_dimension_numbers<[1], [0], [0], [1], [0, 0, 1, 1], [], []>} : vector<16x8xbf16>, vector<8x1800xbf16>, vector<16x1800xf32> -> vector<16x1800xf32>
    %84 = arith.addf %79, %83 : vector<16x1800xf32>
    %c0_99 = arith.constant 0 : index
    %c0_100 = arith.constant 0 : index
    %85 = vector.load %arg4[%c0_99, %c0_100] : memref<16x1800xf32, #tpu.memory_space<vmem>>, vector<16x1800xf32>
    tpu.vector_store %arg4[%c0_99, %c0_100], %84 {strides = array<i32>} : memref<16x1800xf32, #tpu.memory_space<vmem>>, vector<16x1800xf32>,
    %c0_101 = arith.constant 0 : index
    %c0_102 = arith.constant 0 : index
    %86 = vector.load %arg4[%c0_101, %c0_102] : memref<16x1800xf32, #tpu.memory_space<vmem>>, vector<16x1800xf32>
    %c12 = arith.constant 12 : index
    %c0_103 = arith.constant 0 : index
    %c0_104 = arith.constant 0 : index
    %87 = vector.load %arg2[%c12, %c0_103, %c0_104] : memref<33x16x8xbf16, #tpu.memory_space<vmem>>, vector<1x16x8xbf16>
    %88 = vector.shape_cast %87 : vector<1x16x8xbf16> to vector<16x8xbf16>
    %c0_105 = arith.constant 0 : index
    %c210 = arith.constant 210 : index
    %89 = vector.load %arg1[%c0_105, %c210] : memref<8x2234xbf16, #tpu.memory_space<vmem>>, vector<8x1800xbf16>
    %cst_106 = arith.constant dense<0.000000e+00> : vector<16x1800xf32>
    %90 = tpu.matmul %88, %89, %cst_106 {dimension_numbers = #tpu.dot_dimension_numbers<[1], [0], [0], [1], [0, 0, 1, 1], [], []>} : vector<16x8xbf16>, vector<8x1800xbf16>, vector<16x1800xf32> -> vector<16x1800xf32>
    %91 = arith.addf %86, %90 : vector<16x1800xf32>
    %c0_107 = arith.constant 0 : index
    %c0_108 = arith.constant 0 : index
    %92 = vector.load %arg4[%c0_107, %c0_108] : memref<16x1800xf32, #tpu.memory_space<vmem>>, vector<16x1800xf32>
    tpu.vector_store %arg4[%c0_107, %c0_108], %91 {strides = array<i32>} : memref<16x1800xf32, #tpu.memory_space<vmem>>, vector<16x1800xf32>,
    %c0_109 = arith.constant 0 : index
    %c0_110 = arith.constant 0 : index
    %93 = vector.load %arg4[%c0_109, %c0_110] : memref<16x1800xf32, #tpu.memory_space<vmem>>, vector<16x1800xf32>
    %c13 = arith.constant 13 : index
    %c0_111 = arith.constant 0 : index
    %c0_112 = arith.constant 0 : index
    %94 = vector.load %arg2[%c13, %c0_111, %c0_112] : memref<33x16x8xbf16, #tpu.memory_space<vmem>>, vector<1x16x8xbf16>
    %95 = vector.shape_cast %94 : vector<1x16x8xbf16> to vector<16x8xbf16>
    %c0_113 = arith.constant 0 : index
    %c224 = arith.constant 224 : index
    %96 = vector.load %arg1[%c0_113, %c224] : memref<8x2234xbf16, #tpu.memory_space<vmem>>, vector<8x1800xbf16>
    %cst_114 = arith.constant dense<0.000000e+00> : vector<16x1800xf32>
    %97 = tpu.matmul %95, %96, %cst_114 {dimension_numbers = #tpu.dot_dimension_numbers<[1], [0], [0], [1], [0, 0, 1, 1], [], []>} : vector<16x8xbf16>, vector<8x1800xbf16>, vector<16x1800xf32> -> vector<16x1800xf32>
    %98 = arith.addf %93, %97 : vector<16x1800xf32>
    %c0_115 = arith.constant 0 : index
    %c0_116 = arith.constant 0 : index
    %99 = vector.load %arg4[%c0_115, %c0_116] : memref<16x1800xf32, #tpu.memory_space<vmem>>, vector<16x1800xf32>
    tpu.vector_store %arg4[%c0_115, %c0_116], %98 {strides = array<i32>} : memref<16x1800xf32, #tpu.memory_space<vmem>>, vector<16x1800xf32>,
    %c0_117 = arith.constant 0 : index
    %c0_118 = arith.constant 0 : index
    %100 = vector.load %arg4[%c0_117, %c0_118] : memref<16x1800xf32, #tpu.memory_space<vmem>>, vector<16x1800xf32>
    %c14_119 = arith.constant 14 : index
    %c0_120 = arith.constant 0 : index
    %c0_121 = arith.constant 0 : index
    %101 = vector.load %arg2[%c14_119, %c0_120, %c0_121] : memref<33x16x8xbf16, #tpu.memory_space<vmem>>, vector<1x16x8xbf16>
    %102 = vector.shape_cast %101 : vector<1x16x8xbf16> to vector<16x8xbf16>
    %c0_122 = arith.constant 0 : index
    %c420 = arith.constant 420 : index
    %103 = vector.load %arg1[%c0_122, %c420] : memref<8x2234xbf16, #tpu.memory_space<vmem>>, vector<8x1800xbf16>
    %cst_123 = arith.constant dense<0.000000e+00> : vector<16x1800xf32>
    %104 = tpu.matmul %102, %103, %cst_123 {dimension_numbers = #tpu.dot_dimension_numbers<[1], [0], [0], [1], [0, 0, 1, 1], [], []>} : vector<16x8xbf16>, vector<8x1800xbf16>, vector<16x1800xf32> -> vector<16x1800xf32>
    %105 = arith.addf %100, %104 : vector<16x1800xf32>
    %c0_124 = arith.constant 0 : index
    %c0_125 = arith.constant 0 : index
    %106 = vector.load %arg4[%c0_124, %c0_125] : memref<16x1800xf32, #tpu.memory_space<vmem>>, vector<16x1800xf32>
    tpu.vector_store %arg4[%c0_124, %c0_125], %105 {strides = array<i32>} : memref<16x1800xf32, #tpu.memory_space<vmem>>, vector<16x1800xf32>,
    %c0_126 = arith.constant 0 : index
    %c0_127 = arith.constant 0 : index
    %107 = vector.load %arg4[%c0_126, %c0_127] : memref<16x1800xf32, #tpu.memory_space<vmem>>, vector<16x1800xf32>
    %c15 = arith.constant 15 : index
    %c0_128 = arith.constant 0 : index
    %c0_129 = arith.constant 0 : index
    %108 = vector.load %arg2[%c15, %c0_128, %c0_129] : memref<33x16x8xbf16, #tpu.memory_space<vmem>>, vector<1x16x8xbf16>
    %109 = vector.shape_cast %108 : vector<1x16x8xbf16> to vector<16x8xbf16>
    %c0_130 = arith.constant 0 : index
    %c427 = arith.constant 427 : index
    %110 = vector.load %arg1[%c0_130, %c427] : memref<8x2234xbf16, #tpu.memory_space<vmem>>, vector<8x1800xbf16>
    %cst_131 = arith.constant dense<0.000000e+00> : vector<16x1800xf32>
    %111 = tpu.matmul %109, %110, %cst_131 {dimension_numbers = #tpu.dot_dimension_numbers<[1], [0], [0], [1], [0, 0, 1, 1], [], []>} : vector<16x8xbf16>, vector<8x1800xbf16>, vector<16x1800xf32> -> vector<16x1800xf32>
    %112 = arith.addf %107, %111 : vector<16x1800xf32>
    %c0_132 = arith.constant 0 : index
    %c0_133 = arith.constant 0 : index
    %113 = vector.load %arg4[%c0_132, %c0_133] : memref<16x1800xf32, #tpu.memory_space<vmem>>, vector<16x1800xf32>
    tpu.vector_store %arg4[%c0_132, %c0_133], %112 {strides = array<i32>} : memref<16x1800xf32, #tpu.memory_space<vmem>>, vector<16x1800xf32>,
    %c0_134 = arith.constant 0 : index
    %c0_135 = arith.constant 0 : index
    %114 = vector.load %arg4[%c0_134, %c0_135] : memref<16x1800xf32, #tpu.memory_space<vmem>>, vector<16x1800xf32>
    %c16 = arith.constant 16 : index
    %c0_136 = arith.constant 0 : index
    %c0_137 = arith.constant 0 : index
    %115 = vector.load %arg2[%c16, %c0_136, %c0_137] : memref<33x16x8xbf16, #tpu.memory_space<vmem>>, vector<1x16x8xbf16>
    %116 = vector.shape_cast %115 : vector<1x16x8xbf16> to vector<16x8xbf16>
    %c0_138 = arith.constant 0 : index
    %c434 = arith.constant 434 : index
    %117 = vector.load %arg1[%c0_138, %c434] : memref<8x2234xbf16, #tpu.memory_space<vmem>>, vector<8x1800xbf16>
    %cst_139 = arith.constant dense<0.000000e+00> : vector<16x1800xf32>
    %118 = tpu.matmul %116, %117, %cst_139 {dimension_numbers = #tpu.dot_dimension_numbers<[1], [0], [0], [1], [0, 0, 1, 1], [], []>} : vector<16x8xbf16>, vector<8x1800xbf16>, vector<16x1800xf32> -> vector<16x1800xf32>
    %119 = arith.addf %114, %118 : vector<16x1800xf32>
    %c0_140 = arith.constant 0 : index
    %c0_141 = arith.constant 0 : index
    %120 = vector.load %arg4[%c0_140, %c0_141] : memref<16x1800xf32, #tpu.memory_space<vmem>>, vector<16x1800xf32>
    tpu.vector_store %arg4[%c0_140, %c0_141], %119 {strides = array<i32>} : memref<16x1800xf32, #tpu.memory_space<vmem>>, vector<16x1800xf32>,
    %c0_142 = arith.constant 0 : index
    %c0_143 = arith.constant 0 : index
    %121 = vector.load %arg4[%c0_142, %c0_143] : memref<16x1800xf32, #tpu.memory_space<vmem>>, vector<16x1800xf32>
    %c17 = arith.constant 17 : index
    %c0_144 = arith.constant 0 : index
    %c0_145 = arith.constant 0 : index
    %122 = vector.load %arg2[%c17, %c0_144, %c0_145] : memref<33x16x8xbf16, #tpu.memory_space<vmem>>, vector<1x16x8xbf16>
    %123 = vector.shape_cast %122 : vector<1x16x8xbf16> to vector<16x8xbf16>
    %c0_146 = arith.constant 0 : index
    %c186 = arith.constant 186 : index
    %124 = vector.load %arg1[%c0_146, %c186] : memref<8x2234xbf16, #tpu.memory_space<vmem>>, vector<8x1800xbf16>
    %cst_147 = arith.constant dense<0.000000e+00> : vector<16x1800xf32>
    %125 = tpu.matmul %123, %124, %cst_147 {dimension_numbers = #tpu.dot_dimension_numbers<[1], [0], [0], [1], [0, 0, 1, 1], [], []>} : vector<16x8xbf16>, vector<8x1800xbf16>, vector<16x1800xf32> -> vector<16x1800xf32>
    %126 = arith.addf %121, %125 : vector<16x1800xf32>
    %c0_148 = arith.constant 0 : index
    %c0_149 = arith.constant 0 : index
    %127 = vector.load %arg4[%c0_148, %c0_149] : memref<16x1800xf32, #tpu.memory_space<vmem>>, vector<16x1800xf32>
    tpu.vector_store %arg4[%c0_148, %c0_149], %126 {strides = array<i32>} : memref<16x1800xf32, #tpu.memory_space<vmem>>, vector<16x1800xf32>,
    %c0_150 = arith.constant 0 : index
    %c0_151 = arith.constant 0 : index
    %128 = vector.load %arg4[%c0_150, %c0_151] : memref<16x1800xf32, #tpu.memory_space<vmem>>, vector<16x1800xf32>
    %c18 = arith.constant 18 : index
    %c0_152 = arith.constant 0 : index
    %c0_153 = arith.constant 0 : index
    %129 = vector.load %arg2[%c18, %c0_152, %c0_153] : memref<33x16x8xbf16, #tpu.memory_space<vmem>>, vector<1x16x8xbf16>
    %130 = vector.shape_cast %129 : vector<1x16x8xbf16> to vector<16x8xbf16>
    %c0_154 = arith.constant 0 : index
    %c187 = arith.constant 187 : index
    %131 = vector.load %arg1[%c0_154, %c187] : memref<8x2234xbf16, #tpu.memory_space<vmem>>, vector<8x1800xbf16>
    %cst_155 = arith.constant dense<0.000000e+00> : vector<16x1800xf32>
    %132 = tpu.matmul %130, %131, %cst_155 {dimension_numbers = #tpu.dot_dimension_numbers<[1], [0], [0], [1], [0, 0, 1, 1], [], []>} : vector<16x8xbf16>, vector<8x1800xbf16>, vector<16x1800xf32> -> vector<16x1800xf32>
    %133 = arith.addf %128, %132 : vector<16x1800xf32>
    %c0_156 = arith.constant 0 : index
    %c0_157 = arith.constant 0 : index
    %134 = vector.load %arg4[%c0_156, %c0_157] : memref<16x1800xf32, #tpu.memory_space<vmem>>, vector<16x1800xf32>
    tpu.vector_store %arg4[%c0_156, %c0_157], %133 {strides = array<i32>} : memref<16x1800xf32, #tpu.memory_space<vmem>>, vector<16x1800xf32>,
    %c0_158 = arith.constant 0 : index
    %c0_159 = arith.constant 0 : index
    %135 = vector.load %arg4[%c0_158, %c0_159] : memref<16x1800xf32, #tpu.memory_space<vmem>>, vector<16x1800xf32>
    %c19 = arith.constant 19 : index
    %c0_160 = arith.constant 0 : index
    %c0_161 = arith.constant 0 : index
    %136 = vector.load %arg2[%c19, %c0_160, %c0_161] : memref<33x16x8xbf16, #tpu.memory_space<vmem>>, vector<1x16x8xbf16>
    %137 = vector.shape_cast %136 : vector<1x16x8xbf16> to vector<16x8xbf16>
    %c0_162 = arith.constant 0 : index
    %c188 = arith.constant 188 : index
    %138 = vector.load %arg1[%c0_162, %c188] : memref<8x2234xbf16, #tpu.memory_space<vmem>>, vector<8x1800xbf16>
    %cst_163 = arith.constant dense<0.000000e+00> : vector<16x1800xf32>
    %139 = tpu.matmul %137, %138, %cst_163 {dimension_numbers = #tpu.dot_dimension_numbers<[1], [0], [0], [1], [0, 0, 1, 1], [], []>} : vector<16x8xbf16>, vector<8x1800xbf16>, vector<16x1800xf32> -> vector<16x1800xf32>
    %140 = arith.addf %135, %139 : vector<16x1800xf32>
    %c0_164 = arith.constant 0 : index
    %c0_165 = arith.constant 0 : index
    %141 = vector.load %arg4[%c0_164, %c0_165] : memref<16x1800xf32, #tpu.memory_space<vmem>>, vector<16x1800xf32>
    tpu.vector_store %arg4[%c0_164, %c0_165], %140 {strides = array<i32>} : memref<16x1800xf32, #tpu.memory_space<vmem>>, vector<16x1800xf32>,
    %c0_166 = arith.constant 0 : index
    %c0_167 = arith.constant 0 : index
    %142 = vector.load %arg4[%c0_166, %c0_167] : memref<16x1800xf32, #tpu.memory_space<vmem>>, vector<16x1800xf32>
    %c20 = arith.constant 20 : index
    %c0_168 = arith.constant 0 : index
    %c0_169 = arith.constant 0 : index
    %143 = vector.load %arg2[%c20, %c0_168, %c0_169] : memref<33x16x8xbf16, #tpu.memory_space<vmem>>, vector<1x16x8xbf16>
    %144 = vector.shape_cast %143 : vector<1x16x8xbf16> to vector<16x8xbf16>
    %c0_170 = arith.constant 0 : index
    %c216 = arith.constant 216 : index
    %145 = vector.load %arg1[%c0_170, %c216] : memref<8x2234xbf16, #tpu.memory_space<vmem>>, vector<8x1800xbf16>
    %cst_171 = arith.constant dense<0.000000e+00> : vector<16x1800xf32>
    %146 = tpu.matmul %144, %145, %cst_171 {dimension_numbers = #tpu.dot_dimension_numbers<[1], [0], [0], [1], [0, 0, 1, 1], [], []>} : vector<16x8xbf16>, vector<8x1800xbf16>, vector<16x1800xf32> -> vector<16x1800xf32>
    %147 = arith.addf %142, %146 : vector<16x1800xf32>
    %c0_172 = arith.constant 0 : index
    %c0_173 = arith.constant 0 : index
    %148 = vector.load %arg4[%c0_172, %c0_173] : memref<16x1800xf32, #tpu.memory_space<vmem>>, vector<16x1800xf32>
    tpu.vector_store %arg4[%c0_172, %c0_173], %147 {strides = array<i32>} : memref<16x1800xf32, #tpu.memory_space<vmem>>, vector<16x1800xf32>,
    %c0_174 = arith.constant 0 : index
    %c0_175 = arith.constant 0 : index
    %149 = vector.load %arg4[%c0_174, %c0_175] : memref<16x1800xf32, #tpu.memory_space<vmem>>, vector<16x1800xf32>
    %c21 = arith.constant 21 : index
    %c0_176 = arith.constant 0 : index
    %c0_177 = arith.constant 0 : index
    %150 = vector.load %arg2[%c21, %c0_176, %c0_177] : memref<33x16x8xbf16, #tpu.memory_space<vmem>>, vector<1x16x8xbf16>
    %151 = vector.shape_cast %150 : vector<1x16x8xbf16> to vector<16x8xbf16>
    %c0_178 = arith.constant 0 : index
    %c218 = arith.constant 218 : index
    %152 = vector.load %arg1[%c0_178, %c218] : memref<8x2234xbf16, #tpu.memory_space<vmem>>, vector<8x1800xbf16>
    %cst_179 = arith.constant dense<0.000000e+00> : vector<16x1800xf32>
    %153 = tpu.matmul %151, %152, %cst_179 {dimension_numbers = #tpu.dot_dimension_numbers<[1], [0], [0], [1], [0, 0, 1, 1], [], []>} : vector<16x8xbf16>, vector<8x1800xbf16>, vector<16x1800xf32> -> vector<16x1800xf32>
    %154 = arith.addf %149, %153 : vector<16x1800xf32>
    %c0_180 = arith.constant 0 : index
    %c0_181 = arith.constant 0 : index
    %155 = vector.load %arg4[%c0_180, %c0_181] : memref<16x1800xf32, #tpu.memory_space<vmem>>, vector<16x1800xf32>
    tpu.vector_store %arg4[%c0_180, %c0_181], %154 {strides = array<i32>} : memref<16x1800xf32, #tpu.memory_space<vmem>>, vector<16x1800xf32>,
    %c0_182 = arith.constant 0 : index
    %c0_183 = arith.constant 0 : index
    %156 = vector.load %arg4[%c0_182, %c0_183] : memref<16x1800xf32, #tpu.memory_space<vmem>>, vector<16x1800xf32>
    %c22 = arith.constant 22 : index
    %c0_184 = arith.constant 0 : index
    %c0_185 = arith.constant 0 : index
    %157 = vector.load %arg2[%c22, %c0_184, %c0_185] : memref<33x16x8xbf16, #tpu.memory_space<vmem>>, vector<1x16x8xbf16>
    %158 = vector.shape_cast %157 : vector<1x16x8xbf16> to vector<16x8xbf16>
    %c0_186 = arith.constant 0 : index
    %c246 = arith.constant 246 : index
    %159 = vector.load %arg1[%c0_186, %c246] : memref<8x2234xbf16, #tpu.memory_space<vmem>>, vector<8x1800xbf16>
    %cst_187 = arith.constant dense<0.000000e+00> : vector<16x1800xf32>
    %160 = tpu.matmul %158, %159, %cst_187 {dimension_numbers = #tpu.dot_dimension_numbers<[1], [0], [0], [1], [0, 0, 1, 1], [], []>} : vector<16x8xbf16>, vector<8x1800xbf16>, vector<16x1800xf32> -> vector<16x1800xf32>
    %161 = arith.addf %156, %160 : vector<16x1800xf32>
    %c0_188 = arith.constant 0 : index
    %c0_189 = arith.constant 0 : index
    %162 = vector.load %arg4[%c0_188, %c0_189] : memref<16x1800xf32, #tpu.memory_space<vmem>>, vector<16x1800xf32>
    tpu.vector_store %arg4[%c0_188, %c0_189], %161 {strides = array<i32>} : memref<16x1800xf32, #tpu.memory_space<vmem>>, vector<16x1800xf32>,
    %c0_190 = arith.constant 0 : index
    %c0_191 = arith.constant 0 : index
    %163 = vector.load %arg4[%c0_190, %c0_191] : memref<16x1800xf32, #tpu.memory_space<vmem>>, vector<16x1800xf32>
    %c23 = arith.constant 23 : index
    %c0_192 = arith.constant 0 : index
    %c0_193 = arith.constant 0 : index
    %164 = vector.load %arg2[%c23, %c0_192, %c0_193] : memref<33x16x8xbf16, #tpu.memory_space<vmem>>, vector<1x16x8xbf16>
    %165 = vector.shape_cast %164 : vector<1x16x8xbf16> to vector<16x8xbf16>
    %c0_194 = arith.constant 0 : index
    %c247 = arith.constant 247 : index
    %166 = vector.load %arg1[%c0_194, %c247] : memref<8x2234xbf16, #tpu.memory_space<vmem>>, vector<8x1800xbf16>
    %cst_195 = arith.constant dense<0.000000e+00> : vector<16x1800xf32>
    %167 = tpu.matmul %165, %166, %cst_195 {dimension_numbers = #tpu.dot_dimension_numbers<[1], [0], [0], [1], [0, 0, 1, 1], [], []>} : vector<16x8xbf16>, vector<8x1800xbf16>, vector<16x1800xf32> -> vector<16x1800xf32>
    %168 = arith.addf %163, %167 : vector<16x1800xf32>
    %c0_196 = arith.constant 0 : index
    %c0_197 = arith.constant 0 : index
    %169 = vector.load %arg4[%c0_196, %c0_197] : memref<16x1800xf32, #tpu.memory_space<vmem>>, vector<16x1800xf32>
    tpu.vector_store %arg4[%c0_196, %c0_197], %168 {strides = array<i32>} : memref<16x1800xf32, #tpu.memory_space<vmem>>, vector<16x1800xf32>,
    %c0_198 = arith.constant 0 : index
    %c0_199 = arith.constant 0 : index
    %170 = vector.load %arg4[%c0_198, %c0_199] : memref<16x1800xf32, #tpu.memory_space<vmem>>, vector<16x1800xf32>
    %c24 = arith.constant 24 : index
    %c0_200 = arith.constant 0 : index
    %c0_201 = arith.constant 0 : index
    %171 = vector.load %arg2[%c24, %c0_200, %c0_201] : memref<33x16x8xbf16, #tpu.memory_space<vmem>>, vector<1x16x8xbf16>
    %172 = vector.shape_cast %171 : vector<1x16x8xbf16> to vector<16x8xbf16>
    %c0_202 = arith.constant 0 : index
    %c248 = arith.constant 248 : index
    %173 = vector.load %arg1[%c0_202, %c248] : memref<8x2234xbf16, #tpu.memory_space<vmem>>, vector<8x1800xbf16>
    %cst_203 = arith.constant dense<0.000000e+00> : vector<16x1800xf32>
    %174 = tpu.matmul %172, %173, %cst_203 {dimension_numbers = #tpu.dot_dimension_numbers<[1], [0], [0], [1], [0, 0, 1, 1], [], []>} : vector<16x8xbf16>, vector<8x1800xbf16>, vector<16x1800xf32> -> vector<16x1800xf32>
    %175 = arith.addf %170, %174 : vector<16x1800xf32>
    %c0_204 = arith.constant 0 : index
    %c0_205 = arith.constant 0 : index
    %176 = vector.load %arg4[%c0_204, %c0_205] : memref<16x1800xf32, #tpu.memory_space<vmem>>, vector<16x1800xf32>
    tpu.vector_store %arg4[%c0_204, %c0_205], %175 {strides = array<i32>} : memref<16x1800xf32, #tpu.memory_space<vmem>>, vector<16x1800xf32>,
    %c0_206 = arith.constant 0 : index
    %c0_207 = arith.constant 0 : index
    %177 = vector.load %arg4[%c0_206, %c0_207] : memref<16x1800xf32, #tpu.memory_space<vmem>>, vector<16x1800xf32>
    %c25 = arith.constant 25 : index
    %c0_208 = arith.constant 0 : index
    %c0_209 = arith.constant 0 : index
    %178 = vector.load %arg2[%c25, %c0_208, %c0_209] : memref<33x16x8xbf16, #tpu.memory_space<vmem>>, vector<1x16x8xbf16>
    %179 = vector.shape_cast %178 : vector<1x16x8xbf16> to vector<16x8xbf16>
    %c0_210 = arith.constant 0 : index
    %c124 = arith.constant 124 : index
    %180 = vector.load %arg1[%c0_210, %c124] : memref<8x2234xbf16, #tpu.memory_space<vmem>>, vector<8x1800xbf16>
    %cst_211 = arith.constant dense<0.000000e+00> : vector<16x1800xf32>
    %181 = tpu.matmul %179, %180, %cst_211 {dimension_numbers = #tpu.dot_dimension_numbers<[1], [0], [0], [1], [0, 0, 1, 1], [], []>} : vector<16x8xbf16>, vector<8x1800xbf16>, vector<16x1800xf32> -> vector<16x1800xf32>
    %182 = arith.addf %177, %181 : vector<16x1800xf32>
    %c0_212 = arith.constant 0 : index
    %c0_213 = arith.constant 0 : index
    %183 = vector.load %arg4[%c0_212, %c0_213] : memref<16x1800xf32, #tpu.memory_space<vmem>>, vector<16x1800xf32>
    tpu.vector_store %arg4[%c0_212, %c0_213], %182 {strides = array<i32>} : memref<16x1800xf32, #tpu.memory_space<vmem>>, vector<16x1800xf32>,
    %c0_214 = arith.constant 0 : index
    %c0_215 = arith.constant 0 : index
    %184 = vector.load %arg4[%c0_214, %c0_215] : memref<16x1800xf32, #tpu.memory_space<vmem>>, vector<16x1800xf32>
    %c26 = arith.constant 26 : index
    %c0_216 = arith.constant 0 : index
    %c0_217 = arith.constant 0 : index
    %185 = vector.load %arg2[%c26, %c0_216, %c0_217] : memref<33x16x8xbf16, #tpu.memory_space<vmem>>, vector<1x16x8xbf16>
    %186 = vector.shape_cast %185 : vector<1x16x8xbf16> to vector<16x8xbf16>
    %c0_218 = arith.constant 0 : index
    %c127 = arith.constant 127 : index
    %187 = vector.load %arg1[%c0_218, %c127] : memref<8x2234xbf16, #tpu.memory_space<vmem>>, vector<8x1800xbf16>
    %cst_219 = arith.constant dense<0.000000e+00> : vector<16x1800xf32>
    %188 = tpu.matmul %186, %187, %cst_219 {dimension_numbers = #tpu.dot_dimension_numbers<[1], [0], [0], [1], [0, 0, 1, 1], [], []>} : vector<16x8xbf16>, vector<8x1800xbf16>, vector<16x1800xf32> -> vector<16x1800xf32>
    %189 = arith.addf %184, %188 : vector<16x1800xf32>
    %c0_220 = arith.constant 0 : index
    %c0_221 = arith.constant 0 : index
    %190 = vector.load %arg4[%c0_220, %c0_221] : memref<16x1800xf32, #tpu.memory_space<vmem>>, vector<16x1800xf32>
    tpu.vector_store %arg4[%c0_220, %c0_221], %189 {strides = array<i32>} : memref<16x1800xf32, #tpu.memory_space<vmem>>, vector<16x1800xf32>,
    %c0_222 = arith.constant 0 : index
    %c0_223 = arith.constant 0 : index
    %191 = vector.load %arg4[%c0_222, %c0_223] : memref<16x1800xf32, #tpu.memory_space<vmem>>, vector<16x1800xf32>
    %c27 = arith.constant 27 : index
    %c0_224 = arith.constant 0 : index
    %c0_225 = arith.constant 0 : index
    %192 = vector.load %arg2[%c27, %c0_224, %c0_225] : memref<33x16x8xbf16, #tpu.memory_space<vmem>>, vector<1x16x8xbf16>
    %193 = vector.shape_cast %192 : vector<1x16x8xbf16> to vector<16x8xbf16>
    %c0_226 = arith.constant 0 : index
    %c130 = arith.constant 130 : index
    %194 = vector.load %arg1[%c0_226, %c130] : memref<8x2234xbf16, #tpu.memory_space<vmem>>, vector<8x1800xbf16>
    %cst_227 = arith.constant dense<0.000000e+00> : vector<16x1800xf32>
    %195 = tpu.matmul %193, %194, %cst_227 {dimension_numbers = #tpu.dot_dimension_numbers<[1], [0], [0], [1], [0, 0, 1, 1], [], []>} : vector<16x8xbf16>, vector<8x1800xbf16>, vector<16x1800xf32> -> vector<16x1800xf32>
    %196 = arith.addf %191, %195 : vector<16x1800xf32>
    %c0_228 = arith.constant 0 : index
    %c0_229 = arith.constant 0 : index
    %197 = vector.load %arg4[%c0_228, %c0_229] : memref<16x1800xf32, #tpu.memory_space<vmem>>, vector<16x1800xf32>
    tpu.vector_store %arg4[%c0_228, %c0_229], %196 {strides = array<i32>} : memref<16x1800xf32, #tpu.memory_space<vmem>>, vector<16x1800xf32>,
    %c0_230 = arith.constant 0 : index
    %c0_231 = arith.constant 0 : index
    %198 = vector.load %arg4[%c0_230, %c0_231] : memref<16x1800xf32, #tpu.memory_space<vmem>>, vector<16x1800xf32>
    %c28 = arith.constant 28 : index
    %c0_232 = arith.constant 0 : index
    %c0_233 = arith.constant 0 : index
    %199 = vector.load %arg2[%c28, %c0_232, %c0_233] : memref<33x16x8xbf16, #tpu.memory_space<vmem>>, vector<1x16x8xbf16>
    %200 = vector.shape_cast %199 : vector<1x16x8xbf16> to vector<16x8xbf16>
    %c0_234 = arith.constant 0 : index
    %c214 = arith.constant 214 : index
    %201 = vector.load %arg1[%c0_234, %c214] : memref<8x2234xbf16, #tpu.memory_space<vmem>>, vector<8x1800xbf16>
    %cst_235 = arith.constant dense<0.000000e+00> : vector<16x1800xf32>
    %202 = tpu.matmul %200, %201, %cst_235 {dimension_numbers = #tpu.dot_dimension_numbers<[1], [0], [0], [1], [0, 0, 1, 1], [], []>} : vector<16x8xbf16>, vector<8x1800xbf16>, vector<16x1800xf32> -> vector<16x1800xf32>
    %203 = arith.addf %198, %202 : vector<16x1800xf32>
    %c0_236 = arith.constant 0 : index
    %c0_237 = arith.constant 0 : index
    %204 = vector.load %arg4[%c0_236, %c0_237] : memref<16x1800xf32, #tpu.memory_space<vmem>>, vector<16x1800xf32>
    tpu.vector_store %arg4[%c0_236, %c0_237], %203 {strides = array<i32>} : memref<16x1800xf32, #tpu.memory_space<vmem>>, vector<16x1800xf32>,
    %c0_238 = arith.constant 0 : index
    %c0_239 = arith.constant 0 : index
    %205 = vector.load %arg4[%c0_238, %c0_239] : memref<16x1800xf32, #tpu.memory_space<vmem>>, vector<16x1800xf32>
    %c29 = arith.constant 29 : index
    %c0_240 = arith.constant 0 : index
    %c0_241 = arith.constant 0 : index
    %206 = vector.load %arg2[%c29, %c0_240, %c0_241] : memref<33x16x8xbf16, #tpu.memory_space<vmem>>, vector<1x16x8xbf16>
    %207 = vector.shape_cast %206 : vector<1x16x8xbf16> to vector<16x8xbf16>
    %c0_242 = arith.constant 0 : index
    %c220 = arith.constant 220 : index
    %208 = vector.load %arg1[%c0_242, %c220] : memref<8x2234xbf16, #tpu.memory_space<vmem>>, vector<8x1800xbf16>
    %cst_243 = arith.constant dense<0.000000e+00> : vector<16x1800xf32>
    %209 = tpu.matmul %207, %208, %cst_243 {dimension_numbers = #tpu.dot_dimension_numbers<[1], [0], [0], [1], [0, 0, 1, 1], [], []>} : vector<16x8xbf16>, vector<8x1800xbf16>, vector<16x1800xf32> -> vector<16x1800xf32>
    %210 = arith.addf %205, %209 : vector<16x1800xf32>
    %c0_244 = arith.constant 0 : index
    %c0_245 = arith.constant 0 : index
    %211 = vector.load %arg4[%c0_244, %c0_245] : memref<16x1800xf32, #tpu.memory_space<vmem>>, vector<16x1800xf32>
    tpu.vector_store %arg4[%c0_244, %c0_245], %210 {strides = array<i32>} : memref<16x1800xf32, #tpu.memory_space<vmem>>, vector<16x1800xf32>,
    %c0_246 = arith.constant 0 : index
    %c0_247 = arith.constant 0 : index
    %212 = vector.load %arg4[%c0_246, %c0_247] : memref<16x1800xf32, #tpu.memory_space<vmem>>, vector<16x1800xf32>
    %c30 = arith.constant 30 : index
    %c0_248 = arith.constant 0 : index
    %c0_249 = arith.constant 0 : index
    %213 = vector.load %arg2[%c30, %c0_248, %c0_249] : memref<33x16x8xbf16, #tpu.memory_space<vmem>>, vector<1x16x8xbf16>
    %214 = vector.shape_cast %213 : vector<1x16x8xbf16> to vector<16x8xbf16>
    %c0_250 = arith.constant 0 : index
    %c304 = arith.constant 304 : index
    %215 = vector.load %arg1[%c0_250, %c304] : memref<8x2234xbf16, #tpu.memory_space<vmem>>, vector<8x1800xbf16>
    %cst_251 = arith.constant dense<0.000000e+00> : vector<16x1800xf32>
    %216 = tpu.matmul %214, %215, %cst_251 {dimension_numbers = #tpu.dot_dimension_numbers<[1], [0], [0], [1], [0, 0, 1, 1], [], []>} : vector<16x8xbf16>, vector<8x1800xbf16>, vector<16x1800xf32> -> vector<16x1800xf32>
    %217 = arith.addf %212, %216 : vector<16x1800xf32>
    %c0_252 = arith.constant 0 : index
    %c0_253 = arith.constant 0 : index
    %218 = vector.load %arg4[%c0_252, %c0_253] : memref<16x1800xf32, #tpu.memory_space<vmem>>, vector<16x1800xf32>
    tpu.vector_store %arg4[%c0_252, %c0_253], %217 {strides = array<i32>} : memref<16x1800xf32, #tpu.memory_space<vmem>>, vector<16x1800xf32>,
    %c0_254 = arith.constant 0 : index
    %c0_255 = arith.constant 0 : index
    %219 = vector.load %arg4[%c0_254, %c0_255] : memref<16x1800xf32, #tpu.memory_space<vmem>>, vector<16x1800xf32>
    %c31 = arith.constant 31 : index
    %c0_256 = arith.constant 0 : index
    %c0_257 = arith.constant 0 : index
    %220 = vector.load %arg2[%c31, %c0_256, %c0_257] : memref<33x16x8xbf16, #tpu.memory_space<vmem>>, vector<1x16x8xbf16>
    %221 = vector.shape_cast %220 : vector<1x16x8xbf16> to vector<16x8xbf16>
    %c0_258 = arith.constant 0 : index
    %c307 = arith.constant 307 : index
    %222 = vector.load %arg1[%c0_258, %c307] : memref<8x2234xbf16, #tpu.memory_space<vmem>>, vector<8x1800xbf16>
    %cst_259 = arith.constant dense<0.000000e+00> : vector<16x1800xf32>
    %223 = tpu.matmul %221, %222, %cst_259 {dimension_numbers = #tpu.dot_dimension_numbers<[1], [0], [0], [1], [0, 0, 1, 1], [], []>} : vector<16x8xbf16>, vector<8x1800xbf16>, vector<16x1800xf32> -> vector<16x1800xf32>
    %224 = arith.addf %219, %223 : vector<16x1800xf32>
    %c0_260 = arith.constant 0 : index
    %c0_261 = arith.constant 0 : index
    %225 = vector.load %arg4[%c0_260, %c0_261] : memref<16x1800xf32, #tpu.memory_space<vmem>>, vector<16x1800xf32>
    tpu.vector_store %arg4[%c0_260, %c0_261], %224 {strides = array<i32>} : memref<16x1800xf32, #tpu.memory_space<vmem>>, vector<16x1800xf32>,
    %c0_262 = arith.constant 0 : index
    %c0_263 = arith.constant 0 : index
    %226 = vector.load %arg4[%c0_262, %c0_263] : memref<16x1800xf32, #tpu.memory_space<vmem>>, vector<16x1800xf32>
    %c32 = arith.constant 32 : index
    %c0_264 = arith.constant 0 : index
    %c0_265 = arith.constant 0 : index
    %227 = vector.load %arg2[%c32, %c0_264, %c0_265] : memref<33x16x8xbf16, #tpu.memory_space<vmem>>, vector<1x16x8xbf16>
    %228 = vector.shape_cast %227 : vector<1x16x8xbf16> to vector<16x8xbf16>
    %c0_266 = arith.constant 0 : index
    %c310 = arith.constant 310 : index
    %229 = vector.load %arg1[%c0_266, %c310] : memref<8x2234xbf16, #tpu.memory_space<vmem>>, vector<8x1800xbf16>
    %cst_267 = arith.constant dense<0.000000e+00> : vector<16x1800xf32>
    %230 = tpu.matmul %228, %229, %cst_267 {dimension_numbers = #tpu.dot_dimension_numbers<[1], [0], [0], [1], [0, 0, 1, 1], [], []>} : vector<16x8xbf16>, vector<8x1800xbf16>, vector<16x1800xf32> -> vector<16x1800xf32>
    %231 = arith.addf %226, %230 : vector<16x1800xf32>
    %c0_268 = arith.constant 0 : index
    %c0_269 = arith.constant 0 : index
    %232 = vector.load %arg4[%c0_268, %c0_269] : memref<16x1800xf32, #tpu.memory_space<vmem>>, vector<16x1800xf32>
    tpu.vector_store %arg4[%c0_268, %c0_269], %231 {strides = array<i32>} : memref<16x1800xf32, #tpu.memory_space<vmem>>, vector<16x1800xf32>,
    return
  }
  func.func @transform_0(%arg0: i32) -> (i32, i32) {
    %c0_i32 = arith.constant 0 : i32
    %c0_i32_0 = arith.constant 0 : i32
    %c0_i32_1 = arith.constant 0 : i32
    return %c0_i32, %c0_i32_0 : i32, i32
  }
  func.func @transform_1(%arg0: i32) -> (i32, i32, i32) {
    %c0_i32 = arith.constant 0 : i32
    %c0_i32_0 = arith.constant 0 : i32
    %c0_i32_1 = arith.constant 0 : i32
    %c0_i32_2 = arith.constant 0 : i32
    return %c0_i32, %c0_i32_0, %c0_i32_1 : i32, i32, i32
  }
  func.func @transform_2(%arg0: i32) -> (i32, i32) {
    %c0_i32 = arith.constant 0 : i32
    %c0_i32_0 = arith.constant 0 : i32
    %c0_i32_1 = arith.constant 0 : i32
    return %c0_i32, %c0_i32_0 : i32, i32
  }
  func.func @transform_3(%arg0: i32) -> (i32, i32) {
    %c0_i32 = arith.constant 0 : i32
    %c0_i32_0 = arith.constant 0 : i32
    %c0_i32_1 = arith.constant 0 : i32
    return %c0_i32, %c0_i32_0 : i32, i32
  }
}

</mosaic_0001>

<bundles_post_ra>
// kernel: tpu_custom_call.1
= control target key start
LH: loop header
LB: loop body
LE: loop exit
PB: predicated region body
PF: predicated region fallthrough
CT: control target
= control target key end

     0   :  { %s20805_s16 = smov 66   ;;  %v28601_v7 = vmov 0   ;;  %s20807_s29 = smov 61   ;;  %s28591_s0 = inlined_call_operand.vmem [shape: bf16[8,2234], index: 0, kind: input, shape index: {}]   ;;  %s28592_s1 = inlined_call_operand.vmem [shape: bf16[33,16,8], index: 1, kind: input, shape index: {}]   ;;  %s28593_s2 = inlined_call_operand.vmem [shape: f32[16,1800], index: 2, kind: input, shape index: {}]   ;;  %s28594_s3 = inlined_call_operand.hbm [shape: f32[16,1800], index: 3, kind: output, shape index: {}]  }
   0x1   :  { %v110_v0 = vld [vmem:[%s28591_s0 + $0x8] sm:$0xff]  ;;  %v109_v1 = vld [vmem:[%s28591_s0] sm:$0xff]  ;;  %v111_v6 = vld [vmem:[%s28591_s0 + $0x10] sm:$0xff]  ;;  %286 = vmatprep.mubr.bf16.mxu0 %v28601_v7  ;;  %329 = vmatprep.mubr.bf16.mxu1 %v28601_v7 }
   0x2   :  { %v20869_v2 = vcombine.low %v110_v0, %v110_v0  ;;  %v19166_v3 = vcombine.low %v109_v1, %v109_v1  ;;  %v20871_v4 = vcombine.high %v110_v0, %v110_v0  ;;  %v19167_v5 = vcombine.high %v109_v1, %v109_v1  ;;  %v112_v10 = vld [vmem:[%s28591_s0 + $0x18] sm:$0xff]  ;;  %v113_v11 = vld [vmem:[%s28591_s0 + $0x20] sm:$0xff]  ;;  %v114_v14 = vld [vmem:[%s28591_s0 + $0x28] sm:$0xff] }
   0x3   :  { %v20884_v8 = vcombine.high %v111_v6, %v111_v6  ;;  %v20886_v9 = vcombine.low %v111_v6, %v111_v6  ;;  %v20898_v12 = vcombine.high %v112_v10, %v112_v10  ;;  %v20900_v13 = vcombine.low %v112_v10, %v112_v10  ;;  %v115_v17 = vld [vmem:[%s28591_s0 + $0x30] sm:$0xff]  ;;  %v20570_v22 = vld [vmem:[%s28591_s0 + $0x38] ss:$0 sps:$4 sm:$0xff]  }
   0x4   :  { %164 = vrot.lane.b32.xlu1 %v20869_v2, %s20805_s16  ;;  %160 = vrot.lane.b32.xlu0 %v19166_v3, %s20805_s16  ;;  %v20909_v15 = vcombine.high %v113_v11, %v113_v11  ;;  %v20911_v16 = vcombine.low %v113_v11, %v113_v11  ;;  %v20920_v18 = vcombine.high %v114_v14, %v114_v14 }
   0x5   :  { %v20922_v19 = vcombine.low %v114_v14, %v114_v14  ;;  %v20928_v20 = vcombine.high %v115_v17, %v115_v17  ;;  %v20930_v21 = vcombine.low %v115_v17, %v115_v17 }
   0x8   :  { %166 = vrot.lane.b32.xlu1 %v20871_v4, %s20805_s16  ;;  %162 = vrot.lane.b32.xlu0 %v19167_v5, %s20805_s16 }
   0xc   :  { %170 = vrot.lane.b32.xlu1 %v20884_v8, %s20805_s16  ;;  %168 = vrot.lane.b32.xlu0 %v20886_v9, %s20805_s16 }
  0x10   :  { %174 = vrot.lane.b32.xlu1 %v20898_v12, %s20805_s16  ;;  %172 = vrot.lane.b32.xlu0 %v20900_v13, %s20805_s16 }
  0x14   :  { %178 = vrot.lane.b32.xlu1 %v20909_v15, %s20805_s16  ;;  %176 = vrot.lane.b32.xlu0 %v20911_v16, %s20805_s16 }
  0x18   :  { %182 = vrot.lane.b32.xlu1 %v20920_v18, %s20805_s16  ;;  %180 = vrot.lane.b32.xlu0 %v20922_v19, %s20805_s16 }
  0x1c   :  { %186 = vrot.lane.b32.xlu1 %v20928_v20, %s20805_s16  ;;  %184 = vrot.lane.b32.xlu0 %v20930_v21, %s20805_s16 }
  0x20   :  { %740 = vrot.lane.b32.xlu1 %v19166_v3, %s20807_s29  ;;  %188 = vrot.lane.b32.xlu0 %v20570_v22, %s20805_s16 }
  0x24   :  { %744 = vrot.lane.b32.xlu1 %v20869_v2, %s20807_s29  ;;  %742 = vrot.lane.b32.xlu0 %v19167_v5, %s20807_s29 }
  0x28   :  { %748 = vrot.lane.b32.xlu1 %v20886_v9, %s20807_s29  ;;  %746 = vrot.lane.b32.xlu0 %v20871_v4, %s20807_s29 }
  0x2c   :  { %752 = vrot.lane.b32.xlu1 %v20900_v13, %s20807_s29  ;;  %750 = vrot.lane.b32.xlu0 %v20884_v8, %s20807_s29 }
  0x2d   :  { %8 = vsyncpa [#allocation3], 0  ;;  %v20571_v23 = vld [vmem:[%s28591_s0 + $0x38] ss:$0 sps:$4 sm:$0xff]   ;;  %s20808_s5 = smov 56   ;;  %v1847_v24 = vld [vmem:[%s28591_s0 + $0x4] sm:$0xff] }
  0x2e   :  { %v20572_v25 = vld [vmem:[%s28591_s0 + $0x38] ss:$0 sps:$4 sm:$0xff]   ;;  %v20973_v26 = vcombine.low %v1847_v24, %v1847_v24  ;;  %v1848_v27 = vld [vmem:[%s28591_s0 + $0xc] sm:$0xff]  ;;  %s20809_s12 = smov 44   ;;  %v20982_v29 = vcombine.high %v1847_v24, %v1847_v24  ;;  %v1850_v33 = vld [vmem:[%s28591_s0 + $0x1c] sm:$0xff]  ;;  %vm190_vm0 = vcmask 539648  }
  0x2f   :  { %v20980_v28 = vcombine.low %v1848_v27, %v1848_v27  ;;  %v1849_v30 = vld [vmem:[%s28591_s0 + $0x14] sm:$0xff]  ;;  %v20993_v32 = vcombine.high %v1848_v27, %v1848_v27  ;;  %v21002_v34 = vcombine.low %v1850_v33, %v1850_v33  ;;  %v1851_v36 = vld [vmem:[%s28591_s0 + $0x24] sm:$0xff]  ;;  %v21015_v38 = vcombine.high %v1850_v33, %v1850_v33  ;;  %v1852_v39 = vld [vmem:[%s28591_s0 + $0x2c] sm:$0xff]  ;;  %s20810_s25 = smov 39   ;;  %s20813_s30 = smov 34  }
  0x30   :  { %756 = vrot.lane.b32.xlu1 %v20911_v16, %s20807_s29  ;;  %754 = vrot.lane.b32.xlu0 %v20898_v12, %s20807_s29  ;;  %v20991_v31 = vcombine.low %v1849_v30, %v1849_v30  ;;  %v21004_v35 = vcombine.high %v1849_v30, %v1849_v30  ;;  %v21013_v37 = vcombine.low %v1851_v36, %v1851_v36  ;;  %v1853_v42 = vld [vmem:[%s28591_s0 + $0x34] sm:$0xff]  ;;  %v20586_v45 = vld [vmem:[%s28591_s0 + $0x3c] ss:$0 sps:$4 sm:$0xff]   ;;  %vm208_vm1 = vcmask 1043456   ;;  %s20814_s8 = smov 22   ;;  %s20815_s21 = smov 17  }
  0x31   :  { %v21024_v40 = vcombine.low %v1852_v39, %v1852_v39  ;;  %v21026_v41 = vcombine.high %v1851_v36, %v1851_v36  ;;  %v21035_v43 = vcombine.low %v1853_v42, %v1853_v42  ;;  %v21037_v44 = vcombine.high %v1852_v39, %v1852_v39  ;;  %v21060_v54 = vld [vmem:[%s28592_s1] sm:$0xff]   ;;  %s20816_s9 = smov 12   ;;  %s20817_s16 = smov 121  }
  0x32   :  { %v21046_v46 = vcombine.high %v1853_v42, %v1853_v42  ;;  %vm60_vm2 = vcmask 64512   ;;  %vm770_vm3 = vcmask 498688   ;;  %vm20812_vm4 = vmmov 0   ;;  %s20818_s23 = smov 114   ;;  %s20819_s15 = smov 46  }
  0x33   :  { %vm1349_vm5 = vcmask 457728   ;;  %vm1928_vm6 = vcmask 359424   ;;  %vm2507_vm7 = vcmask 318464   ;;  %vm3086_vm8 = vcmask 277504   ;;  %s20820_s17 = smov 32   ;;  %s20821_s11 = smov 92  }
  0x34   :  { %760 = vrot.lane.b32.xlu1 %v20922_v19, %s20807_s29  ;;  %758 = vrot.lane.b32.xlu0 %v20909_v15, %s20807_s29  ;;  %vm3665_vm9 = vcmask 179200   ;;  %vm4244_vm10 = vcmask 138240   ;;  %vm4823_vm11 = vcmask 97280   ;;  %vm5936_vm12 = vcmask 990208   ;;  %s20823_s10 = smov 78   ;;  %s20825_s24 = smov 69  }
  0x35   :  { %vm6515_vm13 = vcmask 932864   ;;  %vm7094_vm14 = vcmask 375808   ;;  %vm7673_vm15 = vcmask 261120   ;;  %s20827_s18 = smov 40   ;;  %s20832_s14 = smov 4  }
  0x38   :  { %764 = vrot.lane.b32.xlu1 %v20930_v21, %s20807_s29  ;;  %762 = vrot.lane.b32.xlu0 %v20920_v18, %s20807_s29 }
  0x3c   :  { %768 = vrot.lane.b32.xlu1 %v20571_v23, %s20807_s29  ;;  %766 = vrot.lane.b32.xlu0 %v20928_v20, %s20807_s29  ;;  %s20836_s29 = smov 36  }
  0x40   :  { %1319 = vrot.lane.b32.xlu0 %v19166_v3, %s20808_s5  ;;  %1321 = vrot.lane.b32.xlu1 %v19167_v5, %s20808_s5 }
  0x44   :  { %1323 = vrot.lane.b32.xlu0 %v20869_v2, %s20808_s5  ;;  %1325 = vrot.lane.b32.xlu1 %v20871_v4, %s20808_s5 }
  0x48   :  { %1327 = vrot.lane.b32.xlu0 %v20886_v9, %s20808_s5  ;;  %1329 = vrot.lane.b32.xlu1 %v20884_v8, %s20808_s5 }
  0x4c   :  { %1331 = vrot.lane.b32.xlu0 %v20900_v13, %s20808_s5  ;;  %1333 = vrot.lane.b32.xlu1 %v20898_v12, %s20808_s5 }
  0x50   :  { %1335 = vrot.lane.b32.xlu0 %v20911_v16, %s20808_s5  ;;  %1337 = vrot.lane.b32.xlu1 %v20909_v15, %s20808_s5 }
  0x54   :  { %1339 = vrot.lane.b32.xlu0 %v20922_v19, %s20808_s5  ;;  %1341 = vrot.lane.b32.xlu1 %v20920_v18, %s20808_s5 }
  0x58   :  { %1343 = vrot.lane.b32.xlu0 %v20930_v21, %s20808_s5  ;;  %1345 = vrot.lane.b32.xlu1 %v20928_v20, %s20808_s5 }
  0x5c   :  { %1347 = vrot.lane.b32.xlu0 %v20572_v25, %s20808_s5  ;;  %1898 = vrot.lane.b32.xlu1 %v20973_v26, %s20809_s12 }
  0x60   :  { %1902 = vrot.lane.b32.xlu1 %v20980_v28, %s20809_s12  ;;  %1900 = vrot.lane.b32.xlu0 %v20982_v29, %s20809_s12 }
  0x64   :  { %1906 = vrot.lane.b32.xlu1 %v20991_v31, %s20809_s12  ;;  %1904 = vrot.lane.b32.xlu0 %v20993_v32, %s20809_s12 }
  0x68   :  { %1910 = vrot.lane.b32.xlu1 %v21002_v34, %s20809_s12  ;;  %1908 = vrot.lane.b32.xlu0 %v21004_v35, %s20809_s12 }
  0x6c   :  { %1914 = vrot.lane.b32.xlu1 %v21013_v37, %s20809_s12  ;;  %1912 = vrot.lane.b32.xlu0 %v21015_v38, %s20809_s12 }
  0x70   :  { %1918 = vrot.lane.b32.xlu1 %v21024_v40, %s20809_s12  ;;  %1916 = vrot.lane.b32.xlu0 %v21026_v41, %s20809_s12 }
  0x74   :  { %1922 = vrot.lane.b32.xlu1 %v21035_v43, %s20809_s12  ;;  %1920 = vrot.lane.b32.xlu0 %v21037_v44, %s20809_s12 }
  0x76   :  { %v165_v47 = vpop.permute.xlu1 %164  ;;  %v161_v48 = vpop.permute.xlu0 %160 }
  0x78   :  { %1926 = vrot.lane.b32.xlu1 %v20586_v45, %s20809_s12  ;;  %1924 = vrot.lane.b32.xlu0 %v21046_v46, %s20809_s12  ;;  %v28595_v45 = vmov 0.0  }
  0x7a   :  { %v167_v49 = vpop.permute.xlu1 %166  ;;  %v163_v50 = vpop.permute.xlu0 %162 }
  0x7b   :  { %v192_v51 = vsel %vm190_vm0, %v163_v50, %v165_v47  ;;  %v191_v52 = vsel %vm190_vm0, %v161_v48, %v163_v50  ;;  %v193_v55 = vsel %vm190_vm0, %v165_v47, %v167_v49 }
  0x7c   :  { %19181 = vmatprep.subr.msk.bf16.mxu0 %vm208_vm1, %v192_v51  ;;  %v210_v53 = vsel %vm208_vm1, %v191_v52, 0  ;;  %2477 = vrot.lane.b32.xlu0 %v20973_v26, %s20810_s25  ;;  %v216_v59 = vsel %vm208_vm1, %v193_v55, 0  ;;  %v20589_v52 = vld [vmem:[%s28591_s0 + $0x3c] ss:$0 sps:$4 sm:$0xff]  }
  0x7d   :  { %269 = vmatpush1.bf16.msra.mxu0 %v210_v53  ;;  %2479 = vrot.lane.b32.xlu1 %v20982_v29, %s20810_s25 }
  0x7e   :  { %v171_v56 = vpop.permute.xlu1 %170  ;;  %v169_v57 = vpop.permute.xlu0 %168 }
  0x7f   :  { %v194_v58 = vsel %vm190_vm0, %v167_v49, %v169_v57  ;;  %v195_v60 = vsel %vm190_vm0, %v169_v57, %v171_v56 }
  0x80   :  { %19182 = vmatmul.mubr.msk.bf16.vlgmr.msra.gmra.mxu0 %vm60_vm2, %v21060_v54  ;;  %19183 = vmatprep.subr.msk.bf16.mxu1 %vm208_vm1, %v194_v58  ;;  %v222_v0 = vsel %vm208_vm1, %v195_v60, 0 }
  0x81   :  { %312 = vmatpush1.bf16.msra.mxu1 %v216_v59  ;;  %2481 = vrot.lane.b32.xlu0 %v20980_v28, %s20810_s25 }
  0x82   :  { %v175_v61 = vpop.permute.xlu1 %174  ;;  %v173_v62 = vpop.permute.xlu0 %172  ;;  %372 = vmatprep.mubr.bf16.mxu0 %v28601_v7  ;;  %2483 = vrot.lane.b32.xlu1 %v20993_v32, %s20810_s25 }
  0x83   :  { %v196_v63 = vsel %vm190_vm0, %v171_v56, %v173_v62  ;;  %v197_v1 = vsel %vm190_vm0, %v173_v62, %v175_v61  ;;  %v21155_v62 = vld [vmem:[%s28592_s1 + $0x8] sm:$0xff]  }
  0x84   :  { %19184 = vmatmul.mubr.msk.bf16.vlgmr.msra.gmra.mxu1 %vm60_vm2, %v21060_v54  ;;  %19185 = vmatprep.subr.msk.bf16.mxu0 %vm208_vm1, %v196_v63  ;;  %v228_v10 = vsel %vm208_vm1, %v197_v1, 0 }
  0x85   :  { %355 = vmatpush1.bf16.msra.mxu0 %v222_v0  ;;  %2485 = vrot.lane.b32.xlu0 %v20991_v31, %s20810_s25 }
  0x86   :  { %v179_v3 = vpop.permute.xlu1 %178  ;;  %v177_v5 = vpop.permute.xlu0 %176  ;;  %415 = vmatprep.mubr.bf16.mxu1 %v28601_v7  ;;  %2487 = vrot.lane.b32.xlu1 %v21004_v35, %s20810_s25 }
  0x87   :  { %v198_v6 = vsel %vm190_vm0, %v175_v61, %v177_v5  ;;  %v199_v11 = vsel %vm190_vm0, %v177_v5, %v179_v3 }
  0x88   :  { %19186 = vmatmul.mubr.msk.bf16.vlgmr.msra.gmra.mxu0 %vm60_vm2, %v21060_v54  ;;  %19187 = vmatprep.subr.msk.bf16.mxu1 %vm208_vm1, %v198_v6  ;;  %v234_v23 = vsel %vm208_vm1, %v199_v11, 0 }
  0x89   :  { %398 = vmatpush1.bf16.msra.mxu1 %v228_v10  ;;  %2489 = vrot.lane.b32.xlu0 %v21002_v34, %s20810_s25 }
  0x8a   :  { %v183_v14 = vpop.permute.xlu1 %182  ;;  %v181_v17 = vpop.permute.xlu0 %180  ;;  %458 = vmatprep.mubr.bf16.mxu0 %v28601_v7  ;;  %2491 = vrot.lane.b32.xlu1 %v21015_v38, %s20810_s25 }
  0x8b   :  { %v200_v22 = vsel %vm190_vm0, %v179_v3, %v181_v17  ;;  %v201_v24 = vsel %vm190_vm0, %v181_v17, %v183_v14 }
  0x8c   :  { %19188 = vmatmul.mubr.msk.bf16.vlgmr.msra.gmra.mxu1 %vm60_vm2, %v21060_v54  ;;  %19189 = vmatprep.subr.msk.bf16.mxu0 %vm208_vm1, %v200_v22  ;;  %v240_v33 = vsel %vm208_vm1, %v201_v24, 0 }
  0x8d   :  { %441 = vmatpush1.bf16.msra.mxu0 %v234_v23  ;;  %2493 = vrot.lane.b32.xlu0 %v21013_v37, %s20810_s25 }
  0x8e   :  { %v187_v25 = vpop.permute.xlu1 %186  ;;  %v185_v27 = vpop.permute.xlu0 %184  ;;  %501 = vmatprep.mubr.bf16.mxu1 %v28601_v7  ;;  %2495 = vrot.lane.b32.xlu1 %v21026_v41, %s20810_s25 }
  0x8f   :  { %v202_v30 = vsel %vm190_vm0, %v183_v14, %v185_v27  ;;  %v203_v36 = vsel %vm190_vm0, %v185_v27, %v187_v25 }
  0x90   :  { %19190 = vmatmul.mubr.msk.bf16.vlgmr.msra.gmra.mxu0 %vm60_vm2, %v21060_v54  ;;  %19191 = vmatprep.subr.msk.bf16.mxu1 %vm208_vm1, %v202_v30  ;;  %v246_v49 = vsel %vm208_vm1, %v203_v36, 0  ;;  %v20591_v36 = vld [vmem:[%s28591_s0 + $0x3c] ss:$0 sps:$4 sm:$0xff]  }
  0x91   :  { %484 = vmatpush1.bf16.msra.mxu1 %v240_v33  ;;  %2497 = vrot.lane.b32.xlu0 %v21024_v40, %s20810_s25 }
  0x92   :  { %v741_v39 = vpop.permute.xlu1 %740  ;;  %v189_v42 = vpop.permute.xlu0 %188  ;;  %20320 = vmatprep.subr.bf16.mxu1 %v28595_v45  ;;  %544 = vmatprep.mubr.bf16.mxu0 %v28601_v7 }
  0x93   :  { %v204_v47 = vsel %vm190_vm0, %v187_v25, %v189_v42  ;;  %v252_v48 = vsel %vm208_vm1, %v189_v42, 0  ;;  %2499 = vrot.lane.b32.xlu1 %v21037_v44, %s20810_s25  ;;  %vm8252_vm0 = vcmask 752640  }
  0x94   :  { %19192 = vmatmul.mubr.msk.bf16.vlgmr.msra.gmra.mxu1 %vm60_vm2, %v21060_v54  ;;  %19193 = vmatprep.subr.msk.bf16.mxu0 %vm208_vm1, %v204_v47 }
  0x95   :  { %527 = vmatpush1.bf16.msra.mxu0 %v246_v49  ;;  %20321 = vmatpush3.bf16.msra.mxu1 %v252_v48 }
  0x96   :  { %v745_v50 = vpop.permute.xlu1 %744  ;;  %v743_v51 = vpop.permute.xlu0 %742  ;;  %2501 = vrot.lane.b32.xlu0 %v21035_v43, %s20810_s25  ;;  %20322 = vmatprep.mubr.msk.bf16.mxu1 %vm20812_vm4, %v28595_v45 }
  0x97   :  { %v771_v53 = vsel %vm770_vm3, %v741_v39, %v743_v51  ;;  %v772_v55 = vsel %vm770_vm3, %v743_v51, %v745_v50  ;;  %2503 = vrot.lane.b32.xlu1 %v21046_v46, %s20810_s25 }
  0x98   :  { %19194 = vmatmul.mubr.msk.bf16.vlgmr.msra.gmra.mxu0 %vm60_vm2, %v21060_v54  ;;  %19214 = vmatprep.subr.msk.bf16.mxu0 %vm208_vm1, %v772_v55  ;;  %v789_v56 = vsel %vm208_vm1, %v771_v53, 0 }
  0x99   :  { %848 = vmatpush1.bf16.msra.mxu0 %v789_v56  ;;  %865 = vmatprep.mubr.bf16.mxu0 %v28601_v7 }
  0x9a   :  { %v749_v57 = vpop.permute.xlu1 %748  ;;  %v747_v58 = vpop.permute.xlu0 %746  ;;  %2505 = vrot.lane.b32.xlu0 %v20589_v52, %s20810_s25  ;;  %v21250_v52 = vld [vmem:[%s28592_s1 + $0x10] sm:$0xff]   ;;  %s20828_s25 = smov 38  }
  0x9b   :  { %v773_v59 = vsel %vm770_vm3, %v745_v50, %v747_v58  ;;  %v774_v60 = vsel %vm770_vm3, %v747_v58, %v749_v57  ;;  %3056 = vrot.lane.b32.xlu1 %v20973_v26, %s20813_s30 }
  0x9c   :  { %20323 = vmatmul.mubr.msk.bf16.vlgmr.msra.gmra.mxu1 %vm60_vm2, %v21060_v54  ;;  %19216 = vmatprep.subr.msk.bf16.mxu1 %vm208_vm1, %v774_v60  ;;  %v795_v61 = vsel %vm208_vm1, %v773_v59, 0 }
  0x9d   :  { %891 = vmatpush1.bf16.msra.mxu1 %v795_v61  ;;  %908 = vmatprep.mubr.bf16.mxu1 %v28601_v7 }
  0x9e   :  { %v753_v63 = vpop.permute.xlu1 %752  ;;  %v751_v0 = vpop.permute.xlu0 %750  ;;  %3058 = vrot.lane.b32.xlu0 %v20982_v29, %s20813_s30 }
  0x9f   :  { %v775_v26 = vsel %vm770_vm3, %v749_v57, %v751_v0  ;;  %v776_v54 = vsel %vm770_vm3, %v751_v0, %v753_v63  ;;  %3060 = vrot.lane.b32.xlu1 %v20980_v28, %s20813_s30 }
  0xa0   :  { %19215 = vmatmul.mubr.msk.bf16.vlgmr.msra.gmra.mxu0 %vm60_vm2, %v21155_v62  ;;  %19218 = vmatprep.subr.msk.bf16.mxu0 %vm208_vm1, %v776_v54  ;;  %v801_v1 = vsel %vm208_vm1, %v775_v26, 0 }
  0xa1   :  { %934 = vmatpush1.bf16.msra.mxu0 %v801_v1  ;;  %951 = vmatprep.mubr.bf16.mxu0 %v28601_v7 }
  0xa2   :  { %v757_v3 = vpop.permute.xlu1 %756  ;;  %v755_v5 = vpop.permute.xlu0 %754  ;;  %3062 = vrot.lane.b32.xlu0 %v20993_v32, %s20813_s30 }
  0xa3   :  { %v777_v29 = vsel %vm770_vm3, %v753_v63, %v755_v5  ;;  %v778_v6 = vsel %vm770_vm3, %v755_v5, %v757_v3  ;;  %3064 = vrot.lane.b32.xlu1 %v20991_v31, %s20813_s30 }
  0xa4   :  { %19217 = vmatmul.mubr.msk.bf16.vlgmr.msra.gmra.mxu1 %vm60_vm2, %v21155_v62  ;;  %19220 = vmatprep.subr.msk.bf16.mxu1 %vm208_vm1, %v778_v6  ;;  %v807_v28 = vsel %vm208_vm1, %v777_v29, 0 }
  0xa5   :  { %977 = vmatpush1.bf16.msra.mxu1 %v807_v28  ;;  %994 = vmatprep.mubr.bf16.mxu1 %v28601_v7 }
  0xa6   :  { %v761_v10 = vpop.permute.xlu1 %760  ;;  %v759_v11 = vpop.permute.xlu0 %758  ;;  %3066 = vrot.lane.b32.xlu0 %v21004_v35, %s20813_s30 }
  0xa7   :  { %v779_v32 = vsel %vm770_vm3, %v757_v3, %v759_v11  ;;  %v780_v14 = vsel %vm770_vm3, %v759_v11, %v761_v10  ;;  %3068 = vrot.lane.b32.xlu1 %v21002_v34, %s20813_s30 }
  0xa8   :  { %19219 = vmatmul.mubr.msk.bf16.vlgmr.msra.gmra.mxu0 %vm60_vm2, %v21155_v62  ;;  %19222 = vmatprep.subr.msk.bf16.mxu0 %vm208_vm1, %v780_v14  ;;  %v813_v31 = vsel %vm208_vm1, %v779_v32, 0 }
  0xa9   :  { %1020 = vmatpush1.bf16.msra.mxu0 %v813_v31  ;;  %1037 = vmatprep.mubr.bf16.mxu0 %v28601_v7  ;;  %v4164_v31 = vld [vmem:[%s28591_s0 + $0x10] sm:$0xff] }
  0xaa   :  { %v765_v17 = vpop.permute.xlu1 %764  ;;  %v763_v22 = vpop.permute.xlu0 %762  ;;  %3070 = vrot.lane.b32.xlu0 %v21015_v38, %s20813_s30 }
  0xab   :  { %v781_v35 = vsel %vm770_vm3, %v761_v10, %v763_v22  ;;  %v782_v23 = vsel %vm770_vm3, %v763_v22, %v765_v17  ;;  %3072 = vrot.lane.b32.xlu1 %v21013_v37, %s20813_s30 }
  0xac   :  { %19221 = vmatmul.mubr.msk.bf16.vlgmr.msra.gmra.mxu1 %vm60_vm2, %v21155_v62  ;;  %19224 = vmatprep.subr.msk.bf16.mxu1 %vm208_vm1, %v782_v23  ;;  %v819_v34 = vsel %vm208_vm1, %v781_v35, 0 }
  0xad   :  { %1063 = vmatpush1.bf16.msra.mxu1 %v819_v34  ;;  %1080 = vmatprep.mubr.bf16.mxu1 %v28601_v7 }
  0xae   :  { %v769_v24 = vpop.permute.xlu1 %768  ;;  %v767_v25 = vpop.permute.xlu0 %766  ;;  %3074 = vrot.lane.b32.xlu0 %v21026_v41, %s20813_s30  ;;  %20326 = vmatprep.subr.bf16.mxu1 %v28595_v45 }
  0xaf   :  { %v783_v38 = vsel %vm770_vm3, %v765_v17, %v767_v25  ;;  %v784_v37 = vsel %vm770_vm3, %v767_v25, %v769_v24  ;;  %3076 = vrot.lane.b32.xlu1 %v21024_v40, %s20813_s30  ;;  %v831_v33 = vsel %vm208_vm1, %v769_v24, 0  ;;  %v30_v17 = vld [vmem:[%s28593_s2 + $0x70] sm:$0xff]  ;;  %vm8831_vm3 = vcmask 695296  }
  0xb0   :  { %19223 = vmatmul.mubr.msk.bf16.vlgmr.msra.gmra.mxu0 %vm60_vm2, %v21155_v62  ;;  %19226 = vmatprep.subr.msk.bf16.mxu0 %vm208_vm1, %v784_v37  ;;  %v825_v27 = vsel %vm208_vm1, %v783_v38, 0  ;;  %61 = vst.msk [vmem:[#allocation2 + $0x70] sm:$0xff] %vm60_vm2, %v30_v17  ;;  %v21350_v38 = vcombine.low %v4164_v31, %v4164_v31  ;;  %v4165_v37 = vld [vmem:[%s28591_s0 + $0x18] sm:$0xff] }
  0xb1   :  { %1106 = vmatpush1.bf16.msra.mxu0 %v825_v27  ;;  %1123 = vmatprep.mubr.bf16.mxu0 %v28601_v7  ;;  %v45_v27 = vld [vmem:[%s28593_s2 + $0xe8] sm:$0xff] }
  0xb2   :  { %v1320_v41 = vpop.permute.xlu0 %1319  ;;  %v1322_v30 = vpop.permute.xlu1 %1321  ;;  %3078 = vrot.lane.b32.xlu0 %v21037_v44, %s20813_s30  ;;  %76 = vst.msk [vmem:[#allocation2 + $0xe8] sm:$0xff] %vm60_vm2, %v45_v27 }
  0xb3   :  { %v1350_v40 = vsel %vm1349_vm5, %v1320_v41, %v1322_v30  ;;  %3080 = vrot.lane.b32.xlu1 %v21035_v43, %s20813_s30 }
  0xb4   :  { %19225 = vmatmul.mubr.msk.bf16.vlgmr.msra.gmra.mxu1 %vm60_vm2, %v21155_v62  ;;  %v1368_v42 = vsel %vm208_vm1, %v1350_v40, 0  ;;  %v21366_v40 = vcombine.high %v4164_v31, %v4164_v31 }
  0xb5   :  { %20327 = vmatpush3.bf16.msra.mxu1 %v831_v33  ;;  %20328 = vmatprep.mubr.msk.bf16.mxu1 %vm20812_vm4, %v28595_v45 }
  0xb6   :  { %v1324_v39 = vpop.permute.xlu0 %1323  ;;  %v1326_v44 = vpop.permute.xlu1 %1325  ;;  %3082 = vrot.lane.b32.xlu0 %v21046_v46, %s20813_s30 }
  0xb7   :  { %v1351_v43 = vsel %vm1349_vm5, %v1322_v30, %v1324_v39  ;;  %v1352_v47 = vsel %vm1349_vm5, %v1324_v39, %v1326_v44  ;;  %3084 = vrot.lane.b32.xlu1 %v20591_v36, %s20813_s30  ;;  %s20833_s30 = smov 1  }
  0xb8   :  { %19227 = vmatmul.mubr.msk.bf16.vlgmr.msra.gmra.mxu0 %vm60_vm2, %v21155_v62  ;;  %19247 = vmatprep.subr.msk.bf16.mxu0 %vm208_vm1, %v1351_v43  ;;  %v1374_v49 = vsel %vm208_vm1, %v1352_v47, 0  ;;  %v4166_v43 = vld [vmem:[%s28591_s0 + $0x20] sm:$0xff] }
  0xb9   :  { %1427 = vmatpush1.bf16.msra.mxu0 %v1368_v42  ;;  %1444 = vmatprep.mubr.bf16.mxu0 %v28601_v7  ;;  %v21372_v42 = vcombine.low %v4165_v37, %v4165_v37 }
  0xba   :  { %v1328_v48 = vpop.permute.xlu0 %1327  ;;  %v1330_v50 = vpop.permute.xlu1 %1329  ;;  %3635 = vrot.lane.b32.xlu0 %v20869_v2, %s20814_s8 }
  0xbb   :  { %v1353_v46 = vsel %vm1349_vm5, %v1326_v44, %v1328_v48  ;;  %v1354_v51 = vsel %vm1349_vm5, %v1328_v48, %v1330_v50  ;;  %3637 = vrot.lane.b32.xlu1 %v20871_v4, %s20814_s8  ;;  %v21379_v44 = vld [vmem:[%s28592_s1 + $0x18] sm:$0xff]  }
  0xbc   :  { %20329 = vmatmul.mubr.msk.bf16.vlgmr.msra.gmra.mxu1 %vm60_vm2, %v21155_v62  ;;  %19249 = vmatprep.subr.msk.bf16.mxu1 %vm208_vm1, %v1353_v46  ;;  %v1380_v53 = vsel %vm208_vm1, %v1354_v51, 0 }
  0xbd   :  { %1470 = vmatpush1.bf16.msra.mxu1 %v1374_v49  ;;  %1487 = vmatprep.mubr.bf16.mxu1 %v28601_v7 }
  0xbe   :  { %v1332_v2 = vpop.permute.xlu0 %1331  ;;  %v1334_v55 = vpop.permute.xlu1 %1333  ;;  %3639 = vrot.lane.b32.xlu0 %v20886_v9, %s20814_s8 }
  0xbf   :  { %v1355_v4 = vsel %vm1349_vm5, %v1330_v50, %v1332_v2  ;;  %v1356_v56 = vsel %vm1349_vm5, %v1332_v2, %v1334_v55  ;;  %3641 = vrot.lane.b32.xlu1 %v20884_v8, %s20814_s8  ;;  %v21389_v50 = vcombine.high %v4165_v37, %v4165_v37  ;;  %v4167_v2 = vld [vmem:[%s28591_s0 + $0x28] sm:$0xff]  ;;  %v21495_v37 = vld [vmem:[%s28592_s1 + $0x20] sm:$0xff]  }
  0xc0   :  { %19248 = vmatmul.mubr.msk.bf16.vlgmr.msra.gmra.mxu0 %vm60_vm2, %v21250_v52  ;;  %19251 = vmatprep.subr.msk.bf16.mxu0 %vm208_vm1, %v1355_v4  ;;  %v1386_v58 = vsel %vm208_vm1, %v1356_v56, 0  ;;  %v21407_v56 = vcombine.high %v4166_v43, %v4166_v43 }
  0xc1   :  { %1513 = vmatpush1.bf16.msra.mxu0 %v1380_v53  ;;  %1530 = vmatprep.mubr.bf16.mxu0 %v28601_v7 }
  0xc2   :  { %v1336_v57 = vpop.permute.xlu0 %1335  ;;  %v1338_v59 = vpop.permute.xlu1 %1337  ;;  %3643 = vrot.lane.b32.xlu0 %v20900_v13, %s20814_s8 }
  0xc3   :  { %v1357_v9 = vsel %vm1349_vm5, %v1334_v55, %v1336_v57  ;;  %v1358_v60 = vsel %vm1349_vm5, %v1336_v57, %v1338_v59  ;;  %3645 = vrot.lane.b32.xlu1 %v20898_v12, %s20814_s8 }
  0xc4   :  { %19250 = vmatmul.mubr.msk.bf16.vlgmr.msra.gmra.mxu1 %vm60_vm2, %v21250_v52  ;;  %19253 = vmatprep.subr.msk.bf16.mxu1 %vm208_vm1, %v1357_v9  ;;  %v1392_v61 = vsel %vm208_vm1, %v1358_v60, 0  ;;  %v4168_v9 = vld [vmem:[%s28591_s0 + $0x30] sm:$0xff] }
  0xc5   :  { %1556 = vmatpush1.bf16.msra.mxu1 %v1386_v58  ;;  %1573 = vmatprep.mubr.bf16.mxu1 %v28601_v7 }
  0xc6   :  { %v1340_v8 = vpop.permute.xlu0 %1339  ;;  %v1342_v62 = vpop.permute.xlu1 %1341  ;;  %3647 = vrot.lane.b32.xlu0 %v20911_v16, %s20814_s8 }
  0xc7   :  { %v1359_v13 = vsel %vm1349_vm5, %v1338_v59, %v1340_v8  ;;  %v1360_v63 = vsel %vm1349_vm5, %v1340_v8, %v1342_v62  ;;  %3649 = vrot.lane.b32.xlu1 %v20909_v15, %s20814_s8  ;;  %v3590_v15 = vld [vmem:[%s28591_s0 + $0x38] sm:$0xff]  ;;  %v21413_v59 = vcombine.low %v4167_v2, %v4167_v2 }
  0xc8   :  { %19252 = vmatmul.mubr.msk.bf16.vlgmr.msra.gmra.mxu0 %vm60_vm2, %v21250_v52  ;;  %19255 = vmatprep.subr.msk.bf16.mxu0 %vm208_vm1, %v1359_v13  ;;  %v1398_v0 = vsel %vm208_vm1, %v1360_v63, 0  ;;  %v21309_v29 = vcombine.high %v3590_v15, %v3590_v15 }
  0xc9   :  { %1599 = vmatpush1.bf16.msra.mxu0 %v1392_v61  ;;  %1616 = vmatprep.mubr.bf16.mxu0 %v28601_v7 }
  0xca   :  { %v1344_v12 = vpop.permute.xlu0 %1343  ;;  %v1346_v26 = vpop.permute.xlu1 %1345  ;;  %3651 = vrot.lane.b32.xlu0 %v20922_v19, %s20814_s8 }
  0xcb   :  { %v1361_v16 = vsel %vm1349_vm5, %v1342_v62, %v1344_v12  ;;  %v1362_v54 = vsel %vm1349_vm5, %v1344_v12, %v1346_v26  ;;  %3653 = vrot.lane.b32.xlu1 %v20920_v18, %s20814_s8  ;;  %v21304_v18 = vcombine.low %v3590_v15, %v3590_v15  ;;  %v21425_v62 = vcombine.high %v4167_v2, %v4167_v2 }
  0xcc   :  { %19254 = vmatmul.mubr.msk.bf16.vlgmr.msra.gmra.mxu1 %vm60_vm2, %v21250_v52  ;;  %19257 = vmatprep.subr.msk.bf16.mxu1 %vm208_vm1, %v1361_v16  ;;  %v1404_v1 = vsel %vm208_vm1, %v1362_v54, 0  ;;  %v21431_v12 = vcombine.low %v4168_v9, %v4168_v9  ;;  %v21440_v54 = vcombine.high %v4168_v9, %v4168_v9 }
  0xcd   :  { %1642 = vmatpush1.bf16.msra.mxu1 %v1398_v0  ;;  %1659 = vmatprep.mubr.bf16.mxu1 %v28601_v7 }
  0xce   :  { %v1348_v19 = vpop.permute.xlu0 %1347  ;;  %v1899_v3 = vpop.permute.xlu1 %1898  ;;  %3655 = vrot.lane.b32.xlu0 %v20930_v21, %s20814_s8  ;;  %20332 = vmatprep.subr.bf16.mxu1 %v28595_v45  ;;  %v4163_v21 = vld [vmem:[%s28591_s0 + $0x8] sm:$0xff] }
  0xcf   :  { %v1363_v5 = vsel %vm1349_vm5, %v1346_v26, %v1348_v19  ;;  %3657 = vrot.lane.b32.xlu1 %v20928_v20, %s20814_s8  ;;  %v1410_v10 = vsel %vm208_vm1, %v1348_v19, 0  ;;  %v20595_v20 = vld [vmem:[%s28591_s0 + $0x40] ss:$0 sps:$4 sm:$0xff]   ;;  %v21328_v14 = vcombine.low %v4163_v21, %v4163_v21  ;;  %v21344_v34 = vcombine.high %v4163_v21, %v4163_v21 }
  0xd0   :  { %19256 = vmatmul.mubr.msk.bf16.vlgmr.msra.gmra.mxu0 %vm60_vm2, %v21250_v52  ;;  %19259 = vmatprep.subr.msk.bf16.mxu0 %vm208_vm1, %v1363_v5  ;;  %v20609_v21 = vld [vmem:[%s28591_s0 + $0x40] ss:$0 sps:$4 sm:$0xff]   ;;  %vm9410_vm5 = vcmask 637952  }
  0xd1   :  { %1685 = vmatpush1.bf16.msra.mxu0 %v1404_v1  ;;  %1702 = vmatprep.mubr.bf16.mxu0 %v28601_v7 }
  0xd2   :  { %v1903_v6 = vpop.permute.xlu1 %1902  ;;  %v1901_v28 = vpop.permute.xlu0 %1900  ;;  %3659 = vrot.lane.b32.xlu0 %v21304_v18, %s20814_s8 }
  0xd3   :  { %v1929_v11 = vsel %vm1928_vm6, %v1899_v3, %v1901_v28  ;;  %v1930_v32 = vsel %vm1928_vm6, %v1901_v28, %v1903_v6  ;;  %3661 = vrot.lane.b32.xlu1 %v21309_v29, %s20814_s8 }
  0xd4   :  { %19258 = vmatmul.mubr.msk.bf16.vlgmr.msra.gmra.mxu1 %vm60_vm2, %v21250_v52  ;;  %19280 = vmatprep.subr.msk.bf16.mxu0 %vm208_vm1, %v1930_v32  ;;  %v1947_v22 = vsel %vm208_vm1, %v1929_v11, 0 }
  0xd5   :  { %20333 = vmatpush3.bf16.msra.mxu1 %v1410_v10  ;;  %20334 = vmatprep.mubr.msk.bf16.mxu1 %vm20812_vm4, %v28595_v45 }
  0xd6   :  { %v1907_v35 = vpop.permute.xlu1 %1906  ;;  %v1905_v23 = vpop.permute.xlu0 %1904  ;;  %3663 = vrot.lane.b32.xlu0 %v20595_v20, %s20814_s8 }
  0xd7   :  { %v1931_v24 = vsel %vm1928_vm6, %v1903_v6, %v1905_v23  ;;  %v1932_v25 = vsel %vm1928_vm6, %v1905_v23, %v1907_v35  ;;  %4214 = vrot.lane.b32.xlu1 %v21328_v14, %s20815_s21 }
  0xd8   :  { %19260 = vmatmul.mubr.msk.bf16.vlgmr.msra.gmra.mxu0 %vm60_vm2, %v21250_v52  ;;  %19282 = vmatprep.subr.msk.bf16.mxu1 %vm208_vm1, %v1932_v25  ;;  %v1953_v41 = vsel %vm208_vm1, %v1931_v24, 0 }
  0xd9   :  { %2006 = vmatpush1.bf16.msra.mxu0 %v1947_v22  ;;  %2023 = vmatprep.mubr.bf16.mxu0 %v28601_v7 }
  0xda   :  { %v1911_v30 = vpop.permute.xlu1 %1910  ;;  %v1909_v33 = vpop.permute.xlu0 %1908  ;;  %4216 = vrot.lane.b32.xlu0 %v21344_v34, %s20815_s21 }
  0xdb   :  { %v1933_v36 = vsel %vm1928_vm6, %v1907_v35, %v1909_v33  ;;  %v1934_v39 = vsel %vm1928_vm6, %v1909_v33, %v1911_v30  ;;  %4218 = vrot.lane.b32.xlu1 %v21350_v38, %s20815_s21 }
  0xdc   :  { %20335 = vmatmul.mubr.msk.bf16.vlgmr.msra.gmra.mxu1 %vm60_vm2, %v21250_v52  ;;  %19284 = vmatprep.subr.msk.bf16.mxu0 %vm208_vm1, %v1934_v39  ;;  %v1959_v47 = vsel %vm208_vm1, %v1933_v36, 0  ;;  %v21395_v52 = vcombine.low %v4166_v43, %v4166_v43 }
  0xdd   :  { %2049 = vmatpush1.bf16.msra.mxu1 %v1953_v41  ;;  %2066 = vmatprep.mubr.bf16.mxu1 %v28601_v7 }
  0xde   :  { %v1915_v48 = vpop.permute.xlu1 %1914  ;;  %v1913_v49 = vpop.permute.xlu0 %1912  ;;  %4220 = vrot.lane.b32.xlu0 %v21366_v40, %s20815_s21 }
  0xdf   :  { %v1935_v46 = vsel %vm1928_vm6, %v1911_v30, %v1913_v49  ;;  %v1936_v51 = vsel %vm1928_vm6, %v1913_v49, %v1915_v48  ;;  %4222 = vrot.lane.b32.xlu1 %v21372_v42, %s20815_s21 }
  0xe0   :  { %19281 = vmatmul.mubr.msk.bf16.vlgmr.msra.gmra.mxu0 %vm60_vm2, %v21379_v44  ;;  %19286 = vmatprep.subr.msk.bf16.mxu1 %vm208_vm1, %v1936_v51  ;;  %v1965_v53 = vsel %vm208_vm1, %v1935_v46, 0 }
  0xe1   :  { %2092 = vmatpush1.bf16.msra.mxu0 %v1959_v47  ;;  %2109 = vmatprep.mubr.bf16.mxu0 %v28601_v7 }
  0xe2   :  { %v1919_v55 = vpop.permute.xlu1 %1918  ;;  %v1917_v4 = vpop.permute.xlu0 %1916  ;;  %4224 = vrot.lane.b32.xlu0 %v21389_v50, %s20815_s21 }
  0xe3   :  { %v1937_v57 = vsel %vm1928_vm6, %v1915_v48, %v1917_v4  ;;  %v1938_v58 = vsel %vm1928_vm6, %v1917_v4, %v1919_v55  ;;  %4226 = vrot.lane.b32.xlu1 %v21395_v52, %s20815_s21 }
  0xe4   :  { %19283 = vmatmul.mubr.msk.bf16.vlgmr.msra.gmra.mxu1 %vm60_vm2, %v21379_v44  ;;  %19288 = vmatprep.subr.msk.bf16.mxu0 %vm208_vm1, %v1938_v58  ;;  %v1971_v60 = vsel %vm208_vm1, %v1937_v57, 0 }
  0xe5   :  { %2135 = vmatpush1.bf16.msra.mxu1 %v1965_v53  ;;  %2152 = vmatprep.mubr.bf16.mxu1 %v28601_v7 }
  0xe6   :  { %v1923_v8 = vpop.permute.xlu1 %1922  ;;  %v1921_v61 = vpop.permute.xlu0 %1920  ;;  %4228 = vrot.lane.b32.xlu0 %v21407_v56, %s20815_s21 }
  0xe7   :  { %v1939_v13 = vsel %vm1928_vm6, %v1919_v55, %v1921_v61  ;;  %v1940_v63 = vsel %vm1928_vm6, %v1921_v61, %v1923_v8  ;;  %4230 = vrot.lane.b32.xlu1 %v21413_v59, %s20815_s21  ;;  %v5855_v61 = vld [vmem:[%s28591_s0] sm:$0xff] }
  0xe8   :  { %19285 = vmatmul.mubr.msk.bf16.vlgmr.msra.gmra.mxu0 %vm60_vm2, %v21379_v44  ;;  %19290 = vmatprep.subr.msk.bf16.mxu1 %vm208_vm1, %v1940_v63  ;;  %v1977_v0 = vsel %vm208_vm1, %v1939_v13, 0  ;;  %v20611_v63 = vld [vmem:[%s28591_s0 + $0x40] ss:$0 sps:$4 sm:$0xff]  }
  0xe9   :  { %2178 = vmatpush1.bf16.msra.mxu0 %v1971_v60  ;;  %2195 = vmatprep.mubr.bf16.mxu0 %v28601_v7 }
  0xea   :  { %v1927_v26 = vpop.permute.xlu1 %1926  ;;  %v1925_v16 = vpop.permute.xlu0 %1924  ;;  %4232 = vrot.lane.b32.xlu0 %v21425_v62, %s20815_s21 }
  0xeb   :  { %v1941_v15 = vsel %vm1928_vm6, %v1923_v8, %v1925_v16  ;;  %v1942_v19 = vsel %vm1928_vm6, %v1925_v16, %v1927_v26  ;;  %4234 = vrot.lane.b32.xlu1 %v21431_v12, %s20815_s21  ;;  %v1989_v6 = vsel %vm208_vm1, %v1927_v26, 0  ;;  %v21558_v26 = vcombine.low %v5855_v61, %v5855_v61 }
  0xec   :  { %19287 = vmatmul.mubr.msk.bf16.vlgmr.msra.gmra.mxu1 %vm60_vm2, %v21379_v44  ;;  %19292 = vmatprep.subr.msk.bf16.mxu0 %vm208_vm1, %v1942_v19  ;;  %v1983_v1 = vsel %vm208_vm1, %v1941_v15, 0  ;;  %v21566_v19 = vcombine.high %v5855_v61, %v5855_v61  ;;  %v6437_v61 = vld [vmem:[%s28591_s0 + $0x18] sm:$0xff]  ;;  %vm9989_vm6 = vcmask 572416  }
  0xed   :  { %2221 = vmatpush1.bf16.msra.mxu1 %v1977_v0  ;;  %2238 = vmatprep.mubr.bf16.mxu1 %v28601_v7 }
  0xee   :  { %v2478_v3 = vpop.permute.xlu0 %2477  ;;  %20338 = vmatprep.subr.bf16.mxu1 %v28595_v45  ;;  %4236 = vrot.lane.b32.xlu0 %v21440_v54, %s20815_s21 }
  0xef   :  { %v2480_v5 = vpop.permute.xlu1 %2479  ;;  %4238 = vrot.lane.b32.xlu1 %v21304_v18, %s20815_s21 }
  0xf0   :  { %19289 = vmatmul.mubr.msk.bf16.vlgmr.msra.gmra.mxu0 %vm60_vm2, %v21379_v44  ;;  %v2508_v28 = vsel %vm2507_vm7, %v2478_v3, %v2480_v5 }
  0xf1   :  { %2264 = vmatpush1.bf16.msra.mxu0 %v1983_v1  ;;  %2281 = vmatprep.mubr.bf16.mxu0 %v28601_v7  ;;  %v2526_v32 = vsel %vm208_vm1, %v2508_v28, 0 }
  0xf2   :  { %4240 = vrot.lane.b32.xlu0 %v21309_v29, %s20815_s21 }
  0xf3   :  { %v2482_v10 = vpop.permute.xlu0 %2481  ;;  %4242 = vrot.lane.b32.xlu1 %v20609_v21, %s20815_s21 }
  0xf4   :  { %19291 = vmatmul.mubr.msk.bf16.vlgmr.msra.gmra.mxu1 %vm60_vm2, %v21379_v44  ;;  %v2509_v20 = vsel %vm2507_vm7, %v2480_v5, %v2482_v10  ;;  %v2484_v11 = vpop.permute.xlu1 %2483 }
  0xf5   :  { %20339 = vmatpush3.bf16.msra.mxu1 %v1989_v6  ;;  %19313 = vmatprep.subr.msk.bf16.mxu0 %vm208_vm1, %v2509_v20  ;;  %v2510_v31 = vsel %vm2507_vm7, %v2482_v10, %v2484_v11 }
  0xf6   :  { %20340 = vmatprep.mubr.msk.bf16.mxu1 %vm20812_vm4, %v28595_v45  ;;  %4793 = vrot.lane.b32.xlu0 %v21328_v14, %s20816_s9  ;;  %v2532_v23 = vsel %vm208_vm1, %v2510_v31, 0 }
  0xf7   :  { %v2486_v17 = vpop.permute.xlu0 %2485  ;;  %4795 = vrot.lane.b32.xlu1 %v21344_v34, %s20816_s9 }
  0xf8   :  { %19293 = vmatmul.mubr.msk.bf16.vlgmr.msra.gmra.mxu0 %vm60_vm2, %v21379_v44  ;;  %v2511_v22 = vsel %vm2507_vm7, %v2484_v11, %v2486_v17  ;;  %v2488_v35 = vpop.permute.xlu1 %2487 }
  0xf9   :  { %2585 = vmatpush1.bf16.msra.mxu0 %v2526_v32  ;;  %19315 = vmatprep.subr.msk.bf16.mxu1 %vm208_vm1, %v2511_v22  ;;  %v2512_v24 = vsel %vm2507_vm7, %v2486_v17, %v2488_v35 }
  0xfa   :  { %2602 = vmatprep.mubr.bf16.mxu0 %v28601_v7  ;;  %4797 = vrot.lane.b32.xlu0 %v21350_v38, %s20816_s9  ;;  %v2538_v30 = vsel %vm208_vm1, %v2512_v24, 0 }
  0xfb   :  { %v2490_v25 = vpop.permute.xlu0 %2489  ;;  %4799 = vrot.lane.b32.xlu1 %v21366_v40, %s20816_s9 }
  0xfc   :  { %20341 = vmatmul.mubr.msk.bf16.vlgmr.msra.gmra.mxu1 %vm60_vm2, %v21379_v44  ;;  %v2513_v27 = vsel %vm2507_vm7, %v2488_v35, %v2490_v25  ;;  %v2492_v41 = vpop.permute.xlu1 %2491 }
  0xfd   :  { %2628 = vmatpush1.bf16.msra.mxu1 %v2532_v23  ;;  %19317 = vmatprep.subr.msk.bf16.mxu0 %vm208_vm1, %v2513_v27  ;;  %v2514_v33 = vsel %vm2507_vm7, %v2490_v25, %v2492_v41 }
  0xfe   :  { %2645 = vmatprep.mubr.bf16.mxu1 %v28601_v7  ;;  %4801 = vrot.lane.b32.xlu0 %v21372_v42, %s20816_s9  ;;  %v2544_v43 = vsel %vm208_vm1, %v2514_v33, 0 }
  0xff   :  { %v2494_v36 = vpop.permute.xlu0 %2493  ;;  %4803 = vrot.lane.b32.xlu1 %v21389_v50, %s20816_s9 }
 0x100   :  { %19314 = vmatmul.mubr.msk.bf16.vlgmr.msra.gmra.mxu0 %vm60_vm2, %v21495_v37  ;;  %v2515_v39 = vsel %vm2507_vm7, %v2492_v41, %v2494_v36  ;;  %v2496_v44 = vpop.permute.xlu1 %2495 }
 0x101   :  { %2671 = vmatpush1.bf16.msra.mxu0 %v2538_v30  ;;  %19319 = vmatprep.subr.msk.bf16.mxu1 %vm208_vm1, %v2515_v39  ;;  %v2516_v47 = vsel %vm2507_vm7, %v2494_v36, %v2496_v44 }
 0x102   :  { %2688 = vmatprep.mubr.bf16.mxu0 %v28601_v7  ;;  %4805 = vrot.lane.b32.xlu0 %v21395_v52, %s20816_s9  ;;  %v2550_v51 = vsel %vm208_vm1, %v2516_v47, 0 }
 0x103   :  { %v2498_v48 = vpop.permute.xlu0 %2497  ;;  %4807 = vrot.lane.b32.xlu1 %v21407_v56, %s20816_s9 }
 0x104   :  { %19316 = vmatmul.mubr.msk.bf16.vlgmr.msra.gmra.mxu1 %vm60_vm2, %v21495_v37  ;;  %v2517_v49 = vsel %vm2507_vm7, %v2496_v44, %v2498_v48 }
 0x105   :  { %2714 = vmatpush1.bf16.msra.mxu1 %v2544_v43  ;;  %19321 = vmatprep.subr.msk.bf16.mxu0 %vm208_vm1, %v2517_v49  ;;  %v2500_v46 = vpop.permute.xlu1 %2499 }
 0x106   :  { %2731 = vmatprep.mubr.bf16.mxu1 %v28601_v7  ;;  %4809 = vrot.lane.b32.xlu0 %v21413_v59, %s20816_s9  ;;  %v2518_v2 = vsel %vm2507_vm7, %v2498_v48, %v2500_v46 }
 0x107   :  { %4811 = vrot.lane.b32.xlu1 %v21425_v62, %s20816_s9  ;;  %v2556_v57 = vsel %vm208_vm1, %v2518_v2, 0 }
 0x108   :  { %19318 = vmatmul.mubr.msk.bf16.vlgmr.msra.gmra.mxu0 %vm60_vm2, %v21495_v37  ;;  %v2502_v53 = vpop.permute.xlu0 %2501 }
 0x109   :  { %2757 = vmatpush1.bf16.msra.mxu0 %v2550_v51  ;;  %v2519_v55 = vsel %vm2507_vm7, %v2500_v46, %v2502_v53  ;;  %v2504_v4 = vpop.permute.xlu1 %2503  ;;  %2774 = vmatprep.mubr.bf16.mxu0 %v28601_v7 }
 0x10a   :  { %19323 = vmatprep.subr.msk.bf16.mxu1 %vm208_vm1, %v2519_v55  ;;  %4813 = vrot.lane.b32.xlu0 %v21431_v12, %s20816_s9  ;;  %v2520_v58 = vsel %vm2507_vm7, %v2502_v53, %v2504_v4  ;;  %v6436_v53 = vld [vmem:[%s28591_s0 + $0x10] sm:$0xff] }
 0x10b   :  { %4815 = vrot.lane.b32.xlu1 %v21440_v54, %s20816_s9  ;;  %v2562_v13 = vsel %vm208_vm1, %v2520_v58, 0 }
 0x10c   :  { %19320 = vmatmul.mubr.msk.bf16.vlgmr.msra.gmra.mxu1 %vm60_vm2, %v21495_v37  ;;  %v2506_v9 = vpop.permute.xlu0 %2505 }
 0x10d   :  { %2800 = vmatpush1.bf16.msra.mxu1 %v2556_v57  ;;  %v2521_v60 = vsel %vm2507_vm7, %v2504_v4, %v2506_v9  ;;  %v3057_v8 = vpop.permute.xlu1 %3056  ;;  %2817 = vmatprep.mubr.bf16.mxu1 %v28601_v7  ;;  %v2568_v15 = vsel %vm208_vm1, %v2506_v9, 0  ;;  %v21684_v9 = vcombine.low %v6436_v53, %v6436_v53  ;;  %vm10568_vm7 = vcmask 564224  }
 0x10e   :  { %19325 = vmatprep.subr.msk.bf16.mxu0 %vm208_vm1, %v2521_v60  ;;  %20344 = vmatprep.subr.bf16.mxu1 %v28595_v45 }
 0x10f   :  { %4817 = vrot.lane.b32.xlu0 %v21304_v18, %s20816_s9  ;;  %4819 = vrot.lane.b32.xlu1 %v21309_v29, %s20816_s9  ;;  %28804 = vst [vmem:[#allocation7_spill] sm:$0xff] %v21684_v9 }
 0x110   :  { %19322 = vmatmul.mubr.msk.bf16.vlgmr.msra.gmra.mxu0 %vm60_vm2, %v21495_v37  ;;  %v3059_v0 = vpop.permute.xlu0 %3058 }
 0x111   :  { %2843 = vmatpush1.bf16.msra.mxu0 %v2562_v13  ;;  %v3061_v16 = vpop.permute.xlu1 %3060  ;;  %2860 = vmatprep.mubr.bf16.mxu0 %v28601_v7  ;;  %v3087_v29 = vsel %vm3086_vm8, %v3057_v8, %v3059_v0  ;;  %v21690_v8 = vcombine.high %v6436_v53, %v6436_v53 }
 0x112   :  { %v3088_v18 = vsel %vm3086_vm8, %v3059_v0, %v3061_v16  ;;  %v3105_v5 = vsel %vm208_vm1, %v3087_v29, 0  ;;  %v21713_v29 = vcombine.high %v6437_v61, %v6437_v61 }
 0x113   :  { %19346 = vmatprep.subr.msk.bf16.mxu0 %vm208_vm1, %v3088_v18  ;;  %4821 = vrot.lane.b32.xlu0 %v20611_v63, %s20816_s9  ;;  %28805 = vst [vmem:[#allocation8_spill] sm:$0xff] %v21690_v8  ;;  %s20834_s9 = smov 126  }
 0x114   :  { %19324 = vmatmul.mubr.msk.bf16.vlgmr.msra.gmra.mxu1 %vm60_vm2, %v21495_v37  ;;  %v3063_v1 = vpop.permute.xlu0 %3062  ;;  %5906 = vrot.lane.b32.xlu1 %v21558_v26, %s20817_s16  ;;  %28807 = vst [vmem:[#allocation10_spill] sm:$0xff] %v21713_v29 }
 0x115   :  { %20345 = vmatpush3.bf16.msra.mxu1 %v2568_v15  ;;  %v3065_v3 = vpop.permute.xlu1 %3064  ;;  %20346 = vmatprep.mubr.msk.bf16.mxu1 %vm20812_vm4, %v28595_v45  ;;  %v3089_v6 = vsel %vm3086_vm8, %v3061_v16, %v3063_v1  ;;  %v21702_v16 = vcombine.low %v6437_v61, %v6437_v61  ;;  %v21709_v15 = vld [vmem:[%s28592_s1 + $0x30] sm:$0xff]  }
 0x116   :  { %v3090_v21 = vsel %vm3086_vm8, %v3063_v1, %v3065_v3  ;;  %v3111_v20 = vsel %vm208_vm1, %v3089_v6, 0 }
 0x117   :  { %19348 = vmatprep.subr.msk.bf16.mxu1 %vm208_vm1, %v3090_v21  ;;  %5908 = vrot.lane.b32.xlu0 %v21566_v19, %s20817_s16  ;;  %28806 = vst [vmem:[#allocation9_spill] sm:$0xff] %v21702_v16 }
 0x118   :  { %19326 = vmatmul.mubr.msk.bf16.vlgmr.msra.gmra.mxu0 %vm60_vm2, %v21495_v37  ;;  %v3067_v28 = vpop.permute.xlu0 %3066  ;;  %5910 = vrot.lane.b32.xlu1 %v21328_v14, %s20817_s16  ;;  %v21596_v14 = vld [vmem:[%s28592_s1 + $0x28] sm:$0xff]  }
 0x119   :  { %3164 = vmatpush1.bf16.msra.mxu0 %v3105_v5  ;;  %v3069_v10 = vpop.permute.xlu1 %3068  ;;  %3181 = vmatprep.mubr.bf16.mxu0 %v28601_v7  ;;  %v3091_v32 = vsel %vm3086_vm8, %v3065_v3, %v3067_v28 }
 0x11a   :  { %v3092_v11 = vsel %vm3086_vm8, %v3067_v28, %v3069_v10  ;;  %v3117_v22 = vsel %vm208_vm1, %v3091_v32, 0 }
 0x11b   :  { %19350 = vmatprep.subr.msk.bf16.mxu0 %vm208_vm1, %v3092_v11  ;;  %5912 = vrot.lane.b32.xlu0 %v21344_v34, %s20817_s16  ;;  %v6439_v11 = vld [vmem:[%s28591_s0 + $0x28] sm:$0xff] }
 0x11c   :  { %20347 = vmatmul.mubr.msk.bf16.vlgmr.msra.gmra.mxu1 %vm60_vm2, %v21495_v37  ;;  %v3071_v31 = vpop.permute.xlu0 %3070  ;;  %5914 = vrot.lane.b32.xlu1 %v21350_v38, %s20817_s16 }
 0x11d   :  { %3207 = vmatpush1.bf16.msra.mxu1 %v3111_v20  ;;  %v3073_v17 = vpop.permute.xlu1 %3072  ;;  %3224 = vmatprep.mubr.bf16.mxu1 %v28601_v7  ;;  %v3093_v35 = vsel %vm3086_vm8, %v3069_v10, %v3071_v31 }
 0x11e   :  { %v3094_v34 = vsel %vm3086_vm8, %v3071_v31, %v3073_v17  ;;  %v3123_v24 = vsel %vm208_vm1, %v3093_v35, 0 }
 0x11f   :  { %19352 = vmatprep.subr.msk.bf16.mxu1 %vm208_vm1, %v3094_v34  ;;  %5916 = vrot.lane.b32.xlu0 %v21366_v40, %s20817_s16  ;;  %v21747_v34 = vcombine.low %v6439_v11, %v6439_v11 }
 0x120   :  { %19347 = vmatmul.mubr.msk.bf16.vlgmr.msra.gmra.mxu0 %vm60_vm2, %v21596_v14  ;;  %v3075_v23 = vpop.permute.xlu0 %3074  ;;  %5918 = vrot.lane.b32.xlu1 %v21372_v42, %s20817_s16 }
 0x121   :  { %3250 = vmatpush1.bf16.msra.mxu0 %v3117_v22  ;;  %v3077_v38 = vpop.permute.xlu1 %3076  ;;  %3267 = vmatprep.mubr.bf16.mxu0 %v28601_v7  ;;  %v3095_v37 = vsel %vm3086_vm8, %v3073_v17, %v3075_v23  ;;  %28810 = vst [vmem:[#allocation13_spill] sm:$0xff] %v21747_v34 }
 0x122   :  { %v3096_v25 = vsel %vm3086_vm8, %v3075_v23, %v3077_v38  ;;  %v3129_v27 = vsel %vm208_vm1, %v3095_v37, 0 }
 0x123   :  { %19354 = vmatprep.subr.msk.bf16.mxu0 %vm208_vm1, %v3096_v25  ;;  %5920 = vrot.lane.b32.xlu0 %v21389_v50, %s20817_s16 }
 0x124   :  { %19349 = vmatmul.mubr.msk.bf16.vlgmr.msra.gmra.mxu1 %vm60_vm2, %v21596_v14  ;;  %v3079_v40 = vpop.permute.xlu0 %3078  ;;  %5922 = vrot.lane.b32.xlu1 %v21395_v52, %s20817_s16 }
 0x125   :  { %3293 = vmatpush1.bf16.msra.mxu1 %v3123_v24  ;;  %v3081_v42 = vpop.permute.xlu1 %3080  ;;  %3310 = vmatprep.mubr.bf16.mxu1 %v28601_v7  ;;  %v3097_v30 = vsel %vm3086_vm8, %v3077_v38, %v3079_v40  ;;  %v21757_v38 = vcombine.high %v6439_v11, %v6439_v11  ;;  %v6440_v24 = vld [vmem:[%s28591_s0 + $0x30] sm:$0xff] }
 0x126   :  { %v3098_v41 = vsel %vm3086_vm8, %v3079_v40, %v3081_v42  ;;  %v3135_v33 = vsel %vm208_vm1, %v3097_v30, 0 }
 0x127   :  { %19356 = vmatprep.subr.msk.bf16.mxu1 %vm208_vm1, %v3098_v41  ;;  %5924 = vrot.lane.b32.xlu0 %v21407_v56, %s20817_s16  ;;  %28811 = vst [vmem:[#allocation14_spill] sm:$0xff] %v21757_v38 }
 0x128   :  { %19351 = vmatmul.mubr.msk.bf16.vlgmr.msra.gmra.mxu0 %vm60_vm2, %v21596_v14  ;;  %v3083_v50 = vpop.permute.xlu0 %3082  ;;  %5926 = vrot.lane.b32.xlu1 %v21413_v59, %s20817_s16  ;;  %v20616_v59 = vld [vmem:[%s28591_s0 + $0x38] ss:$0 sps:$4 sm:$0xff]  }
 0x129   :  { %3336 = vmatpush1.bf16.msra.mxu0 %v3129_v27  ;;  %v3085_v52 = vpop.permute.xlu1 %3084  ;;  %3353 = vmatprep.mubr.bf16.mxu0 %v28601_v7  ;;  %v3099_v39 = vsel %vm3086_vm8, %v3081_v42, %v3083_v50 }
 0x12a   :  { %v3100_v36 = vsel %vm3086_vm8, %v3083_v50, %v3085_v52  ;;  %v3141_v43 = vsel %vm208_vm1, %v3099_v39, 0  ;;  %v3147_v49 = vsel %vm208_vm1, %v3085_v52, 0  ;;  %v21773_v50 = vcombine.low %v6440_v24, %v6440_v24 }
 0x12b   :  { %19358 = vmatprep.subr.msk.bf16.mxu0 %vm208_vm1, %v3100_v36  ;;  %5928 = vrot.lane.b32.xlu0 %v21425_v62, %s20817_s16  ;;  %v21783_v36 = vcombine.high %v6440_v24, %v6440_v24  ;;  %vm11147_vm8 = vcmask 556032  }
 0x12c   :  { %19353 = vmatmul.mubr.msk.bf16.vlgmr.msra.gmra.mxu1 %vm60_vm2, %v21596_v14  ;;  %v3636_v56 = vpop.permute.xlu0 %3635  ;;  %5930 = vrot.lane.b32.xlu1 %v21431_v12, %s20817_s16  ;;  %v6435_v12 = vld [vmem:[%s28591_s0 + $0x8] sm:$0xff]  ;;  %28812 = vst [vmem:[#allocation15_spill] sm:$0xff] %v21773_v50 }
 0x12d   :  { %3379 = vmatpush1.bf16.msra.mxu1 %v3135_v33  ;;  %3396 = vmatprep.mubr.bf16.mxu1 %v28601_v7  ;;  %v3638_v44 = vpop.permute.xlu1 %3637  ;;  %v21665_v46 = vcombine.low %v6435_v12, %v6435_v12  ;;  %v21671_v2 = vcombine.high %v6435_v12, %v6435_v12  ;;  %28813 = vst [vmem:[#allocation16_spill] sm:$0xff] %v21783_v36 }
 0x12e   :  { %20350 = vmatprep.subr.bf16.mxu1 %v28595_v45 }
 0x12f   :  { %5932 = vrot.lane.b32.xlu0 %v21440_v54, %s20817_s16  ;;  %v3666_v54 = vsel %vm3665_vm9, %v3636_v56, %v3638_v44  ;;  %28802 = vst [vmem:[#allocation5_spill] sm:$0xff] %v21665_v46  ;;  %28803 = vst [vmem:[#allocation6_spill] sm:$0xff] %v21671_v2 }
 0x130   :  { %19355 = vmatmul.mubr.msk.bf16.vlgmr.msra.gmra.mxu0 %vm60_vm2, %v21596_v14  ;;  %v3640_v62 = vpop.permute.xlu0 %3639  ;;  %5934 = vrot.lane.b32.xlu1 %v20616_v59, %s20817_s16  ;;  %v3684_v57 = vsel %vm208_vm1, %v3666_v54, 0  ;;  %v7013_v59 = vld [vmem:[%s28591_s0 + $0x4] sm:$0xff] }
 0x131   :  { %3422 = vmatpush1.bf16.msra.mxu0 %v3141_v43  ;;  %3439 = vmatprep.mubr.bf16.mxu0 %v28601_v7  ;;  %v3667_v47 = vsel %vm3665_vm9, %v3638_v44, %v3640_v62  ;;  %v3642_v48 = vpop.permute.xlu1 %3641 }
 0x132   :  { %19379 = vmatprep.subr.msk.bf16.mxu0 %vm208_vm1, %v3667_v47  ;;  %v3668_v58 = vsel %vm3665_vm9, %v3640_v62, %v3642_v48 }
 0x133   :  { %6485 = vrot.lane.b32.xlu0 %v21558_v26, %s20818_s23  ;;  %v3690_v0 = vsel %vm208_vm1, %v3668_v58, 0 }
 0x134   :  { %19357 = vmatmul.mubr.msk.bf16.vlgmr.msra.gmra.mxu1 %vm60_vm2, %v21596_v14  ;;  %v3644_v51 = vpop.permute.xlu0 %3643  ;;  %6487 = vrot.lane.b32.xlu1 %v21566_v19, %s20818_s23  ;;  %v6438_v19 = vld [vmem:[%s28591_s0 + $0x20] sm:$0xff] }
 0x135   :  { %20351 = vmatpush3.bf16.msra.mxu1 %v3147_v49  ;;  %20352 = vmatprep.mubr.msk.bf16.mxu1 %vm20812_vm4, %v28595_v45  ;;  %v3669_v55 = vsel %vm3665_vm9, %v3642_v48, %v3644_v51  ;;  %v3646_v4 = vpop.permute.xlu1 %3645  ;;  %v21725_v6 = vcombine.low %v6438_v19, %v6438_v19  ;;  %v21733_v20 = vcombine.high %v6438_v19, %v6438_v19  ;;  %v20630_v48 = vld [vmem:[%s28591_s0 + $0x38] ss:$0 sps:$4 sm:$0xff]  }
 0x136   :  { %19381 = vmatprep.subr.msk.bf16.mxu1 %vm208_vm1, %v3669_v55  ;;  %v3670_v26 = vsel %vm3665_vm9, %v3644_v51, %v3646_v4  ;;  %v21810_v51 = vcombine.low %v7013_v59, %v7013_v59 }
 0x137   :  { %6489 = vrot.lane.b32.xlu0 %v21665_v46, %s20818_s23  ;;  %v3696_v5 = vsel %vm208_vm1, %v3670_v26, 0  ;;  %28808 = vst [vmem:[#allocation11_spill] sm:$0xff] %v21725_v6  ;;  %28809 = vst [vmem:[#allocation12_spill] sm:$0xff] %v21733_v20 }
 0x138   :  { %19359 = vmatmul.mubr.msk.bf16.vlgmr.msra.gmra.mxu0 %vm60_vm2, %v21596_v14  ;;  %v3648_v60 = vpop.permute.xlu0 %3647  ;;  %6491 = vrot.lane.b32.xlu1 %v21671_v2, %s20818_s23 }
 0x139   :  { %3743 = vmatpush1.bf16.msra.mxu0 %v3684_v57  ;;  %3760 = vmatprep.mubr.bf16.mxu0 %v28601_v7  ;;  %v3671_v13 = vsel %vm3665_vm9, %v3646_v4, %v3648_v60  ;;  %v3650_v63 = vpop.permute.xlu1 %3649  ;;  %v7014_v4 = vld [vmem:[%s28591_s0 + $0xc] sm:$0xff] }
 0x13a   :  { %19383 = vmatprep.subr.msk.bf16.mxu0 %vm208_vm1, %v3671_v13  ;;  %v3672_v21 = vsel %vm3665_vm9, %v3648_v60, %v3650_v63  ;;  %v21824_v13 = vcombine.high %v7013_v59, %v7013_v59  ;;  %v21834_v26 = vcombine.low %v7014_v4, %v7014_v4 }
 0x13b   :  { %6493 = vrot.lane.b32.xlu0 %v21684_v9, %s20818_s23  ;;  %v3702_v17 = vsel %vm208_vm1, %v3672_v21, 0  ;;  %v7019_v9 = vld [vmem:[%s28591_s0 + $0x34] sm:$0xff] }
 0x13c   :  { %20353 = vmatmul.mubr.msk.bf16.vlgmr.msra.gmra.mxu1 %vm60_vm2, %v21596_v14  ;;  %v3652_v18 = vpop.permute.xlu0 %3651  ;;  %6495 = vrot.lane.b32.xlu1 %v21690_v8, %s20818_s23 }
 0x13d   :  { %3786 = vmatpush1.bf16.msra.mxu1 %v3690_v0  ;;  %3803 = vmatprep.mubr.bf16.mxu1 %v28601_v7  ;;  %v3673_v1 = vsel %vm3665_vm9, %v3650_v63, %v3652_v18  ;;  %v3654_v3 = vpop.permute.xlu1 %3653 }
 0x13e   :  { %19385 = vmatprep.subr.msk.bf16.mxu1 %vm208_vm1, %v3673_v1  ;;  %v3674_v22 = vsel %vm3665_vm9, %v3652_v18, %v3654_v3  ;;  %v7015_v1 = vld [vmem:[%s28591_s0 + $0x14] sm:$0xff] }
 0x13f   :  { %6497 = vrot.lane.b32.xlu0 %v21702_v16, %s20818_s23  ;;  %v3708_v27 = vsel %vm208_vm1, %v3674_v22, 0  ;;  %v21860_v22 = vcombine.low %v7015_v1, %v7015_v1  ;;  %v21877_v59 = vcombine.high %v7015_v1, %v7015_v1 }
 0x140   :  { %v21727_v28 = vpop.f32.mrf.mxu0  ;;  %19380 = vmatmul.mubr.msk.bf16.vlgmr.msra.gmra.mxu0 %vm60_vm2, %v21709_v15  ;;  %v3656_v10 = vpop.permute.xlu0 %3655  ;;  %6499 = vrot.lane.b32.xlu1 %v21713_v29, %s20818_s23 }
 0x141   :  { %3829 = vmatpush1.bf16.msra.mxu0 %v3696_v5  ;;  %3846 = vmatprep.mubr.bf16.mxu0 %v28601_v7  ;;  %v3675_v32 = vsel %vm3665_vm9, %v3654_v3, %v3656_v10  ;;  %v3658_v14 = vpop.permute.xlu1 %3657 }
 0x142   :  { %v21740_v31 = vpop.f32.mrf.mxu0  ;;  %19387 = vmatprep.subr.msk.bf16.mxu0 %vm208_vm1, %v3675_v32  ;;  %v3676_v30 = vsel %vm3665_vm9, %v3656_v10, %v3658_v14  ;;  %v21850_v32 = vcombine.high %v7014_v4, %v7014_v4 }
 0x143   :  { %6501 = vrot.lane.b32.xlu0 %v21725_v6, %s20818_s23  ;;  %v3714_v62 = vsel %vm208_vm1, %v3676_v30, 0 }
 0x144   :  { %v21749_v35 = vpop.f32.mrf.mxu0  ;;  %v21751_v23 = vpop.f32.mrf.mxu1  ;;  %19382 = vmatmul.mubr.msk.bf16.vlgmr.msra.gmra.mxu1 %vm60_vm2, %v21709_v15  ;;  %6503 = vrot.lane.b32.xlu1 %v21733_v20, %s20818_s23  ;;  %v28814_v20 = vmov 0  }
 0x145   :  { %3872 = vmatpush1.bf16.msra.mxu1 %v3702_v17  ;;  %v3660_v25 = vpop.permute.xlu0 %3659  ;;  %3889 = vmatprep.mubr.bf16.mxu1 %v28601_v7  ;;  %v3662_v37 = vpop.permute.xlu1 %3661 }
 0x146   :  { %v21763_v40 = vpop.f32.mrf.mxu0  ;;  %v21765_v42 = vpop.f32.mrf.mxu1  ;;  %v3677_v41 = vsel %vm3665_vm9, %v3658_v14, %v3660_v25  ;;  %v3678_v47 = vsel %vm3665_vm9, %v3660_v25, %v3662_v37 }
 0x147   :  { %19389 = vmatprep.subr.msk.bf16.mxu1 %vm208_vm1, %v3677_v41  ;;  %6505 = vrot.lane.b32.xlu0 %v21747_v34, %s20818_s23  ;;  %v3720_v60 = vsel %vm208_vm1, %v3678_v47, 0 }
 0x148   :  { %v21775_v52 = vpop.f32.mrf.mxu1  ;;  %v21777_v33 = vpop.f32.mrf.mxu0  ;;  %19384 = vmatmul.mubr.msk.bf16.vlgmr.msra.gmra.mxu0 %vm60_vm2, %v21709_v15  ;;  %6507 = vrot.lane.b32.xlu1 %v21757_v38, %s20818_s23  ;;  %v106_v38 = vld [vmem:[#allocation2 + $0xe8] sm:$0xff] }
 0x149   :  { %3915 = vmatpush1.bf16.msra.mxu0 %v3708_v27  ;;  %v3664_v39 = vpop.permute.xlu0 %3663  ;;  %3932 = vmatprep.mubr.bf16.mxu0 %v28601_v7  ;;  %v4215_v56 = vpop.permute.xlu1 %4214 }
 0x14a   :  { %v21789_v44 = vpop.f32.mrf.mxu1  ;;  %v21791_v43 = vpop.f32.mrf.mxu0  ;;  %v3679_v12 = vsel %vm3665_vm9, %v3662_v37, %v3664_v39  ;;  %v3726_v21 = vsel %vm208_vm1, %v3664_v39, 0  ;;  %v7016_v37 = vld [vmem:[%s28591_s0 + $0x1c] sm:$0xff]  ;;  %vm11726_vm9 = vcmask 326656  }
 0x14b   :  { %19391 = vmatprep.subr.msk.bf16.mxu0 %vm208_vm1, %v3679_v12  ;;  %6509 = vrot.lane.b32.xlu0 %v21773_v50, %s20818_s23  ;;  %v21887_v47 = vcombine.low %v7016_v37, %v7016_v37  ;;  %v17_v50 = vld [vmem:[%s28593_s2 + $0x8] sm:$0xff] }
 0x14c   :  { %v21802_v49 = vpop.f32.mrf.mxu0  ;;  %v21804_v54 = vpop.f32.mrf.mxu1  ;;  %19386 = vmatmul.mubr.msk.bf16.vlgmr.msra.gmra.mxu1 %vm60_vm2, %v21709_v15  ;;  %6511 = vrot.lane.b32.xlu1 %v21783_v36, %s20818_s23 }
 0x14d   :  { %3958 = vmatpush1.bf16.msra.mxu1 %v3714_v62  ;;  %3975 = vmatprep.mubr.bf16.mxu1 %v28601_v7  ;;  %v4219_v53 = vpop.permute.xlu1 %4218  ;;  %v4217_v55 = vpop.permute.xlu0 %4216 }
 0x14e   :  { %v21816_v57 = vpop.f32.mrf.mxu0  ;;  %v21818_v58 = vpop.f32.mrf.mxu1  ;;  %20356 = vmatprep.subr.bf16.mxu1 %v28595_v45  ;;  %v4246_v61 = vsel %vm4244_vm10, %v4217_v55, %v4219_v53  ;;  %v4245_v10 = vsel %vm4244_vm10, %v4215_v56, %v4217_v55  ;;  %v7017_v55 = vld [vmem:[%s28591_s0 + $0x24] sm:$0xff] }
 0x14f   :  { %6513 = vrot.lane.b32.xlu0 %v20630_v48, %s20818_s23  ;;  %v4263_v30 = vsel %vm208_vm1, %v4245_v10, 0  ;;  %v21906_v10 = vcombine.high %v7016_v37, %v7016_v37  ;;  %s20822_s23 = smov 85  }
 0x150   :  { %v21826_v63 = vpop.f32.mrf.mxu1  ;;  %v21828_v0 = vpop.f32.mrf.mxu0  ;;  %19388 = vmatmul.mubr.msk.bf16.vlgmr.msra.gmra.mxu0 %vm60_vm2, %v21709_v15  ;;  %7064 = vrot.lane.b32.xlu1 %v21810_v51, %s20819_s15 }
 0x151   :  { %4001 = vmatpush1.bf16.msra.mxu0 %v3720_v60  ;;  %4018 = vmatprep.mubr.bf16.mxu0 %v28601_v7  ;;  %v4223_v18 = vpop.permute.xlu1 %4222  ;;  %v4221_v19 = vpop.permute.xlu0 %4220 }
 0x152   :  { %v21840_v3 = vpop.f32.mrf.mxu1  ;;  %v21842_v5 = vpop.f32.mrf.mxu0  ;;  %19412 = vmatprep.subr.msk.bf16.mxu0 %vm208_vm1, %v4246_v61  ;;  %v4248_v11 = vsel %vm4244_vm10, %v4221_v19, %v4223_v18  ;;  %v4247_v39 = vsel %vm4244_vm10, %v4219_v53, %v4221_v19  ;;  %v91_v61 = vld [vmem:[#allocation2 + $0x70] sm:$0xff] }
 0x153   :  { %7066 = vrot.lane.b32.xlu0 %v21824_v13, %s20819_s15  ;;  %v4269_v19 = vsel %vm208_vm1, %v4247_v39, 0 }
 0x154   :  { %v21852_v14 = vpop.f32.mrf.mxu0  ;;  %v21854_v17 = vpop.f32.mrf.mxu1  ;;  %19390 = vmatmul.mubr.msk.bf16.vlgmr.msra.gmra.mxu1 %vm60_vm2, %v21709_v15  ;;  %7068 = vrot.lane.b32.xlu1 %v21834_v26, %s20819_s15 }
 0x155   :  { %20357 = vmatpush3.bf16.msra.mxu1 %v3726_v21  ;;  %20358 = vmatprep.mubr.msk.bf16.mxu1 %vm20812_vm4, %v28595_v45  ;;  %v4227_v24 = vpop.permute.xlu1 %4226  ;;  %v4225_v25 = vpop.permute.xlu0 %4224 }
 0x156   :  { %v21867_v27 = vpop.f32.mrf.mxu0  ;;  %v21869_v41 = vpop.f32.mrf.mxu1  ;;  %19414 = vmatprep.subr.msk.bf16.mxu1 %vm208_vm1, %v4248_v11  ;;  %v4250_v56 = vsel %vm4244_vm10, %v4225_v25, %v4227_v24  ;;  %v4249_v1 = vsel %vm4244_vm10, %v4223_v18, %v4225_v25  ;;  %v16_v11 = vld [vmem:[%s28593_s2] sm:$0xff]  ;;  %v21918_v18 = vld [vmem:[%s28592_s1 + $0x38] sm:$0xff]   ;;  %v21922_v25 = vcombine.low %v7017_v55, %v7017_v55 }
 0x157   :  { %7070 = vrot.lane.b32.xlu0 %v21850_v32, %s20819_s15 }
 0x158   :  { %v21879_v62 = vpop.f32.mrf.mxu1  ;;  %v21881_v12 = vpop.f32.mrf.mxu0  ;;  %19392 = vmatmul.mubr.msk.bf16.vlgmr.msra.gmra.mxu0 %vm60_vm2, %v21709_v15  ;;  %7072 = vrot.lane.b32.xlu1 %v21860_v22, %s20819_s15 }
 0x159   :  { %4322 = vmatpush1.bf16.msra.mxu0 %v4263_v30  ;;  %4339 = vmatprep.mubr.bf16.mxu0 %v28601_v7  ;;  %v21890_v48 = vpop.permute.xlu1 %4230  ;;  %v4229_v53 = vpop.permute.xlu0 %4228 }
 0x15a   :  { %v21895_v4 = vpop.f32.mrf.mxu1  ;;  %v21897_v60 = vpop.f32.mrf.mxu0  ;;  %19416 = vmatprep.subr.msk.bf16.mxu0 %vm208_vm1, %v4250_v56  ;;  %v4252_v21 = vsel %vm4244_vm10, %v4229_v53, %v21890_v48 }
 0x15b   :  { %7074 = vrot.lane.b32.xlu0 %v21877_v59, %s20819_s15 }
 0x15c   :  { %v21911_v30 = vpop.f32.mrf.mxu0  ;;  %v589_v45 = vpop.f32.mrf.mxu1  ;;  %20359 = vmatmul.mubr.msk.bf16.vlgmr.msra.gmra.mxu1 %vm60_vm2, %v21709_v15  ;;  %7076 = vrot.lane.b32.xlu1 %v21887_v47, %s20819_s15  ;;  %v7018_v15 = vld [vmem:[%s28591_s0 + $0x2c] sm:$0xff] }
 0x15d   :  { %v610_v37 = vadd.f32 %v589_v45, %v91_v61  ;;  %4365 = vmatpush1.bf16.msra.mxu1 %v4269_v19  ;;  %4382 = vmatprep.mubr.bf16.mxu1 %v28601_v7  ;;  %v21925_v39 = vpop.permute.xlu1 %4234  ;;  %v4233_v56 = vpop.permute.xlu0 %4232  ;;  %v4275_v45 = vsel %vm208_vm1, %v4249_v1, 0  ;;  %v596_v61 = vadd.f32 %v21727_v28, %v16_v11  ;;  %v31_v19 = vld [vmem:[%s28593_s2 + $0x78] sm:$0xff]  ;;  %v4251_v7 = vsel %vm4244_vm10, %v4227_v24, %v4229_v53  ;;  %v18_v28 = vld [vmem:[%s28593_s2 + $0x10] sm:$0xff] }
 0x15e   :  { %v21933_v36 = vpop.f32.mrf.mxu0  ;;  %v20324_v34 = vpop.f32.mrf.mxu1  ;;  %19418 = vmatprep.subr.msk.bf16.mxu1 %vm208_vm1, %v4252_v21  ;;  %v4254_v6 = vsel %vm4244_vm10, %v4233_v56, %v21925_v39  ;;  %v21956_v24 = vcombine.low %v7018_v15, %v7018_v15  ;;  %v597_v53 = vadd.f32 %v21740_v31, %v17_v50  ;;  %v611_v8 = vadd.f32 %v21749_v35, %v31_v19  ;;  %v19_v31 = vld [vmem:[%s28593_s2 + $0x18] sm:$0xff]  ;;  %v20_v35 = vld [vmem:[%s28593_s2 + $0x20] sm:$0xff] }
 0x15f   :  { %640 = vst.msk [vmem:[#allocation2 + $0x70] sm:$0xff] %vm60_vm2, %v610_v37  ;;  %7078 = vrot.lane.b32.xlu0 %v21906_v10, %s20819_s15  ;;  %v21947_v34 = vcombine.high %v7017_v55, %v7017_v55  ;;  %v32_v55 = vld [vmem:[%s28593_s2 + $0x80] sm:$0xff]  ;;  %v600_v46 = vadd.f32 %v21777_v33, %v20_v35  ;;  %v22_v35 = vld [vmem:[%s28593_s2 + $0x30] sm:$0xff] }
 0x160   :  { %v592_v1 = vpop.f32.mrf.mxu1  ;;  %v867_v21 = vpop.f32.mrf.mxu0  ;;  %19413 = vmatmul.mubr.msk.bf16.vlgmr.msra.gmra.mxu0 %vm60_vm2, %v21918_v18  ;;  %7080 = vrot.lane.b32.xlu1 %v21922_v25, %s20819_s15 }
 0x161   :  { %v625_v11 = vadd.f32 %v592_v1, %v106_v38  ;;  %v21962_v37 = vadd.f32 %v867_v21, %v596_v61  ;;  %4408 = vmatpush1.bf16.msra.mxu0 %v4275_v45  ;;  %4425 = vmatprep.mubr.bf16.mxu0 %v28814_v20  ;;  %v21965_v16 = vpop.permute.xlu1 %4238  ;;  %v4237_v29 = vpop.permute.xlu0 %4236  ;;  %v4281_v61 = vsel %vm208_vm1, %v4251_v7, 0  ;;  %v21976_v45 = vcombine.high %v7018_v15, %v7018_v15  ;;  %v33_v21 = vld [vmem:[%s28593_s2 + $0x88] sm:$0xff] }
 0x162   :  { %v20325_v50 = vpop.f32.mrf.mxu1  ;;  %v869_v38 = vpop.f32.mrf.mxu0  ;;  %19420 = vmatprep.subr.msk.bf16.mxu0 %vm208_vm1, %v4254_v6  ;;  %v598_v1 = vadd.f32 %v21751_v23, %v18_v28  ;;  %v4253_v7 = vsel %vm4244_vm10, %v21890_v48, %v4233_v56  ;;  %v4256_v6 = vsel %vm4244_vm10, %v4237_v29, %v21965_v16  ;;  %v612_v23 = vadd.f32 %v21763_v40, %v32_v55  ;;  %v34_v56 = vld [vmem:[%s28593_s2 + $0x90] sm:$0xff] }
 0x163   :  { %655 = vst.msk [vmem:[#allocation2 + $0xe8] sm:$0xff] %vm60_vm2, %v625_v11  ;;  %v21986_v19 = vadd.f32 %v869_v38, %v597_v53  ;;  %7082 = vrot.lane.b32.xlu0 %v21947_v34, %s20819_s15  ;;  %v21999_v53 = vcombine.low %v7019_v9, %v7019_v9  ;;  %v599_v48 = vadd.f32 %v21765_v42, %v19_v31  ;;  %v21_v42 = vld [vmem:[%s28593_s2 + $0x28] sm:$0xff] }
 0x164   :  { %v871_v15 = vpop.f32.mrf.mxu0  ;;  %v910_v28 = vpop.f32.mrf.mxu1  ;;  %19415 = vmatmul.mubr.msk.bf16.vlgmr.msra.gmra.mxu1 %vm60_vm2, %v21918_v18  ;;  %7084 = vrot.lane.b32.xlu1 %v21956_v24, %s20819_s15  ;;  %v613_v38 = vadd.f32 %v21775_v52, %v33_v21  ;;  %v4255_v33 = vsel %vm4244_vm10, %v21925_v39, %v4237_v29  ;;  %v601_v29 = vadd.f32 %v21791_v43, %v21_v42  ;;  %v23_v43 = vld [vmem:[%s28593_s2 + $0x38] sm:$0xff] }
 0x165   :  { %v22005_v11 = vadd.f32 %v871_v15, %v611_v8  ;;  %v22007_v50 = vadd.f32 %v910_v28, %v598_v1  ;;  %4451 = vmatpush1.bf16.msra.mxu1 %v4281_v61  ;;  %4468 = vmatprep.mubr.bf16.mxu1 %v28814_v20  ;;  %v22010_v40 = vpop.permute.xlu1 %4242  ;;  %v4241_v55 = vpop.permute.xlu0 %4240  ;;  %v4287_v8 = vsel %vm208_vm1, %v4253_v7, 0  ;;  %v22019_v61 = vcombine.high %v7019_v9, %v7019_v9  ;;  %v35_v1 = vld [vmem:[%s28593_s2 + $0x98] sm:$0xff] }
 0x166   :  { %v873_v31 = vpop.f32.mrf.mxu0  ;;  %v912_v2 = vpop.f32.mrf.mxu1  ;;  %19422 = vmatprep.subr.msk.bf16.mxu1 %vm208_vm1, %v4256_v6  ;;  %v4258_v21 = vsel %vm4244_vm10, %v4241_v55, %v22010_v40  ;;  %v614_v9 = vadd.f32 %v21789_v44, %v34_v56  ;;  %v36_v44 = vld [vmem:[%s28593_s2 + $0xa0] sm:$0xff]  ;;  %v615_v56 = vadd.f32 %v21802_v49, %v35_v1  ;;  %v4257_v49 = vsel %vm4244_vm10, %v21965_v16, %v4241_v55  ;;  %v38_v16 = vld [vmem:[%s28593_s2 + $0xb0] sm:$0xff] }
 0x167   :  { %v22024_v15 = vadd.f32 %v873_v31, %v612_v23  ;;  %v22026_v52 = vadd.f32 %v912_v2, %v599_v48  ;;  %7086 = vrot.lane.b32.xlu0 %v21976_v45, %s20819_s15  ;;  %v20644_v2 = vld [vmem:[%s28591_s0 + $0x3c] ss:$0 sps:$4 sm:$0xff]   ;;  %v616_v1 = vadd.f32 %v21816_v57, %v36_v44  ;;  %vm12305_vm10 = vcmask 310272  }
 0x168   :  { %v914_v7 = vpop.f32.mrf.mxu1  ;;  %v953_v6 = vpop.f32.mrf.mxu0  ;;  %19417 = vmatmul.mubr.msk.bf16.vlgmr.msra.gmra.mxu0 %vm60_vm2, %v21918_v18  ;;  %7088 = vrot.lane.b32.xlu1 %v21999_v53, %s20819_s15 }
 0x169   :  { %v22049_v39 = vadd.f32 %v914_v7, %v613_v38  ;;  %v22051_v23 = vadd.f32 %v953_v6, %v600_v46  ;;  %4494 = vmatpush1.bf16.msra.mxu0 %v4287_v8  ;;  %4511 = vmatprep.mubr.bf16.mxu0 %v28814_v20  ;;  %v22054_v28 = vpop.permute.xlu0 %4793  ;;  %v22056_v48 = vpop.permute.xlu1 %4795  ;;  %v4293_v38 = vsel %vm208_vm1, %v4255_v33, 0  ;;  %v602_v46 = vadd.f32 %v21804_v54, %v22_v35  ;;  %v37_v8 = vld [vmem:[%s28593_s2 + $0xa8] sm:$0xff]  ;;  %v24_v54 = vld [vmem:[%s28593_s2 + $0x40] sm:$0xff] }
 0x16a   :  { %v916_v42 = vpop.f32.mrf.mxu1  ;;  %v955_v31 = vpop.f32.mrf.mxu0  ;;  %19424 = vmatprep.subr.msk.bf16.mxu0 %vm208_vm1, %v4258_v21  ;;  %v617_v44 = vadd.f32 %v21826_v63, %v37_v8  ;;  %v26_v63 = vld [vmem:[%s28593_s2 + $0x50] sm:$0xff] }
 0x16b   :  { %v22068_v7 = vadd.f32 %v916_v42, %v614_v9  ;;  %v22070_v6 = vadd.f32 %v955_v31, %v601_v29  ;;  %7090 = vrot.lane.b32.xlu0 %v22019_v61, %s20819_s15  ;;  %v603_v9 = vadd.f32 %v21818_v58, %v23_v43  ;;  %v25_v58 = vld [vmem:[%s28593_s2 + $0x48] sm:$0xff]  ;;  %v28815_v42 = vmov 0.0  }
 0x16c   :  { %v957_v33 = vpop.f32.mrf.mxu0  ;;  %v996_v21 = vpop.f32.mrf.mxu1  ;;  %19419 = vmatmul.mubr.msk.bf16.vlgmr.msra.gmra.mxu1 %vm60_vm2, %v21918_v18  ;;  %7092 = vrot.lane.b32.xlu1 %v20644_v2, %s20819_s15  ;;  %v604_v31 = vadd.f32 %v21828_v0, %v24_v54  ;;  %v618_v0 = vadd.f32 %v21840_v3, %v38_v16  ;;  %s20826_s15 = smov 68  }
 0x16d   :  { %v22087_v55 = vadd.f32 %v957_v33, %v615_v56  ;;  %v22089_v57 = vadd.f32 %v996_v21, %v602_v46  ;;  %4537 = vmatpush1.bf16.msra.mxu1 %v4293_v38  ;;  %4554 = vmatprep.mubr.bf16.mxu1 %v28814_v20  ;;  %v22092_v35 = vpop.permute.xlu0 %4797  ;;  %v22094_v29 = vpop.permute.xlu1 %4799  ;;  %v4299_v56 = vsel %vm208_vm1, %v4257_v49, 0  ;;  %v39_v38 = vld [vmem:[%s28593_s2 + $0xb8] sm:$0xff]  ;;  %v40_v21 = vld [vmem:[%s28593_s2 + $0xc0] sm:$0xff] }
 0x16e   :  { %v959_v2 = vpop.f32.mrf.mxu0  ;;  %v998_v43 = vpop.f32.mrf.mxu1  ;;  %20362 = vmatprep.subr.bf16.mxu1 %v28815_v42  ;;  %v4825_v49 = vsel %vm4823_vm11, %v22056_v48, %v22092_v35  ;;  %v619_v16 = vadd.f32 %v21852_v14, %v39_v38  ;;  %v28_v14 = vld [vmem:[%s28593_s2 + $0x60] sm:$0xff]  ;;  %v4824_v38 = vsel %vm4823_vm11, %v22054_v28, %v22056_v48  ;;  %v42_v28 = vld [vmem:[%s28593_s2 + $0xd0] sm:$0xff] }
 0x16f   :  { %v22109_v46 = vadd.f32 %v959_v2, %v616_v1  ;;  %v22111_v8 = vadd.f32 %v998_v43, %v603_v9  ;;  %7643 = vrot.lane.b32.xlu0 %v21810_v51, %s20820_s17  ;;  %v605_v1 = vadd.f32 %v21842_v5, %v25_v58  ;;  %v27_v5 = vld [vmem:[%s28593_s2 + $0x58] sm:$0xff] }
 0x170   :  { %v1000_v54 = vpop.f32.mrf.mxu1  ;;  %v1039_v33 = vpop.f32.mrf.mxu0  ;;  %19421 = vmatmul.mubr.msk.bf16.vlgmr.msra.gmra.mxu0 %vm60_vm2, %v21918_v18  ;;  %7645 = vrot.lane.b32.xlu1 %v21824_v13, %s20820_s17  ;;  %v606_v13 = vadd.f32 %v21854_v17, %v26_v63  ;;  %v620_v63 = vadd.f32 %v21867_v27, %v40_v21 }
 0x171   :  { %v22127_v9 = vadd.f32 %v1000_v54, %v617_v44  ;;  %v22129_v2 = vadd.f32 %v1039_v33, %v604_v31  ;;  %4580 = vmatpush1.bf16.msra.mxu0 %v4299_v56  ;;  %4597 = vmatprep.mubr.bf16.mxu0 %v28814_v20  ;;  %v22132_v51 = vpop.permute.xlu0 %4801  ;;  %v4804_v3 = vpop.permute.xlu1 %4803  ;;  %v4305_v44 = vsel %vm208_vm1, %v22010_v40, 0  ;;  %v41_v56 = vld [vmem:[%s28593_s2 + $0xc8] sm:$0xff] }
 0x172   :  { %v1002_v58 = vpop.f32.mrf.mxu1  ;;  %v1041_v43 = vpop.f32.mrf.mxu0  ;;  %19445 = vmatprep.subr.msk.bf16.mxu0 %vm208_vm1, %v4825_v49  ;;  %v4827_v40 = vsel %vm4823_vm11, %v22094_v29, %v22132_v51  ;;  %v621_v21 = vadd.f32 %v21879_v62, %v41_v56  ;;  %v4826_v62 = vsel %vm4823_vm11, %v22092_v35, %v22094_v29  ;;  %v622_v56 = vadd.f32 %v21895_v4, %v42_v28 }
 0x173   :  { %v22148_v17 = vadd.f32 %v1002_v58, %v618_v0  ;;  %v22150_v31 = vadd.f32 %v1041_v43, %v605_v1  ;;  %7647 = vrot.lane.b32.xlu0 %v21834_v26, %s20820_s17  ;;  %v607_v0 = vadd.f32 %v21869_v41, %v27_v5  ;;  %v608_v58 = vadd.f32 %v21881_v12, %v28_v14  ;;  %v29_v41 = vld [vmem:[%s28593_s2 + $0x68] sm:$0xff] }
 0x174   :  { %v1043_v49 = vpop.f32.mrf.mxu0  ;;  %v1082_v54 = vpop.f32.mrf.mxu1  ;;  %19423 = vmatmul.mubr.msk.bf16.vlgmr.msra.gmra.mxu1 %vm60_vm2, %v21918_v18  ;;  %7649 = vrot.lane.b32.xlu1 %v21850_v32, %s20820_s17 }
 0x175   :  { %v22169_v48 = vadd.f32 %v1043_v49, %v619_v16  ;;  %v22171_v33 = vadd.f32 %v1082_v54, %v606_v13  ;;  %20363 = vmatpush3.bf16.msra.mxu1 %v4305_v44  ;;  %20364 = vmatprep.mubr.msk.bf16.mxu1 %vm20812_vm4, %v28815_v42  ;;  %v4806_v27 = vpop.permute.xlu0 %4805  ;;  %v4808_v1 = vpop.permute.xlu1 %4807  ;;  %v4842_v16 = vsel %vm208_vm1, %v4824_v38, 0  ;;  %v43_v13 = vld [vmem:[%s28593_s2 + $0xd8] sm:$0xff] }
 0x176   :  { %v1045_v5 = vpop.f32.mrf.mxu0  ;;  %v1084_v43 = vpop.f32.mrf.mxu1  ;;  %19447 = vmatprep.subr.msk.bf16.mxu1 %vm208_vm1, %v4827_v40  ;;  %v4829_v12 = vsel %vm4823_vm11, %v4804_v3, %v4806_v27  ;;  %v609_v40 = vadd.f32 %v21897_v60, %v29_v41  ;;  %v623_v4 = vadd.f32 %v21911_v30, %v43_v13 }
 0x177   :  { %v22185_v44 = vadd.f32 %v1045_v5, %v620_v63  ;;  %v22187_v49 = vadd.f32 %v1084_v43, %v607_v0  ;;  %7651 = vrot.lane.b32.xlu0 %v21860_v22, %s20820_s17  ;;  %v44_v0 = vld [vmem:[%s28593_s2 + $0xe0] sm:$0xff]  ;;  %v4848_v43 = vsel %vm208_vm1, %v4826_v62, 0 }
 0x178   :  { %v1086_v14 = vpop.f32.mrf.mxu1  ;;  %v1125_v38 = vpop.f32.mrf.mxu0  ;;  %19425 = vmatmul.mubr.msk.bf16.vlgmr.msra.gmra.mxu0 %vm60_vm2, %v21918_v18  ;;  %7653 = vrot.lane.b32.xlu1 %v21877_v59, %s20820_s17  ;;  %v22226_v62 = vld [vmem:[%s28592_s1 + $0x40] sm:$0xff]  }
 0x179   :  { %v22201_v63 = vadd.f32 %v1086_v14, %v621_v21  ;;  %v22203_v35 = vadd.f32 %v1125_v38, %v608_v58  ;;  %4901 = vmatpush1.bf16.msra.mxu0 %v4842_v16  ;;  %4918 = vmatprep.mubr.bf16.mxu0 %v28814_v20  ;;  %v4810_v29 = vpop.permute.xlu0 %4809  ;;  %v4812_v54 = vpop.permute.xlu1 %4811  ;;  %v4828_v58 = vsel %vm4823_vm11, %v22132_v51, %v4804_v3  ;;  %v670_v16 = vld [vmem:[#allocation2 + $0x70] sm:$0xff] }
 0x17a   :  { %v1088_v28 = vpop.f32.mrf.mxu1  ;;  %v1127_v5 = vpop.f32.mrf.mxu0  ;;  %19449 = vmatprep.subr.msk.bf16.mxu0 %vm208_vm1, %v4829_v12  ;;  %v4831_v41 = vsel %vm4823_vm11, %v4808_v1, %v4810_v29  ;;  %v624_v51 = vadd.f32 %v21933_v36, %v44_v0  ;;  %v4830_v36 = vsel %vm4823_vm11, %v4806_v27, %v4808_v1  ;;  %v685_v0 = vld [vmem:[#allocation2 + $0xe8] sm:$0xff] }
 0x17b   :  { %v22212_v60 = vadd.f32 %v1088_v28, %v622_v56  ;;  %v22214_v21 = vadd.f32 %v1127_v5, %v609_v40  ;;  %7655 = vrot.lane.b32.xlu0 %v21887_v47, %s20820_s17  ;;  %v4854_v40 = vsel %vm208_vm1, %v4828_v58, 0 }
 0x17c   :  { %v1129_v30 = vpop.f32.mrf.mxu0  ;;  %v1168_v13 = vpop.f32.mrf.mxu1  ;;  %20365 = vmatmul.mubr.msk.bf16.vlgmr.msra.gmra.mxu1 %vm60_vm2, %v21918_v18  ;;  %7657 = vrot.lane.b32.xlu1 %v21906_v10, %s20820_s17 }
 0x17d   :  { %v22231_v3 = vadd.f32 %v1129_v30, %v623_v4  ;;  %v1189_v12 = vadd.f32 %v1168_v13, %v670_v16  ;;  %4944 = vmatpush1.bf16.msra.mxu1 %v4848_v43  ;;  %4961 = vmatprep.mubr.bf16.mxu1 %v28814_v20  ;;  %v4814_v56 = vpop.permute.xlu0 %4813  ;;  %v4816_v14 = vpop.permute.xlu1 %4815  ;;  %v4860_v16 = vsel %vm208_vm1, %v4830_v36, 0 }
 0x17e   :  { %v1131_v38 = vpop.f32.mrf.mxu0  ;;  %v20330_v18 = vpop.f32.mrf.mxu1  ;;  %19451 = vmatprep.subr.msk.bf16.mxu1 %vm208_vm1, %v4831_v41  ;;  %v4833_v4 = vsel %vm4823_vm11, %v4812_v54, %v4814_v56 }
 0x17f   :  { %1219 = vst.msk [vmem:[#allocation2 + $0x70] sm:$0xff] %vm60_vm2, %v1189_v12  ;;  %v22237_v28 = vadd.f32 %v1131_v38, %v624_v51  ;;  %7659 = vrot.lane.b32.xlu0 %v21922_v25, %s20820_s17  ;;  %v4832_v51 = vsel %vm4823_vm11, %v4810_v29, %v4812_v54 }
 0x180   :  { %v1171_v5 = vpop.f32.mrf.mxu1  ;;  %v1446_v43 = vpop.f32.mrf.mxu0  ;;  %19446 = vmatmul.mubr.msk.bf16.vlgmr.msra.gmra.mxu0 %vm60_vm2, %v22226_v62  ;;  %7661 = vrot.lane.b32.xlu1 %v21947_v34, %s20820_s17 }
 0x181   :  { %v1204_v58 = vadd.f32 %v1171_v5, %v685_v0  ;;  %v22248_v41 = vadd.f32 %v1446_v43, %v21962_v37  ;;  %4987 = vmatpush1.bf16.msra.mxu0 %v4854_v40  ;;  %5004 = vmatprep.mubr.bf16.mxu0 %v28814_v20  ;;  %v4818_v27 = vpop.permute.xlu0 %4817  ;;  %v4820_v12 = vpop.permute.xlu1 %4819 }
 0x182   :  { %v20331_v1 = vpop.f32.mrf.mxu1  ;;  %v1448_v30 = vpop.f32.mrf.mxu0  ;;  %19453 = vmatprep.subr.msk.bf16.mxu0 %vm208_vm1, %v4833_v4  ;;  %v4835_v37 = vsel %vm4823_vm11, %v4816_v14, %v4818_v27  ;;  %v4866_v4 = vsel %vm208_vm1, %v4832_v51, 0 }
 0x183   :  { %1234 = vst.msk [vmem:[#allocation2 + $0xe8] sm:$0xff] %vm60_vm2, %v1204_v58  ;;  %v22255_v13 = vadd.f32 %v1448_v30, %v21986_v19  ;;  %7663 = vrot.lane.b32.xlu0 %v21956_v24, %s20820_s17  ;;  %v20650_v58 = vld [vmem:[%s28591_s0 + $0x3c] ss:$0 sps:$4 sm:$0xff]  }
 0x184   :  { %v1450_v38 = vpop.f32.mrf.mxu0  ;;  %v1489_v18 = vpop.f32.mrf.mxu1  ;;  %19448 = vmatmul.mubr.msk.bf16.vlgmr.msra.gmra.mxu1 %vm60_vm2, %v22226_v62  ;;  %7665 = vrot.lane.b32.xlu1 %v21976_v45, %s20820_s17 }
 0x185   :  { %v22266_v40 = vadd.f32 %v1450_v38, %v22005_v11  ;;  %v22269_v19 = vadd.f32 %v1489_v18, %v22007_v50  ;;  %5030 = vmatpush1.bf16.msra.mxu1 %v4860_v16  ;;  %5047 = vmatprep.mubr.bf16.mxu1 %v28814_v20  ;;  %v4822_v29 = vpop.permute.xlu0 %4821  ;;  %v4834_v11 = vsel %vm4823_vm11, %v4814_v56, %v4816_v14  ;;  %v5321_v38 = vld [vmem:[%s28591_s0] sm:$0xff] }
 0x186   :  { %v1452_v54 = vpop.f32.mrf.mxu0  ;;  %v1491_v36 = vpop.f32.mrf.mxu1  ;;  %19455 = vmatprep.subr.msk.bf16.mxu1 %vm208_vm1, %v4835_v37  ;;  %v4837_v50 = vsel %vm4823_vm11, %v4820_v12, %v4822_v29  ;;  %v4872_v51 = vsel %vm208_vm1, %v4834_v11, 0 }
 0x187   :  { %v22275_v0 = vadd.f32 %v1452_v54, %v22024_v15  ;;  %v22278_v5 = vadd.f32 %v1491_v36, %v22026_v52  ;;  %v22282_v43 = vpop.permute.xlu1 %5906  ;;  %7667 = vrot.lane.b32.xlu0 %v21999_v53, %s20820_s17 }
 0x188   :  { %v1493_v1 = vpop.f32.mrf.mxu1  ;;  %v1532_v30 = vpop.f32.mrf.mxu0  ;;  %19450 = vmatmul.mubr.msk.bf16.vlgmr.msra.gmra.mxu0 %vm60_vm2, %v22226_v62  ;;  %7669 = vrot.lane.b32.xlu1 %v22019_v61, %s20820_s17 }
 0x189   :  { %v22294_v15 = vadd.f32 %v1493_v1, %v22049_v39  ;;  %v22297_v52 = vadd.f32 %v1532_v30, %v22051_v23  ;;  %5073 = vmatpush1.bf16.msra.mxu0 %v4866_v4  ;;  %5090 = vmatprep.mubr.bf16.mxu0 %v28814_v20  ;;  %v22300_v56 = vpop.permute.xlu0 %5908  ;;  %v4836_v23 = vsel %vm4823_vm11, %v4818_v27, %v4820_v12  ;;  %vm12884_vm11 = vcmask 80896  }
 0x18a   :  { %v1495_v14 = vpop.f32.mrf.mxu1  ;;  %v1534_v16 = vpop.f32.mrf.mxu0  ;;  %19457 = vmatprep.subr.msk.bf16.mxu0 %vm208_vm1, %v4837_v50  ;;  %v4878_v11 = vsel %vm208_vm1, %v4836_v23, 0  ;;  %v19464_v50 = vcombine.high %v5321_v38, %v5321_v38 }
 0x18b   :  { %v22305_v37 = vadd.f32 %v1495_v14, %v22068_v7  ;;  %v22308_v39 = vadd.f32 %v1534_v16, %v22070_v6  ;;  %v22314_v18 = vpop.permute.xlu1 %5910  ;;  %7671 = vrot.lane.b32.xlu0 %v20650_v58, %s20820_s17  ;;  %v4884_v16 = vsel %vm208_vm1, %v4822_v29, 0  ;;  %s20824_s17 = smov 70  }
 0x18c   :  { %v1536_v54 = vpop.f32.mrf.mxu0  ;;  %v1575_v36 = vpop.f32.mrf.mxu1  ;;  %19452 = vmatmul.mubr.msk.bf16.vlgmr.msra.gmra.mxu1 %vm60_vm2, %v22226_v62  ;;  %8222 = vrot.lane.b32.xlu1 %v21834_v26, %s20821_s11 }
 0x18d   :  { %v22322_v7 = vadd.f32 %v1536_v54, %v22087_v55  ;;  %v22325_v6 = vadd.f32 %v1575_v36, %v22089_v57  ;;  %5116 = vmatpush1.bf16.msra.mxu1 %v4872_v51  ;;  %5133 = vmatprep.mubr.bf16.mxu1 %v28814_v20  ;;  %v22328_v27 = vpop.permute.xlu0 %5912  ;;  %v19463_v51 = vcombine.low %v5321_v38, %v5321_v38 }
 0x18e   :  { %v1538_v12 = vpop.f32.mrf.mxu0  ;;  %v1577_v4 = vpop.f32.mrf.mxu1  ;;  %20368 = vmatprep.subr.bf16.mxu1 %v28815_v42 }
 0x18f   :  { %v22333_v26 = vadd.f32 %v1538_v12, %v22109_v46  ;;  %v22336_v55 = vadd.f32 %v1577_v4, %v22111_v8  ;;  %v22338_v57 = vpop.permute.xlu1 %5914  ;;  %8224 = vrot.lane.b32.xlu0 %v21850_v32, %s20821_s11  ;;  %v5376_v36 = vsel %vm208_vm1, %v19463_v51, 0  ;;  %v28816_v12 = vld [vmem:[#allocation6_spill] sm:$0xff]  ;;  %v1249_v51 = vld [vmem:[#allocation2 + $0x70] sm:$0xff] }
 0x190   :  { %v1579_v58 = vpop.f32.mrf.mxu1  ;;  %v1618_v1 = vpop.f32.mrf.mxu0  ;;  %19454 = vmatmul.mubr.msk.bf16.vlgmr.msra.gmra.mxu0 %vm60_vm2, %v22226_v62  ;;  %8226 = vrot.lane.b32.xlu1 %v21860_v22, %s20821_s11 }
 0x191   :  { %v22347_v30 = vadd.f32 %v1579_v58, %v22127_v9  ;;  %v22350_v46 = vadd.f32 %v1618_v1, %v22129_v2  ;;  %5159 = vmatpush1.bf16.msra.mxu0 %v4878_v11  ;;  %5176 = vmatprep.mubr.bf16.mxu0 %v28814_v20  ;;  %v22353_v8 = vpop.permute.xlu0 %5916  ;;  %v28817_v1 = vld [vmem:[#allocation5_spill] sm:$0xff] }
 0x192   :  { %v1581_v32 = vpop.f32.mrf.mxu1  ;;  %v1620_v14 = vpop.f32.mrf.mxu0  ;;  %19478 = vmatprep.subr.msk.bf16.mxu0 %vm208_vm1, %v19464_v50 }
 0x193   :  { %v22358_v22 = vadd.f32 %v1581_v32, %v22148_v17  ;;  %v22361_v9 = vadd.f32 %v1620_v14, %v22150_v31  ;;  %v22363_v2 = vpop.permute.xlu1 %5918  ;;  %8228 = vrot.lane.b32.xlu0 %v21877_v59, %s20821_s11  ;;  %v5382_v32 = vsel %vm208_vm1, %v28817_v1, 0  ;;  %v28818_v14 = vld [vmem:[#allocation8_spill] sm:$0xff] }
 0x194   :  { %v1622_v23 = vpop.f32.mrf.mxu0  ;;  %v1661_v54 = vpop.f32.mrf.mxu1  ;;  %19456 = vmatmul.mubr.msk.bf16.vlgmr.msra.gmra.mxu1 %vm60_vm2, %v22226_v62  ;;  %8230 = vrot.lane.b32.xlu1 %v21887_v47, %s20821_s11 }
 0x195   :  { %v22372_v29 = vadd.f32 %v1622_v23, %v22169_v48  ;;  %v22375_v17 = vadd.f32 %v1661_v54, %v22171_v33  ;;  %20369 = vmatpush3.bf16.msra.mxu1 %v4884_v16  ;;  %20370 = vmatprep.mubr.msk.bf16.mxu1 %vm20812_vm4, %v28815_v42  ;;  %v22379_v31 = vpop.permute.xlu0 %5920  ;;  %v22426_v54 = vld [vmem:[%s28592_s1 + $0x48] sm:$0xff]  }
 0x196   :  { %v1624_v59 = vpop.f32.mrf.mxu0  ;;  %v1663_v38 = vpop.f32.mrf.mxu1  ;;  %19480 = vmatprep.subr.msk.bf16.mxu1 %vm208_vm1, %v28816_v12 }
 0x197   :  { %v22385_v47 = vadd.f32 %v1624_v59, %v22185_v44  ;;  %v22388_v48 = vadd.f32 %v1663_v38, %v22187_v49  ;;  %v22390_v33 = vpop.permute.xlu1 %5922  ;;  %8232 = vrot.lane.b32.xlu0 %v21906_v10, %s20821_s11 }
 0x198   :  { %v1665_v4 = vpop.f32.mrf.mxu1  ;;  %v1704_v11 = vpop.f32.mrf.mxu0  ;;  %19458 = vmatmul.mubr.msk.bf16.vlgmr.msra.gmra.mxu0 %vm60_vm2, %v22226_v62  ;;  %8234 = vrot.lane.b32.xlu1 %v21922_v25, %s20821_s11 }
 0x199   :  { %v22399_v50 = vadd.f32 %v1665_v4, %v22201_v63  ;;  %v22402_v44 = vadd.f32 %v1704_v11, %v22203_v35  ;;  %5435 = vmatpush1.bf16.msra.mxu0 %v5376_v36  ;;  %5452 = vmatprep.mubr.bf16.mxu0 %v28814_v20  ;;  %v22405_v49 = vpop.permute.xlu0 %5924  ;;  %v28819_v36 = vld [vmem:[#allocation7_spill] sm:$0xff]  ;;  %v28820_v4 = vld [vmem:[#allocation10_spill] sm:$0xff]  ;;  %v1264_v11 = vld [vmem:[#allocation2 + $0xe8] sm:$0xff] }
 0x19a   :  { %v1667_v10 = vpop.f32.mrf.mxu1  ;;  %v1706_v58 = vpop.f32.mrf.mxu0  ;;  %19482 = vmatprep.subr.msk.bf16.mxu0 %vm208_vm1, %v28818_v14  ;;  %v5388_v12 = vsel %vm208_vm1, %v28819_v36, 0 }
 0x19b   :  { %v22412_v25 = vadd.f32 %v1667_v10, %v22212_v60  ;;  %v22415_v63 = vadd.f32 %v1706_v58, %v22214_v21  ;;  %v22417_v35 = vpop.permute.xlu1 %5926  ;;  %8236 = vrot.lane.b32.xlu0 %v21947_v34, %s20821_s11 }
 0x19c   :  { %v1708_v16 = vpop.f32.mrf.mxu0  ;;  %v1747_v23 = vpop.f32.mrf.mxu1  ;;  %20371 = vmatmul.mubr.msk.bf16.vlgmr.msra.gmra.mxu1 %vm60_vm2, %v22226_v62  ;;  %8238 = vrot.lane.b32.xlu1 %v21956_v24, %s20821_s11  ;;  %v8177_v62 = vld [vmem:[%s28591_s0 + $0x3c] sm:$0xff] }
 0x19d   :  { %v22431_v60 = vadd.f32 %v1708_v16, %v22231_v3  ;;  %v1768_v21 = vadd.f32 %v1747_v23, %v1249_v51  ;;  %5478 = vmatpush1.bf16.msra.mxu1 %v5382_v32  ;;  %5495 = vmatprep.mubr.bf16.mxu1 %v28814_v20  ;;  %v22434_v34 = vpop.permute.xlu0 %5928  ;;  %v22455_v1 = vcombine.low %v8177_v62, %v8177_v62  ;;  %v28821_v51 = vld [vmem:[#allocation9_spill] sm:$0xff] }
 0x19e   :  { %v1710_v59 = vpop.f32.mrf.mxu0  ;;  %v20336_v38 = vpop.f32.mrf.mxu1  ;;  %19484 = vmatprep.subr.msk.bf16.mxu1 %vm208_vm1, %v28820_v4  ;;  %v5394_v23 = vsel %vm208_vm1, %v28821_v51, 0 }
 0x19f   :  { %1798 = vst.msk [vmem:[#allocation2 + $0x70] sm:$0xff] %vm60_vm2, %v1768_v21  ;;  %v22445_v24 = vadd.f32 %v1710_v59, %v22237_v28  ;;  %v22447_v3 = vpop.permute.xlu1 %5930  ;;  %8240 = vrot.lane.b32.xlu0 %v21976_v45, %s20821_s11  ;;  %v28822_v21 = vld [vmem:[#allocation12_spill] sm:$0xff]  ;;  %v22475_v59 = vcombine.high %v8177_v62, %v8177_v62 }
 0x1a0   :  { %v1750_v10 = vpop.f32.mrf.mxu1  ;;  %v2025_v58 = vpop.f32.mrf.mxu0  ;;  %19479 = vmatmul.mubr.msk.bf16.vlgmr.msra.gmra.mxu0 %vm60_vm2, %v22426_v54  ;;  %8242 = vrot.lane.b32.xlu1 %v21999_v53, %s20821_s11 }
 0x1a1   :  { %v1783_v32 = vadd.f32 %v1750_v10, %v1264_v11  ;;  %v22458_v28 = vadd.f32 %v2025_v58, %v22248_v41  ;;  %5521 = vmatpush1.bf16.msra.mxu0 %v5388_v12  ;;  %5538 = vmatprep.mubr.bf16.mxu0 %v28814_v20  ;;  %v22461_v14 = vpop.permute.xlu0 %5932  ;;  %v8750_v12 = vld [vmem:[%s28591_s0 + $0xc] sm:$0xff]  ;;  %v28824_v58 = vld [vmem:[#allocation11_spill] sm:$0xff] }
 0x1a2   :  { %v20337_v45 = vpop.f32.mrf.mxu1  ;;  %v2027_v16 = vpop.f32.mrf.mxu0  ;;  %19486 = vmatprep.subr.msk.bf16.mxu0 %vm208_vm1, %v28822_v21  ;;  %v22510_v51 = vcombine.low %v8750_v12, %v8750_v12 }
 0x1a3   :  { %1813 = vst.msk [vmem:[#allocation2 + $0xe8] sm:$0xff] %vm60_vm2, %v1783_v32  ;;  %v22469_v53 = vadd.f32 %v2027_v16, %v22255_v13  ;;  %v22471_v41 = vpop.permute.xlu1 %5934  ;;  %8244 = vrot.lane.b32.xlu0 %v22019_v61, %s20821_s11  ;;  %v20653_v13 = vld [vmem:[%s28591_s0 + $0x44] ss:$0 sps:$4 sm:$0xff]   ;;  %v5400_v32 = vsel %vm208_vm1, %v28824_v58, 0  ;;  %v28825_v45 = vld [vmem:[#allocation14_spill] sm:$0xff] }
 0x1a4   :  { %v2029_v38 = vpop.f32.mrf.mxu0  ;;  %v2068_v36 = vpop.f32.mrf.mxu1  ;;  %19481 = vmatmul.mubr.msk.bf16.vlgmr.msra.gmra.mxu1 %vm60_vm2, %v22426_v54  ;;  %8246 = vrot.lane.b32.xlu1 %v22455_v1, %s20821_s11 }
 0x1a5   :  { %v22488_v61 = vadd.f32 %v2029_v38, %v22266_v40  ;;  %v22491_v62 = vadd.f32 %v2068_v36, %v22269_v19  ;;  %5564 = vmatpush1.bf16.msra.mxu1 %v5394_v23  ;;  %5581 = vmatprep.mubr.bf16.mxu1 %v28814_v20  ;;  %v22494_v4 = vpop.permute.xlu0 %6485  ;;  %v22515_v38 = vcombine.high %v8750_v12, %v8750_v12 }
 0x1a6   :  { %28823 = vst [vmem:[#allocation6_spill] sm:$0xff] %v22494_v4  ;;  %v2031_v11 = vpop.f32.mrf.mxu0  ;;  %v2070_v10 = vpop.f32.mrf.mxu1  ;;  %19488 = vmatprep.subr.msk.bf16.mxu1 %vm208_vm1, %v28825_v45  ;;  %v28829_v45 = vld [vmem:[#allocation16_spill] sm:$0xff] }
 0x1a7   :  { %v22501_v16 = vadd.f32 %v2031_v11, %v22275_v0  ;;  %v22504_v40 = vadd.f32 %v2070_v10, %v22278_v5  ;;  %v22506_v19 = vpop.permute.xlu1 %6487  ;;  %8248 = vrot.lane.b32.xlu0 %v22475_v59, %s20821_s11  ;;  %v8751_v0 = vld [vmem:[%s28591_s0 + $0x14] sm:$0xff] }
 0x1a8   :  { %28826 = vst [vmem:[#allocation5_spill] sm:$0xff] %v22506_v19  ;;  %v2072_v23 = vpop.f32.mrf.mxu1  ;;  %v2111_v21 = vpop.f32.mrf.mxu0  ;;  %19483 = vmatmul.mubr.msk.bf16.vlgmr.msra.gmra.mxu0 %vm60_vm2, %v22426_v54  ;;  %8250 = vrot.lane.b32.xlu1 %v20653_v13, %s20821_s11  ;;  %v28828_v13 = vld [vmem:[#allocation13_spill] sm:$0xff]  ;;  %v28834_v19 = vld [vmem:[#allocation15_spill] sm:$0xff]  ;;  %s20829_s11 = smov 10  }
 0x1a9   :  { %v22521_v5 = vadd.f32 %v2072_v23, %v22294_v15  ;;  %v22524_v36 = vadd.f32 %v2111_v21, %v22297_v52  ;;  %5607 = vmatpush1.bf16.msra.mxu0 %v5400_v32  ;;  %5624 = vmatprep.mubr.bf16.mxu0 %v28814_v20  ;;  %v22527_v11 = vpop.permute.xlu0 %6489  ;;  %v5406_v12 = vsel %vm208_vm1, %v28828_v13, 0  ;;  %v22543_v32 = vcombine.low %v8751_v0, %v8751_v0 }
 0x1aa   :  { %28827 = vst [vmem:[#allocation8_spill] sm:$0xff] %v22527_v11  ;;  %v2074_v10 = vpop.f32.mrf.mxu1  ;;  %v2113_v58 = vpop.f32.mrf.mxu0  ;;  %19490 = vmatprep.subr.msk.bf16.mxu0 %vm208_vm1, %v28829_v45 }
 0x1ab   :  { %v22534_v4 = vadd.f32 %v2074_v10, %v22305_v37  ;;  %v22537_v15 = vadd.f32 %v2113_v58, %v22308_v39  ;;  %v22539_v52 = vpop.permute.xlu1 %6491  ;;  %8801 = vrot.lane.b32.xlu0 %v22510_v51, %s20822_s23  ;;  %v22549_v37 = vcombine.high %v8751_v0, %v8751_v0  ;;  %v8752_v39 = vld [vmem:[%s28591_s0 + $0x1c] sm:$0xff]  ;;  %v5412_v0 = vsel %vm208_vm1, %v28834_v19, 0 }
 0x1ac   :  { %28830 = vst [vmem:[#allocation7_spill] sm:$0xff] %v22539_v52  ;;  %v2115_v23 = vpop.f32.mrf.mxu0  ;;  %v2154_v21 = vpop.f32.mrf.mxu1  ;;  %19485 = vmatmul.mubr.msk.bf16.vlgmr.msra.gmra.mxu1 %vm60_vm2, %v22426_v54  ;;  %8803 = vrot.lane.b32.xlu1 %v22515_v38, %s20822_s23  ;;  %v22582_v19 = vcombine.low %v8752_v39, %v8752_v39 }
 0x1ad   :  { %28831 = vst [vmem:[#allocation10_spill] sm:$0xff] %v22549_v37  ;;  %v22555_v10 = vadd.f32 %v2115_v23, %v22322_v7  ;;  %v22558_v58 = vadd.f32 %v2154_v21, %v22325_v6  ;;  %5650 = vmatpush1.bf16.msra.mxu1 %v5406_v12  ;;  %5667 = vmatprep.mubr.bf16.mxu1 %v28814_v20  ;;  %v22561_v13 = vpop.permute.xlu0 %6493  ;;  %v20649_v7 = vld [vmem:[%s28591_s0 + $0x38] ss:$0 sps:$4 sm:$0xff]  }
 0x1ae   :  { %28833 = vst [vmem:[#allocation12_spill] sm:$0xff] %v22561_v13  ;;  %v2117_v45 = vpop.f32.mrf.mxu0  ;;  %v2156_v52 = vpop.f32.mrf.mxu1  ;;  %20374 = vmatprep.subr.bf16.mxu1 %v28815_v42  ;;  %v5938_v12 = vsel %vm5936_vm12, %v22300_v56, %v22314_v18  ;;  %28838 = vst [vmem:[#allocation16_spill] sm:$0xff] %v22582_v19  ;;  %v8753_v13 = vld [vmem:[%s28591_s0 + $0x24] sm:$0xff] }
 0x1af   :  { %28832 = vst [vmem:[#allocation9_spill] sm:$0xff] %v22558_v58  ;;  %v22570_v23 = vadd.f32 %v2117_v45, %v22333_v26  ;;  %v22573_v6 = vadd.f32 %v2156_v52, %v22336_v55  ;;  %v22578_v21 = vpop.permute.xlu1 %6495  ;;  %8805 = vrot.lane.b32.xlu0 %v22543_v32, %s20822_s23  ;;  %v22591_v55 = vcombine.high %v8752_v39, %v8752_v39  ;;  %v5418_v58 = vsel %vm208_vm1, %v20649_v7, 0 }
 0x1b0   :  { %28837 = vst [vmem:[#allocation13_spill] sm:$0xff] %v22578_v21  ;;  %v2158_v26 = vpop.f32.mrf.mxu1  ;;  %v2197_v45 = vpop.f32.mrf.mxu0  ;;  %19487 = vmatmul.mubr.msk.bf16.vlgmr.msra.gmra.mxu0 %vm60_vm2, %v22426_v54  ;;  %8807 = vrot.lane.b32.xlu1 %v22549_v37, %s20822_s23  ;;  %v22604_v37 = vcombine.low %v8753_v13, %v8753_v13 }
 0x1b1   :  { %28835 = vst [vmem:[#allocation11_spill] sm:$0xff] %v22570_v23  ;;  %28836 = vst [vmem:[#allocation14_spill] sm:$0xff] %v22573_v6  ;;  %v22594_v52 = vadd.f32 %v2158_v26, %v22347_v30  ;;  %v22597_v21 = vadd.f32 %v2197_v45, %v22350_v46  ;;  %5693 = vmatpush1.bf16.msra.mxu0 %v5412_v0  ;;  %5710 = vmatprep.mubr.bf16.mxu0 %v28814_v20  ;;  %v22600_v11 = vpop.permute.xlu0 %6497 }
 0x1b2   :  { %v2160_v6 = vpop.f32.mrf.mxu1  ;;  %v2199_v23 = vpop.f32.mrf.mxu0  ;;  %19511 = vmatprep.subr.msk.bf16.mxu0 %vm208_vm1, %v5938_v12  ;;  %v5937_v46 = vsel %vm5936_vm12, %v22282_v43, %v22300_v56  ;;  %v5940_v0 = vsel %vm5936_vm12, %v22328_v27, %v22338_v57  ;;  %v22629_v43 = vcombine.high %v8753_v13, %v8753_v13 }
 0x1b3   :  { %v22607_v39 = vadd.f32 %v2160_v6, %v22358_v22  ;;  %v22610_v30 = vadd.f32 %v2199_v23, %v22361_v9  ;;  %v22618_v26 = vpop.permute.xlu1 %6499  ;;  %8809 = vrot.lane.b32.xlu0 %v22582_v19, %s20822_s23  ;;  %v8754_v22 = vld [vmem:[%s28591_s0 + $0x2c] sm:$0xff] }
 0x1b4   :  { %28839 = vst [vmem:[#allocation15_spill] sm:$0xff] %v22618_v26  ;;  %v2201_v7 = vpop.f32.mrf.mxu0  ;;  %v2240_v9 = vpop.f32.mrf.mxu1  ;;  %19489 = vmatmul.mubr.msk.bf16.vlgmr.msra.gmra.mxu1 %vm60_vm2, %v22426_v54  ;;  %8811 = vrot.lane.b32.xlu1 %v22591_v55, %s20822_s23  ;;  %28840 = vst [vmem:[#allocation17_spill] sm:$0xff] %v22629_v43  ;;  %v5955_v26 = vsel %vm208_vm1, %v5937_v46, 0  ;;  %v22643_v13 = vcombine.low %v8754_v22, %v8754_v22 }
 0x1b5   :  { %v22632_v56 = vadd.f32 %v2201_v7, %v22372_v29  ;;  %v22635_v23 = vadd.f32 %v2240_v9, %v22375_v17  ;;  %20375 = vmatpush3.bf16.msra.mxu1 %v5418_v58  ;;  %20376 = vmatprep.mubr.msk.bf16.mxu1 %vm20812_vm4, %v28815_v42  ;;  %v22639_v6 = vpop.permute.xlu0 %6501  ;;  %v5939_v58 = vsel %vm5936_vm12, %v22314_v18, %v22328_v27 }
 0x1b6   :  { %28841 = vst [vmem:[#allocation18_spill] sm:$0xff] %v22639_v6  ;;  %v2203_v12 = vpop.f32.mrf.mxu0  ;;  %v2242_v45 = vpop.f32.mrf.mxu1  ;;  %19513 = vmatprep.subr.msk.bf16.mxu1 %vm208_vm1, %v5940_v0  ;;  %v5942_v7 = vsel %vm5936_vm12, %v22353_v8, %v22363_v2  ;;  %v22668_v18 = vcombine.high %v8754_v22, %v8754_v22  ;;  %v5961_v6 = vsel %vm208_vm1, %v5939_v58, 0 }
 0x1b7   :  { %v22646_v29 = vadd.f32 %v2203_v12, %v22385_v47  ;;  %v22649_v17 = vadd.f32 %v2242_v45, %v22388_v48  ;;  %v22657_v9 = vpop.permute.xlu1 %6503  ;;  %8813 = vrot.lane.b32.xlu0 %v22604_v37, %s20822_s23  ;;  %v8755_v47 = vld [vmem:[%s28591_s0 + $0x34] sm:$0xff] }
 0x1b8   :  { %28842 = vst [vmem:[#allocation19_spill] sm:$0xff] %v22657_v9  ;;  %v2244_v46 = vpop.f32.mrf.mxu1  ;;  %v2283_v48 = vpop.f32.mrf.mxu0  ;;  %19491 = vmatmul.mubr.msk.bf16.vlgmr.msra.gmra.mxu0 %vm60_vm2, %v22426_v54  ;;  %8815 = vrot.lane.b32.xlu1 %v22629_v43, %s20822_s23  ;;  %28843 = vst [vmem:[#allocation20_spill] sm:$0xff] %v22668_v18  ;;  %v22681_v43 = vcombine.low %v8755_v47, %v8755_v47 }
 0x1b9   :  { %v22671_v27 = vadd.f32 %v2244_v46, %v22399_v50  ;;  %v22674_v0 = vadd.f32 %v2283_v48, %v22402_v44  ;;  %6014 = vmatpush1.bf16.msra.mxu0 %v5955_v26  ;;  %6031 = vmatprep.mubr.bf16.mxu0 %v28814_v20  ;;  %v22677_v12 = vpop.permute.xlu0 %6505  ;;  %v5941_v44 = vsel %vm5936_vm12, %v22338_v57, %v22353_v8 }
 0x1ba   :  { %v2246_v45 = vpop.f32.mrf.mxu1  ;;  %v2285_v9 = vpop.f32.mrf.mxu0  ;;  %19515 = vmatprep.subr.msk.bf16.mxu0 %vm208_vm1, %v5942_v7  ;;  %v5944_v26 = vsel %vm5936_vm12, %v22379_v31, %v22390_v33  ;;  %v1828_v7 = vld [vmem:[#allocation2 + $0x70] sm:$0xff]  ;;  %v22708_v57 = vcombine.high %v8755_v47, %v8755_v47 }
 0x1bb   :  { %v22684_v22 = vadd.f32 %v2246_v45, %v22412_v25  ;;  %v22687_v50 = vadd.f32 %v2285_v9, %v22415_v63  ;;  %v22695_v46 = vpop.permute.xlu1 %6507  ;;  %8817 = vrot.lane.b32.xlu0 %v22643_v13, %s20822_s23  ;;  %v22704_v63 = vld [vmem:[%s28592_s1 + $0x50] sm:$0xff]  }
 0x1bc   :  { %28844 = vst [vmem:[#allocation21_spill] sm:$0xff] %v22695_v46  ;;  %v2287_v58 = vpop.f32.mrf.mxu0  ;;  %v2326_v25 = vpop.f32.mrf.mxu1  ;;  %20377 = vmatmul.mubr.msk.bf16.vlgmr.msra.gmra.mxu1 %vm60_vm2, %v22426_v54  ;;  %8819 = vrot.lane.b32.xlu1 %v22668_v18, %s20822_s23  ;;  %v5967_v46 = vsel %vm208_vm1, %v5941_v44, 0  ;;  %v1843_v44 = vld [vmem:[#allocation2 + $0xe8] sm:$0xff] }
 0x1bd   :  { %v22711_v8 = vadd.f32 %v2287_v58, %v22431_v60  ;;  %v2347_v9 = vadd.f32 %v2326_v25, %v1828_v7  ;;  %6057 = vmatpush1.bf16.msra.mxu1 %v5961_v6  ;;  %6074 = vmatprep.mubr.bf16.mxu1 %v28814_v20  ;;  %v22714_v48 = vpop.permute.xlu0 %6509  ;;  %v5943_v60 = vsel %vm5936_vm12, %v22363_v2, %v22379_v31 }
 0x1be   :  { %v2289_v54 = vpop.f32.mrf.mxu0  ;;  %v20342_v45 = vpop.f32.mrf.mxu1  ;;  %19517 = vmatprep.subr.msk.bf16.mxu1 %vm208_vm1, %v5944_v26  ;;  %v5946_v6 = vsel %vm5936_vm12, %v22405_v49, %v22417_v35 }
 0x1bf   :  { %2377 = vst.msk [vmem:[#allocation2 + $0x70] sm:$0xff] %vm60_vm2, %v2347_v9  ;;  %v22720_v47 = vadd.f32 %v2289_v54, %v22445_v24  ;;  %v22728_v58 = vpop.permute.xlu1 %6511  ;;  %8821 = vrot.lane.b32.xlu0 %v22681_v43, %s20822_s23  ;;  %v5973_v54 = vsel %vm208_vm1, %v5943_v60, 0  ;;  %v20667_v60 = vld [vmem:[%s28591_s0 + $0x44] ss:$0 sps:$4 sm:$0xff]  }
 0x1c0   :  { %v2329_v26 = vpop.f32.mrf.mxu1  ;;  %v2604_v7 = vpop.f32.mrf.mxu0  ;;  %19512 = vmatmul.mubr.msk.bf16.vlgmr.msra.gmra.mxu0 %vm60_vm2, %v22704_v63  ;;  %8823 = vrot.lane.b32.xlu1 %v22708_v57, %s20822_s23 }
 0x1c1   :  { %v2362_v24 = vadd.f32 %v2329_v26, %v1843_v44  ;;  %v22737_v2 = vadd.f32 %v2604_v7, %v22458_v28  ;;  %6100 = vmatpush1.bf16.msra.mxu0 %v5967_v46  ;;  %6117 = vmatprep.mubr.bf16.mxu0 %v28814_v20  ;;  %v22740_v31 = vpop.permute.xlu0 %6513  ;;  %v5945_v28 = vsel %vm5936_vm12, %v22390_v33, %v22405_v49 }
 0x1c2   :  { %v20343_v25 = vpop.f32.mrf.mxu1  ;;  %v2606_v9 = vpop.f32.mrf.mxu0  ;;  %19519 = vmatprep.subr.msk.bf16.mxu0 %vm208_vm1, %v5946_v6  ;;  %v5948_v46 = vsel %vm5936_vm12, %v22434_v34, %v22447_v3 }
 0x1c3   :  { %2392 = vst.msk [vmem:[#allocation2 + $0xe8] sm:$0xff] %vm60_vm2, %v2362_v24  ;;  %v22746_v45 = vadd.f32 %v2606_v9, %v22469_v53  ;;  %v22754_v44 = vpop.permute.xlu1 %7064  ;;  %8825 = vrot.lane.b32.xlu0 %v22455_v1, %s20822_s23  ;;  %v5979_v25 = vsel %vm208_vm1, %v5945_v28, 0 }
 0x1c4   :  { %28845 = vst [vmem:[#allocation22_spill] sm:$0xff] %v22754_v44  ;;  %v2608_v6 = vpop.f32.mrf.mxu0  ;;  %v2647_v53 = vpop.f32.mrf.mxu1  ;;  %19514 = vmatmul.mubr.msk.bf16.vlgmr.msra.gmra.mxu1 %vm60_vm2, %v22704_v63  ;;  %8827 = vrot.lane.b32.xlu1 %v22475_v59, %s20822_s23 }
 0x1c5   :  { %v22766_v33 = vadd.f32 %v2608_v6, %v22488_v61  ;;  %v22769_v49 = vadd.f32 %v2647_v53, %v22491_v62  ;;  %6143 = vmatpush1.bf16.msra.mxu1 %v5973_v54  ;;  %6160 = vmatprep.mubr.bf16.mxu1 %v28814_v20  ;;  %v22772_v26 = vpop.permute.xlu0 %7066  ;;  %v5947_v62 = vsel %vm5936_vm12, %v22417_v35, %v22434_v34 }
 0x1c6   :  { %v2610_v7 = vpop.f32.mrf.mxu0  ;;  %v2649_v24 = vpop.f32.mrf.mxu1  ;;  %19521 = vmatprep.subr.msk.bf16.mxu1 %vm208_vm1, %v5948_v46  ;;  %v5950_v54 = vsel %vm5936_vm12, %v22461_v14, %v22471_v41  ;;  %v5985_v53 = vsel %vm208_vm1, %v5947_v62, 0 }
 0x1c7   :  { %v22777_v9 = vadd.f32 %v2610_v7, %v22501_v16  ;;  %v22780_v61 = vadd.f32 %v2649_v24, %v22504_v40  ;;  %v22788_v6 = vpop.permute.xlu1 %7068  ;;  %8829 = vrot.lane.b32.xlu0 %v20667_v60, %s20822_s23 }
 0x1c8   :  { %v2651_v28 = vpop.f32.mrf.mxu1  ;;  %v2690_v46 = vpop.f32.mrf.mxu0  ;;  %19516 = vmatmul.mubr.msk.bf16.vlgmr.msra.gmra.mxu0 %vm60_vm2, %v22704_v63  ;;  %9380 = vrot.lane.b32.xlu1 %v22510_v51, %s20823_s10 }
 0x1c9   :  { %v22796_v16 = vadd.f32 %v2651_v28, %v22521_v5  ;;  %v22799_v35 = vadd.f32 %v2690_v46, %v22524_v36  ;;  %6186 = vmatpush1.bf16.msra.mxu0 %v5979_v25  ;;  %6203 = vmatprep.mubr.bf16.mxu0 %v28814_v20  ;;  %v22802_v34 = vpop.permute.xlu0 %7070  ;;  %v5949_v36 = vsel %vm5936_vm12, %v22447_v3, %v22461_v14  ;;  %vm13463_vm12 = vcmask 72704  }
 0x1ca   :  { %28846 = vst [vmem:[#allocation23_spill] sm:$0xff] %v22802_v34  ;;  %v2653_v40 = vpop.f32.mrf.mxu1  ;;  %v2692_v60 = vpop.f32.mrf.mxu0  ;;  %19523 = vmatprep.subr.msk.bf16.mxu0 %vm208_vm1, %v5950_v54  ;;  %v5991_v46 = vsel %vm208_vm1, %v5949_v36, 0  ;;  %v28851_v34 = vld [vmem:[#allocation14_spill] sm:$0xff] }
 0x1cb   :  { %v22807_v7 = vadd.f32 %v2653_v40, %v22534_v4  ;;  %v22810_v5 = vadd.f32 %v2692_v60, %v22537_v15  ;;  %v22815_v24 = vpop.permute.xlu1 %7072  ;;  %9382 = vrot.lane.b32.xlu0 %v22515_v38, %s20823_s10  ;;  %v28848_v15 = vld [vmem:[#allocation9_spill] sm:$0xff]  ;;  %v28850_v40 = vld [vmem:[#allocation11_spill] sm:$0xff] }
 0x1cc   :  { %28847 = vst [vmem:[#allocation24_spill] sm:$0xff] %v22815_v24  ;;  %v2694_v25 = vpop.f32.mrf.mxu0  ;;  %v2733_v28 = vpop.f32.mrf.mxu1  ;;  %19518 = vmatmul.mubr.msk.bf16.vlgmr.msra.gmra.mxu1 %vm60_vm2, %v22704_v63  ;;  %9384 = vrot.lane.b32.xlu1 %v22543_v32, %s20823_s10 }
 0x1cd   :  { %v22824_v4 = vadd.f32 %v2694_v25, %v22555_v10  ;;  %v22827_v62 = vadd.f32 %v2733_v28, %v28848_v15  ;;  %6229 = vmatpush1.bf16.msra.mxu1 %v5985_v53  ;;  %6246 = vmatprep.mubr.bf16.mxu1 %v28814_v20  ;;  %v22830_v3 = vpop.permute.xlu0 %7074  ;;  %v28852_v25 = vld [vmem:[#allocation8_spill] sm:$0xff]  ;;  %v28853_v28 = vld [vmem:[#allocation5_spill] sm:$0xff] }
 0x1ce   :  { %28849 = vst [vmem:[#allocation9_spill] sm:$0xff] %v22830_v3  ;;  %v2696_v14 = vpop.f32.mrf.mxu0  ;;  %v2735_v54 = vpop.f32.mrf.mxu1  ;;  %20380 = vmatprep.subr.bf16.mxu1 %v28815_v42  ;;  %v6517_v53 = vsel %vm6515_vm13, %v28853_v28, %v28852_v25  ;;  %v28855_v3 = vld [vmem:[#allocation10_spill] sm:$0xff] }
 0x1cf   :  { %v22835_v60 = vadd.f32 %v2696_v14, %v28850_v40  ;;  %v22838_v10 = vadd.f32 %v2735_v54, %v28851_v34  ;;  %v22843_v15 = vpop.permute.xlu1 %7076  ;;  %9386 = vrot.lane.b32.xlu0 %v28855_v3, %s20823_s10 }
 0x1d0   :  { %28854 = vst [vmem:[#allocation11_spill] sm:$0xff] %v22843_v15  ;;  %v2737_v24 = vpop.f32.mrf.mxu1  ;;  %v2776_v44 = vpop.f32.mrf.mxu0  ;;  %19520 = vmatmul.mubr.msk.bf16.vlgmr.msra.gmra.mxu0 %vm60_vm2, %v22704_v63  ;;  %9388 = vrot.lane.b32.xlu1 %v22582_v19, %s20823_s10  ;;  %v5997_v15 = vsel %vm208_vm1, %v22471_v41, 0 }
 0x1d1   :  { %v22852_v34 = vadd.f32 %v2737_v24, %v22594_v52  ;;  %v22855_v36 = vadd.f32 %v2776_v44, %v22597_v21  ;;  %6272 = vmatpush1.bf16.msra.mxu0 %v5991_v46  ;;  %6289 = vmatprep.mubr.bf16.mxu0 %v28814_v20  ;;  %v22858_v14 = vpop.permute.xlu0 %7078  ;;  %v28858_v21 = vld [vmem:[#allocation6_spill] sm:$0xff]  ;;  %v28859_v24 = vld [vmem:[#allocation12_spill] sm:$0xff]  ;;  %v28860_v46 = vld [vmem:[#allocation7_spill] sm:$0xff] }
 0x1d2   :  { %28857 = vst [vmem:[#allocation8_spill] sm:$0xff] %v22858_v14  ;;  %v2739_v54 = vpop.f32.mrf.mxu1  ;;  %v2778_v40 = vpop.f32.mrf.mxu0  ;;  %19544 = vmatprep.subr.msk.bf16.mxu0 %vm208_vm1, %v6517_v53  ;;  %v6516_v44 = vsel %vm6515_vm13, %v28858_v21, %v28853_v28  ;;  %v6519_v14 = vsel %vm6515_vm13, %v28860_v46, %v28859_v24 }
 0x1d3   :  { %28856 = vst [vmem:[#allocation14_spill] sm:$0xff] %v22855_v36  ;;  %v22864_v19 = vadd.f32 %v2739_v54, %v22607_v39  ;;  %v22867_v52 = vadd.f32 %v2778_v40, %v22610_v30  ;;  %v22875_v36 = vpop.permute.xlu1 %7080  ;;  %9390 = vrot.lane.b32.xlu0 %v22591_v55, %s20823_s10  ;;  %v6534_v21 = vsel %vm208_vm1, %v6516_v44, 0  ;;  %v28865_v44 = vld [vmem:[#allocation17_spill] sm:$0xff] }
 0x1d4   :  { %28861 = vst [vmem:[#allocation5_spill] sm:$0xff] %v22875_v36  ;;  %v2780_v41 = vpop.f32.mrf.mxu0  ;;  %v2819_v53 = vpop.f32.mrf.mxu1  ;;  %19522 = vmatmul.mubr.msk.bf16.vlgmr.msra.gmra.mxu1 %vm60_vm2, %v22704_v63  ;;  %9392 = vrot.lane.b32.xlu1 %v22604_v37, %s20823_s10 }
 0x1d5   :  { %v22884_v39 = vadd.f32 %v2780_v41, %v22632_v56  ;;  %v22887_v30 = vadd.f32 %v2819_v53, %v22635_v23  ;;  %20381 = vmatpush3.bf16.msra.mxu1 %v5997_v15  ;;  %20382 = vmatprep.mubr.msk.bf16.mxu1 %vm20812_vm4, %v28815_v42  ;;  %v22891_v28 = vpop.permute.xlu0 %7082  ;;  %v6518_v23 = vsel %vm6515_vm13, %v28852_v25, %v28860_v46  ;;  %v28863_v15 = vld [vmem:[#allocation13_spill] sm:$0xff] }
 0x1d6   :  { %28862 = vst [vmem:[#allocation10_spill] sm:$0xff] %v22891_v28  ;;  %v2782_v54 = vpop.f32.mrf.mxu0  ;;  %v2821_v40 = vpop.f32.mrf.mxu1  ;;  %19546 = vmatprep.subr.msk.bf16.mxu1 %vm208_vm1, %v6519_v14  ;;  %v6521_v41 = vsel %vm6515_vm13, %v28863_v15, %v22600_v11 }
 0x1d7   :  { %v22896_v36 = vadd.f32 %v2782_v54, %v22646_v29  ;;  %v22899_v56 = vadd.f32 %v2821_v40, %v22649_v17  ;;  %v22907_v53 = vpop.permute.xlu1 %7084  ;;  %9394 = vrot.lane.b32.xlu0 %v28865_v44, %s20823_s10  ;;  %v6540_v40 = vsel %vm208_vm1, %v6518_v23, 0 }
 0x1d8   :  { %28864 = vst [vmem:[#allocation6_spill] sm:$0xff] %v22907_v53  ;;  %v2823_v14 = vpop.f32.mrf.mxu1  ;;  %v2862_v28 = vpop.f32.mrf.mxu0  ;;  %19524 = vmatmul.mubr.msk.bf16.vlgmr.msra.gmra.mxu0 %vm60_vm2, %v22704_v63  ;;  %9396 = vrot.lane.b32.xlu1 %v22643_v13, %s20823_s10 }
 0x1d9   :  { %v22916_v29 = vadd.f32 %v2823_v14, %v22671_v27  ;;  %v22919_v17 = vadd.f32 %v2862_v28, %v22674_v0  ;;  %6593 = vmatpush1.bf16.msra.mxu0 %v6534_v21  ;;  %6610 = vmatprep.mubr.bf16.mxu0 %v28814_v20  ;;  %v22922_v25 = vpop.permute.xlu0 %7086  ;;  %v6520_v0 = vsel %vm6515_vm13, %v28859_v24, %v28863_v15  ;;  %v28867_v28 = vld [vmem:[#allocation18_spill] sm:$0xff]  ;;  %v28868_v21 = vld [vmem:[#allocation15_spill] sm:$0xff] }
 0x1da   :  { %28866 = vst [vmem:[#allocation12_spill] sm:$0xff] %v22922_v25  ;;  %v2825_v46 = vpop.f32.mrf.mxu1  ;;  %v2864_v54 = vpop.f32.mrf.mxu0  ;;  %19548 = vmatprep.subr.msk.bf16.mxu0 %vm208_vm1, %v6521_v41  ;;  %v6523_v14 = vsel %vm6515_vm13, %v28868_v21, %v28867_v28  ;;  %v2407_v41 = vld [vmem:[#allocation2 + $0x70] sm:$0xff] }
 0x1db   :  { %v22927_v53 = vadd.f32 %v2825_v46, %v22684_v22  ;;  %v22930_v27 = vadd.f32 %v2864_v54, %v22687_v50  ;;  %v22938_v25 = vpop.permute.xlu1 %7088  ;;  %9398 = vrot.lane.b32.xlu0 %v22668_v18, %s20823_s10  ;;  %v22947_v50 = vld [vmem:[%s28592_s1 + $0x58] sm:$0xff]  }
 0x1dc   :  { %28869 = vst [vmem:[#allocation7_spill] sm:$0xff] %v22938_v25  ;;  %v2866_v23 = vpop.f32.mrf.mxu0  ;;  %v2905_v22 = vpop.f32.mrf.mxu1  ;;  %20383 = vmatmul.mubr.msk.bf16.vlgmr.msra.gmra.mxu1 %vm60_vm2, %v22704_v63  ;;  %9400 = vrot.lane.b32.xlu1 %v22681_v43, %s20823_s10  ;;  %v6546_v63 = vsel %vm208_vm1, %v6520_v0, 0 }
 0x1dd   :  { %v22952_v24 = vadd.f32 %v2866_v23, %v22711_v8  ;;  %v2926_v15 = vadd.f32 %v2905_v22, %v2407_v41  ;;  %6636 = vmatpush1.bf16.msra.mxu1 %v6540_v40  ;;  %6653 = vmatprep.mubr.bf16.mxu1 %v28814_v20  ;;  %v22955_v46 = vpop.permute.xlu0 %7090  ;;  %v6522_v8 = vsel %vm6515_vm13, %v22600_v11, %v28868_v21  ;;  %v28871_v40 = vld [vmem:[#allocation19_spill] sm:$0xff] }
 0x1de   :  { %28870 = vst [vmem:[#allocation13_spill] sm:$0xff] %v22955_v46  ;;  %v2868_v54 = vpop.f32.mrf.mxu0  ;;  %v20348_v25 = vpop.f32.mrf.mxu1  ;;  %19550 = vmatprep.subr.msk.bf16.mxu1 %vm208_vm1, %v6523_v14  ;;  %v6525_v23 = vsel %vm6515_vm13, %v28871_v40, %v22677_v12  ;;  %v20669_v11 = vld [vmem:[%s28591_s0 + $0x44] ss:$0 sps:$4 sm:$0xff]  }
 0x1df   :  { %2956 = vst.msk [vmem:[#allocation2 + $0x70] sm:$0xff] %vm60_vm2, %v2926_v15  ;;  %v22961_v18 = vadd.f32 %v2868_v54, %v22720_v47  ;;  %v22969_v41 = vpop.permute.xlu1 %7092  ;;  %9402 = vrot.lane.b32.xlu0 %v22708_v57, %s20823_s10  ;;  %v2422_v25 = vld [vmem:[#allocation2 + $0xe8] sm:$0xff] }
 0x1e0   :  { %28872 = vst [vmem:[#allocation17_spill] sm:$0xff] %v22969_v41  ;;  %v2908_v0 = vpop.f32.mrf.mxu1  ;;  %v3183_v14 = vpop.f32.mrf.mxu0  ;;  %19545 = vmatmul.mubr.msk.bf16.vlgmr.msra.gmra.mxu0 %vm60_vm2, %v22947_v50  ;;  %9404 = vrot.lane.b32.xlu1 %v22455_v1, %s20823_s10  ;;  %v9908_v47 = vld [vmem:[%s28591_s0 + $0x4] sm:$0xff]  ;;  %v6552_v1 = vsel %vm208_vm1, %v6522_v8, 0 }
 0x1e1   :  { %v2941_v21 = vadd.f32 %v2908_v0, %v2422_v25  ;;  %v22984_v22 = vadd.f32 %v3183_v14, %v22737_v2  ;;  %6679 = vmatpush1.bf16.msra.mxu0 %v6546_v63  ;;  %6696 = vmatprep.mubr.bf16.mxu0 %v28814_v20  ;;  %v22987_v15 = vpop.permute.xlu0 %7643  ;;  %v6524_v2 = vsel %vm6515_vm13, %v28867_v28, %v28871_v40  ;;  %v28873_v63 = vld [vmem:[#allocation21_spill] sm:$0xff] }
 0x1e2   :  { %v20349_v54 = vpop.f32.mrf.mxu1  ;;  %v3185_v46 = vpop.f32.mrf.mxu0  ;;  %19552 = vmatprep.subr.msk.bf16.mxu0 %vm208_vm1, %v6525_v23  ;;  %v6527_v25 = vsel %vm6515_vm13, %v28873_v63, %v22714_v48  ;;  %v23005_v8 = vcombine.low %v9908_v47, %v9908_v47 }
 0x1e3   :  { %2971 = vst.msk [vmem:[#allocation2 + $0xe8] sm:$0xff] %vm60_vm2, %v2941_v21  ;;  %v22993_v41 = vadd.f32 %v3185_v46, %v22746_v45  ;;  %v23001_v0 = vpop.permute.xlu1 %7645  ;;  %9406 = vrot.lane.b32.xlu0 %v22475_v59, %s20823_s10  ;;  %v23010_v45 = vcombine.high %v9908_v47, %v9908_v47  ;;  %v6558_v54 = vsel %vm208_vm1, %v6524_v2, 0  ;;  %v6529_v47 = vsel %vm6515_vm13, %v22728_v58, %v22740_v31 }
 0x1e4   :  { %v3187_v23 = vpop.f32.mrf.mxu0  ;;  %v3226_v14 = vpop.f32.mrf.mxu1  ;;  %19547 = vmatmul.mubr.msk.bf16.vlgmr.msra.gmra.mxu1 %vm60_vm2, %v22947_v50  ;;  %9408 = vrot.lane.b32.xlu1 %v20669_v11, %s20823_s10  ;;  %s20837_s10 = smov 80  }
 0x1e5   :  { %v23013_v28 = vadd.f32 %v3187_v23, %v22766_v33  ;;  %v23016_v46 = vadd.f32 %v3226_v14, %v22769_v49  ;;  %6722 = vmatpush1.bf16.msra.mxu1 %v6552_v1  ;;  %6739 = vmatprep.mubr.bf16.mxu1 %v28814_v20  ;;  %v23019_v59 = vpop.permute.xlu0 %7647  ;;  %v6526_v49 = vsel %vm6515_vm13, %v22677_v12, %v28873_v63 }
 0x1e6   :  { %v3189_v40 = vpop.f32.mrf.mxu0  ;;  %v3228_v21 = vpop.f32.mrf.mxu1  ;;  %19554 = vmatprep.subr.msk.bf16.mxu1 %vm208_vm1, %v6527_v25  ;;  %v6564_v14 = vsel %vm208_vm1, %v6526_v49, 0 }
 0x1e7   :  { %v23024_v11 = vadd.f32 %v3189_v40, %v22777_v9  ;;  %v23027_v33 = vadd.f32 %v3228_v21, %v22780_v61  ;;  %v23035_v1 = vpop.permute.xlu1 %7649  ;;  %9959 = vrot.lane.b32.xlu0 %v23005_v8, %s20824_s17 }
 0x1e8   :  { %v3230_v2 = vpop.f32.mrf.mxu1  ;;  %v3269_v9 = vpop.f32.mrf.mxu0  ;;  %19549 = vmatmul.mubr.msk.bf16.vlgmr.msra.gmra.mxu0 %vm60_vm2, %v22947_v50  ;;  %9961 = vrot.lane.b32.xlu1 %v23010_v45, %s20824_s17 }
 0x1e9   :  { %v23044_v12 = vadd.f32 %v3230_v2, %v22796_v16  ;;  %v23047_v61 = vadd.f32 %v3269_v9, %v22799_v35  ;;  %6765 = vmatpush1.bf16.msra.mxu0 %v6558_v54  ;;  %6782 = vmatprep.mubr.bf16.mxu0 %v28814_v20  ;;  %v23050_v63 = vpop.permute.xlu0 %7651  ;;  %v6528_v35 = vsel %vm6515_vm13, %v22714_v48, %v22728_v58  ;;  %vm14625_vm13 = vcmask 31744  }
 0x1ea   :  { %v3232_v25 = vpop.f32.mrf.mxu1  ;;  %v3271_v23 = vpop.f32.mrf.mxu0  ;;  %19556 = vmatprep.subr.msk.bf16.mxu0 %vm208_vm1, %v6529_v47  ;;  %v6570_v49 = vsel %vm208_vm1, %v6528_v35, 0 }
 0x1eb   :  { %v23055_v40 = vadd.f32 %v3232_v25, %v22807_v7  ;;  %v23058_v16 = vadd.f32 %v3271_v23, %v22810_v5  ;;  %v23063_v21 = vpop.permute.xlu1 %7653  ;;  %9963 = vrot.lane.b32.xlu0 %v22510_v51, %s20824_s17 }
 0x1ec   :  { %v3273_v54 = vpop.f32.mrf.mxu0  ;;  %v3312_v2 = vpop.f32.mrf.mxu1  ;;  %19551 = vmatmul.mubr.msk.bf16.vlgmr.msra.gmra.mxu1 %vm60_vm2, %v22947_v50  ;;  %9965 = vrot.lane.b32.xlu1 %v22515_v38, %s20824_s17 }
 0x1ed   :  { %v23072_v7 = vadd.f32 %v3273_v54, %v22824_v4  ;;  %v23075_v5 = vadd.f32 %v3312_v2, %v22827_v62  ;;  %6808 = vmatpush1.bf16.msra.mxu1 %v6564_v14  ;;  %6825 = vmatprep.mubr.bf16.mxu1 %v28814_v20  ;;  %v23078_v48 = vpop.permute.xlu0 %7655  ;;  %v7096_v4 = vsel %vm7094_vm14, %v22772_v26, %v22788_v6  ;;  %v6576_v54 = vsel %vm208_vm1, %v22740_v31, 0  ;;  %v28875_v2 = vld [vmem:[#allocation22_spill] sm:$0xff]  ;;  %v28878_v31 = vld [vmem:[#allocation16_spill] sm:$0xff] }
 0x1ee   :  { %v3275_v51 = vpop.f32.mrf.mxu0  ;;  %v3314_v58 = vpop.f32.mrf.mxu1  ;;  %20386 = vmatprep.subr.bf16.mxu1 %v28815_v42 }
 0x1ef   :  { %v23083_v47 = vadd.f32 %v3275_v51, %v22835_v60  ;;  %v23086_v38 = vadd.f32 %v3314_v58, %v22838_v10  ;;  %v23091_v62 = vpop.permute.xlu1 %7657  ;;  %9967 = vrot.lane.b32.xlu0 %v22543_v32, %s20824_s17  ;;  %v28874_v10 = vld [vmem:[#allocation14_spill] sm:$0xff]  ;;  %v7095_v51 = vsel %vm7094_vm14, %v28875_v2, %v22772_v26  ;;  %v28876_v58 = vld [vmem:[#allocation24_spill] sm:$0xff] }
 0x1f0   :  { %v3316_v9 = vpop.f32.mrf.mxu1  ;;  %v3355_v25 = vpop.f32.mrf.mxu0  ;;  %19553 = vmatmul.mubr.msk.bf16.vlgmr.msra.gmra.mxu0 %vm60_vm2, %v22947_v50  ;;  %9969 = vrot.lane.b32.xlu1 %v28855_v3, %s20824_s17  ;;  %v7113_v2 = vsel %vm208_vm1, %v7095_v51, 0 }
 0x1f1   :  { %v23100_v60 = vadd.f32 %v3316_v9, %v22852_v34  ;;  %v23103_v23 = vadd.f32 %v3355_v25, %v28874_v10  ;;  %6851 = vmatpush1.bf16.msra.mxu0 %v6570_v49  ;;  %6868 = vmatprep.mubr.bf16.mxu0 %v28814_v20  ;;  %v23106_v14 = vpop.permute.xlu0 %7659  ;;  %v28877_v49 = vld [vmem:[#allocation23_spill] sm:$0xff] }
 0x1f2   :  { %v3318_v32 = vpop.f32.mrf.mxu1  ;;  %v3357_v35 = vpop.f32.mrf.mxu0  ;;  %19577 = vmatprep.subr.msk.bf16.mxu0 %vm208_vm1, %v7096_v4  ;;  %v7098_v9 = vsel %vm7094_vm14, %v28877_v49, %v28876_v58 }
 0x1f3   :  { %v23112_v3 = vadd.f32 %v3318_v32, %v22864_v19  ;;  %v23115_v34 = vadd.f32 %v3357_v35, %v22867_v52  ;;  %v23123_v25 = vpop.permute.xlu1 %7661  ;;  %9971 = vrot.lane.b32.xlu0 %v28878_v31, %s20824_s17  ;;  %v28880_v31 = vld [vmem:[#allocation9_spill] sm:$0xff] }
 0x1f4   :  { %v3359_v4 = vpop.f32.mrf.mxu0  ;;  %v3398_v10 = vpop.f32.mrf.mxu1  ;;  %19555 = vmatmul.mubr.msk.bf16.vlgmr.msra.gmra.mxu1 %vm60_vm2, %v22947_v50  ;;  %9973 = vrot.lane.b32.xlu1 %v22591_v55, %s20824_s17 }
 0x1f5   :  { %v23132_v19 = vadd.f32 %v3359_v4, %v22884_v39  ;;  %v23135_v26 = vadd.f32 %v3398_v10, %v22887_v30  ;;  %20387 = vmatpush3.bf16.msra.mxu1 %v6576_v54  ;;  %20388 = vmatprep.mubr.msk.bf16.mxu1 %vm20812_vm4, %v28815_v42  ;;  %v23139_v52 = vpop.permute.xlu0 %7663  ;;  %v7097_v30 = vsel %vm7094_vm14, %v22788_v6, %v28877_v49  ;;  %v28879_v54 = vld [vmem:[#allocation11_spill] sm:$0xff] }
 0x1f6   :  { %v3361_v32 = vpop.f32.mrf.mxu0  ;;  %v3400_v35 = vpop.f32.mrf.mxu1  ;;  %19579 = vmatprep.subr.msk.bf16.mxu1 %vm208_vm1, %v7098_v9  ;;  %v7100_v4 = vsel %vm7094_vm14, %v28880_v31, %v28879_v54 }
 0x1f7   :  { %v23144_v55 = vadd.f32 %v3361_v32, %v22896_v36  ;;  %v23147_v39 = vadd.f32 %v3400_v35, %v22899_v56  ;;  %v23155_v10 = vpop.permute.xlu1 %7665  ;;  %9975 = vrot.lane.b32.xlu0 %v22604_v37, %s20824_s17  ;;  %v7119_v32 = vsel %vm208_vm1, %v7097_v30, 0 }
 0x1f8   :  { %28881 = vst [vmem:[#allocation18_spill] sm:$0xff] %v23155_v10  ;;  %v3402_v51 = vpop.f32.mrf.mxu1  ;;  %v3441_v9 = vpop.f32.mrf.mxu0  ;;  %19557 = vmatmul.mubr.msk.bf16.vlgmr.msra.gmra.mxu0 %vm60_vm2, %v22947_v50  ;;  %9977 = vrot.lane.b32.xlu1 %v28865_v44, %s20824_s17 }
 0x1f9   :  { %v23164_v36 = vadd.f32 %v3402_v51, %v22916_v29  ;;  %v23167_v6 = vadd.f32 %v3441_v9, %v22919_v17  ;;  %7172 = vmatpush1.bf16.msra.mxu0 %v7113_v2  ;;  %7189 = vmatprep.mubr.bf16.mxu0 %v28814_v20  ;;  %v23170_v56 = vpop.permute.xlu0 %7667  ;;  %v7099_v29 = vsel %vm7094_vm14, %v28876_v58, %v28880_v31  ;;  %v28882_v17 = vld [vmem:[#allocation5_spill] sm:$0xff]  ;;  %v28883_v2 = vld [vmem:[#allocation8_spill] sm:$0xff] }
 0x1fa   :  { %v3404_v37 = vpop.f32.mrf.mxu1  ;;  %v3443_v49 = vpop.f32.mrf.mxu0  ;;  %19581 = vmatprep.subr.msk.bf16.mxu0 %vm208_vm1, %v7100_v4  ;;  %v7102_v51 = vsel %vm7094_vm14, %v28883_v2, %v28882_v17  ;;  %v2986_v4 = vld [vmem:[#allocation2 + $0x70] sm:$0xff]  ;;  %v28885_v58 = vld [vmem:[#allocation20_spill] sm:$0xff] }
 0x1fb   :  { %v23175_v35 = vadd.f32 %v3404_v37, %v22927_v53  ;;  %v23178_v44 = vadd.f32 %v3443_v49, %v22930_v27  ;;  %v23186_v9 = vpop.permute.xlu1 %7669  ;;  %9979 = vrot.lane.b32.xlu0 %v22643_v13, %s20824_s17  ;;  %v23195_v27 = vld [vmem:[%s28592_s1 + $0x60] sm:$0xff]  }
 0x1fc   :  { %28884 = vst [vmem:[#allocation15_spill] sm:$0xff] %v23186_v9  ;;  %v3445_v30 = vpop.f32.mrf.mxu0  ;;  %v3484_v53 = vpop.f32.mrf.mxu1  ;;  %20389 = vmatmul.mubr.msk.bf16.vlgmr.msra.gmra.mxu1 %vm60_vm2, %v22947_v50  ;;  %9981 = vrot.lane.b32.xlu1 %v28885_v58, %s20824_s17  ;;  %v7125_v50 = vsel %vm208_vm1, %v7099_v29, 0  ;;  %v20672_v29 = vld [vmem:[%s28591_s0 + $0x3c] ss:$0 sps:$4 sm:$0xff]   ;;  %v10488_v58 = vld [vmem:[%s28591_s0 + $0xc] sm:$0xff] }
 0x1fd   :  { %v23200_v31 = vadd.f32 %v3445_v30, %v22952_v24  ;;  %v3505_v37 = vadd.f32 %v3484_v53, %v2986_v4  ;;  %7215 = vmatpush1.bf16.msra.mxu1 %v7119_v32  ;;  %7232 = vmatprep.mubr.bf16.mxu1 %v28814_v20  ;;  %v23203_v13 = vpop.permute.xlu0 %7671  ;;  %v7101_v24 = vsel %vm7094_vm14, %v28879_v54, %v28883_v2  ;;  %v28887_v32 = vld [vmem:[#allocation6_spill] sm:$0xff] }
 0x1fe   :  { %28886 = vst [vmem:[#allocation19_spill] sm:$0xff] %v23203_v13  ;;  %v3447_v49 = vpop.f32.mrf.mxu0  ;;  %v20354_v9 = vpop.f32.mrf.mxu1  ;;  %19583 = vmatprep.subr.msk.bf16.mxu1 %vm208_vm1, %v7102_v51  ;;  %v28888_v30 = vld [vmem:[#allocation10_spill] sm:$0xff]  ;;  %v3001_v51 = vld [vmem:[#allocation2 + $0xe8] sm:$0xff] }
 0x1ff   :  { %3535 = vst.msk [vmem:[#allocation2 + $0x70] sm:$0xff] %vm60_vm2, %v3505_v37  ;;  %v23209_v10 = vadd.f32 %v3447_v49, %v22961_v18  ;;  %v7104_v4 = vsel %vm7094_vm14, %v28888_v30, %v28887_v32  ;;  %v23217_v53 = vpop.permute.xlu1 %8222  ;;  %9983 = vrot.lane.b32.xlu0 %v22681_v43, %s20824_s17 }
 0x200   :  { %28889 = vst [vmem:[#allocation21_spill] sm:$0xff] %v23217_v53  ;;  %v3487_v18 = vpop.f32.mrf.mxu1  ;;  %v3762_v9 = vpop.f32.mrf.mxu0  ;;  %19578 = vmatmul.mubr.msk.bf16.vlgmr.msra.gmra.mxu0 %vm60_vm2, %v23195_v27  ;;  %9985 = vrot.lane.b32.xlu1 %v22708_v57, %s20824_s17  ;;  %v7131_v53 = vsel %vm208_vm1, %v7101_v24, 0 }
 0x201   :  { %v3520_v54 = vadd.f32 %v3487_v18, %v3001_v51  ;;  %v23229_v2 = vadd.f32 %v3762_v9, %v22984_v22  ;;  %7258 = vmatpush1.bf16.msra.mxu0 %v7125_v50  ;;  %7275 = vmatprep.mubr.bf16.mxu0 %v28814_v20  ;;  %v23232_v43 = vpop.permute.xlu0 %8224  ;;  %v7103_v22 = vsel %vm7094_vm14, %v28882_v17, %v28888_v30  ;;  %v28891_v50 = vld [vmem:[#allocation7_spill] sm:$0xff]  ;;  %v28892_v51 = vld [vmem:[#allocation12_spill] sm:$0xff] }
 0x202   :  { %28890 = vst [vmem:[#allocation14_spill] sm:$0xff] %v23232_v43  ;;  %v20355_v37 = vpop.f32.mrf.mxu1  ;;  %v3764_v49 = vpop.f32.mrf.mxu0  ;;  %19585 = vmatprep.subr.msk.bf16.mxu0 %vm208_vm1, %v7104_v4  ;;  %v7106_v18 = vsel %vm7094_vm14, %v28892_v51, %v28891_v50  ;;  %v7137_v43 = vsel %vm208_vm1, %v7103_v22, 0 }
 0x203   :  { %3550 = vst.msk [vmem:[#allocation2 + $0xe8] sm:$0xff] %vm60_vm2, %v3520_v54  ;;  %v23241_v57 = vadd.f32 %v3764_v49, %v22993_v41  ;;  %v23249_v9 = vpop.permute.xlu1 %8226  ;;  %9987 = vrot.lane.b32.xlu0 %v20672_v29, %s20824_s17  ;;  %v23256_v41 = vcombine.low %v10488_v58, %v10488_v58  ;;  %v10489_v29 = vld [vmem:[%s28591_s0 + $0x14] sm:$0xff]  ;;  %s20830_s17 = smov 9  }
 0x204   :  { %28893 = vst [vmem:[#allocation22_spill] sm:$0xff] %v23249_v9  ;;  %v3766_v24 = vpop.f32.mrf.mxu0  ;;  %v3805_v37 = vpop.f32.mrf.mxu1  ;;  %19580 = vmatmul.mubr.msk.bf16.vlgmr.msra.gmra.mxu1 %vm60_vm2, %v23195_v27  ;;  %10538 = vrot.lane.b32.xlu1 %v23005_v8, %s20825_s24 }
 0x205   :  { %v23259_v17 = vadd.f32 %v3766_v24, %v23013_v28  ;;  %v23262_v30 = vadd.f32 %v3805_v37, %v23016_v46  ;;  %7301 = vmatpush1.bf16.msra.mxu1 %v7131_v53  ;;  %7318 = vmatprep.mubr.bf16.mxu1 %v28814_v20  ;;  %v23265_v4 = vpop.permute.xlu0 %8228  ;;  %v23272_v28 = vcombine.high %v10488_v58, %v10488_v58  ;;  %v28895_v37 = vld [vmem:[#allocation17_spill] sm:$0xff] }
 0x206   :  { %28894 = vst [vmem:[#allocation24_spill] sm:$0xff] %v23265_v4  ;;  %v3768_v54 = vpop.f32.mrf.mxu0  ;;  %v3807_v49 = vpop.f32.mrf.mxu1  ;;  %19587 = vmatprep.subr.msk.bf16.mxu1 %vm208_vm1, %v7106_v18  ;;  %v7105_v24 = vsel %vm7094_vm14, %v28887_v32, %v28892_v51  ;;  %v28896_v4 = vld [vmem:[#allocation13_spill] sm:$0xff]  ;;  %v10490_v18 = vld [vmem:[%s28591_s0 + $0x1c] sm:$0xff] }
 0x207   :  { %v23275_v46 = vadd.f32 %v3768_v54, %v23024_v11  ;;  %v23278_v53 = vadd.f32 %v3807_v49, %v23027_v33  ;;  %v7108_v9 = vsel %vm7094_vm14, %v28896_v4, %v28895_v37  ;;  %v23286_v13 = vpop.permute.xlu1 %8230  ;;  %10540 = vrot.lane.b32.xlu0 %v23010_v45, %s20825_s24  ;;  %v23294_v11 = vcombine.low %v10489_v29, %v10489_v29 }
 0x208   :  { %28897 = vst [vmem:[#allocation23_spill] sm:$0xff] %v23286_v13  ;;  %v3809_v58 = vpop.f32.mrf.mxu1  ;;  %v3848_v22 = vpop.f32.mrf.mxu0  ;;  %19582 = vmatmul.mubr.msk.bf16.vlgmr.msra.gmra.mxu0 %vm60_vm2, %v23195_v27  ;;  %10542 = vrot.lane.b32.xlu1 %v23256_v41, %s20825_s24  ;;  %v7143_v13 = vsel %vm208_vm1, %v7105_v24, 0 }
 0x209   :  { %v23297_v33 = vadd.f32 %v3809_v58, %v23044_v12  ;;  %v23300_v32 = vadd.f32 %v3848_v22, %v23047_v61  ;;  %7344 = vmatpush1.bf16.msra.mxu0 %v7137_v43  ;;  %7361 = vmatprep.mubr.bf16.mxu0 %v28814_v20  ;;  %v23303_v51 = vpop.permute.xlu0 %8232  ;;  %v7107_v43 = vsel %vm7094_vm14, %v28891_v50, %v28896_v4  ;;  %v10491_v4 = vld [vmem:[%s28591_s0 + $0x24] sm:$0xff]  ;;  %vm15209_vm14 = vcmask 7168  }
 0x20a   :  { %28898 = vst [vmem:[#allocation16_spill] sm:$0xff] %v23303_v51  ;;  %v3811_v54 = vpop.f32.mrf.mxu1  ;;  %v3850_v49 = vpop.f32.mrf.mxu0  ;;  %19589 = vmatprep.subr.msk.bf16.mxu0 %vm208_vm1, %v7108_v9  ;;  %v23323_v22 = vcombine.high %v10489_v29, %v10489_v29 }
 0x20b   :  { %v23311_v12 = vadd.f32 %v3811_v54, %v23055_v40  ;;  %v23314_v61 = vadd.f32 %v3850_v49, %v23058_v16  ;;  %v23319_v58 = vpop.permute.xlu1 %8234  ;;  %10544 = vrot.lane.b32.xlu0 %v23272_v28, %s20825_s24  ;;  %v23329_v40 = vcombine.low %v10490_v18, %v10490_v18  ;;  %v7149_v49 = vsel %vm208_vm1, %v7107_v43, 0 }
 0x20c   :  { %28899 = vst [vmem:[#allocation11_spill] sm:$0xff] %v23319_v58  ;;  %v3852_v24 = vpop.f32.mrf.mxu0  ;;  %v3891_v51 = vpop.f32.mrf.mxu1  ;;  %19584 = vmatmul.mubr.msk.bf16.vlgmr.msra.gmra.mxu1 %vm60_vm2, %v23195_v27  ;;  %10546 = vrot.lane.b32.xlu1 %v23294_v11, %s20825_s24 }
 0x20d   :  { %28900 = vst [vmem:[#allocation9_spill] sm:$0xff] %v23329_v40  ;;  %v23332_v16 = vadd.f32 %v3852_v24, %v23072_v7  ;;  %v23335_v50 = vadd.f32 %v3891_v51, %v23075_v5  ;;  %7387 = vmatpush1.bf16.msra.mxu1 %v7143_v13  ;;  %7404 = vmatprep.mubr.bf16.mxu1 %v28814_v20  ;;  %v23338_v9 = vpop.permute.xlu0 %8236 }
 0x20e   :  { %28901 = vst [vmem:[#allocation5_spill] sm:$0xff] %v23338_v9  ;;  %v3854_v29 = vpop.f32.mrf.mxu0  ;;  %v3893_v54 = vpop.f32.mrf.mxu1  ;;  %20392 = vmatprep.subr.bf16.mxu1 %v28815_v42  ;;  %v7675_v13 = vsel %vm7673_vm15, %v23001_v0, %v23019_v59  ;;  %v23358_v24 = vcombine.high %v10490_v18, %v10490_v18 }
 0x20f   :  { %v23346_v7 = vadd.f32 %v3854_v29, %v23083_v47  ;;  %v23349_v5 = vadd.f32 %v3893_v54, %v23086_v38  ;;  %v23354_v51 = vpop.permute.xlu1 %8238  ;;  %10548 = vrot.lane.b32.xlu0 %v23323_v22, %s20825_s24  ;;  %v23364_v47 = vcombine.low %v10491_v4, %v10491_v4  ;;  %v10492_v54 = vld [vmem:[%s28591_s0 + $0x2c] sm:$0xff] }
 0x210   :  { %28902 = vst [vmem:[#allocation8_spill] sm:$0xff] %v23354_v51  ;;  %v3895_v43 = vpop.f32.mrf.mxu1  ;;  %v3934_v9 = vpop.f32.mrf.mxu0  ;;  %19586 = vmatmul.mubr.msk.bf16.vlgmr.msra.gmra.mxu0 %vm60_vm2, %v23195_v27  ;;  %10550 = vrot.lane.b32.xlu1 %v23329_v40, %s20825_s24  ;;  %v7155_v40 = vsel %vm208_vm1, %v28895_v37, 0 }
 0x211   :  { %v23367_v38 = vadd.f32 %v3895_v43, %v23100_v60  ;;  %v23370_v29 = vadd.f32 %v3934_v9, %v23103_v23  ;;  %7430 = vmatpush1.bf16.msra.mxu0 %v7149_v49  ;;  %7447 = vmatprep.mubr.bf16.mxu0 %v28814_v20  ;;  %v23373_v18 = vpop.permute.xlu0 %8240  ;;  %v23381_v60 = vcombine.high %v10491_v4, %v10491_v4 }
 0x212   :  { %28903 = vst [vmem:[#allocation20_spill] sm:$0xff] %v23373_v18  ;;  %v3897_v51 = vpop.f32.mrf.mxu1  ;;  %v3936_v58 = vpop.f32.mrf.mxu0  ;;  %19610 = vmatprep.subr.msk.bf16.mxu0 %vm208_vm1, %v7675_v13  ;;  %v7674_v49 = vsel %vm7673_vm15, %v22987_v15, %v23001_v0  ;;  %v7677_v43 = vsel %vm7673_vm15, %v23035_v1, %v23050_v63 }
 0x213   :  { %v23384_v23 = vadd.f32 %v3897_v51, %v23112_v3  ;;  %v23387_v9 = vadd.f32 %v3936_v58, %v23115_v34  ;;  %v23395_v18 = vpop.permute.xlu1 %8242  ;;  %10552 = vrot.lane.b32.xlu0 %v23358_v24, %s20825_s24  ;;  %v23403_v3 = vcombine.low %v10492_v54, %v10492_v54  ;;  %v10493_v58 = vld [vmem:[%s28591_s0 + $0x34] sm:$0xff] }
 0x214   :  { %28904 = vst [vmem:[#allocation6_spill] sm:$0xff] %v23395_v18  ;;  %v3938_v37 = vpop.f32.mrf.mxu0  ;;  %v3977_v4 = vpop.f32.mrf.mxu1  ;;  %19588 = vmatmul.mubr.msk.bf16.vlgmr.msra.gmra.mxu1 %vm60_vm2, %v23195_v27  ;;  %10554 = vrot.lane.b32.xlu1 %v23364_v47, %s20825_s24  ;;  %v7692_v18 = vsel %vm208_vm1, %v7674_v49, 0 }
 0x215   :  { %28905 = vst [vmem:[#allocation10_spill] sm:$0xff] %v23403_v3  ;;  %v23406_v15 = vadd.f32 %v3938_v37, %v23132_v19  ;;  %v23409_v0 = vadd.f32 %v3977_v4, %v23135_v26  ;;  %20393 = vmatpush3.bf16.msra.mxu1 %v7155_v40  ;;  %20394 = vmatprep.mubr.msk.bf16.mxu1 %vm20812_vm4, %v28815_v42  ;;  %v23413_v34 = vpop.permute.xlu0 %8244 }
 0x216   :  { %28906 = vst [vmem:[#allocation7_spill] sm:$0xff] %v23413_v34  ;;  %v3940_v13 = vpop.f32.mrf.mxu0  ;;  %v3979_v51 = vpop.f32.mrf.mxu1  ;;  %19612 = vmatprep.subr.msk.bf16.mxu1 %vm208_vm1, %v7677_v43  ;;  %v23420_v19 = vcombine.high %v10492_v54, %v10492_v54  ;;  %v7676_v37 = vsel %vm7673_vm15, %v23019_v59, %v23035_v1  ;;  %v7679_v4 = vsel %vm7673_vm15, %v23063_v21, %v23078_v48 }
 0x217   :  { %v23423_v26 = vadd.f32 %v3940_v13, %v23144_v55  ;;  %v23426_v40 = vadd.f32 %v3979_v51, %v23147_v39  ;;  %v23434_v34 = vpop.permute.xlu1 %8246  ;;  %10556 = vrot.lane.b32.xlu0 %v23381_v60, %s20825_s24  ;;  %v23442_v55 = vcombine.low %v10493_v58, %v10493_v58  ;;  %v7698_v51 = vsel %vm208_vm1, %v7676_v37, 0  ;;  %v3565_v37 = vld [vmem:[#allocation2 + $0x70] sm:$0xff] }
 0x218   :  { %28907 = vst [vmem:[#allocation12_spill] sm:$0xff] %v23434_v34  ;;  %v3981_v54 = vpop.f32.mrf.mxu1  ;;  %v4020_v49 = vpop.f32.mrf.mxu0  ;;  %19590 = vmatmul.mubr.msk.bf16.vlgmr.msra.gmra.mxu0 %vm60_vm2, %v23195_v27  ;;  %10558 = vrot.lane.b32.xlu1 %v23403_v3, %s20825_s24  ;;  %v23455_v34 = vcombine.high %v10493_v58, %v10493_v58 }
 0x219   :  { %v23445_v59 = vadd.f32 %v3981_v54, %v23164_v36  ;;  %v23448_v1 = vadd.f32 %v4020_v49, %v23167_v6  ;;  %7751 = vmatpush1.bf16.msra.mxu0 %v7692_v18  ;;  %7768 = vmatprep.mubr.bf16.mxu0 %v28814_v20  ;;  %v23451_v39 = vpop.permute.xlu0 %8248  ;;  %v7678_v6 = vsel %vm7673_vm15, %v23050_v63, %v23063_v21  ;;  %v20685_v63 = vld [vmem:[%s28591_s0 + $0x3c] ss:$0 sps:$4 sm:$0xff]  }
 0x21a   :  { %28908 = vst [vmem:[#allocation17_spill] sm:$0xff] %v23451_v39  ;;  %v3983_v43 = vpop.f32.mrf.mxu1  ;;  %v4022_v13 = vpop.f32.mrf.mxu0  ;;  %19614 = vmatprep.subr.msk.bf16.mxu0 %vm208_vm1, %v7679_v4  ;;  %28909 = vst [vmem:[#allocation13_spill] sm:$0xff] %v23455_v34  ;;  %v7681_v18 = vsel %vm7673_vm15, %v23091_v62, %v23106_v14 }
 0x21b   :  { %v23458_v3 = vadd.f32 %v3983_v43, %v23175_v35  ;;  %v23461_v36 = vadd.f32 %v4022_v13, %v23178_v44  ;;  %v23469_v54 = vpop.permute.xlu1 %8250  ;;  %10560 = vrot.lane.b32.xlu0 %v23420_v19, %s20825_s24  ;;  %v23478_v44 = vld [vmem:[%s28592_s1 + $0x68] sm:$0xff]   ;;  %v7704_v13 = vsel %vm208_vm1, %v7678_v6, 0 }
 0x21c   :  { %v4024_v58 = vpop.f32.mrf.mxu0  ;;  %v4063_v35 = vpop.f32.mrf.mxu1  ;;  %20395 = vmatmul.mubr.msk.bf16.vlgmr.msra.gmra.mxu1 %vm60_vm2, %v23195_v27  ;;  %10562 = vrot.lane.b32.xlu1 %v23442_v55, %s20825_s24  ;;  %v3580_v6 = vld [vmem:[#allocation2 + $0xe8] sm:$0xff] }
 0x21d   :  { %v23486_v21 = vadd.f32 %v4024_v58, %v23200_v31  ;;  %v4084_v4 = vadd.f32 %v4063_v35, %v3565_v37  ;;  %7794 = vmatpush1.bf16.msra.mxu1 %v7698_v51  ;;  %7811 = vmatprep.mubr.bf16.mxu1 %v28814_v20  ;;  %v23489_v27 = vpop.permute.xlu0 %8801  ;;  %v7680_v31 = vsel %vm7673_vm15, %v23078_v48, %v23091_v62 }
 0x21e   :  { %v4026_v49 = vpop.f32.mrf.mxu0  ;;  %v20360_v43 = vpop.f32.mrf.mxu1  ;;  %19616 = vmatprep.subr.msk.bf16.mxu1 %vm208_vm1, %v7681_v18  ;;  %v7683_v51 = vsel %vm7673_vm15, %v23123_v25, %v23139_v52 }
 0x21f   :  { %4114 = vst.msk [vmem:[#allocation2 + $0x70] sm:$0xff] %vm60_vm2, %v4084_v4  ;;  %v23495_v39 = vadd.f32 %v4026_v49, %v23209_v10  ;;  %v23503_v58 = vpop.permute.xlu1 %8803  ;;  %10564 = vrot.lane.b32.xlu0 %v23455_v34, %s20825_s24  ;;  %v7710_v49 = vsel %vm208_vm1, %v7680_v31, 0 }
 0x220   :  { %v4066_v18 = vpop.f32.mrf.mxu1  ;;  %v4341_v37 = vpop.f32.mrf.mxu0  ;;  %19611 = vmatmul.mubr.msk.bf16.vlgmr.msra.gmra.mxu0 %vm60_vm2, %v23478_v44  ;;  %10566 = vrot.lane.b32.xlu1 %v20685_v63, %s20825_s24  ;;  %v28910_v63 = vld [vmem:[#allocation18_spill] sm:$0xff]  ;;  %s20831_s24 = smov 8  }
 0x221   :  { %v4099_v10 = vadd.f32 %v4066_v18, %v3580_v6  ;;  %v23511_v48 = vadd.f32 %v4341_v37, %v23229_v2  ;;  %7837 = vmatpush1.bf16.msra.mxu0 %v7704_v13  ;;  %7854 = vmatprep.mubr.bf16.mxu0 %v28814_v20  ;;  %v23514_v62 = vpop.permute.xlu0 %8805  ;;  %v7682_v2 = vsel %vm7673_vm15, %v23106_v14, %v23123_v25 }
 0x222   :  { %v20361_v35 = vpop.f32.mrf.mxu1  ;;  %v4343_v4 = vpop.f32.mrf.mxu0  ;;  %19618 = vmatprep.subr.msk.bf16.mxu0 %vm208_vm1, %v7683_v51  ;;  %v7685_v13 = vsel %vm7673_vm15, %v28910_v63, %v23170_v56  ;;  %v7716_v37 = vsel %vm208_vm1, %v7682_v2, 0 }
 0x223   :  { %4129 = vst.msk [vmem:[#allocation2 + $0xe8] sm:$0xff] %vm60_vm2, %v4099_v10  ;;  %v23520_v43 = vadd.f32 %v4343_v4, %v23241_v57  ;;  %v23528_v6 = vpop.permute.xlu1 %8807  ;;  %11117 = vrot.lane.b32.xlu0 %v23005_v8, %s20826_s15  ;;  %v28912_v35 = vld [vmem:[#allocation15_spill] sm:$0xff] }
 0x224   :  { %v4345_v31 = vpop.f32.mrf.mxu0  ;;  %v4384_v51 = vpop.f32.mrf.mxu1  ;;  %19613 = vmatmul.mubr.msk.bf16.vlgmr.msra.gmra.mxu1 %vm60_vm2, %v23478_v44  ;;  %11119 = vrot.lane.b32.xlu1 %v23010_v45, %s20826_s15 }
 0x225   :  { %v23537_v14 = vadd.f32 %v4345_v31, %v23259_v17  ;;  %v23540_v25 = vadd.f32 %v4384_v51, %v23262_v30  ;;  %7880 = vmatpush1.bf16.msra.mxu1 %v7710_v49  ;;  %7897 = vmatprep.mubr.bf16.mxu1 %v28814_v20  ;;  %v23543_v57 = vpop.permute.xlu0 %8809  ;;  %v7684_v17 = vsel %vm7673_vm15, %v23139_v52, %v28910_v63  ;;  %v28911_v30 = vld [vmem:[#allocation19_spill] sm:$0xff] }
 0x226   :  { %v4347_v8 = vpop.f32.mrf.mxu0  ;;  %v4386_v18 = vpop.f32.mrf.mxu1  ;;  %19620 = vmatprep.subr.msk.bf16.mxu1 %vm208_vm1, %v7685_v13  ;;  %v7687_v4 = vsel %vm7673_vm15, %v28912_v35, %v28911_v30  ;;  %v7722_v51 = vsel %vm208_vm1, %v7684_v17, 0 }
 0x227   :  { %v23548_v10 = vadd.f32 %v4347_v8, %v23275_v46  ;;  %v23551_v45 = vadd.f32 %v4386_v18, %v23278_v53  ;;  %v23559_v49 = vpop.permute.xlu1 %8811  ;;  %11121 = vrot.lane.b32.xlu0 %v23256_v41, %s20826_s15 }
 0x228   :  { %28913 = vst [vmem:[#allocation18_spill] sm:$0xff] %v23559_v49  ;;  %v4388_v2 = vpop.f32.mrf.mxu1  ;;  %v4427_v13 = vpop.f32.mrf.mxu0  ;;  %19615 = vmatmul.mubr.msk.bf16.vlgmr.msra.gmra.mxu0 %vm60_vm2, %v23478_v44  ;;  %11123 = vrot.lane.b32.xlu1 %v23272_v28, %s20826_s15 }
 0x229   :  { %v23568_v46 = vadd.f32 %v4388_v2, %v23297_v33  ;;  %v23571_v52 = vadd.f32 %v4427_v13, %v23300_v32  ;;  %7923 = vmatpush1.bf16.msra.mxu0 %v7716_v37  ;;  %7940 = vmatprep.mubr.bf16.mxu0 %v28814_v20  ;;  %v23574_v53 = vpop.permute.xlu0 %8813  ;;  %v7686_v32 = vsel %vm7673_vm15, %v23170_v56, %v28912_v35  ;;  %vm15789_vm15 = vcmask 1031168  }
 0x22a   :  { %28914 = vst [vmem:[#allocation19_spill] sm:$0xff] %v23574_v53  ;;  %v4390_v63 = vpop.f32.mrf.mxu1  ;;  %v4429_v31 = vpop.f32.mrf.mxu0  ;;  %19622 = vmatprep.subr.msk.bf16.mxu0 %vm208_vm1, %v7687_v4  ;;  %v7728_v4 = vsel %vm208_vm1, %v7686_v32, 0 }
 0x22b   :  { %v23579_v8 = vadd.f32 %v4390_v63, %v23311_v12  ;;  %v23582_v33 = vadd.f32 %v4429_v31, %v23314_v61  ;;  %v23587_v18 = vpop.permute.xlu1 %8815  ;;  %11125 = vrot.lane.b32.xlu0 %v23294_v11, %s20826_s15  ;;  %v28917_v63 = vld [vmem:[#allocation22_spill] sm:$0xff] }
 0x22c   :  { %28915 = vst [vmem:[#allocation15_spill] sm:$0xff] %v23587_v18  ;;  %v4431_v37 = vpop.f32.mrf.mxu0  ;;  %v4470_v2 = vpop.f32.mrf.mxu1  ;;  %19617 = vmatmul.mubr.msk.bf16.vlgmr.msra.gmra.mxu1 %vm60_vm2, %v23478_v44  ;;  %11127 = vrot.lane.b32.xlu1 %v23323_v22, %s20826_s15 }
 0x22d   :  { %v23596_v12 = vadd.f32 %v4431_v37, %v23332_v16  ;;  %v23599_v61 = vadd.f32 %v4470_v2, %v23335_v50  ;;  %7966 = vmatpush1.bf16.msra.mxu1 %v7722_v51  ;;  %7983 = vmatprep.mubr.bf16.mxu1 %v28814_v20  ;;  %v23602_v56 = vpop.permute.xlu0 %8817  ;;  %v28918_v50 = vld [vmem:[#allocation14_spill] sm:$0xff]  ;;  %v28920_v37 = vld [vmem:[#allocation9_spill] sm:$0xff] }
 0x22e   :  { %28916 = vst [vmem:[#allocation25_spill] sm:$0xff] %v23602_v56  ;;  %v4433_v17 = vpop.f32.mrf.mxu0  ;;  %v4472_v35 = vpop.f32.mrf.mxu1  ;;  %20398 = vmatprep.subr.bf16.mxu1 %v28815_v42  ;;  %v8254_v31 = vsel %vm8252_vm0, %v28918_v50, %v28917_v63 }
 0x22f   :  { %v23607_v13 = vadd.f32 %v4433_v17, %v23346_v7  ;;  %v23610_v16 = vadd.f32 %v4472_v35, %v23349_v5  ;;  %v23615_v51 = vpop.permute.xlu1 %8819  ;;  %11129 = vrot.lane.b32.xlu0 %v28920_v37, %s20826_s15 }
 0x230   :  { %28919 = vst [vmem:[#allocation22_spill] sm:$0xff] %v23615_v51  ;;  %v4474_v2 = vpop.f32.mrf.mxu1  ;;  %v4513_v18 = vpop.f32.mrf.mxu0  ;;  %19619 = vmatmul.mubr.msk.bf16.vlgmr.msra.gmra.mxu0 %vm60_vm2, %v23478_v44  ;;  %11131 = vrot.lane.b32.xlu1 %v23358_v24, %s20826_s15  ;;  %v7734_v51 = vsel %vm208_vm1, %v28911_v30, 0 }
 0x231   :  { %v23624_v7 = vadd.f32 %v4474_v2, %v23367_v38  ;;  %v23627_v5 = vadd.f32 %v4513_v18, %v23370_v29  ;;  %8009 = vmatpush1.bf16.msra.mxu0 %v7728_v4  ;;  %8026 = vmatprep.mubr.bf16.mxu0 %v28814_v20  ;;  %v23630_v32 = vpop.permute.xlu0 %8821  ;;  %v28922_v29 = vld [vmem:[#allocation21_spill] sm:$0xff]  ;;  %v28923_v4 = vld [vmem:[#allocation23_spill] sm:$0xff]  ;;  %v28924_v2 = vld [vmem:[#allocation24_spill] sm:$0xff] }
 0x232   :  { %28921 = vst [vmem:[#allocation14_spill] sm:$0xff] %v23630_v32  ;;  %v4476_v17 = vpop.f32.mrf.mxu1  ;;  %v4515_v35 = vpop.f32.mrf.mxu0  ;;  %19643 = vmatprep.subr.msk.bf16.mxu0 %vm208_vm1, %v8254_v31  ;;  %v8253_v18 = vsel %vm8252_vm0, %v28922_v29, %v28918_v50  ;;  %v8256_v32 = vsel %vm8252_vm0, %v28924_v2, %v28923_v4 }
 0x233   :  { %v23636_v56 = vadd.f32 %v4476_v17, %v23384_v23  ;;  %v23639_v38 = vadd.f32 %v4515_v35, %v23387_v9  ;;  %v23647_v49 = vpop.permute.xlu1 %8823  ;;  %11133 = vrot.lane.b32.xlu0 %v23364_v47, %s20826_s15  ;;  %v8271_v29 = vsel %vm208_vm1, %v8253_v18, 0  ;;  %v28930_v18 = vld [vmem:[#allocation10_spill] sm:$0xff] }
 0x234   :  { %28925 = vst [vmem:[#allocation9_spill] sm:$0xff] %v23647_v49  ;;  %v4517_v30 = vpop.f32.mrf.mxu0  ;;  %v4556_v31 = vpop.f32.mrf.mxu1  ;;  %19621 = vmatmul.mubr.msk.bf16.vlgmr.msra.gmra.mxu1 %vm60_vm2, %v23478_v44  ;;  %11135 = vrot.lane.b32.xlu1 %v23381_v60, %s20826_s15 }
 0x235   :  { %v23656_v23 = vadd.f32 %v4517_v30, %v23406_v15  ;;  %v23659_v9 = vadd.f32 %v4556_v31, %v23409_v0  ;;  %20399 = vmatpush3.bf16.msra.mxu1 %v7734_v51  ;;  %20400 = vmatprep.mubr.msk.bf16.mxu1 %vm20812_vm4, %v28815_v42  ;;  %v23663_v50 = vpop.permute.xlu0 %8825  ;;  %v8255_v0 = vsel %vm8252_vm0, %v28917_v63, %v28924_v2  ;;  %v28927_v51 = vld [vmem:[#allocation11_spill] sm:$0xff]  ;;  %v28928_v30 = vld [vmem:[#allocation16_spill] sm:$0xff] }
 0x236   :  { %28926 = vst [vmem:[#allocation21_spill] sm:$0xff] %v23663_v50  ;;  %v4519_v17 = vpop.f32.mrf.mxu0  ;;  %v4558_v35 = vpop.f32.mrf.mxu1  ;;  %19645 = vmatprep.subr.msk.bf16.mxu1 %vm208_vm1, %v8256_v32  ;;  %v8258_v31 = vsel %vm8252_vm0, %v28928_v30, %v28927_v51  ;;  %v11645_v2 = vld [vmem:[%s28591_s0 + $0x4] sm:$0xff] }
 0x237   :  { %v23668_v49 = vadd.f32 %v4519_v17, %v23423_v26  ;;  %v23671_v15 = vadd.f32 %v4558_v35, %v23426_v40  ;;  %v23679_v50 = vpop.permute.xlu1 %8827  ;;  %11137 = vrot.lane.b32.xlu0 %v28930_v18, %s20826_s15 }
 0x238   :  { %28929 = vst [vmem:[#allocation23_spill] sm:$0xff] %v23679_v50  ;;  %v4560_v32 = vpop.f32.mrf.mxu1  ;;  %v4599_v53 = vpop.f32.mrf.mxu0  ;;  %19623 = vmatmul.mubr.msk.bf16.vlgmr.msra.gmra.mxu0 %vm60_vm2, %v23478_v44  ;;  %11139 = vrot.lane.b32.xlu1 %v23420_v19, %s20826_s15  ;;  %v8277_v50 = vsel %vm208_vm1, %v8255_v0, 0 }
 0x239   :  { %v23688_v26 = vadd.f32 %v4560_v32, %v23445_v59  ;;  %v23691_v40 = vadd.f32 %v4599_v53, %v23448_v1  ;;  %8330 = vmatpush1.bf16.msra.mxu0 %v8271_v29  ;;  %8347 = vmatprep.mubr.bf16.mxu0 %v28814_v20  ;;  %v23694_v63 = vpop.permute.xlu0 %8829  ;;  %v8257_v53 = vsel %vm8252_vm0, %v28923_v4, %v28928_v30  ;;  %v28935_v29 = vld [vmem:[#allocation8_spill] sm:$0xff]  ;;  %v28936_v32 = vld [vmem:[#allocation5_spill] sm:$0xff] }
 0x23a   :  { %28932 = vst [vmem:[#allocation11_spill] sm:$0xff] %v23694_v63  ;;  %v4562_v17 = vpop.f32.mrf.mxu1  ;;  %v4601_v35 = vpop.f32.mrf.mxu0  ;;  %19647 = vmatprep.subr.msk.bf16.mxu0 %vm208_vm1, %v8258_v31  ;;  %v8260_v63 = vsel %vm8252_vm0, %v28936_v32, %v28935_v29  ;;  %v23725_v4 = vld [vmem:[%s28592_s1 + $0x70] sm:$0xff]   ;;  %v23729_v30 = vcombine.low %v11645_v2, %v11645_v2 }
 0x23b   :  { %28931 = vst [vmem:[#allocation24_spill] sm:$0xff] %v23691_v40  ;;  %v23702_v59 = vadd.f32 %v4562_v17, %v23458_v3  ;;  %v23705_v1 = vadd.f32 %v4601_v35, %v23461_v36  ;;  %v23713_v40 = vpop.permute.xlu1 %9380  ;;  %11141 = vrot.lane.b32.xlu0 %v23442_v55, %s20826_s15  ;;  %v20688_v3 = vld [vmem:[%s28591_s0 + $0x3c] ss:$0 sps:$4 sm:$0xff]   ;;  %v4144_v36 = vld [vmem:[#allocation2 + $0x70] sm:$0xff] }
 0x23c   :  { %28937 = vst [vmem:[#allocation8_spill] sm:$0xff] %v23713_v40  ;;  %v4603_v0 = vpop.f32.mrf.mxu0  ;;  %v4642_v31 = vpop.f32.mrf.mxu1  ;;  %20401 = vmatmul.mubr.msk.bf16.vlgmr.msra.gmra.mxu1 %vm60_vm2, %v23478_v44  ;;  %11143 = vrot.lane.b32.xlu1 %v23455_v34, %s20826_s15 }
 0x23d   :  { %28933 = vst [vmem:[#allocation16_spill] sm:$0xff] %v23702_v59  ;;  %28934 = vst [vmem:[#allocation10_spill] sm:$0xff] %v23705_v1  ;;  %v23732_v17 = vadd.f32 %v4603_v0, %v23486_v21  ;;  %v4663_v35 = vadd.f32 %v4642_v31, %v4144_v36  ;;  %8373 = vmatpush1.bf16.msra.mxu1 %v8277_v50  ;;  %8390 = vmatprep.mubr.bf16.mxu1 %v28814_v20  ;;  %v23735_v40 = vpop.permute.xlu0 %9382  ;;  %v8283_v59 = vsel %vm208_vm1, %v8257_v53, 0  ;;  %v28939_v50 = vld [vmem:[#allocation6_spill] sm:$0xff]  ;;  %v28940_v0 = vld [vmem:[#allocation20_spill] sm:$0xff] }
 0x23e   :  { %28938 = vst [vmem:[#allocation5_spill] sm:$0xff] %v23735_v40  ;;  %v4605_v44 = vpop.f32.mrf.mxu0  ;;  %v20366_v1 = vpop.f32.mrf.mxu1  ;;  %19649 = vmatprep.subr.msk.bf16.mxu1 %vm208_vm1, %v8260_v63  ;;  %v8259_v21 = vsel %vm8252_vm0, %v28927_v51, %v28936_v32  ;;  %v8262_v36 = vsel %vm8252_vm0, %v28940_v0, %v28939_v50  ;;  %v4159_v63 = vld [vmem:[#allocation2 + $0xe8] sm:$0xff] }
 0x23f   :  { %4693 = vst.msk [vmem:[#allocation2 + $0x70] sm:$0xff] %vm60_vm2, %v4663_v35  ;;  %v23741_v34 = vadd.f32 %v4605_v44, %v23495_v39  ;;  %v23749_v31 = vpop.permute.xlu1 %9384  ;;  %11145 = vrot.lane.b32.xlu0 %v20688_v3, %s20826_s15  ;;  %v23752_v1 = vcombine.high %v11645_v2, %v11645_v2  ;;  %v8289_v44 = vsel %vm208_vm1, %v8259_v21, 0 }
 0x240   :  { %v4645_v53 = vpop.f32.mrf.mxu1  ;;  %v4920_v35 = vpop.f32.mrf.mxu0  ;;  %19644 = vmatmul.mubr.msk.bf16.vlgmr.msra.gmra.mxu0 %vm60_vm2, %v23725_v4  ;;  %11696 = vrot.lane.b32.xlu1 %v23729_v30, %s20827_s18 }
 0x241   :  { %v4678_v39 = vadd.f32 %v4645_v53, %v4159_v63  ;;  %v23759_v51 = vadd.f32 %v4920_v35, %v23511_v48  ;;  %8416 = vmatpush1.bf16.msra.mxu0 %v8283_v59  ;;  %8433 = vmatprep.mubr.bf16.mxu0 %v28814_v20  ;;  %v23762_v32 = vpop.permute.xlu0 %9386  ;;  %v8261_v48 = vsel %vm8252_vm0, %v28935_v29, %v28940_v0  ;;  %v28942_v59 = vld [vmem:[#allocation12_spill] sm:$0xff]  ;;  %v28943_v63 = vld [vmem:[#allocation7_spill] sm:$0xff] }
 0x242   :  { %28941 = vst [vmem:[#allocation6_spill] sm:$0xff] %v23762_v32  ;;  %v20367_v2 = vpop.f32.mrf.mxu1  ;;  %v4922_v3 = vpop.f32.mrf.mxu0  ;;  %19651 = vmatprep.subr.msk.bf16.mxu0 %vm208_vm1, %v8262_v36  ;;  %v8264_v53 = vsel %vm8252_vm0, %v28943_v63, %v28942_v59 }
 0x243   :  { %4708 = vst.msk [vmem:[#allocation2 + $0xe8] sm:$0xff] %vm60_vm2, %v4678_v39  ;;  %v23768_v40 = vadd.f32 %v4922_v3, %v23520_v43  ;;  %v23776_v35 = vpop.permute.xlu1 %9388  ;;  %11698 = vrot.lane.b32.xlu0 %v23752_v1, %s20827_s18  ;;  %v8295_v3 = vsel %vm208_vm1, %v8261_v48, 0 }
 0x244   :  { %v4924_v21 = vpop.f32.mrf.mxu0  ;;  %v4963_v36 = vpop.f32.mrf.mxu1  ;;  %19646 = vmatmul.mubr.msk.bf16.vlgmr.msra.gmra.mxu1 %vm60_vm2, %v23725_v4  ;;  %11700 = vrot.lane.b32.xlu1 %v23256_v41, %s20827_s18 }
 0x245   :  { %v23785_v43 = vadd.f32 %v4924_v21, %v23537_v14  ;;  %v23788_v29 = vadd.f32 %v4963_v36, %v23540_v25  ;;  %8459 = vmatpush1.bf16.msra.mxu1 %v8289_v44  ;;  %8476 = vmatprep.mubr.bf16.mxu1 %v28814_v20  ;;  %v23791_v0 = vpop.permute.xlu0 %9390  ;;  %v8263_v14 = vsel %vm8252_vm0, %v28939_v50, %v28943_v63  ;;  %v28944_v25 = vld [vmem:[#allocation17_spill] sm:$0xff] }
 0x246   :  { %v4926_v39 = vpop.f32.mrf.mxu0  ;;  %v4965_v2 = vpop.f32.mrf.mxu1  ;;  %19653 = vmatprep.subr.msk.bf16.mxu1 %vm208_vm1, %v8264_v53  ;;  %v8266_v44 = vsel %vm8252_vm0, %v28944_v25, %v23469_v54  ;;  %v8301_v36 = vsel %vm208_vm1, %v8263_v14, 0 }
 0x247   :  { %v23796_v32 = vadd.f32 %v4926_v39, %v23548_v10  ;;  %v23799_v41 = vadd.f32 %v4965_v2, %v23551_v45  ;;  %v23807_v21 = vpop.permute.xlu1 %9392  ;;  %11702 = vrot.lane.b32.xlu0 %v23272_v28, %s20827_s18 }
 0x248   :  { %v4967_v48 = vpop.f32.mrf.mxu1  ;;  %v5006_v53 = vpop.f32.mrf.mxu0  ;;  %19648 = vmatmul.mubr.msk.bf16.vlgmr.msra.gmra.mxu0 %vm60_vm2, %v23725_v4  ;;  %11704 = vrot.lane.b32.xlu1 %v23294_v11, %s20827_s18 }
 0x249   :  { %v23816_v10 = vadd.f32 %v4967_v48, %v23568_v46  ;;  %v23819_v45 = vadd.f32 %v5006_v53, %v23571_v52  ;;  %8502 = vmatpush1.bf16.msra.mxu0 %v8295_v3  ;;  %8519 = vmatprep.mubr.bf16.mxu0 %v28814_v20  ;;  %v23822_v50 = vpop.permute.xlu0 %9394  ;;  %v8265_v46 = vsel %vm8252_vm0, %v28942_v59, %v28944_v25  ;;  %vm16368_vm0 = vcmask 343040  }
 0x24a   :  { %v4969_v28 = vpop.f32.mrf.mxu1  ;;  %v5008_v63 = vpop.f32.mrf.mxu0  ;;  %19655 = vmatprep.subr.msk.bf16.mxu0 %vm208_vm1, %v8266_v44  ;;  %v8307_v25 = vsel %vm208_vm1, %v8265_v46, 0  ;;  %v8835_v46 = vsel %vm8831_vm3, %v23528_v6, %v23543_v57 }
 0x24b   :  { %v23827_v39 = vadd.f32 %v4969_v28, %v23579_v8  ;;  %v23830_v11 = vadd.f32 %v5008_v63, %v23582_v33  ;;  %v23835_v52 = vpop.permute.xlu1 %9396  ;;  %11706 = vrot.lane.b32.xlu0 %v23323_v22, %s20827_s18 }
 0x24c   :  { %v5010_v2 = vpop.f32.mrf.mxu0  ;;  %v5049_v3 = vpop.f32.mrf.mxu1  ;;  %19650 = vmatmul.mubr.msk.bf16.vlgmr.msra.gmra.mxu1 %vm60_vm2, %v23725_v4  ;;  %11708 = vrot.lane.b32.xlu1 %v28920_v37, %s20827_s18 }
 0x24d   :  { %v23844_v8 = vadd.f32 %v5010_v2, %v23596_v12  ;;  %v23847_v33 = vadd.f32 %v5049_v3, %v23599_v61  ;;  %8545 = vmatpush1.bf16.msra.mxu1 %v8301_v36  ;;  %8562 = vmatprep.mubr.bf16.mxu1 %v28814_v20  ;;  %v23850_v59 = vpop.permute.xlu0 %9398  ;;  %v8833_v61 = vsel %vm8831_vm3, %v23503_v58, %v23514_v62  ;;  %v8313_v36 = vsel %vm208_vm1, %v23469_v54, 0 }
 0x24e   :  { %v5012_v22 = vpop.f32.mrf.mxu0  ;;  %v5051_v14 = vpop.f32.mrf.mxu1  ;;  %20404 = vmatprep.subr.bf16.mxu1 %v28815_v42 }
 0x24f   :  { %v23855_v44 = vadd.f32 %v5012_v22, %v23607_v13  ;;  %v23858_v12 = vadd.f32 %v5051_v14, %v23610_v16  ;;  %v23863_v37 = vpop.permute.xlu1 %9400  ;;  %11710 = vrot.lane.b32.xlu0 %v23358_v24, %s20827_s18  ;;  %v28946_v14 = vld [vmem:[#allocation19_spill] sm:$0xff] }
 0x250   :  { %v5053_v48 = vpop.f32.mrf.mxu1  ;;  %v5092_v53 = vpop.f32.mrf.mxu0  ;;  %19652 = vmatmul.mubr.msk.bf16.vlgmr.msra.gmra.mxu0 %vm60_vm2, %v23725_v4  ;;  %11712 = vrot.lane.b32.xlu1 %v23364_v47, %s20827_s18 }
 0x251   :  { %v23872_v13 = vadd.f32 %v5053_v48, %v23624_v7  ;;  %v23875_v16 = vadd.f32 %v5092_v53, %v23627_v5  ;;  %8588 = vmatpush1.bf16.msra.mxu0 %v8307_v25  ;;  %8605 = vmatprep.mubr.bf16.mxu0 %v28814_v20  ;;  %v23878_v28 = vpop.permute.xlu0 %9402  ;;  %v8832_v5 = vsel %vm8831_vm3, %v23489_v27, %v23503_v58  ;;  %v28947_v25 = vld [vmem:[#allocation18_spill] sm:$0xff] }
 0x252   :  { %v5055_v24 = vpop.f32.mrf.mxu1  ;;  %v5094_v63 = vpop.f32.mrf.mxu0  ;;  %19676 = vmatprep.subr.msk.bf16.mxu0 %vm208_vm1, %v8833_v61  ;;  %v8850_v22 = vsel %vm208_vm1, %v8832_v5, 0  ;;  %v8837_v61 = vsel %vm8831_vm3, %v28947_v25, %v28946_v14 }
 0x253   :  { %v23884_v47 = vadd.f32 %v5055_v24, %v23636_v56  ;;  %v23887_v7 = vadd.f32 %v5094_v63, %v23639_v38  ;;  %v23895_v2 = vpop.permute.xlu1 %9404  ;;  %11714 = vrot.lane.b32.xlu0 %v23381_v60, %s20827_s18 }
 0x254   :  { %v5096_v54 = vpop.f32.mrf.mxu0  ;;  %v5135_v3 = vpop.f32.mrf.mxu1  ;;  %19654 = vmatmul.mubr.msk.bf16.vlgmr.msra.gmra.mxu1 %vm60_vm2, %v23725_v4  ;;  %11716 = vrot.lane.b32.xlu1 %v28930_v18, %s20827_s18 }
 0x255   :  { %v23904_v56 = vadd.f32 %v5096_v54, %v23656_v23  ;;  %v23907_v27 = vadd.f32 %v5135_v3, %v23659_v9  ;;  %20405 = vmatpush3.bf16.msra.mxu1 %v8313_v36  ;;  %20406 = vmatprep.mubr.msk.bf16.mxu1 %vm20812_vm4, %v28815_v42  ;;  %v23911_v58 = vpop.permute.xlu0 %9406  ;;  %v8834_v9 = vsel %vm8831_vm3, %v23514_v62, %v23528_v6  ;;  %v20691_v62 = vld [vmem:[%s28591_s0 + $0x3c] ss:$0 sps:$4 sm:$0xff]  }
 0x256   :  { %28945 = vst [vmem:[#allocation20_spill] sm:$0xff] %v23911_v58  ;;  %v5098_v60 = vpop.f32.mrf.mxu0  ;;  %v5137_v38 = vpop.f32.mrf.mxu1  ;;  %19678 = vmatprep.subr.msk.bf16.mxu1 %vm208_vm1, %v8835_v46  ;;  %v8856_v5 = vsel %vm208_vm1, %v8834_v9, 0  ;;  %v28952_v54 = vld [vmem:[#allocation10_spill] sm:$0xff]  ;;  %v8836_v3 = vsel %vm8831_vm3, %v23543_v57, %v28947_v25  ;;  %v28956_v9 = vld [vmem:[#allocation13_spill] sm:$0xff] }
 0x257   :  { %v23916_v18 = vadd.f32 %v5098_v60, %v23668_v49  ;;  %v23919_v23 = vadd.f32 %v5137_v38, %v23671_v15  ;;  %v23927_v48 = vpop.permute.xlu1 %9408  ;;  %11718 = vrot.lane.b32.xlu0 %v23420_v19, %s20827_s18  ;;  %v28949_v49 = vld [vmem:[#allocation24_spill] sm:$0xff]  ;;  %v28953_v60 = vld [vmem:[#allocation25_spill] sm:$0xff]  ;;  %v28954_v38 = vld [vmem:[#allocation15_spill] sm:$0xff] }
 0x258   :  { %28948 = vst [vmem:[#allocation12_spill] sm:$0xff] %v23927_v48  ;;  %v5139_v53 = vpop.f32.mrf.mxu1  ;;  %v5178_v24 = vpop.f32.mrf.mxu0  ;;  %19656 = vmatmul.mubr.msk.bf16.vlgmr.msra.gmra.mxu0 %vm60_vm2, %v23725_v4  ;;  %11720 = vrot.lane.b32.xlu1 %v23442_v55, %s20827_s18  ;;  %v28951_v55 = vld [vmem:[#allocation16_spill] sm:$0xff] }
 0x259   :  { %v23939_v6 = vadd.f32 %v5139_v53, %v23688_v26  ;;  %v23942_v15 = vadd.f32 %v5178_v24, %v28949_v49  ;;  %8909 = vmatpush1.bf16.msra.mxu0 %v8850_v22  ;;  %8926 = vmatprep.mubr.bf16.mxu0 %v28814_v20  ;;  %v23945_v19 = vpop.permute.xlu0 %9959  ;;  %v8839_v22 = vsel %vm8831_vm3, %v28954_v38, %v28953_v60  ;;  %v4723_v24 = vld [vmem:[#allocation2 + $0x70] sm:$0xff] }
 0x25a   :  { %28950 = vst [vmem:[#allocation7_spill] sm:$0xff] %v23945_v19  ;;  %v5141_v63 = vpop.f32.mrf.mxu1  ;;  %v5180_v36 = vpop.f32.mrf.mxu0  ;;  %19680 = vmatprep.subr.msk.bf16.mxu0 %vm208_vm1, %v8837_v61  ;;  %v12225_v57 = vld [vmem:[%s28591_s0 + $0xc] sm:$0xff] }
 0x25b   :  { %v23950_v46 = vadd.f32 %v5141_v63, %v28951_v55  ;;  %v23953_v26 = vadd.f32 %v5180_v36, %v28952_v54  ;;  %v23961_v53 = vpop.permute.xlu1 %9961  ;;  %11722 = vrot.lane.b32.xlu0 %v28956_v9, %s20827_s18  ;;  %v23970_v63 = vld [vmem:[%s28592_s1 + $0x78] sm:$0xff]   ;;  %v8862_v9 = vsel %vm208_vm1, %v8836_v3, 0  ;;  %v23998_v3 = vcombine.low %v12225_v57, %v12225_v57 }
 0x25c   :  { %28955 = vst [vmem:[#allocation17_spill] sm:$0xff] %v23961_v53  ;;  %v5182_v61 = vpop.f32.mrf.mxu0  ;;  %v5221_v49 = vpop.f32.mrf.mxu1  ;;  %20407 = vmatmul.mubr.msk.bf16.vlgmr.msra.gmra.mxu1 %vm60_vm2, %v23725_v4  ;;  %11724 = vrot.lane.b32.xlu1 %v20691_v62, %s20827_s18 }
 0x25d   :  { %v23977_v25 = vadd.f32 %v5182_v61, %v23732_v17  ;;  %v5242_v36 = vadd.f32 %v5221_v49, %v4723_v24  ;;  %8952 = vmatpush1.bf16.msra.mxu1 %v8856_v5  ;;  %8969 = vmatprep.mubr.bf16.mxu1 %v28814_v20  ;;  %v23980_v55 = vpop.permute.xlu0 %9963  ;;  %v8838_v17 = vsel %vm8831_vm3, %v28946_v14, %v28954_v38  ;;  %v28958_v5 = vld [vmem:[#allocation14_spill] sm:$0xff] }
 0x25e   :  { %28957 = vst [vmem:[#allocation19_spill] sm:$0xff] %v23980_v55  ;;  %v5184_v4 = vpop.f32.mrf.mxu0  ;;  %v20372_v54 = vpop.f32.mrf.mxu1  ;;  %19682 = vmatprep.subr.msk.bf16.mxu1 %vm208_vm1, %v8839_v22  ;;  %v28959_v61 = vld [vmem:[#allocation22_spill] sm:$0xff]  ;;  %v4738_v22 = vld [vmem:[#allocation2 + $0xe8] sm:$0xff]  ;;  %v24004_v14 = vcombine.high %v12225_v57, %v12225_v57  ;;  %v8868_v55 = vsel %vm208_vm1, %v8838_v17, 0 }
 0x25f   :  { %5272 = vst.msk [vmem:[#allocation2 + $0x70] sm:$0xff] %vm60_vm2, %v5242_v36  ;;  %v23986_v62 = vadd.f32 %v5184_v4, %v23741_v34  ;;  %v8841_v24 = vsel %vm8831_vm3, %v28959_v61, %v28958_v5  ;;  %v23994_v49 = vpop.permute.xlu1 %9965  ;;  %12275 = vrot.lane.b32.xlu0 %v23729_v30, %s20828_s25  ;;  %v12226_v38 = vld [vmem:[%s28591_s0 + $0x14] sm:$0xff] }
 0x260   :  { %28960 = vst [vmem:[#allocation18_spill] sm:$0xff] %v23994_v49  ;;  %v5224_v36 = vpop.f32.mrf.mxu1  ;;  %v5454_v34 = vpop.f32.mrf.mxu0  ;;  %19677 = vmatmul.mubr.msk.bf16.vlgmr.msra.gmra.mxu0 %vm60_vm2, %v23970_v63  ;;  %12277 = vrot.lane.b32.xlu1 %v23752_v1, %s20828_s25 }
 0x261   :  { %v5257_v4 = vadd.f32 %v5224_v36, %v4738_v22  ;;  %v24010_v54 = vadd.f32 %v5454_v34, %v23759_v51  ;;  %8995 = vmatpush1.bf16.msra.mxu0 %v8862_v9  ;;  %9012 = vmatprep.mubr.bf16.mxu0 %v28814_v20  ;;  %v24013_v49 = vpop.permute.xlu0 %9967  ;;  %v8840_v51 = vsel %vm8831_vm3, %v28953_v60, %v28959_v61  ;;  %v28962_v9 = vld [vmem:[#allocation21_spill] sm:$0xff] }
 0x262   :  { %28961 = vst [vmem:[#allocation24_spill] sm:$0xff] %v24013_v49  ;;  %v20373_v19 = vpop.f32.mrf.mxu1  ;;  %v5456_v53 = vpop.f32.mrf.mxu0  ;;  %19684 = vmatprep.subr.msk.bf16.mxu0 %vm208_vm1, %v8841_v24  ;;  %v28963_v22 = vld [vmem:[#allocation9_spill] sm:$0xff]  ;;  %v24040_v60 = vcombine.high %v12226_v38, %v12226_v38  ;;  %v8874_v58 = vsel %vm208_vm1, %v8840_v51, 0 }
 0x263   :  { %5287 = vst.msk [vmem:[#allocation2 + $0xe8] sm:$0xff] %vm60_vm2, %v5257_v4  ;;  %v24019_v57 = vadd.f32 %v5456_v53, %v23768_v40  ;;  %v8843_v36 = vsel %vm8831_vm3, %v28963_v22, %v28962_v9  ;;  %v24027_v34 = vpop.permute.xlu1 %9969  ;;  %12279 = vrot.lane.b32.xlu0 %v23998_v3, %s20828_s25  ;;  %v24031_v19 = vcombine.low %v12226_v38, %v12226_v38  ;;  %v12227_v40 = vld [vmem:[%s28591_s0 + $0x1c] sm:$0xff] }
 0x264   :  { %28964 = vst [vmem:[#allocation16_spill] sm:$0xff] %v24027_v34  ;;  %v5458_v53 = vpop.f32.mrf.mxu0  ;;  %v5497_v17 = vpop.f32.mrf.mxu1  ;;  %19679 = vmatmul.mubr.msk.bf16.vlgmr.msra.gmra.mxu1 %vm60_vm2, %v23970_v63  ;;  %12281 = vrot.lane.b32.xlu1 %v24004_v14, %s20828_s25  ;;  %28965 = vst [vmem:[#allocation10_spill] sm:$0xff] %v24040_v60  ;;  %v24053_v48 = vcombine.low %v12227_v40, %v12227_v40 }
 0x265   :  { %v24043_v61 = vadd.f32 %v5458_v53, %v23785_v43  ;;  %v24046_v24 = vadd.f32 %v5497_v17, %v23788_v29  ;;  %9038 = vmatpush1.bf16.msra.mxu1 %v8868_v55  ;;  %9055 = vmatprep.mubr.bf16.mxu1 %v28814_v20  ;;  %v24049_v4 = vpop.permute.xlu0 %9971  ;;  %v8842_v29 = vsel %vm8831_vm3, %v28958_v5, %v28963_v22  ;;  %v28967_v55 = vld [vmem:[#allocation11_spill] sm:$0xff] }
 0x266   :  { %28966 = vst [vmem:[#allocation25_spill] sm:$0xff] %v24049_v4  ;;  %v5460_v34 = vpop.f32.mrf.mxu0  ;;  %v5499_v49 = vpop.f32.mrf.mxu1  ;;  %19686 = vmatprep.subr.msk.bf16.mxu1 %vm208_vm1, %v8843_v36  ;;  %v28968_v53 = vld [vmem:[#allocation23_spill] sm:$0xff] }
 0x267   :  { %v24056_v38 = vadd.f32 %v5460_v34, %v23796_v32  ;;  %v24059_v43 = vadd.f32 %v5499_v49, %v23799_v41  ;;  %v8845_v17 = vsel %vm8831_vm3, %v28968_v53, %v28967_v55  ;;  %v24067_v4 = vpop.permute.xlu1 %9973  ;;  %12283 = vrot.lane.b32.xlu0 %v24031_v19, %s20828_s25  ;;  %v24075_v32 = vcombine.high %v12227_v40, %v12227_v40  ;;  %v12228_v41 = vld [vmem:[%s28591_s0 + $0x24] sm:$0xff] }
 0x268   :  { %28969 = vst [vmem:[#allocation15_spill] sm:$0xff] %v24067_v4  ;;  %v5501_v51 = vpop.f32.mrf.mxu1  ;;  %v5540_v36 = vpop.f32.mrf.mxu0  ;;  %19681 = vmatmul.mubr.msk.bf16.vlgmr.msra.gmra.mxu0 %vm60_vm2, %v23970_v63  ;;  %12285 = vrot.lane.b32.xlu1 %v24040_v60, %s20828_s25  ;;  %v8880_v40 = vsel %vm208_vm1, %v8842_v29, 0 }
 0x269   :  { %v24081_v5 = vadd.f32 %v5501_v51, %v23816_v10  ;;  %v24084_v49 = vadd.f32 %v5540_v36, %v23819_v45  ;;  %9081 = vmatpush1.bf16.msra.mxu0 %v8874_v58  ;;  %9098 = vmatprep.mubr.bf16.mxu0 %v28814_v20  ;;  %v24087_v22 = vpop.permute.xlu0 %9975  ;;  %v8844_v45 = vsel %vm8831_vm3, %v28962_v9, %v28968_v53  ;;  %vm16947_vm3 = vcmask 293888  }
 0x26a   :  { %28970 = vst [vmem:[#allocation13_spill] sm:$0xff] %v24087_v22  ;;  %v5503_v34 = vpop.f32.mrf.mxu1  ;;  %v5542_v4 = vpop.f32.mrf.mxu0  ;;  %19688 = vmatprep.subr.msk.bf16.mxu0 %vm208_vm1, %v8845_v17  ;;  %v24104_v51 = vcombine.low %v12228_v41, %v12228_v41 }
 0x26b   :  { %v24092_v60 = vadd.f32 %v5503_v34, %v23827_v39  ;;  %v24095_v10 = vadd.f32 %v5542_v4, %v23830_v11  ;;  %v24100_v58 = vpop.permute.xlu1 %9977  ;;  %12287 = vrot.lane.b32.xlu0 %v24053_v48, %s20828_s25  ;;  %v24110_v39 = vcombine.high %v12228_v41, %v12228_v41  ;;  %v12229_v11 = vld [vmem:[%s28591_s0 + $0x2c] sm:$0xff]  ;;  %v8886_v41 = vsel %vm208_vm1, %v8844_v45, 0  ;;  %v12230_v45 = vld [vmem:[%s28591_s0 + $0x34] sm:$0xff] }
 0x26c   :  { %28971 = vst [vmem:[#allocation14_spill] sm:$0xff] %v24100_v58  ;;  %v5544_v29 = vpop.f32.mrf.mxu0  ;;  %v5583_v36 = vpop.f32.mrf.mxu1  ;;  %19683 = vmatmul.mubr.msk.bf16.vlgmr.msra.gmra.mxu1 %vm60_vm2, %v23970_v63  ;;  %12289 = vrot.lane.b32.xlu1 %v24075_v32, %s20828_s25 }
 0x26d   :  { %v24116_v9 = vadd.f32 %v5544_v29, %v23844_v8  ;;  %v24119_v4 = vadd.f32 %v5583_v36, %v23847_v33  ;;  %9124 = vmatpush1.bf16.msra.mxu1 %v8880_v40  ;;  %9141 = vmatprep.mubr.bf16.mxu1 %v28814_v20  ;;  %v24122_v53 = vpop.permute.xlu0 %9979  ;;  %v28975_v33 = vld [vmem:[#allocation5_spill] sm:$0xff]  ;;  %v24139_v36 = vcombine.low %v12229_v11, %v12229_v11 }
 0x26e   :  { %28972 = vst [vmem:[#allocation22_spill] sm:$0xff] %v24122_v53  ;;  %v5546_v17 = vpop.f32.mrf.mxu0  ;;  %v5585_v34 = vpop.f32.mrf.mxu1  ;;  %20410 = vmatprep.subr.bf16.mxu1 %v28815_v42  ;;  %v9412_v40 = vsel %vm9410_vm5, %v28975_v33, %v23749_v31 }
 0x26f   :  { %v24127_v58 = vadd.f32 %v5546_v17, %v23855_v44  ;;  %v24130_v8 = vadd.f32 %v5585_v34, %v23858_v12  ;;  %v24135_v29 = vpop.permute.xlu1 %9981  ;;  %12291 = vrot.lane.b32.xlu0 %v24104_v51, %s20828_s25  ;;  %v24148_v12 = vcombine.high %v12229_v11, %v12229_v11  ;;  %v24162_v11 = vcombine.low %v12230_v45, %v12230_v45 }
 0x270   :  { %28976 = vst [vmem:[#allocation11_spill] sm:$0xff] %v24135_v29  ;;  %v5587_v44 = vpop.f32.mrf.mxu1  ;;  %v5626_v17 = vpop.f32.mrf.mxu0  ;;  %19685 = vmatmul.mubr.msk.bf16.vlgmr.msra.gmra.mxu0 %vm60_vm2, %v23970_v63  ;;  %12293 = vrot.lane.b32.xlu1 %v24110_v39, %s20828_s25 }
 0x271   :  { %28973 = vst [vmem:[#allocation21_spill] sm:$0xff] %v24127_v58  ;;  %28974 = vst [vmem:[#allocation9_spill] sm:$0xff] %v24130_v8  ;;  %v24151_v34 = vadd.f32 %v5587_v44, %v23872_v13  ;;  %v24154_v29 = vadd.f32 %v5626_v17, %v23875_v16  ;;  %9167 = vmatpush1.bf16.msra.mxu0 %v8886_v41  ;;  %9184 = vmatprep.mubr.bf16.mxu0 %v28814_v20  ;;  %v24157_v53 = vpop.permute.xlu0 %9983  ;;  %v8892_v58 = vsel %vm208_vm1, %v28967_v55, 0  ;;  %v28980_v41 = vld [vmem:[#allocation8_spill] sm:$0xff]  ;;  %v28981_v17 = vld [vmem:[#allocation6_spill] sm:$0xff] }
 0x272   :  { %28978 = vst [vmem:[#allocation5_spill] sm:$0xff] %v24157_v53  ;;  %v5589_v22 = vpop.f32.mrf.mxu1  ;;  %v5628_v8 = vpop.f32.mrf.mxu0  ;;  %19709 = vmatprep.subr.msk.bf16.mxu0 %vm208_vm1, %v9412_v40  ;;  %28979 = vst [vmem:[#allocation26_spill] sm:$0xff] %v24162_v11  ;;  %v9411_v44 = vsel %vm9410_vm5, %v28980_v41, %v28975_v33  ;;  %v9414_v53 = vsel %vm9410_vm5, %v28981_v17, %v23776_v35 }
 0x273   :  { %28977 = vst [vmem:[#allocation23_spill] sm:$0xff] %v24154_v29  ;;  %v24165_v13 = vadd.f32 %v5589_v22, %v23884_v47  ;;  %v24168_v16 = vadd.f32 %v5628_v8, %v23887_v7  ;;  %v24176_v29 = vpop.permute.xlu1 %9985  ;;  %12295 = vrot.lane.b32.xlu0 %v24139_v36, %s20828_s25  ;;  %v24184_v47 = vcombine.high %v12230_v45, %v12230_v45 }
 0x274   :  { %28982 = vst [vmem:[#allocation8_spill] sm:$0xff] %v24176_v29  ;;  %v5630_v55 = vpop.f32.mrf.mxu0  ;;  %v5669_v40 = vpop.f32.mrf.mxu1  ;;  %19687 = vmatmul.mubr.msk.bf16.vlgmr.msra.gmra.mxu1 %vm60_vm2, %v23970_v63  ;;  %12297 = vrot.lane.b32.xlu1 %v24148_v12, %s20828_s25  ;;  %v9429_v29 = vsel %vm208_vm1, %v9411_v44, 0 }
 0x275   :  { %v24187_v7 = vadd.f32 %v5630_v55, %v23904_v56  ;;  %v24190_v22 = vadd.f32 %v5669_v40, %v23907_v27  ;;  %20411 = vmatpush3.bf16.msra.mxu1 %v8892_v58  ;;  %20412 = vmatprep.mubr.msk.bf16.mxu1 %vm20812_vm4, %v28815_v42  ;;  %v24194_v8 = vpop.permute.xlu0 %9987  ;;  %v9413_v27 = vsel %vm9410_vm5, %v23749_v31, %v28981_v17 }
 0x276   :  { %v5632_v33 = vpop.f32.mrf.mxu0  ;;  %v5671_v41 = vpop.f32.mrf.mxu1  ;;  %19711 = vmatprep.subr.msk.bf16.mxu1 %vm208_vm1, %v9414_v53  ;;  %v9416_v58 = vsel %vm9410_vm5, %v23791_v0, %v23807_v21 }
 0x277   :  { %v24199_v45 = vadd.f32 %v5632_v33, %v23916_v18  ;;  %v24202_v56 = vadd.f32 %v5671_v41, %v23919_v23  ;;  %v24210_v55 = vpop.permute.xlu1 %10538  ;;  %12299 = vrot.lane.b32.xlu0 %v24162_v11, %s20828_s25  ;;  %v20705_v18 = vld [vmem:[%s28591_s0 + $0x3c] ss:$0 sps:$4 sm:$0xff]   ;;  %v9435_v41 = vsel %vm208_vm1, %v9413_v27, 0 }
 0x278   :  { %28983 = vst [vmem:[#allocation6_spill] sm:$0xff] %v24210_v55  ;;  %v5673_v53 = vpop.f32.mrf.mxu1  ;;  %v5712_v23 = vpop.f32.mrf.mxu0  ;;  %19689 = vmatmul.mubr.msk.bf16.vlgmr.msra.gmra.mxu0 %vm60_vm2, %v23970_v63  ;;  %12301 = vrot.lane.b32.xlu1 %v24184_v47, %s20828_s25 }
 0x279   :  { %v24222_v31 = vadd.f32 %v5673_v53, %v23939_v6  ;;  %v24225_v44 = vadd.f32 %v5712_v23, %v23942_v15  ;;  %9488 = vmatpush1.bf16.msra.mxu0 %v9429_v29  ;;  %9505 = vmatprep.mubr.bf16.mxu0 %v28814_v20  ;;  %v24228_v17 = vpop.permute.xlu0 %10540  ;;  %v9415_v15 = vsel %vm9410_vm5, %v23776_v35, %v23791_v0 }
 0x27a   :  { %v5675_v40 = vpop.f32.mrf.mxu1  ;;  %v5714_v33 = vpop.f32.mrf.mxu0  ;;  %19713 = vmatprep.subr.msk.bf16.mxu0 %vm208_vm1, %v9416_v58  ;;  %v9418_v29 = vsel %vm9410_vm5, %v23822_v50, %v23835_v52  ;;  %v5302_v58 = vld [vmem:[#allocation2 + $0x70] sm:$0xff] }
 0x27b   :  { %v24233_v55 = vadd.f32 %v5675_v40, %v23950_v46  ;;  %v24236_v6 = vadd.f32 %v5714_v33, %v23953_v26  ;;  %v24244_v53 = vpop.permute.xlu1 %10542  ;;  %12303 = vrot.lane.b32.xlu0 %v20705_v18, %s20828_s25  ;;  %v24252_v46 = vld [vmem:[%s28592_s1 + $0x80] sm:$0xff]   ;;  %v9441_v40 = vsel %vm208_vm1, %v9415_v15, 0  ;;  %v5317_v15 = vld [vmem:[#allocation2 + $0xe8] sm:$0xff]  ;;  %s20838_s25 = smov 77  }
 0x27c   :  { %v5716_v27 = vpop.f32.mrf.mxu0  ;;  %v5755_v23 = vpop.f32.mrf.mxu1  ;;  %20413 = vmatmul.mubr.msk.bf16.vlgmr.msra.gmra.mxu1 %vm60_vm2, %v23970_v63  ;;  %12854 = vrot.lane.b32.xlu1 %v23729_v30, %s20829_s11  ;;  %v9417_v30 = vsel %vm9410_vm5, %v23807_v21, %v23822_v50 }
 0x27d   :  { %v24257_v35 = vadd.f32 %v5716_v27, %v23977_v25  ;;  %v5776_v0 = vadd.f32 %v5755_v23, %v5302_v58  ;;  %9531 = vmatpush1.bf16.msra.mxu1 %v9435_v41  ;;  %9548 = vmatprep.mubr.bf16.mxu1 %v28814_v20  ;;  %v24260_v26 = vpop.permute.xlu0 %10544  ;;  %v9420_v25 = vsel %vm9410_vm5, %v23850_v59, %v23863_v37  ;;  %v9447_v23 = vsel %vm208_vm1, %v9417_v30, 0 }
 0x27e   :  { %v5718_v18 = vpop.f32.mrf.mxu0  ;;  %v20378_v63 = vpop.f32.mrf.mxu1  ;;  %19715 = vmatprep.subr.msk.bf16.mxu1 %vm208_vm1, %v9418_v29 }
 0x27f   :  { %5806 = vst.msk [vmem:[#allocation2 + $0x70] sm:$0xff] %vm60_vm2, %v5776_v0  ;;  %v24266_v33 = vadd.f32 %v5718_v18, %v23986_v62  ;;  %v24274_v41 = vpop.permute.xlu1 %10546  ;;  %12856 = vrot.lane.b32.xlu0 %v23752_v1, %s20829_s11  ;;  %v9422_v18 = vsel %vm9410_vm5, %v23878_v28, %v23895_v2 }
 0x280   :  { %v5758_v29 = vpop.f32.mrf.mxu1  ;;  %v6033_v27 = vpop.f32.mrf.mxu0  ;;  %19710 = vmatmul.mubr.msk.bf16.vlgmr.msra.gmra.mxu0 %vm60_vm2, %v24252_v46  ;;  %12858 = vrot.lane.b32.xlu1 %v23998_v3, %s20829_s11 }
 0x281   :  { %v5791_v62 = vadd.f32 %v5758_v29, %v5317_v15  ;;  %v24283_v21 = vadd.f32 %v6033_v27, %v24010_v54  ;;  %9574 = vmatpush1.bf16.msra.mxu0 %v9441_v40  ;;  %9591 = vmatprep.mubr.bf16.mxu0 %v28814_v20  ;;  %v24286_v50 = vpop.permute.xlu0 %10548  ;;  %v9419_v54 = vsel %vm9410_vm5, %v23835_v52, %v23850_v59 }
 0x282   :  { %28984 = vst [vmem:[#allocation27_spill] sm:$0xff] %v24286_v50  ;;  %v20379_v58 = vpop.f32.mrf.mxu1  ;;  %v6035_v1 = vpop.f32.mrf.mxu0  ;;  %19717 = vmatprep.subr.msk.bf16.mxu0 %vm208_vm1, %v9420_v25  ;;  %v9453_v29 = vsel %vm208_vm1, %v9419_v54, 0  ;;  %v28990_v54 = vld [vmem:[#allocation10_spill] sm:$0xff] }
 0x283   :  { %5821 = vst.msk [vmem:[#allocation2 + $0xe8] sm:$0xff] %vm60_vm2, %v5791_v62  ;;  %v24292_v0 = vadd.f32 %v6035_v1, %v24019_v57  ;;  %v24300_v63 = vpop.permute.xlu1 %10550  ;;  %12860 = vrot.lane.b32.xlu0 %v24004_v14, %s20829_s11  ;;  %v28987_v62 = vld [vmem:[#allocation12_spill] sm:$0xff] }
 0x284   :  { %28985 = vst [vmem:[#allocation28_spill] sm:$0xff] %v24300_v63  ;;  %v6037_v40 = vpop.f32.mrf.mxu0  ;;  %v6076_v30 = vpop.f32.mrf.mxu1  ;;  %19712 = vmatmul.mubr.msk.bf16.vlgmr.msra.gmra.mxu1 %vm60_vm2, %v24252_v46  ;;  %12862 = vrot.lane.b32.xlu1 %v24031_v19, %s20829_s11  ;;  %v28988_v58 = vld [vmem:[#allocation20_spill] sm:$0xff] }
 0x285   :  { %v24309_v57 = vadd.f32 %v6037_v40, %v24043_v61  ;;  %v24312_v52 = vadd.f32 %v6076_v30, %v24046_v24  ;;  %9617 = vmatpush1.bf16.msra.mxu1 %v9447_v23  ;;  %9634 = vmatprep.mubr.bf16.mxu1 %v28814_v20  ;;  %v24315_v59 = vpop.permute.xlu0 %10552  ;;  %v9421_v24 = vsel %vm9410_vm5, %v23863_v37, %v23878_v28 }
 0x286   :  { %28986 = vst [vmem:[#allocation29_spill] sm:$0xff] %v24315_v59  ;;  %v6039_v25 = vpop.f32.mrf.mxu0  ;;  %v6078_v15 = vpop.f32.mrf.mxu1  ;;  %19719 = vmatprep.subr.msk.bf16.mxu1 %vm208_vm1, %v9422_v18  ;;  %v9424_v1 = vsel %vm9410_vm5, %v28988_v58, %v28987_v62  ;;  %v9471_v59 = vsel %vm208_vm1, %v28987_v62, 0 }
 0x287   :  { %v24320_v27 = vadd.f32 %v6039_v25, %v24056_v38  ;;  %v24323_v61 = vadd.f32 %v6078_v15, %v24059_v43  ;;  %v24331_v23 = vpop.permute.xlu1 %10554  ;;  %12864 = vrot.lane.b32.xlu0 %v28990_v54, %s20829_s11  ;;  %v9459_v25 = vsel %vm208_vm1, %v9421_v24, 0 }
 0x288   :  { %28989 = vst [vmem:[#allocation12_spill] sm:$0xff] %v24331_v23  ;;  %v6080_v18 = vpop.f32.mrf.mxu1  ;;  %v6119_v40 = vpop.f32.mrf.mxu0  ;;  %19714 = vmatmul.mubr.msk.bf16.vlgmr.msra.gmra.mxu0 %vm60_vm2, %v24252_v46  ;;  %12866 = vrot.lane.b32.xlu1 %v24053_v48, %s20829_s11 }
 0x289   :  { %v24340_v38 = vadd.f32 %v6080_v18, %v24081_v5  ;;  %v24343_v37 = vadd.f32 %v6119_v40, %v24084_v49  ;;  %9660 = vmatpush1.bf16.msra.mxu0 %v9453_v29  ;;  %9677 = vmatprep.mubr.bf16.mxu0 %v28814_v20  ;;  %v24346_v28 = vpop.permute.xlu0 %10556  ;;  %v9423_v49 = vsel %vm9410_vm5, %v23895_v2, %v28988_v58  ;;  %vm17526_vm5 = vcmask 654336  }
 0x28a   :  { %28991 = vst [vmem:[#allocation20_spill] sm:$0xff] %v24346_v28  ;;  %v6082_v43 = vpop.f32.mrf.mxu1  ;;  %v6121_v30 = vpop.f32.mrf.mxu0  ;;  %19721 = vmatprep.subr.msk.bf16.mxu0 %vm208_vm1, %v9424_v1  ;;  %v9465_v1 = vsel %vm208_vm1, %v9423_v49, 0  ;;  %v28995_v28 = vld [vmem:[#allocation9_spill] sm:$0xff]  ;;  %v28999_v49 = vld [vmem:[#allocation23_spill] sm:$0xff] }
 0x28b   :  { %v24351_v15 = vadd.f32 %v6082_v43, %v24092_v60  ;;  %v24354_v5 = vadd.f32 %v6121_v30, %v24095_v10  ;;  %v24359_v29 = vpop.permute.xlu1 %10558  ;;  %12868 = vrot.lane.b32.xlu0 %v24075_v32, %s20829_s11  ;;  %v28994_v43 = vld [vmem:[#allocation21_spill] sm:$0xff] }
 0x28c   :  { %28992 = vst [vmem:[#allocation10_spill] sm:$0xff] %v24359_v29  ;;  %v6123_v18 = vpop.f32.mrf.mxu0  ;;  %v6162_v40 = vpop.f32.mrf.mxu1  ;;  %19716 = vmatmul.mubr.msk.bf16.vlgmr.msra.gmra.mxu1 %vm60_vm2, %v24252_v46  ;;  %12870 = vrot.lane.b32.xlu1 %v24104_v51, %s20829_s11 }
 0x28d   :  { %v24368_v60 = vadd.f32 %v6123_v18, %v24116_v9  ;;  %v24371_v10 = vadd.f32 %v6162_v40, %v24119_v4  ;;  %9703 = vmatpush1.bf16.msra.mxu1 %v9459_v25  ;;  %9720 = vmatprep.mubr.bf16.mxu1 %v28814_v20  ;;  %v24374_v2 = vpop.permute.xlu0 %10560  ;;  %v28996_v18 = vld [vmem:[#allocation19_spill] sm:$0xff]  ;;  %v28997_v4 = vld [vmem:[#allocation17_spill] sm:$0xff] }
 0x28e   :  { %28993 = vst [vmem:[#allocation30_spill] sm:$0xff] %v24374_v2  ;;  %v6125_v24 = vpop.f32.mrf.mxu0  ;;  %v6164_v58 = vpop.f32.mrf.mxu1  ;;  %20416 = vmatprep.subr.bf16.mxu1 %v28815_v42  ;;  %v9991_v25 = vsel %vm9989_vm6, %v28997_v4, %v28996_v18 }
 0x28f   :  { %v24379_v30 = vadd.f32 %v6125_v24, %v28994_v43  ;;  %v24382_v9 = vadd.f32 %v6164_v58, %v28995_v28  ;;  %v24387_v40 = vpop.permute.xlu1 %10562  ;;  %12872 = vrot.lane.b32.xlu0 %v24110_v39, %s20829_s11 }
 0x290   :  { %28998 = vst [vmem:[#allocation21_spill] sm:$0xff] %v24387_v40  ;;  %v6166_v2 = vpop.f32.mrf.mxu1  ;;  %v6205_v29 = vpop.f32.mrf.mxu0  ;;  %19718 = vmatmul.mubr.msk.bf16.vlgmr.msra.gmra.mxu0 %vm60_vm2, %v24252_v46  ;;  %12874 = vrot.lane.b32.xlu1 %v24139_v36, %s20829_s11 }
 0x291   :  { %v24396_v28 = vadd.f32 %v6166_v2, %v24151_v34  ;;  %v24399_v24 = vadd.f32 %v6205_v29, %v28999_v49  ;;  %9746 = vmatpush1.bf16.msra.mxu0 %v9465_v1  ;;  %9763 = vmatprep.mubr.bf16.mxu0 %v28814_v20  ;;  %v24402_v58 = vpop.permute.xlu0 %10564  ;;  %v29001_v29 = vld [vmem:[#allocation7_spill] sm:$0xff]  ;;  %v29002_v1 = vld [vmem:[#allocation24_spill] sm:$0xff]  ;;  %v29003_v49 = vld [vmem:[#allocation18_spill] sm:$0xff] }
 0x292   :  { %29000 = vst [vmem:[#allocation9_spill] sm:$0xff] %v24402_v58  ;;  %v6168_v43 = vpop.f32.mrf.mxu1  ;;  %v6207_v40 = vpop.f32.mrf.mxu0  ;;  %19742 = vmatprep.subr.msk.bf16.mxu0 %vm208_vm1, %v9991_v25  ;;  %v9990_v2 = vsel %vm9989_vm6, %v29001_v29, %v28997_v4  ;;  %v9993_v58 = vsel %vm9989_vm6, %v29003_v49, %v29002_v1  ;;  %v20707_v4 = vld [vmem:[%s28591_s0 + $0x3c] ss:$0 sps:$4 sm:$0xff]  }
 0x293   :  { %v24408_v23 = vadd.f32 %v6168_v43, %v24165_v13  ;;  %v24411_v34 = vadd.f32 %v6207_v40, %v24168_v16  ;;  %v24419_v50 = vpop.permute.xlu1 %10566  ;;  %12876 = vrot.lane.b32.xlu0 %v24148_v12, %s20829_s11  ;;  %v13382_v13 = vld [vmem:[%s28591_s0 + $0x4] sm:$0xff]  ;;  %v10008_v63 = vsel %vm208_vm1, %v9990_v2, 0 }
 0x294   :  { %29004 = vst [vmem:[#allocation19_spill] sm:$0xff] %v24419_v50  ;;  %v6209_v62 = vpop.f32.mrf.mxu0  ;;  %v6248_v16 = vpop.f32.mrf.mxu1  ;;  %19720 = vmatmul.mubr.msk.bf16.vlgmr.msra.gmra.mxu1 %vm60_vm2, %v24252_v46  ;;  %12878 = vrot.lane.b32.xlu1 %v24162_v11, %s20829_s11  ;;  %v24445_v11 = vcombine.low %v13382_v13, %v13382_v13 }
 0x295   :  { %v24434_v25 = vadd.f32 %v6209_v62, %v24187_v7  ;;  %v24437_v40 = vadd.f32 %v6248_v16, %v24190_v22  ;;  %20417 = vmatpush3.bf16.msra.mxu1 %v9471_v59  ;;  %20418 = vmatprep.mubr.msk.bf16.mxu1 %vm20812_vm4, %v28815_v42  ;;  %v24441_v43 = vpop.permute.xlu0 %11117  ;;  %v9992_v59 = vsel %vm9989_vm6, %v28996_v18, %v29003_v49  ;;  %v29007_v62 = vld [vmem:[#allocation25_spill] sm:$0xff]  ;;  %v29008_v16 = vld [vmem:[#allocation16_spill] sm:$0xff] }
 0x296   :  { %29006 = vst [vmem:[#allocation23_spill] sm:$0xff] %v24441_v43  ;;  %v6211_v29 = vpop.f32.mrf.mxu0  ;;  %v6250_v50 = vpop.f32.mrf.mxu1  ;;  %19744 = vmatprep.subr.msk.bf16.mxu1 %vm208_vm1, %v9993_v58  ;;  %v9995_v43 = vsel %vm9989_vm6, %v29008_v16, %v29007_v62 }
 0x297   :  { %29005 = vst [vmem:[#allocation17_spill] sm:$0xff] %v24437_v40  ;;  %v24448_v7 = vadd.f32 %v6211_v29, %v24199_v45  ;;  %v24451_v22 = vadd.f32 %v6250_v50, %v24202_v56  ;;  %v24459_v40 = vpop.permute.xlu1 %11119  ;;  %12880 = vrot.lane.b32.xlu0 %v24184_v47, %s20829_s11  ;;  %v24466_v45 = vcombine.high %v13382_v13, %v13382_v13 }
 0x298   :  { %29009 = vst [vmem:[#allocation7_spill] sm:$0xff] %v24459_v40  ;;  %v6252_v58 = vpop.f32.mrf.mxu1  ;;  %v6291_v2 = vpop.f32.mrf.mxu0  ;;  %19722 = vmatmul.mubr.msk.bf16.vlgmr.msra.gmra.mxu0 %vm60_vm2, %v24252_v46  ;;  %12882 = vrot.lane.b32.xlu1 %v20707_v4, %s20829_s11  ;;  %v10014_v40 = vsel %vm208_vm1, %v9992_v59, 0  ;;  %v29012_v4 = vld [vmem:[#allocation15_spill] sm:$0xff] }
 0x299   :  { %v24469_v56 = vadd.f32 %v6252_v58, %v24222_v31  ;;  %v24472_v50 = vadd.f32 %v6291_v2, %v24225_v44  ;;  %10067 = vmatpush1.bf16.msra.mxu0 %v10008_v63  ;;  %10084 = vmatprep.mubr.bf16.mxu0 %v28814_v20  ;;  %v24475_v18 = vpop.permute.xlu0 %11121  ;;  %v9994_v44 = vsel %vm9989_vm6, %v29002_v1, %v29008_v16  ;;  %v29011_v63 = vld [vmem:[#allocation13_spill] sm:$0xff] }
 0x29a   :  { %29010 = vst [vmem:[#allocation24_spill] sm:$0xff] %v24475_v18  ;;  %v6254_v49 = vpop.f32.mrf.mxu1  ;;  %v6293_v29 = vpop.f32.mrf.mxu0  ;;  %19746 = vmatprep.subr.msk.bf16.mxu0 %vm208_vm1, %v9995_v43  ;;  %v9997_v58 = vsel %vm9989_vm6, %v29012_v4, %v29011_v63 }
 0x29b   :  { %v24480_v13 = vadd.f32 %v6254_v49, %v24233_v55  ;;  %v24483_v31 = vadd.f32 %v6293_v29, %v24236_v6  ;;  %v24491_v2 = vpop.permute.xlu1 %11123  ;;  %13433 = vrot.lane.b32.xlu0 %v24445_v11, %s20830_s17  ;;  %v5836_v55 = vld [vmem:[#allocation2 + $0x70] sm:$0xff]  ;;  %v24500_v6 = vld [vmem:[%s28592_s1 + $0x88] sm:$0xff]  }
 0x29c   :  { %29013 = vst [vmem:[#allocation18_spill] sm:$0xff] %v24491_v2  ;;  %v6295_v43 = vpop.f32.mrf.mxu0  ;;  %v6334_v59 = vpop.f32.mrf.mxu1  ;;  %20419 = vmatmul.mubr.msk.bf16.vlgmr.msra.gmra.mxu1 %vm60_vm2, %v24252_v46  ;;  %13435 = vrot.lane.b32.xlu1 %v24466_v45, %s20830_s17  ;;  %v10020_v46 = vsel %vm208_vm1, %v9994_v44, 0  ;;  %v5851_v44 = vld [vmem:[#allocation2 + $0xe8] sm:$0xff] }
 0x29d   :  { %v24505_v1 = vadd.f32 %v6295_v43, %v24257_v35  ;;  %v6355_v16 = vadd.f32 %v6334_v59, %v5836_v55  ;;  %10110 = vmatpush1.bf16.msra.mxu1 %v10014_v40  ;;  %10127 = vmatprep.mubr.bf16.mxu1 %v28814_v20  ;;  %v24508_v49 = vpop.permute.xlu0 %11125  ;;  %v9996_v35 = vsel %vm9989_vm6, %v29007_v62, %v29012_v4  ;;  %v29014_v40 = vld [vmem:[#allocation22_spill] sm:$0xff] }
 0x29e   :  { %v6297_v29 = vpop.f32.mrf.mxu0  ;;  %v20384_v2 = vpop.f32.mrf.mxu1  ;;  %19748 = vmatprep.subr.msk.bf16.mxu1 %vm208_vm1, %v9997_v58  ;;  %v29015_v43 = vld [vmem:[#allocation14_spill] sm:$0xff] }
 0x29f   :  { %6385 = vst.msk [vmem:[#allocation2 + $0x70] sm:$0xff] %vm60_vm2, %v6355_v16  ;;  %v24514_v18 = vadd.f32 %v6297_v29, %v24266_v33  ;;  %v9999_v55 = vsel %vm9989_vm6, %v29015_v43, %v29014_v40  ;;  %v24522_v59 = vpop.permute.xlu1 %11127  ;;  %13437 = vrot.lane.b32.xlu0 %v23998_v3, %s20830_s17  ;;  %v10026_v29 = vsel %vm208_vm1, %v9996_v35, 0 }
 0x2a0   :  { %29016 = vst [vmem:[#allocation25_spill] sm:$0xff] %v24522_v59  ;;  %v6337_v58 = vpop.f32.mrf.mxu1  ;;  %v6612_v2 = vpop.f32.mrf.mxu0  ;;  %19743 = vmatmul.mubr.msk.bf16.vlgmr.msra.gmra.mxu0 %vm60_vm2, %v24500_v6  ;;  %13439 = vrot.lane.b32.xlu1 %v24004_v14, %s20830_s17  ;;  %v9998_v14 = vsel %vm9989_vm6, %v29011_v63, %v29015_v43 }
 0x2a1   :  { %v6370_v33 = vadd.f32 %v6337_v58, %v5851_v44  ;;  %v24531_v62 = vadd.f32 %v6612_v2, %v24283_v21  ;;  %10153 = vmatpush1.bf16.msra.mxu0 %v10020_v46  ;;  %10170 = vmatprep.mubr.bf16.mxu0 %v28814_v20  ;;  %v24534_v4 = vpop.permute.xlu0 %11129  ;;  %v29017_v21 = vld [vmem:[#allocation5_spill] sm:$0xff]  ;;  %v29018_v46 = vld [vmem:[#allocation11_spill] sm:$0xff] }
 0x2a2   :  { %v20385_v16 = vpop.f32.mrf.mxu1  ;;  %v6614_v3 = vpop.f32.mrf.mxu0  ;;  %19750 = vmatprep.subr.msk.bf16.mxu0 %vm208_vm1, %v9999_v55  ;;  %v10001_v44 = vsel %vm9989_vm6, %v29018_v46, %v29017_v21 }
 0x2a3   :  { %6400 = vst.msk [vmem:[#allocation2 + $0xe8] sm:$0xff] %vm60_vm2, %v6370_v33  ;;  %v24540_v59 = vadd.f32 %v6614_v3, %v24292_v0  ;;  %v24548_v58 = vpop.permute.xlu1 %11131  ;;  %13441 = vrot.lane.b32.xlu0 %v24031_v19, %s20830_s17  ;;  %v10032_v33 = vsel %vm208_vm1, %v9998_v14, 0 }
 0x2a4   :  { %v6616_v35 = vpop.f32.mrf.mxu0  ;;  %v6655_v55 = vpop.f32.mrf.mxu1  ;;  %19745 = vmatmul.mubr.msk.bf16.vlgmr.msra.gmra.mxu1 %vm60_vm2, %v24500_v6  ;;  %13443 = vrot.lane.b32.xlu1 %v28990_v54, %s20830_s17  ;;  %v29019_v54 = vld [vmem:[#allocation8_spill] sm:$0xff] }
 0x2a5   :  { %v24557_v0 = vadd.f32 %v6616_v35, %v24309_v57  ;;  %v24560_v63 = vadd.f32 %v6655_v55, %v24312_v52  ;;  %10196 = vmatpush1.bf16.msra.mxu1 %v10026_v29  ;;  %10213 = vmatprep.mubr.bf16.mxu1 %v28814_v20  ;;  %v24563_v43 = vpop.permute.xlu0 %11133  ;;  %v10000_v52 = vsel %vm9989_vm6, %v29014_v40, %v29018_v46 }
 0x2a6   :  { %v6618_v19 = vpop.f32.mrf.mxu0  ;;  %v6657_v2 = vpop.f32.mrf.mxu1  ;;  %19752 = vmatprep.subr.msk.bf16.mxu1 %vm208_vm1, %v10001_v44  ;;  %v10003_v3 = vsel %vm9989_vm6, %v29019_v54, %v24194_v8  ;;  %v10038_v35 = vsel %vm208_vm1, %v10000_v52, 0 }
 0x2a7   :  { %v24568_v16 = vadd.f32 %v6618_v19, %v24320_v27  ;;  %v24571_v57 = vadd.f32 %v6657_v2, %v24323_v61  ;;  %v24579_v29 = vpop.permute.xlu1 %11135  ;;  %13445 = vrot.lane.b32.xlu0 %v24053_v48, %s20830_s17 }
 0x2a8   :  { %v6659_v14 = vpop.f32.mrf.mxu1  ;;  %v6698_v44 = vpop.f32.mrf.mxu0  ;;  %19747 = vmatmul.mubr.msk.bf16.vlgmr.msra.gmra.mxu0 %vm60_vm2, %v24500_v6  ;;  %13447 = vrot.lane.b32.xlu1 %v24075_v32, %s20830_s17 }
 0x2a9   :  { %v24588_v27 = vadd.f32 %v6659_v14, %v24340_v38  ;;  %v24591_v61 = vadd.f32 %v6698_v44, %v24343_v37  ;;  %10239 = vmatpush1.bf16.msra.mxu0 %v10032_v33  ;;  %10256 = vmatprep.mubr.bf16.mxu0 %v28814_v20  ;;  %v24594_v40 = vpop.permute.xlu0 %11137  ;;  %v10002_v38 = vsel %vm9989_vm6, %v29017_v21, %v29019_v54  ;;  %vm18105_vm6 = vcmask 629760  }
 0x2aa   :  { %v6661_v48 = vpop.f32.mrf.mxu1  ;;  %v6700_v46 = vpop.f32.mrf.mxu0  ;;  %19754 = vmatprep.subr.msk.bf16.mxu0 %vm208_vm1, %v10003_v3  ;;  %v10044_v52 = vsel %vm208_vm1, %v10002_v38, 0  ;;  %v10572_v38 = vsel %vm10568_vm7, %v24260_v26, %v24274_v41 }
 0x2ab   :  { %v24599_v55 = vadd.f32 %v6661_v48, %v24351_v15  ;;  %v24602_v32 = vadd.f32 %v6700_v46, %v24354_v5  ;;  %v24607_v37 = vpop.permute.xlu1 %11139  ;;  %13449 = vrot.lane.b32.xlu0 %v24104_v51, %s20830_s17  ;;  %v10050_v46 = vsel %vm208_vm1, %v24194_v8, 0  ;;  %v29022_v8 = vld [vmem:[#allocation26_spill] sm:$0xff] }
 0x2ac   :  { %v6702_v19 = vpop.f32.mrf.mxu0  ;;  %v6741_v2 = vpop.f32.mrf.mxu1  ;;  %19749 = vmatmul.mubr.msk.bf16.vlgmr.msra.gmra.mxu1 %vm60_vm2, %v24500_v6  ;;  %13451 = vrot.lane.b32.xlu1 %v24110_v39, %s20830_s17 }
 0x2ad   :  { %v24616_v15 = vadd.f32 %v6702_v19, %v24368_v60  ;;  %v24619_v5 = vadd.f32 %v6741_v2, %v24371_v10  ;;  %10282 = vmatpush1.bf16.msra.mxu1 %v10038_v35  ;;  %10299 = vmatprep.mubr.bf16.mxu1 %v28814_v20  ;;  %v24622_v21 = vpop.permute.xlu0 %11141  ;;  %v10570_v60 = vsel %vm10568_vm7, %v24228_v17, %v24244_v53 }
 0x2ae   :  { %v6704_v51 = vpop.f32.mrf.mxu0  ;;  %v6743_v33 = vpop.f32.mrf.mxu1  ;;  %20422 = vmatprep.subr.bf16.mxu1 %v28815_v42 }
 0x2af   :  { %v24627_v54 = vadd.f32 %v6704_v51, %v24379_v30  ;;  %v24630_v39 = vadd.f32 %v6743_v33, %v24382_v9  ;;  %v24635_v10 = vpop.permute.xlu1 %11143  ;;  %13453 = vrot.lane.b32.xlu0 %v24139_v36, %s20830_s17  ;;  %v29023_v51 = vld [vmem:[#allocation17_spill] sm:$0xff] }
 0x2b0   :  { %v6745_v3 = vpop.f32.mrf.mxu1  ;;  %v6784_v14 = vpop.f32.mrf.mxu0  ;;  %19751 = vmatmul.mubr.msk.bf16.vlgmr.msra.gmra.mxu0 %vm60_vm2, %v24500_v6  ;;  %13455 = vrot.lane.b32.xlu1 %v24148_v12, %s20830_s17 }
 0x2b1   :  { %v24644_v30 = vadd.f32 %v6745_v3, %v24396_v28  ;;  %v24647_v9 = vadd.f32 %v6784_v14, %v24399_v24  ;;  %10325 = vmatpush1.bf16.msra.mxu0 %v10044_v52  ;;  %10342 = vmatprep.mubr.bf16.mxu0 %v28814_v20  ;;  %v24650_v44 = vpop.permute.xlu0 %11145  ;;  %v29020_v24 = vld [vmem:[#allocation6_spill] sm:$0xff] }
 0x2b2   :  { %v6747_v36 = vpop.f32.mrf.mxu1  ;;  %v6786_v48 = vpop.f32.mrf.mxu0  ;;  %19775 = vmatprep.subr.msk.bf16.mxu0 %vm208_vm1, %v10570_v60  ;;  %v10569_v35 = vsel %vm10568_vm7, %v29020_v24, %v24228_v17  ;;  %v13962_v60 = vld [vmem:[%s28591_s0 + $0xc] sm:$0xff]  ;;  %v29025_v24 = vld [vmem:[#allocation27_spill] sm:$0xff] }
 0x2b3   :  { %v24656_v12 = vadd.f32 %v6747_v36, %v24408_v23  ;;  %v24659_v28 = vadd.f32 %v6786_v48, %v24411_v34  ;;  %v24667_v19 = vpop.permute.xlu1 %11696  ;;  %13457 = vrot.lane.b32.xlu0 %v29022_v8, %s20830_s17  ;;  %v20710_v23 = vld [vmem:[%s28591_s0 + $0x3c] ss:$0 sps:$4 sm:$0xff]   ;;  %v10571_v48 = vsel %vm10568_vm7, %v24244_v53, %v24260_v26 }
 0x2b4   :  { %29021 = vst [vmem:[#allocation16_spill] sm:$0xff] %v24667_v19  ;;  %v6788_v2 = vpop.f32.mrf.mxu0  ;;  %v6827_v34 = vpop.f32.mrf.mxu1  ;;  %19753 = vmatmul.mubr.msk.bf16.vlgmr.msra.gmra.mxu1 %vm60_vm2, %v24500_v6  ;;  %13459 = vrot.lane.b32.xlu1 %v24184_v47, %s20830_s17  ;;  %v10587_v47 = vsel %vm208_vm1, %v10569_v35, 0 }
 0x2b5   :  { %v24679_v17 = vadd.f32 %v6788_v2, %v24434_v25  ;;  %v24682_v33 = vadd.f32 %v6827_v34, %v29023_v51  ;;  %20423 = vmatpush3.bf16.msra.mxu1 %v10050_v46  ;;  %20424 = vmatprep.mubr.msk.bf16.mxu1 %vm20812_vm4, %v28815_v42  ;;  %v24686_v52 = vpop.permute.xlu0 %11698  ;;  %v29024_v46 = vld [vmem:[#allocation28_spill] sm:$0xff] }
 0x2b6   :  { %v6790_v3 = vpop.f32.mrf.mxu0  ;;  %v6829_v14 = vpop.f32.mrf.mxu1  ;;  %19777 = vmatprep.subr.msk.bf16.mxu1 %vm208_vm1, %v10572_v38  ;;  %v10574_v8 = vsel %vm10568_vm7, %v29025_v24, %v29024_v46 }
 0x2b7   :  { %v24694_v25 = vadd.f32 %v6790_v3, %v24448_v7  ;;  %v24697_v36 = vadd.f32 %v6829_v14, %v24451_v22  ;;  %v24705_v2 = vpop.permute.xlu1 %11700  ;;  %13461 = vrot.lane.b32.xlu0 %v20710_v23, %s20830_s17  ;;  %v19960_v7 = vcombine.low %v13962_v60, %v13962_v60  ;;  %v13963_v23 = vld [vmem:[%s28591_s0 + $0x14] sm:$0xff]  ;;  %v29027_v14 = vld [vmem:[#allocation12_spill] sm:$0xff] }
 0x2b8   :  { %v6831_v35 = vpop.f32.mrf.mxu1  ;;  %v6870_v38 = vpop.f32.mrf.mxu0  ;;  %19755 = vmatmul.mubr.msk.bf16.vlgmr.msra.gmra.mxu0 %vm60_vm2, %v24500_v6  ;;  %14012 = vrot.lane.b32.xlu1 %v24445_v11, %s20831_s24  ;;  %v10593_v11 = vsel %vm208_vm1, %v10571_v48, 0  ;;  %v19961_v48 = vcombine.high %v13962_v60, %v13962_v60 }
 0x2b9   :  { %v24713_v53 = vadd.f32 %v6831_v35, %v24469_v56  ;;  %v24716_v26 = vadd.f32 %v6870_v38, %v24472_v50  ;;  %10646 = vmatpush1.bf16.msra.mxu0 %v10587_v47  ;;  %10663 = vmatprep.mubr.bf16.mxu0 %v28814_v20  ;;  %v24719_v22 = vpop.permute.xlu0 %11702  ;;  %v10573_v56 = vsel %vm10568_vm7, %v24274_v41, %v29025_v24  ;;  %v29028_v47 = vld [vmem:[#allocation29_spill] sm:$0xff] }
 0x2ba   :  { %29026 = vst [vmem:[#allocation13_spill] sm:$0xff] %v24719_v22  ;;  %v6833_v34 = vpop.f32.mrf.mxu1  ;;  %v6872_v51 = vpop.f32.mrf.mxu0  ;;  %19779 = vmatprep.subr.msk.bf16.mxu0 %vm208_vm1, %v10574_v8  ;;  %v10576_v35 = vsel %vm10568_vm7, %v29028_v47, %v29027_v14  ;;  %v6415_v41 = vld [vmem:[#allocation2 + $0x70] sm:$0xff] }
 0x2bb   :  { %v24730_v50 = vadd.f32 %v6833_v34, %v24480_v13  ;;  %v24733_v3 = vadd.f32 %v6872_v51, %v24483_v31  ;;  %v24738_v38 = vpop.permute.xlu1 %11704  ;;  %14014 = vrot.lane.b32.xlu0 %v24466_v45, %s20831_s24  ;;  %v24747_v13 = vld [vmem:[%s28592_s1 + $0x90] sm:$0xff]   ;;  %v19962_v31 = vcombine.low %v13963_v23, %v13963_v23 }
 0x2bc   :  { %29029 = vst [vmem:[#allocation15_spill] sm:$0xff] %v24738_v38  ;;  %v6874_v22 = vpop.f32.mrf.mxu0  ;;  %v6913_v24 = vpop.f32.mrf.mxu1  ;;  %20425 = vmatmul.mubr.msk.bf16.vlgmr.msra.gmra.mxu1 %vm60_vm2, %v24500_v6  ;;  %14016 = vrot.lane.b32.xlu1 %v19960_v7, %s20831_s24  ;;  %v13964_v6 = vld [vmem:[%s28591_s0 + $0x1c] sm:$0xff]  ;;  %v10599_v38 = vsel %vm208_vm1, %v10573_v56, 0  ;;  %v10575_v7 = vsel %vm10568_vm7, %v29024_v46, %v29028_v47  ;;  %v19963_v56 = vcombine.high %v13963_v23, %v13963_v23  ;;  %v13965_v23 = vld [vmem:[%s28591_s0 + $0x24] sm:$0xff] }
 0x2bd   :  { %v24751_v8 = vadd.f32 %v6874_v22, %v24505_v1  ;;  %v6934_v34 = vadd.f32 %v6913_v24, %v6415_v41  ;;  %10689 = vmatpush1.bf16.msra.mxu1 %v10593_v11  ;;  %10706 = vmatprep.mubr.bf16.mxu1 %v28814_v20  ;;  %v24754_v45 = vpop.permute.xlu0 %11706  ;;  %v29031_v22 = vld [vmem:[#allocation10_spill] sm:$0xff]  ;;  %v29032_v11 = vld [vmem:[#allocation20_spill] sm:$0xff] }
 0x2be   :  { %29030 = vst [vmem:[#allocation22_spill] sm:$0xff] %v24754_v45  ;;  %v6876_v60 = vpop.f32.mrf.mxu0  ;;  %v20390_v51 = vpop.f32.mrf.mxu1  ;;  %19781 = vmatprep.subr.msk.bf16.mxu1 %vm208_vm1, %v10576_v35  ;;  %v10578_v41 = vsel %vm10568_vm7, %v29032_v11, %v29031_v22 }
 0x2bf   :  { %6964 = vst.msk [vmem:[#allocation2 + $0x70] sm:$0xff] %vm60_vm2, %v6934_v34  ;;  %v24763_v1 = vadd.f32 %v6876_v60, %v24514_v18  ;;  %v24771_v24 = vpop.permute.xlu1 %11708  ;;  %14018 = vrot.lane.b32.xlu0 %v19961_v48, %s20831_s24  ;;  %v6430_v51 = vld [vmem:[#allocation2 + $0xe8] sm:$0xff]  ;;  %v19964_v18 = vcombine.low %v13964_v6, %v13964_v6 }
 0x2c0   :  { %29033 = vst [vmem:[#allocation14_spill] sm:$0xff] %v24771_v24  ;;  %v6916_v35 = vpop.f32.mrf.mxu1  ;;  %v7191_v45 = vpop.f32.mrf.mxu0  ;;  %19776 = vmatmul.mubr.msk.bf16.vlgmr.msra.gmra.mxu0 %vm60_vm2, %v24747_v13  ;;  %14020 = vrot.lane.b32.xlu1 %v19962_v31, %s20831_s24  ;;  %v10605_v24 = vsel %vm208_vm1, %v10575_v7, 0  ;;  %v29035_v31 = vld [vmem:[#allocation21_spill] sm:$0xff]  ;;  %v19965_v7 = vcombine.high %v13964_v6, %v13964_v6 }
 0x2c1   :  { %v6949_v34 = vadd.f32 %v6916_v35, %v6430_v51  ;;  %v24778_v46 = vadd.f32 %v7191_v45, %v24531_v62  ;;  %10732 = vmatpush1.bf16.msra.mxu0 %v10599_v38  ;;  %10749 = vmatprep.mubr.bf16.mxu0 %v28814_v20  ;;  %v24781_v47 = vpop.permute.xlu0 %11710  ;;  %v10577_v38 = vsel %vm10568_vm7, %v29027_v14, %v29032_v11  ;;  %v29036_v45 = vld [vmem:[#allocation30_spill] sm:$0xff]  ;;  %v13966_v6 = vld [vmem:[%s28591_s0 + $0x2c] sm:$0xff] }
 0x2c2   :  { %29034 = vst [vmem:[#allocation5_spill] sm:$0xff] %v24781_v47  ;;  %v20391_v48 = vpop.f32.mrf.mxu1  ;;  %v7193_v60 = vpop.f32.mrf.mxu0  ;;  %19783 = vmatprep.subr.msk.bf16.mxu0 %vm208_vm1, %v10578_v41  ;;  %v10580_v51 = vsel %vm10568_vm7, %v29036_v45, %v29035_v31 }
 0x2c3   :  { %6979 = vst.msk [vmem:[#allocation2 + $0xe8] sm:$0xff] %vm60_vm2, %v6949_v34  ;;  %v24790_v62 = vadd.f32 %v7193_v60, %v24540_v59  ;;  %v24798_v35 = vpop.permute.xlu1 %11712  ;;  %14022 = vrot.lane.b32.xlu0 %v19963_v56, %s20831_s24  ;;  %v19966_v59 = vcombine.low %v13965_v23, %v13965_v23 }
 0x2c4   :  { %29037 = vst [vmem:[#allocation11_spill] sm:$0xff] %v24798_v35  ;;  %v7195_v48 = vpop.f32.mrf.mxu0  ;;  %v7234_v41 = vpop.f32.mrf.mxu1  ;;  %19778 = vmatmul.mubr.msk.bf16.vlgmr.msra.gmra.mxu1 %vm60_vm2, %v24747_v13  ;;  %14024 = vrot.lane.b32.xlu1 %v19964_v18, %s20831_s24  ;;  %v10611_v18 = vsel %vm208_vm1, %v10577_v38, 0  ;;  %v19967_v38 = vcombine.high %v13965_v23, %v13965_v23  ;;  %v13967_v23 = vld [vmem:[%s28591_s0 + $0x34] sm:$0xff] }
 0x2c5   :  { %v24805_v34 = vadd.f32 %v7195_v48, %v24557_v0  ;;  %v24808_v14 = vadd.f32 %v7234_v41, %v24560_v63  ;;  %10775 = vmatpush1.bf16.msra.mxu1 %v10605_v24  ;;  %10792 = vmatprep.mubr.bf16.mxu1 %v28814_v20  ;;  %v24811_v11 = vpop.permute.xlu0 %11714  ;;  %v10579_v0 = vsel %vm10568_vm7, %v29031_v22, %v29036_v45  ;;  %v29039_v48 = vld [vmem:[#allocation19_spill] sm:$0xff]  ;;  %v29040_v41 = vld [vmem:[#allocation9_spill] sm:$0xff] }
 0x2c6   :  { %29038 = vst [vmem:[#allocation8_spill] sm:$0xff] %v24811_v11  ;;  %v7197_v56 = vpop.f32.mrf.mxu0  ;;  %v7236_v60 = vpop.f32.mrf.mxu1  ;;  %19785 = vmatprep.subr.msk.bf16.mxu1 %vm208_vm1, %v10580_v51  ;;  %v10582_v11 = vsel %vm10568_vm7, %v29040_v41, %v29039_v48 }
 0x2c7   :  { %v24822_v63 = vadd.f32 %v7197_v56, %v24568_v16  ;;  %v24825_v24 = vadd.f32 %v7236_v60, %v24571_v57  ;;  %v24830_v47 = vpop.permute.xlu1 %11716  ;;  %14026 = vrot.lane.b32.xlu0 %v19965_v7, %s20831_s24  ;;  %v19968_v16 = vcombine.low %v13966_v6, %v13966_v6  ;;  %v19969_v56 = vcombine.high %v13966_v6, %v13966_v6 }
 0x2c8   :  { %v7238_v35 = vpop.f32.mrf.mxu1  ;;  %v7277_v19 = vpop.f32.mrf.mxu0  ;;  %19780 = vmatmul.mubr.msk.bf16.vlgmr.msra.gmra.mxu0 %vm60_vm2, %v24747_v13  ;;  %14028 = vrot.lane.b32.xlu1 %v19966_v59, %s20831_s24  ;;  %v10617_v59 = vsel %vm208_vm1, %v10579_v0, 0 }
 0x2c9   :  { %v24837_v57 = vadd.f32 %v7238_v35, %v24588_v27  ;;  %v24840_v22 = vadd.f32 %v7277_v19, %v24591_v61  ;;  %10818 = vmatpush1.bf16.msra.mxu0 %v10611_v18  ;;  %10835 = vmatprep.mubr.bf16.mxu0 %v28814_v20  ;;  %v24843_v45 = vpop.permute.xlu0 %11718  ;;  %v10581_v19 = vsel %vm10568_vm7, %v29035_v31, %v29040_v41  ;;  %vm18684_vm7 = vcmask 605184  }
 0x2ca   :  { %29041 = vst [vmem:[#allocation6_spill] sm:$0xff] %v24843_v45  ;;  %v7240_v51 = vpop.f32.mrf.mxu1  ;;  %v7279_v7 = vpop.f32.mrf.mxu0  ;;  %19787 = vmatprep.subr.msk.bf16.mxu0 %vm208_vm1, %v10582_v11  ;;  %v10623_v41 = vsel %vm208_vm1, %v10581_v19, 0 }
 0x2cb   :  { %v24851_v27 = vadd.f32 %v7240_v51, %v24599_v55  ;;  %v24854_v61 = vadd.f32 %v7279_v7, %v24602_v32  ;;  %v24859_v35 = vpop.permute.xlu1 %11720  ;;  %14030 = vrot.lane.b32.xlu0 %v19967_v38, %s20831_s24  ;;  %v19970_v55 = vcombine.low %v13967_v23, %v13967_v23 }
 0x2cc   :  { %v7281_v60 = vpop.f32.mrf.mxu0  ;;  %v7320_v18 = vpop.f32.mrf.mxu1  ;;  %19782 = vmatmul.mubr.msk.bf16.vlgmr.msra.gmra.mxu1 %vm60_vm2, %v24747_v13  ;;  %14032 = vrot.lane.b32.xlu1 %v19968_v16, %s20831_s24  ;;  %v29043_v16 = vld [vmem:[#allocation24_spill] sm:$0xff] }
 0x2cd   :  { %v24866_v32 = vadd.f32 %v7281_v60, %v24616_v15  ;;  %v24869_v11 = vadd.f32 %v7320_v18, %v24619_v5  ;;  %10861 = vmatpush1.bf16.msra.mxu1 %v10617_v59  ;;  %10878 = vmatprep.mubr.bf16.mxu1 %v28814_v20  ;;  %v24872_v31 = vpop.permute.xlu0 %11722  ;;  %v29044_v5 = vld [vmem:[#allocation7_spill] sm:$0xff]  ;;  %v19971_v59 = vcombine.high %v13967_v23, %v13967_v23 }
 0x2ce   :  { %29042 = vst [vmem:[#allocation26_spill] sm:$0xff] %v24872_v31  ;;  %v7283_v6 = vpop.f32.mrf.mxu0  ;;  %v7322_v0 = vpop.f32.mrf.mxu1  ;;  %20428 = vmatprep.subr.bf16.mxu1 %v28815_v42  ;;  %v11149_v51 = vsel %vm11147_vm8, %v29044_v5, %v29043_v16 }
 0x2cf   :  { %v24877_v38 = vadd.f32 %v7283_v6, %v24627_v54  ;;  %v24880_v15 = vadd.f32 %v7322_v0, %v24630_v39  ;;  %v24885_v7 = vpop.permute.xlu1 %11724  ;;  %14034 = vrot.lane.b32.xlu0 %v19969_v56, %s20831_s24  ;;  %v20723_v54 = vld [vmem:[%s28591_s0 + $0x3c] ss:$0 sps:$4 sm:$0xff]   ;;  %v14540_v39 = vld [vmem:[%s28591_s0] sm:$0xff] }
 0x2d0   :  { %29045 = vst [vmem:[#allocation17_spill] sm:$0xff] %v24885_v7  ;;  %v7324_v60 = vpop.f32.mrf.mxu1  ;;  %v7363_v18 = vpop.f32.mrf.mxu0  ;;  %19784 = vmatmul.mubr.msk.bf16.vlgmr.msra.gmra.mxu0 %vm60_vm2, %v24747_v13  ;;  %14036 = vrot.lane.b32.xlu1 %v19970_v55, %s20831_s24  ;;  %v29047_v0 = vld [vmem:[#allocation23_spill] sm:$0xff]  ;;  %v10629_v7 = vsel %vm208_vm1, %v29039_v48, 0 }
 0x2d1   :  { %v24898_v19 = vadd.f32 %v7324_v60, %v24644_v30  ;;  %v24901_v23 = vadd.f32 %v7363_v18, %v24647_v9  ;;  %10904 = vmatpush1.bf16.msra.mxu0 %v10623_v41  ;;  %10921 = vmatprep.mubr.bf16.mxu0 %v28814_v20  ;;  %v24904_v56 = vpop.permute.xlu0 %12275  ;;  %v11148_v31 = vsel %vm11147_vm8, %v29047_v0, %v29044_v5  ;;  %v29048_v41 = vld [vmem:[#allocation18_spill] sm:$0xff] }
 0x2d2   :  { %29046 = vst [vmem:[#allocation28_spill] sm:$0xff] %v24904_v56  ;;  %v7326_v55 = vpop.f32.mrf.mxu1  ;;  %v7365_v6 = vpop.f32.mrf.mxu0  ;;  %19808 = vmatprep.subr.msk.bf16.mxu0 %vm208_vm1, %v11149_v51  ;;  %v11151_v60 = vsel %vm11147_vm8, %v29048_v41, %v24508_v49  ;;  %v24924_v5 = vcombine.low %v14540_v39, %v14540_v39  ;;  %v11150_v56 = vsel %vm11147_vm8, %v29043_v16, %v29048_v41 }
 0x2d3   :  { %v24913_v30 = vadd.f32 %v7326_v55, %v24656_v12  ;;  %v24916_v9 = vadd.f32 %v7365_v6, %v24659_v28  ;;  %v24921_v18 = vpop.permute.xlu1 %12277  ;;  %14038 = vrot.lane.b32.xlu0 %v19971_v59, %s20831_s24  ;;  %v24929_v12 = vcombine.high %v14540_v39, %v14540_v39  ;;  %v14541_v28 = vld [vmem:[%s28591_s0 + $0x8] sm:$0xff]  ;;  %v11166_v39 = vsel %vm208_vm1, %v11148_v31, 0 }
 0x2d4   :  { %29049 = vst [vmem:[#allocation27_spill] sm:$0xff] %v24921_v18  ;;  %v7367_v0 = vpop.f32.mrf.mxu0  ;;  %v7406_v48 = vpop.f32.mrf.mxu1  ;;  %19786 = vmatmul.mubr.msk.bf16.vlgmr.msra.gmra.mxu1 %vm60_vm2, %v24747_v13  ;;  %14040 = vrot.lane.b32.xlu1 %v20723_v54, %s20831_s24  ;;  %v24962_v31 = vcombine.low %v14541_v28, %v14541_v28  ;;  %s20835_s24 = smov 42  }
 0x2d5   :  { %v24935_v51 = vadd.f32 %v7367_v0, %v24679_v17  ;;  %v24938_v59 = vadd.f32 %v7406_v48, %v24682_v33  ;;  %20429 = vmatpush3.bf16.msra.mxu1 %v10629_v7  ;;  %20430 = vmatprep.mubr.msk.bf16.mxu1 %vm20812_vm4, %v28815_v42  ;;  %v24942_v55 = vpop.permute.xlu0 %12279  ;;  %v29051_v7 = vld [vmem:[#allocation25_spill] sm:$0xff] }
 0x2d6   :  { %29050 = vst [vmem:[#allocation12_spill] sm:$0xff] %v24942_v55  ;;  %v7369_v6 = vpop.f32.mrf.mxu0  ;;  %v7408_v54 = vpop.f32.mrf.mxu1  ;;  %19810 = vmatprep.subr.msk.bf16.mxu1 %vm208_vm1, %v11151_v60  ;;  %v11153_v0 = vsel %vm11147_vm8, %v29051_v7, %v24534_v4  ;;  %v11152_v55 = vsel %vm11147_vm8, %v24508_v49, %v29051_v7  ;;  %v6994_v7 = vld [vmem:[#allocation2 + $0x70] sm:$0xff] }
 0x2d7   :  { %v24950_v17 = vadd.f32 %v7369_v6, %v24694_v25  ;;  %v24953_v33 = vadd.f32 %v7408_v54, %v24697_v36  ;;  %v24958_v48 = vpop.permute.xlu1 %12281  ;;  %14593 = vrot.lane.b32.xlu0 %v24924_v5, %s20832_s14  ;;  %v24968_v25 = vcombine.high %v14541_v28, %v14541_v28  ;;  %v14542_v36 = vld [vmem:[%s28591_s0 + $0x10] sm:$0xff]  ;;  %v11172_v28 = vsel %vm208_vm1, %v11150_v56, 0 }
 0x2d8   :  { %29052 = vst [vmem:[#allocation29_spill] sm:$0xff] %v24958_v48  ;;  %v7410_v16 = vpop.f32.mrf.mxu1  ;;  %v7449_v41 = vpop.f32.mrf.mxu0  ;;  %19788 = vmatmul.mubr.msk.bf16.vlgmr.msra.gmra.mxu0 %vm60_vm2, %v24747_v13  ;;  %14595 = vrot.lane.b32.xlu1 %v24929_v12, %s20832_s14  ;;  %v25000_v56 = vcombine.low %v14542_v36, %v14542_v36  ;;  %v11178_v45 = vsel %vm208_vm1, %v11152_v55, 0 }
 0x2d9   :  { %v24974_v60 = vadd.f32 %v7410_v16, %v24713_v53  ;;  %v24977_v6 = vadd.f32 %v7449_v41, %v24716_v26  ;;  %11225 = vmatpush1.bf16.msra.mxu0 %v11166_v39  ;;  %11242 = vmatprep.mubr.bf16.mxu0 %v28814_v20  ;;  %v24980_v54 = vpop.permute.xlu0 %12283  ;;  %v11155_v39 = vsel %vm11147_vm8, %v24548_v58, %v24563_v43 }
 0x2da   :  { %29053 = vst [vmem:[#allocation10_spill] sm:$0xff] %v24980_v54  ;;  %v7412_v48 = vpop.f32.mrf.mxu1  ;;  %v7451_v18 = vpop.f32.mrf.mxu0  ;;  %19812 = vmatprep.subr.msk.bf16.mxu0 %vm208_vm1, %v11153_v0 }
 0x2db   :  { %v24988_v53 = vadd.f32 %v7412_v48, %v24730_v50  ;;  %v24991_v26 = vadd.f32 %v7451_v18, %v24733_v3  ;;  %v24996_v16 = vpop.permute.xlu1 %12285  ;;  %14597 = vrot.lane.b32.xlu0 %v24962_v31, %s20832_s14  ;;  %v25007_v50 = vld [vmem:[%s28592_s1 + $0x98] sm:$0xff]   ;;  %v25011_v3 = vcombine.high %v14542_v36, %v14542_v36 }
 0x2dc   :  { %29054 = vst [vmem:[#allocation20_spill] sm:$0xff] %v24996_v16  ;;  %v7453_v49 = vpop.f32.mrf.mxu0  ;;  %v7492_v0 = vpop.f32.mrf.mxu1  ;;  %20431 = vmatmul.mubr.msk.bf16.vlgmr.msra.gmra.mxu1 %vm60_vm2, %v24747_v13  ;;  %14599 = vrot.lane.b32.xlu1 %v24968_v25, %s20832_s14  ;;  %v14543_v18 = vld [vmem:[%s28591_s0 + $0x18] sm:$0xff] }
 0x2dd   :  { %v25017_v48 = vadd.f32 %v7453_v49, %v24751_v8  ;;  %v7513_v41 = vadd.f32 %v7492_v0, %v6994_v7  ;;  %11268 = vmatpush1.bf16.msra.mxu1 %v11172_v28  ;;  %11285 = vmatprep.mubr.bf16.mxu1 %v28814_v20  ;;  %v25020_v13 = vpop.permute.xlu0 %12287  ;;  %v11154_v8 = vsel %vm11147_vm8, %v24534_v4, %v24548_v58  ;;  %v14544_v58 = vld [vmem:[%s28591_s0 + $0x20] sm:$0xff] }
 0x2de   :  { %29055 = vst [vmem:[#allocation21_spill] sm:$0xff] %v25020_v13  ;;  %v7455_v16 = vpop.f32.mrf.mxu0  ;;  %v20396_v54 = vpop.f32.mrf.mxu1  ;;  %19814 = vmatprep.subr.msk.bf16.mxu1 %vm208_vm1, %v11155_v39  ;;  %v11157_v28 = vsel %vm11147_vm8, %v24579_v29, %v24594_v40  ;;  %v25038_v55 = vcombine.low %v14543_v18, %v14543_v18  ;;  %v25044_v4 = vcombine.high %v14543_v18, %v14543_v18  ;;  %v11184_v13 = vsel %vm208_vm1, %v11154_v8, 0 }
 0x2df   :  { %7543 = vst.msk [vmem:[#allocation2 + $0x70] sm:$0xff] %vm60_vm2, %v7513_v41  ;;  %v25026_v36 = vadd.f32 %v7455_v16, %v24763_v1  ;;  %v25034_v49 = vpop.permute.xlu1 %12289  ;;  %14601 = vrot.lane.b32.xlu0 %v25000_v56, %s20832_s14  ;;  %v7009_v54 = vld [vmem:[#allocation2 + $0xe8] sm:$0xff]  ;;  %v25071_v8 = vcombine.low %v14544_v58, %v14544_v58 }
 0x2e0   :  { %29056 = vst [vmem:[#allocation30_spill] sm:$0xff] %v25034_v49  ;;  %v7495_v39 = vpop.f32.mrf.mxu1  ;;  %v7770_v7 = vpop.f32.mrf.mxu0  ;;  %19809 = vmatmul.mubr.msk.bf16.vlgmr.msra.gmra.mxu0 %vm60_vm2, %v25007_v50  ;;  %14603 = vrot.lane.b32.xlu1 %v25011_v3, %s20832_s14 }
 0x2e1   :  { %v7528_v1 = vadd.f32 %v7495_v39, %v7009_v54  ;;  %v25050_v16 = vadd.f32 %v7770_v7, %v24778_v46  ;;  %11311 = vmatpush1.bf16.msra.mxu0 %v11178_v45  ;;  %11328 = vmatprep.mubr.bf16.mxu0 %v28814_v20  ;;  %v25053_v0 = vpop.permute.xlu0 %12291  ;;  %v11156_v46 = vsel %vm11147_vm8, %v24563_v43, %v24579_v29  ;;  %v14545_v29 = vld [vmem:[%s28591_s0 + $0x28] sm:$0xff] }
 0x2e2   :  { %29057 = vst [vmem:[#allocation19_spill] sm:$0xff] %v25053_v0  ;;  %v20397_v41 = vpop.f32.mrf.mxu1  ;;  %v7772_v49 = vpop.f32.mrf.mxu0  ;;  %19816 = vmatprep.subr.msk.bf16.mxu0 %vm208_vm1, %v11157_v28  ;;  %v11159_v45 = vsel %vm11147_vm8, %v24607_v37, %v24622_v21  ;;  %v25077_v43 = vcombine.high %v14544_v58, %v14544_v58  ;;  %v11190_v58 = vsel %vm208_vm1, %v11156_v46, 0  ;;  %v25109_v46 = vcombine.low %v14545_v29, %v14545_v29 }
 0x2e3   :  { %7558 = vst.msk [vmem:[#allocation2 + $0xe8] sm:$0xff] %vm60_vm2, %v7528_v1  ;;  %v25059_v18 = vadd.f32 %v7772_v49, %v24790_v62  ;;  %v25067_v54 = vpop.permute.xlu1 %12293  ;;  %14605 = vrot.lane.b32.xlu0 %v25038_v55, %s20832_s14 }
 0x2e4   :  { %29058 = vst [vmem:[#allocation9_spill] sm:$0xff] %v25067_v54  ;;  %v7774_v28 = vpop.f32.mrf.mxu0  ;;  %v7813_v39 = vpop.f32.mrf.mxu1  ;;  %19811 = vmatmul.mubr.msk.bf16.vlgmr.msra.gmra.mxu1 %vm60_vm2, %v25007_v50  ;;  %14607 = vrot.lane.b32.xlu1 %v25044_v4, %s20832_s14  ;;  %v11158_v54 = vsel %vm11147_vm8, %v24594_v40, %v24607_v37 }
 0x2e5   :  { %v25083_v62 = vadd.f32 %v7774_v28, %v24805_v34  ;;  %v25086_v49 = vadd.f32 %v7813_v39, %v24808_v14  ;;  %11354 = vmatpush1.bf16.msra.mxu1 %v11184_v13  ;;  %11371 = vmatprep.mubr.bf16.mxu1 %v28814_v20  ;;  %v25089_v7 = vpop.permute.xlu0 %12295  ;;  %v11161_v13 = vsel %vm11147_vm8, %v24635_v10, %v24650_v44 }
 0x2e6   :  { %29059 = vst [vmem:[#allocation24_spill] sm:$0xff] %v25089_v7  ;;  %v7776_v1 = vpop.f32.mrf.mxu0  ;;  %v7815_v41 = vpop.f32.mrf.mxu1  ;;  %19818 = vmatprep.subr.msk.bf16.mxu1 %vm208_vm1, %v11159_v45 }
 0x2e7   :  { %v25097_v34 = vadd.f32 %v7776_v1, %v24822_v63  ;;  %v25100_v14 = vadd.f32 %v7815_v41, %v24825_v24  ;;  %v25105_v28 = vpop.permute.xlu1 %12297  ;;  %14609 = vrot.lane.b32.xlu0 %v25071_v8, %s20832_s14  ;;  %v25115_v63 = vcombine.high %v14545_v29, %v14545_v29  ;;  %v14546_v24 = vld [vmem:[%s28591_s0 + $0x30] sm:$0xff]  ;;  %v11196_v29 = vsel %vm208_vm1, %v11158_v54, 0 }
 0x2e8   :  { %29060 = vst [vmem:[#allocation7_spill] sm:$0xff] %v25105_v28  ;;  %v7817_v40 = vpop.f32.mrf.mxu1  ;;  %v7856_v37 = vpop.f32.mrf.mxu0  ;;  %19813 = vmatmul.mubr.msk.bf16.vlgmr.msra.gmra.mxu0 %vm60_vm2, %v25007_v50  ;;  %14611 = vrot.lane.b32.xlu1 %v25077_v43, %s20832_s14 }
 0x2e9   :  { %v25121_v45 = vadd.f32 %v7817_v40, %v24837_v57  ;;  %v25124_v39 = vadd.f32 %v7856_v37, %v24840_v22  ;;  %11397 = vmatpush1.bf16.msra.mxu0 %v11190_v58  ;;  %11414 = vmatprep.mubr.bf16.mxu0 %v28814_v20  ;;  %v25127_v1 = vpop.permute.xlu0 %12299  ;;  %v11160_v22 = vsel %vm11147_vm8, %v24622_v21, %v24635_v10  ;;  %v14547_v21 = vld [vmem:[%s28591_s0 + $0x38] sm:$0xff] }
 0x2ea   :  { %29061 = vst [vmem:[#allocation23_spill] sm:$0xff] %v25127_v1  ;;  %v7819_v41 = vpop.f32.mrf.mxu1  ;;  %v7858_v28 = vpop.f32.mrf.mxu0  ;;  %19820 = vmatprep.subr.msk.bf16.mxu0 %vm208_vm1, %v11161_v13  ;;  %v25144_v40 = vcombine.low %v14546_v24, %v14546_v24  ;;  %v11208_v1 = vsel %vm208_vm1, %v24650_v44, 0 }
 0x2eb   :  { %v25132_v7 = vadd.f32 %v7819_v41, %v24851_v27  ;;  %v25135_v57 = vadd.f32 %v7858_v28, %v24854_v61  ;;  %v25140_v58 = vpop.permute.xlu1 %12301  ;;  %14613 = vrot.lane.b32.xlu0 %v25109_v46, %s20832_s14  ;;  %v25150_v27 = vcombine.high %v14546_v24, %v14546_v24  ;;  %v11202_v24 = vsel %vm208_vm1, %v11160_v22, 0 }
 0x2ec   :  { %29062 = vst [vmem:[#allocation18_spill] sm:$0xff] %v25140_v58  ;;  %v7860_v54 = vpop.f32.mrf.mxu0  ;;  %v7899_v37 = vpop.f32.mrf.mxu1  ;;  %19815 = vmatmul.mubr.msk.bf16.vlgmr.msra.gmra.mxu1 %vm60_vm2, %v25007_v50  ;;  %14615 = vrot.lane.b32.xlu1 %v25115_v63, %s20832_s14 }
 0x2ed   :  { %v25156_v10 = vadd.f32 %v7860_v54, %v24866_v32  ;;  %v25159_v61 = vadd.f32 %v7899_v37, %v24869_v11  ;;  %11440 = vmatpush1.bf16.msra.mxu1 %v11196_v29  ;;  %11457 = vmatprep.mubr.bf16.mxu1 %v28814_v20  ;;  %v25162_v13 = vpop.permute.xlu0 %12303  ;;  %v11728_v11 = vsel %vm11726_vm9, %v24686_v52, %v24705_v2 }
 0x2ee   :  { %29063 = vst [vmem:[#allocation25_spill] sm:$0xff] %v25162_v13  ;;  %v7862_v28 = vpop.f32.mrf.mxu0  ;;  %v7901_v41 = vpop.f32.mrf.mxu1  ;;  %20434 = vmatprep.subr.bf16.mxu1 %v28815_v42  ;;  %v25179_v54 = vcombine.low %v14547_v21, %v14547_v21 }
 0x2ef   :  { %v25167_v58 = vadd.f32 %v7862_v28, %v24877_v38  ;;  %v25170_v32 = vadd.f32 %v7901_v41, %v24880_v15  ;;  %v25175_v29 = vpop.permute.xlu1 %12854  ;;  %14617 = vrot.lane.b32.xlu0 %v25144_v40, %s20832_s14  ;;  %v25185_v38 = vcombine.high %v14547_v21, %v14547_v21 }
 0x2f0   :  { %29064 = vst [vmem:[#allocation31_spill] sm:$0xff] %v25175_v29  ;;  %v7903_v22 = vpop.f32.mrf.mxu1  ;;  %v7942_v37 = vpop.f32.mrf.mxu0  ;;  %19817 = vmatmul.mubr.msk.bf16.vlgmr.msra.gmra.mxu0 %vm60_vm2, %v25007_v50  ;;  %14619 = vrot.lane.b32.xlu1 %v25150_v27, %s20832_s14 }
 0x2f1   :  { %v25188_v15 = vadd.f32 %v7903_v22, %v24898_v19  ;;  %v25191_v28 = vadd.f32 %v7942_v37, %v24901_v23  ;;  %11483 = vmatpush1.bf16.msra.mxu0 %v11202_v24  ;;  %11500 = vmatprep.mubr.bf16.mxu0 %v28814_v20  ;;  %v25194_v41 = vpop.permute.xlu0 %12856  ;;  %v29066_v23 = vld [vmem:[#allocation16_spill] sm:$0xff]  ;;  %v29067_v22 = vld [vmem:[#allocation15_spill] sm:$0xff]  ;;  %v29068_v37 = vld [vmem:[#allocation13_spill] sm:$0xff] }
 0x2f2   :  { %29065 = vst [vmem:[#allocation32_spill] sm:$0xff] %v25194_v41  ;;  %v7905_v29 = vpop.f32.mrf.mxu1  ;;  %v7944_v13 = vpop.f32.mrf.mxu0  ;;  %19841 = vmatprep.subr.msk.bf16.mxu0 %vm208_vm1, %v11728_v11  ;;  %v11727_v24 = vsel %vm11726_vm9, %v29066_v23, %v24686_v52  ;;  %v11730_v41 = vsel %vm11726_vm9, %v29068_v37, %v29067_v22 }
 0x2f3   :  { %v25200_v21 = vadd.f32 %v7905_v29, %v24913_v30  ;;  %v25203_v19 = vadd.f32 %v7944_v13, %v24916_v9  ;;  %v25211_v0 = vpop.permute.xlu1 %12858  ;;  %14621 = vrot.lane.b32.xlu0 %v25179_v54, %s20832_s14  ;;  %v11745_v23 = vsel %vm208_vm1, %v11727_v24, 0 }
 0x2f4   :  { %29069 = vst [vmem:[#allocation16_spill] sm:$0xff] %v25211_v0  ;;  %v7946_v44 = vpop.f32.mrf.mxu0  ;;  %v7985_v11 = vpop.f32.mrf.mxu1  ;;  %19819 = vmatmul.mubr.msk.bf16.vlgmr.msra.gmra.mxu1 %vm60_vm2, %v25007_v50  ;;  %14623 = vrot.lane.b32.xlu1 %v25185_v38, %s20832_s14 }
 0x2f5   :  { %v25220_v30 = vadd.f32 %v7946_v44, %v24935_v51  ;;  %v25223_v52 = vadd.f32 %v7985_v11, %v24938_v59  ;;  %20435 = vmatpush3.bf16.msra.mxu1 %v11208_v1  ;;  %20436 = vmatprep.mubr.msk.bf16.mxu1 %vm20812_vm4, %v28815_v42  ;;  %v25227_v9 = vpop.permute.xlu0 %12860  ;;  %v11729_v59 = vsel %vm11726_vm9, %v24705_v2, %v29068_v37  ;;  %v29071_v1 = vld [vmem:[#allocation14_spill] sm:$0xff] }
 0x2f6   :  { %29070 = vst [vmem:[#allocation15_spill] sm:$0xff] %v25227_v9  ;;  %v7948_v13 = vpop.f32.mrf.mxu0  ;;  %v7987_v29 = vpop.f32.mrf.mxu1  ;;  %19843 = vmatprep.subr.msk.bf16.mxu1 %vm208_vm1, %v11730_v41  ;;  %v29072_v44 = vld [vmem:[#allocation22_spill] sm:$0xff] }
 0x2f7   :  { %v25232_v0 = vadd.f32 %v7948_v13, %v24950_v17  ;;  %v25235_v51 = vadd.f32 %v7987_v29, %v24953_v33  ;;  %v11732_v11 = vsel %vm11726_vm9, %v29072_v44, %v29071_v1  ;;  %v25243_v9 = vpop.permute.xlu1 %12862  ;;  %15177 = vrot.lane.b32.xlu0 %v24924_v5, %s20833_s30  ;;  %v11751_v13 = vsel %vm208_vm1, %v11729_v59, 0 }
 0x2f8   :  { %v7989_v41 = vpop.f32.mrf.mxu1  ;;  %v8028_v17 = vpop.f32.mrf.mxu0  ;;  %19821 = vmatmul.mubr.msk.bf16.vlgmr.msra.gmra.mxu0 %vm60_vm2, %v25007_v50  ;;  %15179 = vrot.lane.b32.xlu1 %v24929_v12, %s20833_s30 }
 0x2f9   :  { %v25252_v2 = vadd.f32 %v7989_v41, %v24974_v60  ;;  %v25255_v33 = vadd.f32 %v8028_v17, %v24977_v6  ;;  %11804 = vmatpush1.bf16.msra.mxu0 %v11745_v23  ;;  %11821 = vmatprep.mubr.bf16.mxu0 %v28814_v20  ;;  %v25258_v24 = vpop.permute.xlu0 %12864  ;;  %v11731_v60 = vsel %vm11726_vm9, %v29067_v22, %v29072_v44  ;;  %v29074_v6 = vld [vmem:[#allocation11_spill] sm:$0xff]  ;;  %v29075_v23 = vld [vmem:[#allocation5_spill] sm:$0xff] }
 0x2fa   :  { %29073 = vst [vmem:[#allocation13_spill] sm:$0xff] %v25258_v24  ;;  %v7991_v5 = vpop.f32.mrf.mxu1  ;;  %v8030_v37 = vpop.f32.mrf.mxu0  ;;  %19845 = vmatprep.subr.msk.bf16.mxu0 %vm208_vm1, %v11732_v11  ;;  %v11734_v41 = vsel %vm11726_vm9, %v29075_v23, %v29074_v6  ;;  %v7573_v11 = vld [vmem:[#allocation2 + $0x70] sm:$0xff] }
 0x2fb   :  { %v25263_v29 = vadd.f32 %v7991_v5, %v24988_v53  ;;  %v25266_v12 = vadd.f32 %v8030_v37, %v24991_v26  ;;  %v25274_v17 = vpop.permute.xlu1 %12866  ;;  %15181 = vrot.lane.b32.xlu0 %v24962_v31, %s20833_s30  ;;  %v25283_v26 = vld [vmem:[%s28592_s1 + $0xa0] sm:$0xff]  }
 0x2fc   :  { %v8032_v59 = vpop.f32.mrf.mxu0  ;;  %v8071_v53 = vpop.f32.mrf.mxu1  ;;  %20437 = vmatmul.mubr.msk.bf16.vlgmr.msra.gmra.mxu1 %vm60_vm2, %v25007_v50  ;;  %15183 = vrot.lane.b32.xlu1 %v24968_v25, %s20833_s30  ;;  %v11757_v50 = vsel %vm208_vm1, %v11731_v60, 0  ;;  %v11733_v25 = vsel %vm11726_vm9, %v29071_v1, %v29075_v23  ;;  %v7588_v60 = vld [vmem:[#allocation2 + $0xe8] sm:$0xff] }
 0x2fd   :  { %v25288_v22 = vadd.f32 %v8032_v59, %v25017_v48  ;;  %v8092_v44 = vadd.f32 %v8071_v53, %v7573_v11  ;;  %11847 = vmatpush1.bf16.msra.mxu1 %v11751_v13  ;;  %11864 = vmatprep.mubr.bf16.mxu1 %v28814_v20  ;;  %v25291_v31 = vpop.permute.xlu0 %12868  ;;  %v29076_v48 = vld [vmem:[#allocation8_spill] sm:$0xff] }
 0x2fe   :  { %v8034_v5 = vpop.f32.mrf.mxu0  ;;  %v20402_v37 = vpop.f32.mrf.mxu1  ;;  %19847 = vmatprep.subr.msk.bf16.mxu1 %vm208_vm1, %v11734_v41  ;;  %v11736_v13 = vsel %vm11726_vm9, %v29076_v48, %v24830_v47 }
 0x2ff   :  { %8122 = vst.msk [vmem:[#allocation2 + $0x70] sm:$0xff] %vm60_vm2, %v8092_v44  ;;  %v25297_v24 = vadd.f32 %v8034_v5, %v25026_v36  ;;  %v25305_v59 = vpop.permute.xlu1 %12870  ;;  %15185 = vrot.lane.b32.xlu0 %v25000_v56, %s20833_s30  ;;  %v11763_v44 = vsel %vm208_vm1, %v11733_v25, 0 }
 0x300   :  { %v8074_v41 = vpop.f32.mrf.mxu1  ;;  %v8349_v11 = vpop.f32.mrf.mxu0  ;;  %19842 = vmatmul.mubr.msk.bf16.vlgmr.msra.gmra.mxu0 %vm60_vm2, %v25283_v26  ;;  %15187 = vrot.lane.b32.xlu1 %v25011_v3, %s20833_s30  ;;  %v11735_v3 = vsel %vm11726_vm9, %v29074_v6, %v29076_v48 }
 0x301   :  { %v8107_v36 = vadd.f32 %v8074_v41, %v7588_v60  ;;  %v25314_v1 = vadd.f32 %v8349_v11, %v25050_v16  ;;  %11890 = vmatpush1.bf16.msra.mxu0 %v11757_v50  ;;  %11907 = vmatprep.mubr.bf16.mxu0 %v28814_v20  ;;  %v25317_v23 = vpop.permute.xlu0 %12872  ;;  %v29077_v16 = vld [vmem:[#allocation6_spill] sm:$0xff]  ;;  %v11769_v41 = vsel %vm208_vm1, %v11735_v3, 0 }
 0x302   :  { %v20403_v53 = vpop.f32.mrf.mxu1  ;;  %v8351_v56 = vpop.f32.mrf.mxu0  ;;  %19849 = vmatprep.subr.msk.bf16.mxu0 %vm208_vm1, %v11736_v13  ;;  %v11738_v37 = vsel %vm11726_vm9, %v29077_v16, %v24859_v35 }
 0x303   :  { %8137 = vst.msk [vmem:[#allocation2 + $0xe8] sm:$0xff] %vm60_vm2, %v8107_v36  ;;  %v25323_v5 = vadd.f32 %v8351_v56, %v25059_v18  ;;  %v25331_v50 = vpop.permute.xlu1 %12874  ;;  %15189 = vrot.lane.b32.xlu0 %v25038_v55, %s20833_s30  ;;  %v29079_v36 = vld [vmem:[#allocation26_spill] sm:$0xff] }
 0x304   :  { %v8353_v25 = vpop.f32.mrf.mxu0  ;;  %v8392_v13 = vpop.f32.mrf.mxu1  ;;  %19844 = vmatmul.mubr.msk.bf16.vlgmr.msra.gmra.mxu1 %vm60_vm2, %v25283_v26  ;;  %15191 = vrot.lane.b32.xlu1 %v25044_v4, %s20833_s30 }
 0x305   :  { %v25340_v18 = vadd.f32 %v8353_v25, %v25083_v62  ;;  %v25343_v6 = vadd.f32 %v8392_v13, %v25086_v49  ;;  %11933 = vmatpush1.bf16.msra.mxu1 %v11763_v44  ;;  %11950 = vmatprep.mubr.bf16.mxu1 %v28814_v20  ;;  %v25346_v48 = vpop.permute.xlu0 %12876  ;;  %v11737_v62 = vsel %vm11726_vm9, %v24830_v47, %v29077_v16  ;;  %v29078_v49 = vld [vmem:[#allocation17_spill] sm:$0xff] }
 0x306   :  { %v8355_v55 = vpop.f32.mrf.mxu0  ;;  %v8394_v60 = vpop.f32.mrf.mxu1  ;;  %19851 = vmatprep.subr.msk.bf16.mxu1 %vm208_vm1, %v11738_v37  ;;  %v11740_v53 = vsel %vm11726_vm9, %v29079_v36, %v29078_v49  ;;  %v11775_v37 = vsel %vm208_vm1, %v11737_v62, 0 }
 0x307   :  { %v25351_v11 = vadd.f32 %v8355_v55, %v25097_v34  ;;  %v25354_v4 = vadd.f32 %v8394_v60, %v25100_v14  ;;  %v25362_v56 = vpop.permute.xlu1 %12878  ;;  %15193 = vrot.lane.b32.xlu0 %v25071_v8, %s20833_s30 }
 0x308   :  { %v8396_v44 = vpop.f32.mrf.mxu1  ;;  %v8435_v3 = vpop.f32.mrf.mxu0  ;;  %19846 = vmatmul.mubr.msk.bf16.vlgmr.msra.gmra.mxu0 %vm60_vm2, %v25283_v26  ;;  %15195 = vrot.lane.b32.xlu1 %v25077_v43, %s20833_s30 }
 0x309   :  { %v25371_v34 = vadd.f32 %v8396_v44, %v25121_v45  ;;  %v25374_v47 = vadd.f32 %v8435_v3, %v25124_v39  ;;  %11976 = vmatpush1.bf16.msra.mxu0 %v11769_v41  ;;  %11993 = vmatprep.mubr.bf16.mxu0 %v28814_v20  ;;  %v25377_v14 = vpop.permute.xlu0 %12880  ;;  %v11739_v45 = vsel %vm11726_vm9, %v24859_v35, %v29079_v36 }
 0x30a   :  { %29080 = vst [vmem:[#allocation14_spill] sm:$0xff] %v25377_v14  ;;  %v8398_v8 = vpop.f32.mrf.mxu1  ;;  %v8437_v16 = vpop.f32.mrf.mxu0  ;;  %19853 = vmatprep.subr.msk.bf16.mxu0 %vm208_vm1, %v11740_v53  ;;  %v11781_v41 = vsel %vm208_vm1, %v11739_v45, 0  ;;  %v29087_v45 = vld [vmem:[#allocation28_spill] sm:$0xff] }
 0x30b   :  { %v25382_v25 = vadd.f32 %v8398_v8, %v25132_v7  ;;  %v25385_v43 = vadd.f32 %v8437_v16, %v25135_v57  ;;  %v25390_v39 = vpop.permute.xlu1 %12882  ;;  %15197 = vrot.lane.b32.xlu0 %v25109_v46, %s20833_s30 }
 0x30c   :  { %29081 = vst [vmem:[#allocation22_spill] sm:$0xff] %v25390_v39  ;;  %v8439_v13 = vpop.f32.mrf.mxu0  ;;  %v8478_v55 = vpop.f32.mrf.mxu1  ;;  %19848 = vmatmul.mubr.msk.bf16.vlgmr.msra.gmra.mxu1 %vm60_vm2, %v25283_v26  ;;  %15199 = vrot.lane.b32.xlu1 %v25115_v63, %s20833_s30 }
 0x30d   :  { %v25399_v7 = vadd.f32 %v8439_v13, %v25156_v10  ;;  %v25402_v57 = vadd.f32 %v8478_v55, %v25159_v61  ;;  %12019 = vmatpush1.bf16.msra.mxu1 %v11775_v37  ;;  %12036 = vmatprep.mubr.bf16.mxu1 %v28814_v20  ;;  %v25405_v35 = vpop.permute.xlu0 %13433  ;;  %v29083_v10 = vld [vmem:[#allocation12_spill] sm:$0xff]  ;;  %v29084_v61 = vld [vmem:[#allocation27_spill] sm:$0xff]  ;;  %v11787_v13 = vsel %vm208_vm1, %v29078_v49, 0  ;;  %v29088_v55 = vld [vmem:[#allocation10_spill] sm:$0xff] }
 0x30e   :  { %29082 = vst [vmem:[#allocation11_spill] sm:$0xff] %v25405_v35  ;;  %v8441_v46 = vpop.f32.mrf.mxu0  ;;  %v8480_v60 = vpop.f32.mrf.mxu1  ;;  %20440 = vmatprep.subr.bf16.mxu1 %v28815_v42  ;;  %v12307_v36 = vsel %vm12305_vm10, %v29084_v61, %v29083_v10 }
 0x30f   :  { %v25410_v62 = vadd.f32 %v8441_v46, %v25167_v58  ;;  %v25413_v63 = vadd.f32 %v8480_v60, %v25170_v32  ;;  %v25418_v53 = vpop.permute.xlu1 %13435  ;;  %15201 = vrot.lane.b32.xlu0 %v25144_v40, %s20833_s30  ;;  %v15708_v58 = vld [vmem:[%s28591_s0 + $0x4] sm:$0xff]  ;;  %v29089_v46 = vld [vmem:[#allocation29_spill] sm:$0xff] }
 0x310   :  { %29085 = vst [vmem:[#allocation5_spill] sm:$0xff] %v25418_v53  ;;  %v8482_v44 = vpop.f32.mrf.mxu1  ;;  %v8521_v3 = vpop.f32.mrf.mxu0  ;;  %19850 = vmatmul.mubr.msk.bf16.vlgmr.msra.gmra.mxu0 %vm60_vm2, %v25283_v26  ;;  %15203 = vrot.lane.b32.xlu1 %v25150_v27, %s20833_s30  ;;  %v12306_v27 = vsel %vm12305_vm10, %v29087_v45, %v29084_v61  ;;  %v12309_v60 = vsel %vm12305_vm10, %v29089_v46, %v29088_v55  ;;  %v29092_v45 = vld [vmem:[#allocation21_spill] sm:$0xff] }
 0x311   :  { %v25430_v32 = vadd.f32 %v8482_v44, %v25188_v15  ;;  %v25433_v8 = vadd.f32 %v8521_v3, %v25191_v28  ;;  %12062 = vmatpush1.bf16.msra.mxu0 %v11781_v41  ;;  %12079 = vmatprep.mubr.bf16.mxu0 %v28814_v20  ;;  %v25436_v40 = vpop.permute.xlu0 %13437  ;;  %v25457_v61 = vcombine.low %v15708_v58, %v15708_v58 }
 0x312   :  { %29086 = vst [vmem:[#allocation8_spill] sm:$0xff] %v25436_v40  ;;  %v8484_v16 = vpop.f32.mrf.mxu1  ;;  %v8523_v37 = vpop.f32.mrf.mxu0  ;;  %19874 = vmatprep.subr.msk.bf16.mxu0 %vm208_vm1, %v12307_v36 }
 0x313   :  { %v25445_v15 = vadd.f32 %v8484_v16, %v25200_v21  ;;  %v25448_v28 = vadd.f32 %v8523_v37, %v25203_v19  ;;  %v25453_v41 = vpop.permute.xlu1 %13439  ;;  %15205 = vrot.lane.b32.xlu0 %v25179_v54, %s20833_s30  ;;  %v25463_v21 = vcombine.high %v15708_v58, %v15708_v58  ;;  %v15709_v19 = vld [vmem:[%s28591_s0 + $0xc] sm:$0xff]  ;;  %v12324_v58 = vsel %vm208_vm1, %v12306_v27, 0 }
 0x314   :  { %29090 = vst [vmem:[#allocation6_spill] sm:$0xff] %v25453_v41  ;;  %v8525_v49 = vpop.f32.mrf.mxu0  ;;  %v8564_v44 = vpop.f32.mrf.mxu1  ;;  %19852 = vmatmul.mubr.msk.bf16.vlgmr.msra.gmra.mxu1 %vm60_vm2, %v25283_v26  ;;  %15207 = vrot.lane.b32.xlu1 %v25185_v38, %s20833_s30  ;;  %v12308_v37 = vsel %vm12305_vm10, %v29083_v10, %v29089_v46  ;;  %v25496_v27 = vcombine.low %v15709_v19, %v15709_v19  ;;  %s20839_s30 = smov 74  }
 0x315   :  { %v25469_v36 = vadd.f32 %v8525_v49, %v25220_v30  ;;  %v25472_v54 = vadd.f32 %v8564_v44, %v25223_v52  ;;  %20441 = vmatpush3.bf16.msra.mxu1 %v11787_v13  ;;  %20442 = vmatprep.mubr.msk.bf16.mxu1 %vm20812_vm4, %v28815_v42  ;;  %v25476_v3 = vpop.permute.xlu0 %13441  ;;  %v29093_v13 = vld [vmem:[#allocation20_spill] sm:$0xff] }
 0x316   :  { %29091 = vst [vmem:[#allocation17_spill] sm:$0xff] %v25476_v3  ;;  %v8527_v16 = vpop.f32.mrf.mxu0  ;;  %v8566_v38 = vpop.f32.mrf.mxu1  ;;  %19876 = vmatprep.subr.msk.bf16.mxu1 %vm208_vm1, %v12309_v60  ;;  %v12311_v49 = vsel %vm12305_vm10, %v29093_v13, %v29092_v45  ;;  %v12310_v3 = vsel %vm12305_vm10, %v29088_v55, %v29093_v13  ;;  %v8152_v13 = vld [vmem:[#allocation2 + $0x70] sm:$0xff] }
 0x317   :  { %v25484_v30 = vadd.f32 %v8527_v16, %v25232_v0  ;;  %v25487_v52 = vadd.f32 %v8566_v38, %v25235_v51  ;;  %v25492_v44 = vpop.permute.xlu1 %13443  ;;  %15759 = vrot.lane.b32.xlu0 %v25457_v61, %s20834_s9  ;;  %v25502_v0 = vcombine.high %v15709_v19, %v15709_v19  ;;  %v15710_v51 = vld [vmem:[%s28591_s0 + $0x14] sm:$0xff]  ;;  %v12330_v19 = vsel %vm208_vm1, %v12308_v37, 0 }
 0x318   :  { %29094 = vst [vmem:[#allocation26_spill] sm:$0xff] %v25492_v44  ;;  %v8568_v10 = vpop.f32.mrf.mxu1  ;;  %v8607_v46 = vpop.f32.mrf.mxu0  ;;  %19854 = vmatmul.mubr.msk.bf16.vlgmr.msra.gmra.mxu0 %vm60_vm2, %v25283_v26  ;;  %15761 = vrot.lane.b32.xlu1 %v25463_v21, %s20834_s9  ;;  %v25534_v37 = vcombine.low %v15710_v51, %v15710_v51  ;;  %v12336_v40 = vsel %vm208_vm1, %v12310_v3, 0  ;;  %v8167_v3 = vld [vmem:[#allocation2 + $0xe8] sm:$0xff] }
 0x319   :  { %v25508_v60 = vadd.f32 %v8568_v10, %v25252_v2  ;;  %v25511_v16 = vadd.f32 %v8607_v46, %v25255_v33  ;;  %12383 = vmatpush1.bf16.msra.mxu0 %v12324_v58  ;;  %12400 = vmatprep.mubr.bf16.mxu0 %v28814_v20  ;;  %v25514_v38 = vpop.permute.xlu0 %13445  ;;  %v29096_v58 = vld [vmem:[#allocation19_spill] sm:$0xff]  ;;  %v29097_v10 = vld [vmem:[#allocation30_spill] sm:$0xff] }
 0x31a   :  { %29095 = vst [vmem:[#allocation12_spill] sm:$0xff] %v25514_v38  ;;  %v8570_v44 = vpop.f32.mrf.mxu1  ;;  %v8609_v41 = vpop.f32.mrf.mxu0  ;;  %19878 = vmatprep.subr.msk.bf16.mxu0 %vm208_vm1, %v12311_v49  ;;  %v12313_v46 = vsel %vm12305_vm10, %v29097_v10, %v29096_v58 }
 0x31b   :  { %v25522_v2 = vadd.f32 %v8570_v44, %v25263_v29  ;;  %v25525_v33 = vadd.f32 %v8609_v41, %v25266_v12  ;;  %v25530_v38 = vpop.permute.xlu1 %13447  ;;  %15763 = vrot.lane.b32.xlu0 %v25496_v27, %s20834_s9  ;;  %v25541_v29 = vld [vmem:[%s28592_s1 + $0xa8] sm:$0xff]   ;;  %v25545_v12 = vcombine.high %v15710_v51, %v15710_v51  ;;  %v15711_v41 = vld [vmem:[%s28591_s0 + $0x1c] sm:$0xff] }
 0x31c   :  { %29098 = vst [vmem:[#allocation27_spill] sm:$0xff] %v25530_v38  ;;  %v8611_v55 = vpop.f32.mrf.mxu0  ;;  %v8650_v49 = vpop.f32.mrf.mxu1  ;;  %20443 = vmatmul.mubr.msk.bf16.vlgmr.msra.gmra.mxu1 %vm60_vm2, %v25283_v26  ;;  %15765 = vrot.lane.b32.xlu1 %v25502_v0, %s20834_s9 }
 0x31d   :  { %v25551_v44 = vadd.f32 %v8611_v55, %v25288_v22  ;;  %v8671_v38 = vadd.f32 %v8650_v49, %v8152_v13  ;;  %12426 = vmatpush1.bf16.msra.mxu1 %v12330_v19  ;;  %12443 = vmatprep.mubr.bf16.mxu1 %v28814_v20  ;;  %v25554_v26 = vpop.permute.xlu0 %13449  ;;  %v12312_v22 = vsel %vm12305_vm10, %v29092_v45, %v29097_v10  ;;  %v29100_v19 = vld [vmem:[#allocation24_spill] sm:$0xff]  ;;  %v29101_v55 = vld [vmem:[#allocation9_spill] sm:$0xff] }
 0x31e   :  { %29099 = vst [vmem:[#allocation28_spill] sm:$0xff] %v25554_v26  ;;  %v8613_v35 = vpop.f32.mrf.mxu0  ;;  %v20408_v53 = vpop.f32.mrf.mxu1  ;;  %19880 = vmatprep.subr.msk.bf16.mxu1 %vm208_vm1, %v12313_v46  ;;  %v12315_v13 = vsel %vm12305_vm10, %v29101_v55, %v29100_v19  ;;  %v12342_v39 = vsel %vm208_vm1, %v12312_v22, 0 }
 0x31f   :  { %8701 = vst.msk [vmem:[#allocation2 + $0x70] sm:$0xff] %vm60_vm2, %v8671_v38  ;;  %v25560_v51 = vadd.f32 %v8613_v35, %v25297_v24  ;;  %v25568_v49 = vpop.permute.xlu1 %13451  ;;  %15767 = vrot.lane.b32.xlu0 %v25534_v37, %s20834_s9  ;;  %v25572_v53 = vcombine.low %v15711_v41, %v15711_v41  ;;  %v25578_v24 = vcombine.high %v15711_v41, %v15711_v41  ;;  %v15712_v35 = vld [vmem:[%s28591_s0 + $0x24] sm:$0xff] }
 0x320   :  { %29102 = vst [vmem:[#allocation10_spill] sm:$0xff] %v25568_v49  ;;  %v8653_v38 = vpop.f32.mrf.mxu1  ;;  %v8928_v46 = vpop.f32.mrf.mxu0  ;;  %19875 = vmatmul.mubr.msk.bf16.vlgmr.msra.gmra.mxu0 %vm60_vm2, %v25541_v29  ;;  %15769 = vrot.lane.b32.xlu1 %v25545_v12, %s20834_s9 }
 0x321   :  { %29103 = vst [vmem:[#allocation29_spill] sm:$0xff] %v25578_v24  ;;  %v8686_v45 = vadd.f32 %v8653_v38, %v8167_v3  ;;  %v25584_v10 = vadd.f32 %v8928_v46, %v25314_v1  ;;  %12469 = vmatpush1.bf16.msra.mxu0 %v12336_v40  ;;  %12486 = vmatprep.mubr.bf16.mxu0 %v28814_v20  ;;  %v25587_v49 = vpop.permute.xlu0 %13453  ;;  %v29105_v40 = vld [vmem:[#allocation23_spill] sm:$0xff] }
 0x322   :  { %29104 = vst [vmem:[#allocation21_spill] sm:$0xff] %v25587_v49  ;;  %v20409_v26 = vpop.f32.mrf.mxu1  ;;  %v8930_v14 = vpop.f32.mrf.mxu0  ;;  %19882 = vmatprep.subr.msk.bf16.mxu0 %vm208_vm1, %v12315_v13  ;;  %v12314_v1 = vsel %vm12305_vm10, %v29096_v58, %v29101_v55  ;;  %v29106_v3 = vld [vmem:[#allocation7_spill] sm:$0xff] }
 0x323   :  { %8716 = vst.msk [vmem:[#allocation2 + $0xe8] sm:$0xff] %vm60_vm2, %v8686_v45  ;;  %v25593_v41 = vadd.f32 %v8930_v14, %v25323_v5  ;;  %v12317_v38 = vsel %vm12305_vm10, %v29106_v3, %v29105_v40  ;;  %v25601_v46 = vpop.permute.xlu1 %13455  ;;  %15771 = vrot.lane.b32.xlu0 %v25572_v53, %s20834_s9  ;;  %v25605_v26 = vcombine.low %v15712_v35, %v15712_v35  ;;  %v15713_v14 = vld [vmem:[%s28591_s0 + $0x2c] sm:$0xff] }
 0x324   :  { %29107 = vst [vmem:[#allocation20_spill] sm:$0xff] %v25601_v46  ;;  %v8932_v22 = vpop.f32.mrf.mxu0  ;;  %v8971_v13 = vpop.f32.mrf.mxu1  ;;  %19877 = vmatmul.mubr.msk.bf16.vlgmr.msra.gmra.mxu1 %vm60_vm2, %v25541_v29  ;;  %15773 = vrot.lane.b32.xlu1 %v25578_v24, %s20834_s9  ;;  %v25611_v5 = vcombine.high %v15712_v35, %v15712_v35  ;;  %v12348_v35 = vsel %vm208_vm1, %v12314_v1, 0  ;;  %v12316_v24 = vsel %vm12305_vm10, %v29100_v19, %v29106_v3 }
 0x325   :  { %v25617_v58 = vadd.f32 %v8932_v22, %v25340_v18  ;;  %v25620_v55 = vadd.f32 %v8971_v13, %v25343_v6  ;;  %12512 = vmatpush1.bf16.msra.mxu1 %v12342_v39  ;;  %12529 = vmatprep.mubr.bf16.mxu1 %v28814_v20  ;;  %v25623_v45 = vpop.permute.xlu0 %13457  ;;  %v29111_v39 = vld [vmem:[#allocation25_spill] sm:$0xff]  ;;  %v29112_v22 = vld [vmem:[#allocation18_spill] sm:$0xff]  ;;  %v25643_v1 = vcombine.low %v15713_v14, %v15713_v14 }
 0x326   :  { %29108 = vst [vmem:[#allocation19_spill] sm:$0xff] %v25611_v5  ;;  %29109 = vst [vmem:[#allocation30_spill] sm:$0xff] %v25623_v45  ;;  %v8934_v46 = vpop.f32.mrf.mxu0  ;;  %v8973_v49 = vpop.f32.mrf.mxu1  ;;  %19884 = vmatprep.subr.msk.bf16.mxu1 %vm208_vm1, %v12317_v38  ;;  %v12319_v13 = vsel %vm12305_vm10, %v29112_v22, %v29111_v39 }
 0x327   :  { %v25631_v18 = vadd.f32 %v8934_v46, %v25351_v11  ;;  %v25634_v6 = vadd.f32 %v8973_v49, %v25354_v4  ;;  %v25639_v45 = vpop.permute.xlu1 %13459  ;;  %15775 = vrot.lane.b32.xlu0 %v25605_v26, %s20834_s9  ;;  %v25649_v11 = vcombine.high %v15713_v14, %v15713_v14  ;;  %v15714_v4 = vld [vmem:[%s28591_s0 + $0x34] sm:$0xff]  ;;  %v12354_v14 = vsel %vm208_vm1, %v12316_v24, 0 }
 0x328   :  { %29113 = vst [vmem:[#allocation9_spill] sm:$0xff] %v25639_v45  ;;  %v8975_v19 = vpop.f32.mrf.mxu1  ;;  %v9014_v3 = vpop.f32.mrf.mxu0  ;;  %19879 = vmatmul.mubr.msk.bf16.vlgmr.msra.gmra.mxu0 %vm60_vm2, %v25541_v29  ;;  %15777 = vrot.lane.b32.xlu1 %v25611_v5, %s20834_s9 }
 0x329   :  { %29110 = vst [vmem:[#allocation24_spill] sm:$0xff] %v25634_v6  ;;  %v25655_v49 = vadd.f32 %v8975_v19, %v25371_v34  ;;  %v25658_v38 = vadd.f32 %v9014_v3, %v25374_v47  ;;  %12555 = vmatpush1.bf16.msra.mxu0 %v12348_v35  ;;  %12572 = vmatprep.mubr.bf16.mxu0 %v28814_v20  ;;  %v25661_v46 = vpop.permute.xlu0 %13461 }
 0x32a   :  { %29114 = vst [vmem:[#allocation23_spill] sm:$0xff] %v25661_v46  ;;  %v8977_v45 = vpop.f32.mrf.mxu1  ;;  %v9016_v6 = vpop.f32.mrf.mxu0  ;;  %19886 = vmatprep.subr.msk.bf16.mxu0 %vm208_vm1, %v12319_v13  ;;  %v12318_v47 = vsel %vm12305_vm10, %v29105_v40, %v29112_v22  ;;  %v25678_v19 = vcombine.low %v15714_v4, %v15714_v4  ;;  %v12366_v46 = vsel %vm208_vm1, %v29111_v39, 0 }
 0x32b   :  { %v25666_v5 = vadd.f32 %v8977_v45, %v25382_v25  ;;  %v25669_v34 = vadd.f32 %v9016_v6, %v25385_v43  ;;  %v25674_v35 = vpop.permute.xlu1 %14012  ;;  %15779 = vrot.lane.b32.xlu0 %v25643_v1, %s20834_s9  ;;  %v25684_v25 = vcombine.high %v15714_v4, %v15714_v4  ;;  %v12360_v13 = vsel %vm208_vm1, %v12318_v47, 0  ;;  %v20755_v47 = vld [vmem:[%s28591_s0 + $0x3c] ss:$0 sps:$4 sm:$0xff]  }
 0x32c   :  { %29115 = vst [vmem:[#allocation7_spill] sm:$0xff] %v25674_v35  ;;  %v9018_v24 = vpop.f32.mrf.mxu0  ;;  %v9057_v3 = vpop.f32.mrf.mxu1  ;;  %19881 = vmatmul.mubr.msk.bf16.vlgmr.msra.gmra.mxu1 %vm60_vm2, %v25541_v29  ;;  %15781 = vrot.lane.b32.xlu1 %v25649_v11, %s20834_s9 }
 0x32d   :  { %29116 = vst [vmem:[#allocation25_spill] sm:$0xff] %v25684_v25  ;;  %v25687_v43 = vadd.f32 %v9018_v24, %v25399_v7  ;;  %v25690_v40 = vadd.f32 %v9057_v3, %v25402_v57  ;;  %12598 = vmatpush1.bf16.msra.mxu1 %v12354_v14  ;;  %12615 = vmatprep.mubr.bf16.mxu1 %v28814_v20  ;;  %v25693_v45 = vpop.permute.xlu0 %14014  ;;  %v29118_v24 = vld [vmem:[#allocation16_spill] sm:$0xff] }
 0x32e   :  { %29117 = vst [vmem:[#allocation18_spill] sm:$0xff] %v25693_v45  ;;  %v9020_v6 = vpop.f32.mrf.mxu0  ;;  %v9059_v22 = vpop.f32.mrf.mxu1  ;;  %20446 = vmatprep.subr.bf16.mxu1 %v28815_v42  ;;  %v29119_v57 = vld [vmem:[#allocation32_spill] sm:$0xff] }
 0x32f   :  { %v25698_v4 = vadd.f32 %v9020_v6, %v25410_v62  ;;  %v25701_v7 = vadd.f32 %v9059_v22, %v25413_v63  ;;  %v12886_v14 = vsel %vm12884_vm11, %v29119_v57, %v29118_v24  ;;  %v25706_v3 = vpop.permute.xlu1 %14016  ;;  %15783 = vrot.lane.b32.xlu0 %v25678_v19, %s20834_s9 }
 0x330   :  { %29120 = vst [vmem:[#allocation16_spill] sm:$0xff] %v25706_v3  ;;  %v9061_v35 = vpop.f32.mrf.mxu1  ;;  %v9100_v45 = vpop.f32.mrf.mxu0  ;;  %19883 = vmatmul.mubr.msk.bf16.vlgmr.msra.gmra.mxu0 %vm60_vm2, %v25541_v29  ;;  %15785 = vrot.lane.b32.xlu1 %v25684_v25, %s20834_s9 }
 0x331   :  { %v25718_v62 = vadd.f32 %v9061_v35, %v25430_v32  ;;  %v25721_v63 = vadd.f32 %v9100_v45, %v25433_v8  ;;  %12641 = vmatpush1.bf16.msra.mxu0 %v12360_v13  ;;  %12658 = vmatprep.mubr.bf16.mxu0 %v28814_v20  ;;  %v25724_v6 = vpop.permute.xlu0 %14018  ;;  %v29122_v8 = vld [vmem:[#allocation31_spill] sm:$0xff] }
 0x332   :  { %29121 = vst [vmem:[#allocation32_spill] sm:$0xff] %v25724_v6  ;;  %v9063_v22 = vpop.f32.mrf.mxu1  ;;  %v9102_v3 = vpop.f32.mrf.mxu0  ;;  %19907 = vmatprep.subr.msk.bf16.mxu0 %vm208_vm1, %v12886_v14  ;;  %v12885_v35 = vsel %vm12884_vm11, %v29122_v8, %v29119_v57  ;;  %v29123_v45 = vld [vmem:[#allocation15_spill] sm:$0xff] }
 0x333   :  { %v25730_v25 = vadd.f32 %v9063_v22, %v25445_v15  ;;  %v25733_v32 = vadd.f32 %v9102_v3, %v25448_v28  ;;  %v12888_v13 = vsel %vm12884_vm11, %v29123_v45, %v25243_v9  ;;  %v25741_v6 = vpop.permute.xlu1 %14020  ;;  %15787 = vrot.lane.b32.xlu0 %v20755_v47, %s20834_s9  ;;  %v12903_v22 = vsel %vm208_vm1, %v12885_v35, 0 }
 0x334   :  { %v9104_v39 = vpop.f32.mrf.mxu0  ;;  %v9143_v14 = vpop.f32.mrf.mxu1  ;;  %19885 = vmatmul.mubr.msk.bf16.vlgmr.msra.gmra.mxu1 %vm60_vm2, %v25541_v29  ;;  %16338 = vrot.lane.b32.xlu1 %v25457_v61, %s20835_s24 }
 0x335   :  { %v25749_v15 = vadd.f32 %v9104_v39, %v25469_v36  ;;  %v25752_v28 = vadd.f32 %v9143_v14, %v25472_v54  ;;  %20447 = vmatpush3.bf16.msra.mxu1 %v12366_v46  ;;  %20448 = vmatprep.mubr.msk.bf16.mxu1 %vm20812_vm4, %v28815_v42  ;;  %v25756_v57 = vpop.permute.xlu0 %14022  ;;  %v12887_v54 = vsel %vm12884_vm11, %v29118_v24, %v29123_v45  ;;  %v29125_v46 = vld [vmem:[#allocation13_spill] sm:$0xff] }
 0x336   :  { %29124 = vst [vmem:[#allocation31_spill] sm:$0xff] %v25756_v57  ;;  %v9106_v3 = vpop.f32.mrf.mxu0  ;;  %v9145_v47 = vpop.f32.mrf.mxu1  ;;  %19909 = vmatprep.subr.msk.bf16.mxu1 %vm208_vm1, %v12888_v13  ;;  %v12890_v39 = vsel %vm12884_vm11, %v29125_v46, %v25274_v17 }
 0x337   :  { %v25761_v8 = vadd.f32 %v9106_v3, %v25484_v30  ;;  %v25764_v36 = vadd.f32 %v9145_v47, %v25487_v52  ;;  %v25772_v14 = vpop.permute.xlu1 %14024  ;;  %16340 = vrot.lane.b32.xlu0 %v25463_v21, %s20835_s24  ;;  %v12909_v47 = vsel %vm208_vm1, %v12887_v54, 0 }
 0x338   :  { %v9147_v35 = vpop.f32.mrf.mxu1  ;;  %v9186_v13 = vpop.f32.mrf.mxu0  ;;  %19887 = vmatmul.mubr.msk.bf16.vlgmr.msra.gmra.mxu0 %vm60_vm2, %v25541_v29  ;;  %16342 = vrot.lane.b32.xlu1 %v25496_v27, %s20835_s24 }
 0x339   :  { %v25781_v30 = vadd.f32 %v9147_v35, %v25508_v60  ;;  %v25784_v52 = vadd.f32 %v9186_v13, %v25511_v16  ;;  %12962 = vmatpush1.bf16.msra.mxu0 %v12903_v22  ;;  %12979 = vmatprep.mubr.bf16.mxu0 %v28814_v20  ;;  %v25787_v24 = vpop.permute.xlu0 %14026  ;;  %v12889_v16 = vsel %vm12884_vm11, %v25243_v9, %v29125_v46 }
 0x33a   :  { %29126 = vst [vmem:[#allocation15_spill] sm:$0xff] %v25787_v24  ;;  %v9149_v45 = vpop.f32.mrf.mxu1  ;;  %v9188_v3 = vpop.f32.mrf.mxu0  ;;  %19911 = vmatprep.subr.msk.bf16.mxu0 %vm208_vm1, %v12890_v39  ;;  %v12892_v22 = vsel %vm12884_vm11, %v25291_v31, %v25305_v59  ;;  %v8731_v39 = vld [vmem:[#allocation2 + $0x70] sm:$0xff] }
 0x33b   :  { %v25792_v57 = vadd.f32 %v9149_v45, %v25522_v2  ;;  %v25795_v60 = vadd.f32 %v9188_v3, %v25525_v33  ;;  %v25803_v35 = vpop.permute.xlu1 %14028  ;;  %16344 = vrot.lane.b32.xlu0 %v25502_v0, %s20835_s24  ;;  %v25812_v33 = vld [vmem:[%s28592_s1 + $0xb0] sm:$0xff]  }
 0x33c   :  { %v9190_v54 = vpop.f32.mrf.mxu0  ;;  %v9229_v2 = vpop.f32.mrf.mxu1  ;;  %20449 = vmatmul.mubr.msk.bf16.vlgmr.msra.gmra.mxu1 %vm60_vm2, %v25541_v29  ;;  %16346 = vrot.lane.b32.xlu1 %v25534_v37, %s20835_s24  ;;  %v12915_v29 = vsel %vm208_vm1, %v12889_v16, 0  ;;  %v8746_v16 = vld [vmem:[#allocation2 + $0xe8] sm:$0xff] }
 0x33d   :  { %v25817_v9 = vadd.f32 %v9190_v54, %v25551_v44  ;;  %v9250_v46 = vadd.f32 %v9229_v2, %v8731_v39  ;;  %13005 = vmatpush1.bf16.msra.mxu1 %v12909_v47  ;;  %13022 = vmatprep.mubr.bf16.mxu1 %v28814_v20  ;;  %v25820_v13 = vpop.permute.xlu0 %14030  ;;  %v12891_v44 = vsel %vm12884_vm11, %v25274_v17, %v25291_v31 }
 0x33e   :  { %29127 = vst [vmem:[#allocation13_spill] sm:$0xff] %v25820_v13  ;;  %v9192_v45 = vpop.f32.mrf.mxu0  ;;  %v20414_v3 = vpop.f32.mrf.mxu1  ;;  %19913 = vmatprep.subr.msk.bf16.mxu1 %vm208_vm1, %v12892_v22  ;;  %v12894_v47 = vsel %vm12884_vm11, %v25317_v23, %v25331_v50 }
 0x33f   :  { %9280 = vst.msk [vmem:[#allocation2 + $0x70] sm:$0xff] %vm60_vm2, %v9250_v46  ;;  %v25826_v24 = vadd.f32 %v9192_v45, %v25560_v51  ;;  %v25834_v54 = vpop.permute.xlu1 %14032  ;;  %16348 = vrot.lane.b32.xlu0 %v25545_v12, %s20835_s24  ;;  %v12921_v45 = vsel %vm208_vm1, %v12891_v44, 0 }
 0x340   :  { %v9232_v22 = vpop.f32.mrf.mxu1  ;;  %v9507_v39 = vpop.f32.mrf.mxu0  ;;  %19908 = vmatmul.mubr.msk.bf16.vlgmr.msra.gmra.mxu0 %vm60_vm2, %v25812_v33  ;;  %16350 = vrot.lane.b32.xlu1 %v25572_v53, %s20835_s24 }
 0x341   :  { %v9265_v51 = vadd.f32 %v9232_v22, %v8746_v16  ;;  %v25843_v17 = vadd.f32 %v9507_v39, %v25584_v10  ;;  %13048 = vmatpush1.bf16.msra.mxu0 %v12915_v29  ;;  %13065 = vmatprep.mubr.bf16.mxu0 %v28814_v20  ;;  %v25846_v31 = vpop.permute.xlu0 %14034  ;;  %v12893_v10 = vsel %vm12884_vm11, %v25305_v59, %v25317_v23  ;;  %v29130_v22 = vld [vmem:[#allocation29_spill] sm:$0xff] }
 0x342   :  { %29128 = vst [vmem:[#allocation33_spill] sm:$0xff] %v25846_v31  ;;  %v20415_v2 = vpop.f32.mrf.mxu1  ;;  %v9509_v46 = vpop.f32.mrf.mxu0  ;;  %19915 = vmatprep.subr.msk.bf16.mxu0 %vm208_vm1, %v12894_v47  ;;  %v12896_v29 = vsel %vm12884_vm11, %v25346_v48, %v25362_v56  ;;  %v29132_v31 = vld [vmem:[#allocation24_spill] sm:$0xff] }
 0x343   :  { %9295 = vst.msk [vmem:[#allocation2 + $0xe8] sm:$0xff] %vm60_vm2, %v9265_v51  ;;  %v25852_v3 = vadd.f32 %v9509_v46, %v25593_v41  ;;  %v25860_v16 = vpop.permute.xlu1 %14036  ;;  %16352 = vrot.lane.b32.xlu0 %v29130_v22, %s20835_s24  ;;  %v12927_v2 = vsel %vm208_vm1, %v12893_v10, 0  ;;  %v29136_v10 = vld [vmem:[#allocation19_spill] sm:$0xff] }
 0x344   :  { %29129 = vst [vmem:[#allocation34_spill] sm:$0xff] %v25860_v16  ;;  %v9511_v44 = vpop.f32.mrf.mxu0  ;;  %v9550_v47 = vpop.f32.mrf.mxu1  ;;  %19910 = vmatmul.mubr.msk.bf16.vlgmr.msra.gmra.mxu1 %vm60_vm2, %v25812_v33  ;;  %16354 = vrot.lane.b32.xlu1 %v25605_v26, %s20835_s24 }
 0x345   :  { %v25869_v41 = vadd.f32 %v9511_v44, %v25617_v58  ;;  %v25872_v59 = vadd.f32 %v9550_v47, %v25620_v55  ;;  %13091 = vmatpush1.bf16.msra.mxu1 %v12921_v45  ;;  %13108 = vmatprep.mubr.bf16.mxu1 %v28814_v20  ;;  %v25875_v23 = vpop.permute.xlu0 %14038  ;;  %v12895_v55 = vsel %vm12884_vm11, %v25331_v50, %v25346_v48  ;;  %v29133_v45 = vld [vmem:[#allocation22_spill] sm:$0xff] }
 0x346   :  { %29131 = vst [vmem:[#allocation29_spill] sm:$0xff] %v25875_v23  ;;  %v9513_v39 = vpop.f32.mrf.mxu0  ;;  %v9552_v51 = vpop.f32.mrf.mxu1  ;;  %19917 = vmatprep.subr.msk.bf16.mxu1 %vm208_vm1, %v12896_v29  ;;  %v29134_v44 = vld [vmem:[#allocation14_spill] sm:$0xff] }
 0x347   :  { %v25880_v46 = vadd.f32 %v9513_v39, %v25631_v18  ;;  %v25883_v58 = vadd.f32 %v9552_v51, %v29132_v31  ;;  %v12898_v47 = vsel %vm12884_vm11, %v29134_v44, %v29133_v45  ;;  %v25891_v23 = vpop.permute.xlu1 %14040  ;;  %16356 = vrot.lane.b32.xlu0 %v29136_v10, %s20835_s24  ;;  %v12933_v51 = vsel %vm208_vm1, %v12895_v55, 0 }
 0x348   :  { %29135 = vst [vmem:[#allocation24_spill] sm:$0xff] %v25891_v23  ;;  %v9554_v29 = vpop.f32.mrf.mxu1  ;;  %v9593_v16 = vpop.f32.mrf.mxu0  ;;  %19912 = vmatmul.mubr.msk.bf16.vlgmr.msra.gmra.mxu0 %vm60_vm2, %v25812_v33  ;;  %16358 = vrot.lane.b32.xlu1 %v25643_v1, %s20835_s24 }
 0x349   :  { %v25900_v18 = vadd.f32 %v9554_v29, %v25655_v49  ;;  %v25903_v50 = vadd.f32 %v9593_v16, %v25658_v38  ;;  %13134 = vmatpush1.bf16.msra.mxu0 %v12927_v2  ;;  %13151 = vmatprep.mubr.bf16.mxu0 %v28814_v20  ;;  %v25906_v48 = vpop.permute.xlu0 %14593  ;;  %v12897_v38 = vsel %vm12884_vm11, %v25362_v56, %v29134_v44 }
 0x34a   :  { %29137 = vst [vmem:[#allocation22_spill] sm:$0xff] %v25906_v48  ;;  %v9556_v31 = vpop.f32.mrf.mxu1  ;;  %v9595_v39 = vpop.f32.mrf.mxu0  ;;  %19919 = vmatprep.subr.msk.bf16.mxu0 %vm208_vm1, %v12898_v47  ;;  %v29143_v48 = vld [vmem:[#allocation25_spill] sm:$0xff] }
 0x34b   :  { %v25911_v23 = vadd.f32 %v9556_v31, %v25666_v5  ;;  %v25914_v49 = vadd.f32 %v9595_v39, %v25669_v34  ;;  %v25919_v16 = vpop.permute.xlu1 %14595  ;;  %16360 = vrot.lane.b32.xlu0 %v25649_v11, %s20835_s24  ;;  %v20757_v5 = vld [vmem:[%s28591_s0 + $0x3c] ss:$0 sps:$4 sm:$0xff]   ;;  %v12939_v31 = vsel %vm208_vm1, %v12897_v38, 0 }
 0x34c   :  { %29138 = vst [vmem:[#allocation14_spill] sm:$0xff] %v25919_v16  ;;  %v9597_v2 = vpop.f32.mrf.mxu0  ;;  %v9636_v29 = vpop.f32.mrf.mxu1  ;;  %19914 = vmatmul.mubr.msk.bf16.vlgmr.msra.gmra.mxu1 %vm60_vm2, %v25812_v33  ;;  %16362 = vrot.lane.b32.xlu1 %v25678_v19, %s20835_s24 }
 0x34d   :  { %v25931_v56 = vadd.f32 %v9597_v2, %v25687_v43  ;;  %v25934_v34 = vadd.f32 %v9636_v29, %v25690_v40  ;;  %13177 = vmatpush1.bf16.msra.mxu1 %v12933_v51  ;;  %13194 = vmatprep.mubr.bf16.mxu1 %v28814_v20  ;;  %v25937_v55 = vpop.permute.xlu0 %14597  ;;  %v29140_v2 = vld [vmem:[#allocation8_spill] sm:$0xff]  ;;  %v29141_v40 = vld [vmem:[#allocation5_spill] sm:$0xff] }
 0x34e   :  { %29139 = vst [vmem:[#allocation19_spill] sm:$0xff] %v25937_v55  ;;  %v9599_v44 = vpop.f32.mrf.mxu0  ;;  %v9638_v47 = vpop.f32.mrf.mxu1  ;;  %20452 = vmatprep.subr.bf16.mxu1 %v28815_v42  ;;  %v13465_v51 = vsel %vm13463_vm12, %v29141_v40, %v29140_v2 }
 0x34f   :  { %v25942_v39 = vadd.f32 %v9599_v44, %v25698_v4  ;;  %v25945_v43 = vadd.f32 %v9638_v47, %v25701_v7  ;;  %v25950_v29 = vpop.permute.xlu1 %14599  ;;  %16364 = vrot.lane.b32.xlu0 %v29143_v48, %s20835_s24 }
 0x350   :  { %29142 = vst [vmem:[#allocation8_spill] sm:$0xff] %v25950_v29  ;;  %v9640_v16 = vpop.f32.mrf.mxu1  ;;  %v9679_v55 = vpop.f32.mrf.mxu0  ;;  %19916 = vmatmul.mubr.msk.bf16.vlgmr.msra.gmra.mxu0 %vm60_vm2, %v25812_v33  ;;  %16366 = vrot.lane.b32.xlu1 %v20757_v5, %s20835_s24  ;;  %v12945_v29 = vsel %vm208_vm1, %v29133_v45, 0 }
 0x351   :  { %v25958_v4 = vadd.f32 %v9640_v16, %v25718_v62  ;;  %v25961_v7 = vadd.f32 %v9679_v55, %v25721_v63  ;;  %13220 = vmatpush1.bf16.msra.mxu0 %v12939_v31  ;;  %13237 = vmatprep.mubr.bf16.mxu0 %v28814_v20  ;;  %v25964_v38 = vpop.permute.xlu0 %14601  ;;  %v29145_v63 = vld [vmem:[#allocation11_spill] sm:$0xff]  ;;  %v29146_v55 = vld [vmem:[#allocation17_spill] sm:$0xff]  ;;  %v29147_v31 = vld [vmem:[#allocation6_spill] sm:$0xff] }
 0x352   :  { %29144 = vst [vmem:[#allocation5_spill] sm:$0xff] %v25964_v38  ;;  %v9642_v44 = vpop.f32.mrf.mxu1  ;;  %v9681_v47 = vpop.f32.mrf.mxu0  ;;  %19940 = vmatprep.subr.msk.bf16.mxu0 %vm208_vm1, %v13465_v51  ;;  %v13464_v16 = vsel %vm13463_vm12, %v29145_v63, %v29141_v40  ;;  %v13467_v38 = vsel %vm13463_vm12, %v29147_v31, %v29146_v55  ;;  %v29149_v63 = vld [vmem:[#allocation26_spill] sm:$0xff] }
 0x353   :  { %v25970_v5 = vadd.f32 %v9642_v44, %v25730_v25  ;;  %v25973_v62 = vadd.f32 %v9681_v47, %v25733_v32  ;;  %v25981_v13 = vpop.permute.xlu1 %14603  ;;  %16917 = vrot.lane.b32.xlu0 %v25457_v61, %s20836_s29  ;;  %v13482_v47 = vsel %vm208_vm1, %v13464_v16, 0 }
 0x354   :  { %v9683_v45 = vpop.f32.mrf.mxu0  ;;  %v9722_v25 = vpop.f32.mrf.mxu1  ;;  %19918 = vmatmul.mubr.msk.bf16.vlgmr.msra.gmra.mxu1 %vm60_vm2, %v25812_v33  ;;  %16919 = vrot.lane.b32.xlu1 %v25463_v21, %s20836_s29 }
 0x355   :  { %v25990_v32 = vadd.f32 %v9683_v45, %v25749_v15  ;;  %v25993_v40 = vadd.f32 %v9722_v25, %v25752_v28  ;;  %20453 = vmatpush3.bf16.msra.mxu1 %v12945_v29  ;;  %20454 = vmatprep.mubr.msk.bf16.mxu1 %vm20812_vm4, %v28815_v42  ;;  %v25997_v51 = vpop.permute.xlu0 %14605  ;;  %v13466_v28 = vsel %vm13463_vm12, %v29140_v2, %v29147_v31  ;;  %v29148_v29 = vld [vmem:[#allocation12_spill] sm:$0xff] }
 0x356   :  { %v9685_v61 = vpop.f32.mrf.mxu0  ;;  %v9724_v44 = vpop.f32.mrf.mxu1  ;;  %19942 = vmatprep.subr.msk.bf16.mxu1 %vm208_vm1, %v13467_v38  ;;  %v13469_v45 = vsel %vm13463_vm12, %v29149_v63, %v29148_v29 }
 0x357   :  { %v26002_v21 = vadd.f32 %v9685_v61, %v25761_v8  ;;  %v26005_v15 = vadd.f32 %v9724_v44, %v25764_v36  ;;  %v26013_v25 = vpop.permute.xlu1 %14607  ;;  %16921 = vrot.lane.b32.xlu0 %v25496_v27, %s20836_s29  ;;  %v13488_v61 = vsel %vm208_vm1, %v13466_v28, 0 }
 0x358   :  { %v9726_v38 = vpop.f32.mrf.mxu1  ;;  %v9765_v16 = vpop.f32.mrf.mxu0  ;;  %19920 = vmatmul.mubr.msk.bf16.vlgmr.msra.gmra.mxu0 %vm60_vm2, %v25812_v33  ;;  %16923 = vrot.lane.b32.xlu1 %v25502_v0, %s20836_s29 }
 0x359   :  { %v26022_v8 = vadd.f32 %v9726_v38, %v25781_v30  ;;  %v26025_v36 = vadd.f32 %v9765_v16, %v25784_v52  ;;  %13541 = vmatpush1.bf16.msra.mxu0 %v13482_v47  ;;  %13558 = vmatprep.mubr.bf16.mxu0 %v28814_v20  ;;  %v26028_v2 = vpop.permute.xlu0 %14609  ;;  %v13468_v30 = vsel %vm13463_vm12, %v29146_v55, %v29149_v63  ;;  %v29150_v52 = vld [vmem:[#allocation28_spill] sm:$0xff]  ;;  %v29151_v47 = vld [vmem:[#allocation27_spill] sm:$0xff] }
 0x35a   :  { %v9728_v27 = vpop.f32.mrf.mxu1  ;;  %v9767_v31 = vpop.f32.mrf.mxu0  ;;  %19944 = vmatprep.subr.msk.bf16.mxu0 %vm208_vm1, %v13469_v45  ;;  %v13471_v38 = vsel %vm13463_vm12, %v29151_v47, %v29150_v52  ;;  %v9310_v45 = vld [vmem:[#allocation2 + $0x70] sm:$0xff] }
 0x35b   :  { %v26033_v44 = vadd.f32 %v9728_v27, %v25792_v57  ;;  %v26036_v0 = vadd.f32 %v9767_v31, %v25795_v60  ;;  %v26044_v16 = vpop.permute.xlu1 %14611  ;;  %16925 = vrot.lane.b32.xlu0 %v25534_v37, %s20836_s29  ;;  %v26053_v60 = vld [vmem:[%s28592_s1 + $0xb8] sm:$0xff]  }
 0x35c   :  { %29152 = vst [vmem:[#allocation25_spill] sm:$0xff] %v26044_v16  ;;  %v9769_v28 = vpop.f32.mrf.mxu0  ;;  %v9808_v57 = vpop.f32.mrf.mxu1  ;;  %20455 = vmatmul.mubr.msk.bf16.vlgmr.msra.gmra.mxu1 %vm60_vm2, %v25812_v33  ;;  %16927 = vrot.lane.b32.xlu1 %v25545_v12, %s20836_s29  ;;  %v13494_v33 = vsel %vm208_vm1, %v13468_v30, 0  ;;  %v13470_v12 = vsel %vm13463_vm12, %v29148_v29, %v29151_v47  ;;  %v9325_v30 = vld [vmem:[#allocation2 + $0xe8] sm:$0xff] }
 0x35d   :  { %v26058_v55 = vadd.f32 %v9769_v28, %v25817_v9  ;;  %v9829_v63 = vadd.f32 %v9808_v57, %v9310_v45  ;;  %13584 = vmatpush1.bf16.msra.mxu1 %v13488_v61  ;;  %13601 = vmatprep.mubr.bf16.mxu1 %v28814_v20  ;;  %v26061_v37 = vpop.permute.xlu0 %14613  ;;  %v29153_v9 = vld [vmem:[#allocation21_spill] sm:$0xff]  ;;  %v29154_v61 = vld [vmem:[#allocation10_spill] sm:$0xff] }
 0x35e   :  { %v9771_v27 = vpop.f32.mrf.mxu0  ;;  %v20420_v31 = vpop.f32.mrf.mxu1  ;;  %19946 = vmatprep.subr.msk.bf16.mxu1 %vm208_vm1, %v13471_v38  ;;  %v13473_v28 = vsel %vm13463_vm12, %v29154_v61, %v29153_v9 }
 0x35f   :  { %9859 = vst.msk [vmem:[#allocation2 + $0x70] sm:$0xff] %vm60_vm2, %v9829_v63  ;;  %v26067_v16 = vadd.f32 %v9771_v27, %v25826_v24  ;;  %v26075_v45 = vpop.permute.xlu1 %14615  ;;  %16929 = vrot.lane.b32.xlu0 %v25572_v53, %s20836_s29  ;;  %v13500_v27 = vsel %vm208_vm1, %v13470_v12, 0 }
 0x360   :  { %29155 = vst [vmem:[#allocation11_spill] sm:$0xff] %v26075_v45  ;;  %v9811_v38 = vpop.f32.mrf.mxu1  ;;  %v10086_v57 = vpop.f32.mrf.mxu0  ;;  %19941 = vmatmul.mubr.msk.bf16.vlgmr.msra.gmra.mxu0 %vm60_vm2, %v26053_v60  ;;  %16931 = vrot.lane.b32.xlu1 %v29130_v22, %s20836_s29  ;;  %v29157_v22 = vld [vmem:[#allocation30_spill] sm:$0xff] }
 0x361   :  { %v9844_v24 = vadd.f32 %v9811_v38, %v9325_v30  ;;  %v26084_v29 = vadd.f32 %v10086_v57, %v25843_v17  ;;  %13627 = vmatpush1.bf16.msra.mxu0 %v13494_v33  ;;  %13644 = vmatprep.mubr.bf16.mxu0 %v28814_v20  ;;  %v26087_v47 = vpop.permute.xlu0 %14617  ;;  %v13472_v17 = vsel %vm13463_vm12, %v29150_v52, %v29154_v61  ;;  %v29158_v33 = vld [vmem:[#allocation20_spill] sm:$0xff] }
 0x362   :  { %29156 = vst [vmem:[#allocation17_spill] sm:$0xff] %v26087_v47  ;;  %v20421_v63 = vpop.f32.mrf.mxu1  ;;  %v10088_v53 = vpop.f32.mrf.mxu0  ;;  %19948 = vmatprep.subr.msk.bf16.mxu0 %vm208_vm1, %v13473_v28  ;;  %v13475_v30 = vsel %vm13463_vm12, %v29158_v33, %v29157_v22 }
 0x363   :  { %9874 = vst.msk [vmem:[#allocation2 + $0xe8] sm:$0xff] %vm60_vm2, %v9844_v24  ;;  %v26093_v31 = vadd.f32 %v10088_v53, %v25852_v3  ;;  %v26101_v38 = vpop.permute.xlu1 %14619  ;;  %16933 = vrot.lane.b32.xlu0 %v25605_v26, %s20836_s29  ;;  %v13506_v24 = vsel %vm208_vm1, %v13472_v17, 0  ;;  %v29162_v53 = vld [vmem:[#allocation9_spill] sm:$0xff] }
 0x364   :  { %29159 = vst [vmem:[#allocation6_spill] sm:$0xff] %v26101_v38  ;;  %v10090_v12 = vpop.f32.mrf.mxu0  ;;  %v10129_v28 = vpop.f32.mrf.mxu1  ;;  %19943 = vmatmul.mubr.msk.bf16.vlgmr.msra.gmra.mxu1 %vm60_vm2, %v26053_v60  ;;  %16935 = vrot.lane.b32.xlu1 %v29136_v10, %s20836_s29  ;;  %v29161_v10 = vld [vmem:[#allocation23_spill] sm:$0xff] }
 0x365   :  { %v26110_v3 = vadd.f32 %v10090_v12, %v25869_v41  ;;  %v26113_v52 = vadd.f32 %v10129_v28, %v25872_v59  ;;  %13670 = vmatpush1.bf16.msra.mxu1 %v13500_v27  ;;  %13687 = vmatprep.mubr.bf16.mxu1 %v28814_v20  ;;  %v26116_v61 = vpop.permute.xlu0 %14621  ;;  %v13474_v59 = vsel %vm13463_vm12, %v29153_v9, %v29158_v33 }
 0x366   :  { %29160 = vst [vmem:[#allocation12_spill] sm:$0xff] %v26116_v61  ;;  %v10092_v26 = vpop.f32.mrf.mxu0  ;;  %v10131_v57 = vpop.f32.mrf.mxu1  ;;  %19950 = vmatprep.subr.msk.bf16.mxu1 %vm208_vm1, %v13475_v30  ;;  %v13477_v27 = vsel %vm13463_vm12, %v29162_v53, %v29161_v10 }
 0x367   :  { %v26121_v63 = vadd.f32 %v10092_v26, %v25880_v46  ;;  %v26124_v41 = vadd.f32 %v10131_v57, %v25883_v58  ;;  %v26132_v12 = vpop.permute.xlu1 %14623  ;;  %16937 = vrot.lane.b32.xlu0 %v25643_v1, %s20836_s29  ;;  %v17445_v1 = vld [vmem:[%s28591_s0 + $0x8] sm:$0xff]  ;;  %v13512_v26 = vsel %vm208_vm1, %v13474_v59, 0 }
 0x368   :  { %29163 = vst [vmem:[#allocation26_spill] sm:$0xff] %v26132_v12  ;;  %v10133_v17 = vpop.f32.mrf.mxu1  ;;  %v10172_v30 = vpop.f32.mrf.mxu0  ;;  %19945 = vmatmul.mubr.msk.bf16.vlgmr.msra.gmra.mxu0 %vm60_vm2, %v26053_v60  ;;  %16939 = vrot.lane.b32.xlu1 %v25649_v11, %s20836_s29 }
 0x369   :  { %v26141_v46 = vadd.f32 %v10133_v17, %v25900_v18  ;;  %v26144_v58 = vadd.f32 %v10172_v30, %v25903_v50  ;;  %13713 = vmatpush1.bf16.msra.mxu0 %v13506_v24  ;;  %13730 = vmatprep.mubr.bf16.mxu0 %v28814_v20  ;;  %v26147_v9 = vpop.permute.xlu0 %15177  ;;  %v13476_v50 = vsel %vm13463_vm12, %v29157_v22, %v29162_v53  ;;  %v20759_v24 = vld [vmem:[%s28591_s0 + $0x3c] ss:$0 sps:$4 sm:$0xff]   ;;  %v17446_v53 = vld [vmem:[%s28591_s0 + $0x10] sm:$0xff] }
 0x36a   :  { %29164 = vst [vmem:[#allocation28_spill] sm:$0xff] %v26147_v9  ;;  %v10135_v33 = vpop.f32.mrf.mxu1  ;;  %v10174_v28 = vpop.f32.mrf.mxu0  ;;  %19952 = vmatprep.subr.msk.bf16.mxu0 %vm208_vm1, %v13477_v27 }
 0x36b   :  { %v26155_v11 = vadd.f32 %v10135_v33, %v25911_v23  ;;  %v26158_v18 = vadd.f32 %v10174_v28, %v25914_v49  ;;  %v26163_v57 = vpop.permute.xlu1 %15179  ;;  %16941 = vrot.lane.b32.xlu0 %v25678_v19, %s20836_s29  ;;  %v26174_v23 = vcombine.low %v17445_v1, %v17445_v1  ;;  %v29167_v33 = vld [vmem:[#allocation16_spill] sm:$0xff]  ;;  %v29168_v28 = vld [vmem:[#allocation18_spill] sm:$0xff] }
 0x36c   :  { %29165 = vst [vmem:[#allocation27_spill] sm:$0xff] %v26163_v57  ;;  %v10176_v59 = vpop.f32.mrf.mxu0  ;;  %v10215_v27 = vpop.f32.mrf.mxu1  ;;  %19947 = vmatmul.mubr.msk.bf16.vlgmr.msra.gmra.mxu1 %vm60_vm2, %v26053_v60  ;;  %16943 = vrot.lane.b32.xlu1 %v29143_v48, %s20836_s29  ;;  %v13518_v48 = vsel %vm208_vm1, %v13476_v50, 0  ;;  %v29171_v57 = vld [vmem:[#allocation7_spill] sm:$0xff] }
 0x36d   :  { %v26177_v49 = vadd.f32 %v10176_v59, %v25931_v56  ;;  %v26180_v22 = vadd.f32 %v10215_v27, %v25934_v34  ;;  %13756 = vmatpush1.bf16.msra.mxu1 %v13512_v26  ;;  %13773 = vmatprep.mubr.bf16.mxu1 %v28814_v20  ;;  %v26183_v19 = vpop.permute.xlu0 %15181  ;;  %v14044_v26 = vsel %vm60_vm2, %v29168_v28, %v29167_v33 }
 0x36e   :  { %29166 = vst [vmem:[#allocation21_spill] sm:$0xff] %v26183_v19  ;;  %v10178_v17 = vpop.f32.mrf.mxu0  ;;  %v10217_v30 = vpop.f32.mrf.mxu1  ;;  %20458 = vmatprep.subr.bf16.mxu1 %v28815_v42  ;;  %v26202_v27 = vcombine.high %v17445_v1, %v17445_v1  ;;  %v14043_v19 = vsel %vm60_vm2, %v29171_v57, %v29168_v28  ;;  %v26241_v57 = vcombine.high %v17446_v53, %v17446_v53 }
 0x36f   :  { %v26191_v56 = vadd.f32 %v10178_v17, %v25942_v39  ;;  %v26194_v34 = vadd.f32 %v10217_v30, %v25945_v43  ;;  %v26199_v59 = vpop.permute.xlu1 %15183  ;;  %16945 = vrot.lane.b32.xlu0 %v20759_v24, %s20836_s29  ;;  %v26208_v39 = vcombine.low %v17446_v53, %v17446_v53  ;;  %v17447_v24 = vld [vmem:[%s28591_s0 + $0x18] sm:$0xff]  ;;  %v14061_v12 = vsel %vm208_vm1, %v14043_v19, 0 }
 0x370   :  { %29169 = vst [vmem:[#allocation10_spill] sm:$0xff] %v26199_v59  ;;  %v10219_v9 = vpop.f32.mrf.mxu1  ;;  %v10258_v50 = vpop.f32.mrf.mxu0  ;;  %19949 = vmatmul.mubr.msk.bf16.vlgmr.msra.gmra.mxu0 %vm60_vm2, %v26053_v60  ;;  %17496 = vrot.lane.b32.xlu1 %v26174_v23, %s20837_s10  ;;  %v26280_v19 = vcombine.high %v17447_v24, %v17447_v24 }
 0x371   :  { %v26211_v43 = vadd.f32 %v10219_v9, %v25958_v4  ;;  %v26214_v17 = vadd.f32 %v10258_v50, %v25961_v7  ;;  %13799 = vmatpush1.bf16.msra.mxu0 %v13518_v48  ;;  %13816 = vmatprep.mubr.bf16.mxu0 %v28814_v20  ;;  %v26217_v1 = vpop.permute.xlu0 %15185  ;;  %v13524_v4 = vsel %vm208_vm1, %v29161_v10, 0  ;;  %v29172_v48 = vld [vmem:[#allocation32_spill] sm:$0xff] }
 0x372   :  { %29170 = vst [vmem:[#allocation30_spill] sm:$0xff] %v26217_v1  ;;  %v10221_v30 = vpop.f32.mrf.mxu1  ;;  %v10260_v59 = vpop.f32.mrf.mxu0  ;;  %19973 = vmatprep.subr.msk.bf16.mxu0 %vm208_vm1, %v14044_v26  ;;  %v14046_v50 = vsel %vm60_vm2, %v29172_v48, %v25741_v6 }
 0x373   :  { %v26229_v7 = vadd.f32 %v10221_v30, %v25970_v5  ;;  %v26232_v9 = vadd.f32 %v10260_v59, %v25973_v62  ;;  %v26237_v1 = vpop.permute.xlu1 %15187  ;;  %17498 = vrot.lane.b32.xlu0 %v26202_v27, %s20837_s10  ;;  %v26247_v5 = vcombine.low %v17447_v24, %v17447_v24  ;;  %v17448_v59 = vld [vmem:[%s28591_s0 + $0x20] sm:$0xff] }
 0x374   :  { %29173 = vst [vmem:[#allocation20_spill] sm:$0xff] %v26237_v1  ;;  %v10262_v10 = vpop.f32.mrf.mxu0  ;;  %v10301_v28 = vpop.f32.mrf.mxu1  ;;  %19951 = vmatmul.mubr.msk.bf16.vlgmr.msra.gmra.mxu1 %vm60_vm2, %v26053_v60  ;;  %17500 = vrot.lane.b32.xlu1 %v26208_v39, %s20837_s10 }
 0x375   :  { %v26250_v62 = vadd.f32 %v10262_v10, %v25990_v32  ;;  %v26253_v26 = vadd.f32 %v10301_v28, %v25993_v40  ;;  %20459 = vmatpush3.bf16.msra.mxu1 %v13524_v4  ;;  %20460 = vmatprep.mubr.msk.bf16.mxu1 %vm20812_vm4, %v28815_v42  ;;  %v26257_v53 = vpop.permute.xlu0 %15189  ;;  %v14045_v32 = vsel %vm60_vm2, %v29167_v33, %v29172_v48  ;;  %v29175_v10 = vld [vmem:[#allocation31_spill] sm:$0xff] }
 0x376   :  { %29174 = vst [vmem:[#allocation23_spill] sm:$0xff] %v26257_v53  ;;  %v10264_v30 = vpop.f32.mrf.mxu0  ;;  %v10303_v1 = vpop.f32.mrf.mxu1  ;;  %19975 = vmatprep.subr.msk.bf16.mxu1 %vm208_vm1, %v14046_v50  ;;  %v14048_v28 = vsel %vm60_vm2, %v29175_v10, %v25772_v14  ;;  %v17449_v50 = vld [vmem:[%s28591_s0 + $0x28] sm:$0xff]  ;;  %v14067_v38 = vsel %vm208_vm1, %v14045_v32, 0  ;;  %v26318_v32 = vcombine.high %v17448_v59, %v17448_v59 }
 0x377   :  { %v26268_v40 = vadd.f32 %v10264_v30, %v26002_v21  ;;  %v26271_v4 = vadd.f32 %v10303_v1, %v26005_v15  ;;  %v26276_v53 = vpop.permute.xlu1 %15191  ;;  %17502 = vrot.lane.b32.xlu0 %v26241_v57, %s20837_s10  ;;  %v26286_v21 = vcombine.low %v17448_v59, %v17448_v59 }
 0x378   :  { %29176 = vst [vmem:[#allocation9_spill] sm:$0xff] %v26276_v53  ;;  %v10305_v33 = vpop.f32.mrf.mxu1  ;;  %v10344_v48 = vpop.f32.mrf.mxu0  ;;  %19953 = vmatmul.mubr.msk.bf16.vlgmr.msra.gmra.mxu0 %vm60_vm2, %v26053_v60  ;;  %17504 = vrot.lane.b32.xlu1 %v26247_v5, %s20837_s10 }
 0x379   :  { %v26289_v15 = vadd.f32 %v10305_v33, %v26022_v8  ;;  %v26292_v1 = vadd.f32 %v10344_v48, %v26025_v36  ;;  %14120 = vmatpush1.bf16.msra.mxu0 %v14061_v12  ;;  %14137 = vmatprep.mubr.bf16.mxu0 %v28814_v20  ;;  %v26295_v24 = vpop.permute.xlu0 %15193  ;;  %v14047_v8 = vsel %vm60_vm2, %v25741_v6, %v29175_v10  ;;  %v29178_v33 = vld [vmem:[#allocation15_spill] sm:$0xff]  ;;  %v9889_v10 = vld [vmem:[#allocation2 + $0x70] sm:$0xff] }
 0x37a   :  { %29177 = vst [vmem:[#allocation16_spill] sm:$0xff] %v26295_v24  ;;  %v10307_v30 = vpop.f32.mrf.mxu1  ;;  %v10346_v53 = vpop.f32.mrf.mxu0  ;;  %19977 = vmatprep.subr.msk.bf16.mxu0 %vm208_vm1, %v14048_v28  ;;  %v14050_v48 = vsel %vm60_vm2, %v29178_v33, %v25803_v35  ;;  %v14073_v45 = vsel %vm208_vm1, %v14047_v8, 0  ;;  %v9904_v8 = vld [vmem:[#allocation2 + $0xe8] sm:$0xff] }
 0x37b   :  { %v26306_v36 = vadd.f32 %v10307_v30, %v26033_v44  ;;  %v26309_v12 = vadd.f32 %v10346_v53, %v26036_v0  ;;  %v26314_v24 = vpop.permute.xlu1 %15195  ;;  %17506 = vrot.lane.b32.xlu0 %v26280_v19, %s20837_s10  ;;  %v26325_v44 = vld [vmem:[%s28592_s1 + $0xc0] sm:$0xff]   ;;  %v26329_v0 = vcombine.low %v17449_v50, %v17449_v50 }
 0x37c   :  { %29179 = vst [vmem:[#allocation18_spill] sm:$0xff] %v26314_v24  ;;  %v10348_v6 = vpop.f32.mrf.mxu0  ;;  %v10387_v28 = vpop.f32.mrf.mxu1  ;;  %20461 = vmatmul.mubr.msk.bf16.vlgmr.msra.gmra.mxu1 %vm60_vm2, %v26053_v60  ;;  %17508 = vrot.lane.b32.xlu1 %v26286_v21, %s20837_s10  ;;  %v17450_v60 = vld [vmem:[%s28591_s0 + $0x30] sm:$0xff] }
 0x37d   :  { %v26332_v53 = vadd.f32 %v10348_v6, %v26058_v55  ;;  %v10408_v59 = vadd.f32 %v10387_v28, %v9889_v10  ;;  %14163 = vmatpush1.bf16.msra.mxu1 %v14067_v38  ;;  %14180 = vmatprep.mubr.bf16.mxu1 %v28814_v20  ;;  %v26335_v30 = vpop.permute.xlu0 %15197  ;;  %v14049_v38 = vsel %vm60_vm2, %v25772_v14, %v29178_v33  ;;  %v29181_v6 = vld [vmem:[#allocation13_spill] sm:$0xff]  ;;  %v17451_v33 = vld [vmem:[%s28591_s0 + $0x38] sm:$0xff] }
 0x37e   :  { %29180 = vst [vmem:[#allocation7_spill] sm:$0xff] %v26335_v30  ;;  %v10350_v24 = vpop.f32.mrf.mxu0  ;;  %v20426_v61 = vpop.f32.mrf.mxu1  ;;  %19979 = vmatprep.subr.msk.bf16.mxu1 %vm208_vm1, %v14050_v48  ;;  %v14052_v10 = vsel %vm60_vm2, %v29181_v6, %v25834_v54  ;;  %v26362_v14 = vcombine.low %v17450_v60, %v17450_v60  ;;  %v14079_v47 = vsel %vm208_vm1, %v14049_v38, 0  ;;  %v26389_v38 = vcombine.high %v17450_v60, %v17450_v60 }
 0x37f   :  { %10438 = vst.msk [vmem:[#allocation2 + $0x70] sm:$0xff] %vm60_vm2, %v10408_v59  ;;  %v26344_v55 = vadd.f32 %v10350_v24, %v26067_v16  ;;  %v26352_v28 = vpop.permute.xlu1 %15199  ;;  %17510 = vrot.lane.b32.xlu0 %v26318_v32, %s20837_s10  ;;  %v26356_v61 = vcombine.high %v17449_v50, %v17449_v50 }
 0x380   :  { %29182 = vst [vmem:[#allocation32_spill] sm:$0xff] %v26352_v28  ;;  %v10390_v48 = vpop.f32.mrf.mxu1  ;;  %v10665_v59 = vpop.f32.mrf.mxu0  ;;  %19974 = vmatmul.mubr.msk.bf16.vlgmr.msra.gmra.mxu0 %vm60_vm2, %v26325_v44  ;;  %17512 = vrot.lane.b32.xlu1 %v26329_v0, %s20837_s10  ;;  %29183 = vst [vmem:[#allocation31_spill] sm:$0xff] %v26362_v14 }
 0x381   :  { %v10423_v16 = vadd.f32 %v10390_v48, %v9904_v8  ;;  %v26365_v24 = vadd.f32 %v10665_v59, %v26084_v29  ;;  %14206 = vmatpush1.bf16.msra.mxu0 %v14073_v45  ;;  %14223 = vmatprep.mubr.bf16.mxu0 %v28814_v20  ;;  %v26368_v50 = vpop.permute.xlu0 %15201  ;;  %v14051_v45 = vsel %vm60_vm2, %v25803_v35, %v29181_v6  ;;  %v29185_v8 = vld [vmem:[#allocation34_spill] sm:$0xff]  ;;  %v29186_v48 = vld [vmem:[#allocation33_spill] sm:$0xff] }
 0x382   :  { %29184 = vst [vmem:[#allocation15_spill] sm:$0xff] %v26368_v50  ;;  %v20427_v28 = vpop.f32.mrf.mxu1  ;;  %v10667_v30 = vpop.f32.mrf.mxu0  ;;  %19981 = vmatprep.subr.msk.bf16.mxu0 %vm208_vm1, %v14052_v10  ;;  %v14054_v59 = vsel %vm60_vm2, %v29186_v48, %v29185_v8  ;;  %v26395_v35 = vcombine.low %v17451_v33, %v17451_v33 }
 0x383   :  { %10453 = vst.msk [vmem:[#allocation2 + $0xe8] sm:$0xff] %vm60_vm2, %v10423_v16  ;;  %v26377_v29 = vadd.f32 %v10667_v30, %v26093_v31  ;;  %v26385_v50 = vpop.permute.xlu1 %15203  ;;  %17514 = vrot.lane.b32.xlu0 %v26356_v61, %s20837_s10 }
 0x384   :  { %29187 = vst [vmem:[#allocation13_spill] sm:$0xff] %v26385_v50  ;;  %v10669_v10 = vpop.f32.mrf.mxu0  ;;  %v10708_v28 = vpop.f32.mrf.mxu1  ;;  %19976 = vmatmul.mubr.msk.bf16.vlgmr.msra.gmra.mxu1 %vm60_vm2, %v26325_v44  ;;  %17516 = vrot.lane.b32.xlu1 %v26362_v14, %s20837_s10  ;;  %29188 = vst [vmem:[#allocation34_spill] sm:$0xff] %v26395_v35  ;;  %v14085_v50 = vsel %vm208_vm1, %v14051_v45, 0  ;;  %v14053_v14 = vsel %vm60_vm2, %v25834_v54, %v29186_v48  ;;  %v26424_v45 = vcombine.high %v17451_v33, %v17451_v33 }
 0x385   :  { %v26398_v31 = vadd.f32 %v10669_v10, %v26110_v3  ;;  %v26401_v30 = vadd.f32 %v10708_v28, %v26113_v52  ;;  %14249 = vmatpush1.bf16.msra.mxu1 %v14079_v47  ;;  %14266 = vmatprep.mubr.bf16.mxu1 %v28814_v20  ;;  %v26404_v60 = vpop.permute.xlu0 %15205  ;;  %v29190_v47 = vld [vmem:[#allocation24_spill] sm:$0xff]  ;;  %v29191_v10 = vld [vmem:[#allocation29_spill] sm:$0xff] }
 0x386   :  { %29189 = vst [vmem:[#allocation33_spill] sm:$0xff] %v26404_v60  ;;  %v10671_v6 = vpop.f32.mrf.mxu0  ;;  %v10710_v16 = vpop.f32.mrf.mxu1  ;;  %19983 = vmatprep.subr.msk.bf16.mxu1 %vm208_vm1, %v14054_v59  ;;  %v14056_v28 = vsel %vm60_vm2, %v29191_v10, %v29190_v47 }
 0x387   :  { %v26412_v3 = vadd.f32 %v10671_v6, %v26121_v63  ;;  %v26415_v52 = vadd.f32 %v10710_v16, %v26124_v41  ;;  %v26420_v60 = vpop.permute.xlu1 %15207  ;;  %17518 = vrot.lane.b32.xlu0 %v26389_v38, %s20837_s10  ;;  %v20773_v63 = vld [vmem:[%s28591_s0 + $0x40] ss:$0 sps:$4 sm:$0xff]  }
 0x388   :  { %29192 = vst [vmem:[#allocation24_spill] sm:$0xff] %v26420_v60  ;;  %v10712_v54 = vpop.f32.mrf.mxu1  ;;  %v10751_v48 = vpop.f32.mrf.mxu0  ;;  %19978 = vmatmul.mubr.msk.bf16.vlgmr.msra.gmra.mxu0 %vm60_vm2, %v26325_v44  ;;  %17520 = vrot.lane.b32.xlu1 %v26395_v35, %s20837_s10  ;;  %v14091_v60 = vsel %vm208_vm1, %v14053_v14, 0 }
 0x389   :  { %v26434_v41 = vadd.f32 %v10712_v54, %v26141_v46  ;;  %v26437_v59 = vadd.f32 %v10751_v48, %v26144_v58  ;;  %14292 = vmatpush1.bf16.msra.mxu0 %v14085_v50  ;;  %14309 = vmatprep.mubr.bf16.mxu0 %v28814_v20  ;;  %v26440_v33 = vpop.permute.xlu0 %15759  ;;  %v14055_v58 = vsel %vm60_vm2, %v29185_v8, %v29191_v10 }
 0x38a   :  { %29193 = vst [vmem:[#allocation29_spill] sm:$0xff] %v26440_v33  ;;  %v10714_v6 = vpop.f32.mrf.mxu1  ;;  %v10753_v16 = vpop.f32.mrf.mxu0  ;;  %19985 = vmatprep.subr.msk.bf16.mxu0 %vm208_vm1, %v14056_v28  ;;  %v14097_v28 = vsel %vm208_vm1, %v14055_v58, 0 }
 0x38b   :  { %v26445_v35 = vadd.f32 %v10714_v6, %v26155_v11  ;;  %v26448_v46 = vadd.f32 %v10753_v16, %v26158_v18  ;;  %v26453_v50 = vpop.permute.xlu1 %15761  ;;  %17522 = vrot.lane.b32.xlu0 %v26424_v45, %s20837_s10 }
 0x38c   :  { %29194 = vst [vmem:[#allocation35_spill] sm:$0xff] %v26453_v50  ;;  %v10755_v54 = vpop.f32.mrf.mxu0  ;;  %v10794_v48 = vpop.f32.mrf.mxu1  ;;  %19980 = vmatmul.mubr.msk.bf16.vlgmr.msra.gmra.mxu1 %vm60_vm2, %v26325_v44  ;;  %17524 = vrot.lane.b32.xlu1 %v20773_v63, %s20837_s10  ;;  %v29195_v63 = vld [vmem:[#allocation19_spill] sm:$0xff] }
 0x38d   :  { %v26461_v11 = vadd.f32 %v10755_v54, %v26177_v49  ;;  %v26464_v18 = vadd.f32 %v10794_v48, %v26180_v22  ;;  %14335 = vmatpush1.bf16.msra.mxu1 %v14091_v60  ;;  %14352 = vmatprep.mubr.bf16.mxu1 %v28814_v20  ;;  %v26467_v14 = vpop.permute.xlu0 %15763  ;;  %v29196_v22 = vld [vmem:[#allocation14_spill] sm:$0xff] }
 0x38e   :  { %v10757_v8 = vpop.f32.mrf.mxu0  ;;  %v10796_v10 = vpop.f32.mrf.mxu1  ;;  %20464 = vmatprep.subr.bf16.mxu1 %v28815_v42  ;;  %v14627_v60 = vsel %vm14625_vm13, %v29196_v22, %v29195_v63 }
 0x38f   :  { %v26472_v6 = vadd.f32 %v10757_v8, %v26191_v56  ;;  %v26475_v49 = vadd.f32 %v10796_v10, %v26194_v34  ;;  %v26480_v16 = vpop.permute.xlu1 %15765  ;;  %18075 = vrot.lane.b32.xlu0 %v26174_v23, %s20838_s25 }
 0x390   :  { %29197 = vst [vmem:[#allocation19_spill] sm:$0xff] %v26480_v16  ;;  %v10798_v54 = vpop.f32.mrf.mxu1  ;;  %v10837_v58 = vpop.f32.mrf.mxu0  ;;  %19982 = vmatmul.mubr.msk.bf16.vlgmr.msra.gmra.mxu0 %vm60_vm2, %v26325_v44  ;;  %18077 = vrot.lane.b32.xlu1 %v26202_v27, %s20838_s25  ;;  %v14103_v16 = vsel %vm208_vm1, %v29190_v47, 0 }
 0x391   :  { %v26489_v56 = vadd.f32 %v10798_v54, %v26211_v43  ;;  %v26492_v34 = vadd.f32 %v10837_v58, %v26214_v17  ;;  %14378 = vmatpush1.bf16.msra.mxu0 %v14097_v28  ;;  %14395 = vmatprep.mubr.bf16.mxu0 %v28814_v20  ;;  %v26495_v48 = vpop.permute.xlu0 %15767  ;;  %v29199_v17 = vld [vmem:[#allocation22_spill] sm:$0xff]  ;;  %v29200_v54 = vld [vmem:[#allocation5_spill] sm:$0xff]  ;;  %v29201_v58 = vld [vmem:[#allocation8_spill] sm:$0xff] }
 0x392   :  { %29198 = vst [vmem:[#allocation14_spill] sm:$0xff] %v26495_v48  ;;  %v10800_v8 = vpop.f32.mrf.mxu1  ;;  %v10839_v10 = vpop.f32.mrf.mxu0  ;;  %20007 = vmatprep.subr.msk.bf16.mxu0 %vm208_vm1, %v14627_v60  ;;  %v14626_v28 = vsel %vm14625_vm13, %v29199_v17, %v29196_v22  ;;  %v14629_v48 = vsel %vm14625_vm13, %v29201_v58, %v29200_v54 }
 0x393   :  { %v26501_v33 = vadd.f32 %v10800_v8, %v26229_v7  ;;  %v26504_v43 = vadd.f32 %v10839_v10, %v26232_v9  ;;  %v26512_v50 = vpop.permute.xlu1 %15769  ;;  %18079 = vrot.lane.b32.xlu0 %v26208_v39, %s20838_s25  ;;  %v14645_v17 = vsel %vm208_vm1, %v14626_v28, 0 }
 0x394   :  { %29202 = vst [vmem:[#allocation22_spill] sm:$0xff] %v26512_v50  ;;  %v10841_v47 = vpop.f32.mrf.mxu0  ;;  %v10880_v60 = vpop.f32.mrf.mxu1  ;;  %19984 = vmatmul.mubr.msk.bf16.vlgmr.msra.gmra.mxu1 %vm60_vm2, %v26325_v44  ;;  %18081 = vrot.lane.b32.xlu1 %v26241_v57, %s20838_s25 }
 0x395   :  { %v26521_v7 = vadd.f32 %v10841_v47, %v26250_v62  ;;  %v26524_v9 = vadd.f32 %v10880_v60, %v26253_v26  ;;  %20465 = vmatpush3.bf16.msra.mxu1 %v14103_v16  ;;  %20466 = vmatprep.mubr.msk.bf16.mxu1 %vm20812_vm4, %v28815_v42  ;;  %v26528_v22 = vpop.permute.xlu0 %15771  ;;  %v14628_v26 = vsel %vm14625_vm13, %v29195_v63, %v29201_v58 }
 0x396   :  { %v10843_v8 = vpop.f32.mrf.mxu0  ;;  %v10882_v10 = vpop.f32.mrf.mxu1  ;;  %20009 = vmatprep.subr.msk.bf16.mxu1 %vm208_vm1, %v14629_v48  ;;  %v14631_v16 = vsel %vm14625_vm13, %v25981_v13, %v25997_v51 }
 0x397   :  { %v26533_v50 = vadd.f32 %v10843_v8, %v26268_v40  ;;  %v26536_v62 = vadd.f32 %v10882_v10, %v26271_v4  ;;  %v26544_v47 = vpop.permute.xlu1 %15773  ;;  %18083 = vrot.lane.b32.xlu0 %v26247_v5, %s20838_s25  ;;  %v14651_v8 = vsel %vm208_vm1, %v14628_v26, 0 }
 0x398   :  { %29203 = vst [vmem:[#allocation5_spill] sm:$0xff] %v26544_v47  ;;  %v10884_v48 = vpop.f32.mrf.mxu1  ;;  %v10923_v28 = vpop.f32.mrf.mxu0  ;;  %19986 = vmatmul.mubr.msk.bf16.vlgmr.msra.gmra.mxu0 %vm60_vm2, %v26325_v44  ;;  %18085 = vrot.lane.b32.xlu1 %v26280_v19, %s20838_s25 }
 0x399   :  { %v26553_v40 = vadd.f32 %v10884_v48, %v26289_v15  ;;  %v26556_v4 = vadd.f32 %v10923_v28, %v26292_v1  ;;  %14704 = vmatpush1.bf16.msra.mxu0 %v14645_v17  ;;  %14721 = vmatprep.mubr.bf16.mxu0 %v28814_v20  ;;  %v26559_v63 = vpop.permute.xlu0 %15775  ;;  %v14630_v1 = vsel %vm14625_vm13, %v29200_v54, %v25981_v13 }
 0x39a   :  { %v10886_v58 = vpop.f32.mrf.mxu1  ;;  %v10925_v60 = vpop.f32.mrf.mxu0  ;;  %20011 = vmatprep.subr.msk.bf16.mxu0 %vm208_vm1, %v14631_v16  ;;  %v14633_v17 = vsel %vm14625_vm13, %v26013_v25, %v26028_v2  ;;  %v10468_v16 = vld [vmem:[#allocation2 + $0x70] sm:$0xff] }
 0x39b   :  { %v26564_v10 = vadd.f32 %v10886_v58, %v26306_v36  ;;  %v26567_v15 = vadd.f32 %v10925_v60, %v26309_v12  ;;  %v26575_v48 = vpop.permute.xlu1 %15777  ;;  %18087 = vrot.lane.b32.xlu0 %v26286_v21, %s20838_s25  ;;  %v26584_v12 = vld [vmem:[%s28592_s1 + $0xc8] sm:$0xff]   ;;  %v14657_v60 = vsel %vm208_vm1, %v14630_v1, 0 }
 0x39c   :  { %29204 = vst [vmem:[#allocation8_spill] sm:$0xff] %v26575_v48  ;;  %v10927_v26 = vpop.f32.mrf.mxu0  ;;  %v10966_v36 = vpop.f32.mrf.mxu1  ;;  %20467 = vmatmul.mubr.msk.bf16.vlgmr.msra.gmra.mxu1 %vm60_vm2, %v26325_v44  ;;  %18089 = vrot.lane.b32.xlu1 %v26318_v32, %s20838_s25  ;;  %v10483_v1 = vld [vmem:[#allocation2 + $0xe8] sm:$0xff] }
 0x39d   :  { %v26589_v13 = vadd.f32 %v10927_v26, %v26332_v53  ;;  %v10987_v54 = vadd.f32 %v10966_v36, %v10468_v16  ;;  %14747 = vmatpush1.bf16.msra.mxu1 %v14651_v8  ;;  %14764 = vmatprep.mubr.bf16.mxu1 %v28814_v20  ;;  %v14632_v53 = vsel %vm14625_vm13, %v25997_v51, %v26013_v25  ;;  %v29205_v26 = vld [vmem:[#allocation25_spill] sm:$0xff]  ;;  %v26604_v16 = vpop.permute.xlu0 %15779 }
 0x39e   :  { %v10929_v28 = vpop.f32.mrf.mxu0  ;;  %v20432_v58 = vpop.f32.mrf.mxu1  ;;  %20013 = vmatprep.subr.msk.bf16.mxu1 %vm208_vm1, %v14633_v17  ;;  %v14635_v8 = vsel %vm14625_vm13, %v29205_v26, %v26061_v37  ;;  %29206 = vst [vmem:[#allocation25_spill] sm:$0xff] %v26604_v16 }
 0x39f   :  { %11017 = vst.msk [vmem:[#allocation2 + $0x70] sm:$0xff] %vm60_vm2, %v10987_v54  ;;  %v26596_v44 = vadd.f32 %v10929_v28, %v26344_v55  ;;  %v26606_v36 = vpop.permute.xlu1 %15781  ;;  %18091 = vrot.lane.b32.xlu0 %v26329_v0, %s20838_s25  ;;  %v14663_v58 = vsel %vm208_vm1, %v14632_v53, 0 }
 0x3a0   :  { %29207 = vst [vmem:[#allocation36_spill] sm:$0xff] %v26606_v36  ;;  %v10969_v17 = vpop.f32.mrf.mxu1  ;;  %v11244_v54 = vpop.f32.mrf.mxu0  ;;  %20008 = vmatmul.mubr.msk.bf16.vlgmr.msra.gmra.mxu0 %vm60_vm2, %v26584_v12  ;;  %18093 = vrot.lane.b32.xlu1 %v26356_v61, %s20838_s25 }
 0x3a1   :  { %v11002_v51 = vadd.f32 %v10969_v17, %v10483_v1  ;;  %v26615_v25 = vadd.f32 %v11244_v54, %v26365_v24  ;;  %14790 = vmatpush1.bf16.msra.mxu0 %v14657_v60  ;;  %14807 = vmatprep.mubr.bf16.mxu0 %v28814_v20  ;;  %v14634_v1 = vsel %vm14625_vm13, %v26028_v2, %v29205_v26  ;;  %v29208_v24 = vld [vmem:[#allocation17_spill] sm:$0xff]  ;;  %v29209_v17 = vld [vmem:[#allocation11_spill] sm:$0xff]  ;;  %v26645_v26 = vpop.permute.xlu0 %15783 }
 0x3a2   :  { %v20433_v55 = vpop.f32.mrf.mxu1  ;;  %v11246_v28 = vpop.f32.mrf.mxu0  ;;  %20015 = vmatprep.subr.msk.bf16.mxu0 %vm208_vm1, %v14635_v8  ;;  %v14637_v60 = vsel %vm14625_vm13, %v29209_v17, %v29208_v24  ;;  %29212 = vst [vmem:[#allocation11_spill] sm:$0xff] %v26645_v26  ;;  %v29215_v26 = vld [vmem:[#allocation34_spill] sm:$0xff] }
 0x3a3   :  { %11032 = vst.msk [vmem:[#allocation2 + $0xe8] sm:$0xff] %vm60_vm2, %v11002_v51  ;;  %v26622_v36 = vadd.f32 %v11246_v28, %v26377_v29  ;;  %v26630_v54 = vpop.permute.xlu1 %15785  ;;  %v29211_v55 = vld [vmem:[#allocation31_spill] sm:$0xff] }
 0x3a4   :  { %29210 = vst [vmem:[#allocation17_spill] sm:$0xff] %v26630_v54  ;;  %18095 = vrot.lane.b32.xlu0 %v29211_v55, %s20838_s25  ;;  %v11248_v53 = vpop.f32.mrf.mxu0  ;;  %v11287_v8 = vpop.f32.mrf.mxu1  ;;  %20010 = vmatmul.mubr.msk.bf16.vlgmr.msra.gmra.mxu1 %vm60_vm2, %v26584_v12  ;;  %v14669_v54 = vsel %vm208_vm1, %v14634_v1, 0  ;;  %v20776_v1 = vld [vmem:[%s28591_s0 + $0x40] ss:$0 sps:$4 sm:$0xff]  }
 0x3a5   :  { %18097 = vrot.lane.b32.xlu1 %v26389_v38, %s20838_s25  ;;  %v26639_v29 = vadd.f32 %v11248_v53, %v26398_v31  ;;  %v26642_v2 = vadd.f32 %v11287_v8, %v26401_v30  ;;  %14833 = vmatpush1.bf16.msra.mxu1 %v14663_v58  ;;  %v14636_v30 = vsel %vm14625_vm13, %v26061_v37, %v29209_v17  ;;  %v29213_v58 = vld [vmem:[#allocation12_spill] sm:$0xff]  ;;  %v29214_v53 = vld [vmem:[#allocation6_spill] sm:$0xff] }
 0x3a6   :  { %14850 = vmatprep.mubr.bf16.mxu1 %v28814_v20  ;;  %v11250_v51 = vpop.f32.mrf.mxu0  ;;  %v11289_v28 = vpop.f32.mrf.mxu1  ;;  %20017 = vmatprep.subr.msk.bf16.mxu1 %vm208_vm1, %v14637_v60  ;;  %v14639_v8 = vsel %vm14625_vm13, %v29214_v53, %v29213_v58  ;;  %v14675_v16 = vsel %vm208_vm1, %v14636_v30, 0 }
 0x3a7   :  { %v26650_v48 = vadd.f32 %v11250_v51, %v26412_v3  ;;  %v26653_v31 = vadd.f32 %v11289_v28, %v26415_v52  ;;  %v26677_v17 = vpop.permute.xlu1 %16338 }
 0x3a8   :  { %18099 = vrot.lane.b32.xlu0 %v29215_v26, %s20838_s25  ;;  %v11291_v3 = vpop.f32.mrf.mxu1  ;;  %v11330_v60 = vpop.f32.mrf.mxu0  ;;  %20012 = vmatmul.mubr.msk.bf16.vlgmr.msra.gmra.mxu0 %vm60_vm2, %v26584_v12 }
 0x3a9   :  { %18101 = vrot.lane.b32.xlu1 %v26424_v45, %s20838_s25  ;;  %v26671_v37 = vadd.f32 %v11291_v3, %v26434_v41  ;;  %v26674_v52 = vadd.f32 %v11330_v60, %v26437_v59  ;;  %14876 = vmatpush1.bf16.msra.mxu0 %v14669_v54  ;;  %v14638_v59 = vsel %vm14625_vm13, %v29208_v24, %v29214_v53  ;;  %v26690_v54 = vpop.permute.xlu0 %15787 }
 0x3aa   :  { %14893 = vmatprep.mubr.bf16.mxu0 %v28814_v20  ;;  %v11293_v51 = vpop.f32.mrf.mxu1  ;;  %v11332_v28 = vpop.f32.mrf.mxu0  ;;  %20019 = vmatprep.subr.msk.bf16.mxu0 %vm208_vm1, %v14639_v8  ;;  %v14681_v53 = vsel %vm208_vm1, %v14638_v59, 0 }
 0x3ab   :  { %v26682_v47 = vadd.f32 %v11293_v51, %v26445_v35  ;;  %v26685_v41 = vadd.f32 %v11332_v28, %v26448_v46  ;;  %v26718_v28 = vpop.permute.xlu1 %16342 }
 0x3ac   :  { %18103 = vrot.lane.b32.xlu0 %v20776_v1, %s20838_s25  ;;  %v11334_v3 = vpop.f32.mrf.mxu0  ;;  %v11373_v60 = vpop.f32.mrf.mxu1  ;;  %20014 = vmatmul.mubr.msk.bf16.vlgmr.msra.gmra.mxu1 %vm60_vm2, %v26584_v12  ;;  %v29217_v1 = vld [vmem:[#allocation21_spill] sm:$0xff] }
 0x3ad   :  { %18654 = vrot.lane.b32.xlu1 %v26174_v23, %s20839_s30  ;;  %v26698_v35 = vadd.f32 %v11334_v3, %v26461_v11  ;;  %v26701_v46 = vadd.f32 %v11373_v60, %v26464_v18  ;;  %14919 = vmatpush1.bf16.msra.mxu1 %v14675_v16  ;;  %v29216_v11 = vld [vmem:[#allocation26_spill] sm:$0xff]  ;;  %v29218_v16 = vld [vmem:[#allocation27_spill] sm:$0xff]  ;;  %v26720_v3 = vpop.permute.xlu0 %16340 }
 0x3ae   :  { %14936 = vmatprep.mubr.bf16.mxu1 %v28814_v20  ;;  %v11336_v24 = vpop.f32.mrf.mxu0  ;;  %v11375_v30 = vpop.f32.mrf.mxu1  ;;  %20470 = vmatprep.subr.bf16.mxu1 %v28815_v42  ;;  %v14640_v18 = vsel %vm14625_vm13, %v29213_v58, %v29216_v11  ;;  %v15211_v51 = vsel %vm15209_vm14, %v29218_v16, %v29217_v1  ;;  %v29220_v11 = vld [vmem:[#allocation30_spill] sm:$0xff] }
 0x3af   :  { %v26707_v8 = vadd.f32 %v11336_v24, %v26472_v6  ;;  %v26710_v23 = vadd.f32 %v11375_v30, %v26475_v49  ;;  %v14687_v60 = vsel %vm208_vm1, %v14640_v18, 0 }
 0x3b0   :  { %18656 = vrot.lane.b32.xlu0 %v26202_v27, %s20839_s30  ;;  %v11377_v6 = vpop.f32.mrf.mxu1  ;;  %v11416_v59 = vpop.f32.mrf.mxu0  ;;  %20016 = vmatmul.mubr.msk.bf16.vlgmr.msra.gmra.mxu0 %vm60_vm2, %v26584_v12 }
 0x3b1   :  { %18658 = vrot.lane.b32.xlu1 %v26208_v39, %s20839_s30  ;;  %v26729_v49 = vadd.f32 %v11377_v6, %v26489_v56  ;;  %v26732_v58 = vadd.f32 %v11416_v59, %v26492_v34  ;;  %14962 = vmatpush1.bf16.msra.mxu0 %v14681_v53  ;;  %v29219_v56 = vld [vmem:[#allocation28_spill] sm:$0xff]  ;;  %v29221_v53 = vld [vmem:[#allocation10_spill] sm:$0xff] }
 0x3b2   :  { %14979 = vmatprep.mubr.bf16.mxu0 %v28814_v20  ;;  %v11379_v27 = vpop.f32.mrf.mxu1  ;;  %v11418_v24 = vpop.f32.mrf.mxu0  ;;  %20041 = vmatprep.subr.msk.bf16.mxu0 %vm208_vm1, %v15211_v51  ;;  %v15210_v34 = vsel %vm15209_vm14, %v29219_v56, %v29218_v16  ;;  %v15213_v6 = vsel %vm15209_vm14, %v29221_v53, %v29220_v11  ;;  %v29223_v56 = vld [vmem:[#allocation20_spill] sm:$0xff] }
 0x3b3   :  { %v26738_v30 = vadd.f32 %v11379_v27, %v26501_v33  ;;  %v26741_v39 = vadd.f32 %v11418_v24, %v26504_v43  ;;  %v26763_v16 = vpop.permute.xlu1 %16346  ;;  %v15229_v24 = vsel %vm208_vm1, %v15210_v34, 0 }
 0x3b4   :  { %18660 = vrot.lane.b32.xlu0 %v26241_v57, %s20839_s30  ;;  %v11420_v18 = vpop.f32.mrf.mxu0  ;;  %v11459_v59 = vpop.f32.mrf.mxu1  ;;  %20018 = vmatmul.mubr.msk.bf16.vlgmr.msra.gmra.mxu1 %vm60_vm2, %v26584_v12 }
 0x3b5   :  { %18662 = vrot.lane.b32.xlu1 %v26247_v5, %s20839_s30  ;;  %v26756_v33 = vadd.f32 %v11420_v18, %v26521_v7  ;;  %v26759_v43 = vadd.f32 %v11459_v59, %v26524_v9  ;;  %20471 = vmatpush3.bf16.msra.mxu1 %v14687_v60  ;;  %v26765_v57 = vpop.permute.xlu0 %16344  ;;  %v15212_v9 = vsel %vm15209_vm14, %v29217_v1, %v29221_v53  ;;  %v29222_v60 = vld [vmem:[#allocation23_spill] sm:$0xff] }
 0x3b6   :  { %20472 = vmatprep.mubr.msk.bf16.mxu1 %vm20812_vm4, %v28815_v42  ;;  %v11422_v51 = vpop.f32.mrf.mxu0  ;;  %v11461_v27 = vpop.f32.mrf.mxu1  ;;  %20043 = vmatprep.subr.msk.bf16.mxu1 %vm208_vm1, %v15213_v6  ;;  %v15215_v18 = vsel %vm15209_vm14, %v29223_v56, %v29222_v60 }
 0x3b7   :  { %v26770_v5 = vadd.f32 %v11422_v51, %v26533_v50  ;;  %v26773_v7 = vadd.f32 %v11461_v27, %v26536_v62  ;;  %v29225_v51 = vld [vmem:[#allocation9_spill] sm:$0xff] }
 0x3b8   :  { %18664 = vrot.lane.b32.xlu0 %v26280_v19, %s20839_s30  ;;  %v11463_v34 = vpop.f32.mrf.mxu1  ;;  %v11502_v59 = vpop.f32.mrf.mxu0  ;;  %20020 = vmatmul.mubr.msk.bf16.vlgmr.msra.gmra.mxu0 %vm60_vm2, %v26584_v12  ;;  %v15235_v19 = vsel %vm208_vm1, %v15212_v9, 0  ;;  %v11047_v9 = vld [vmem:[#allocation2 + $0x70] sm:$0xff] }
 0x3b9   :  { %18666 = vrot.lane.b32.xlu1 %v26286_v21, %s20839_s30  ;;  %v26788_v50 = vadd.f32 %v11463_v34, %v26553_v40  ;;  %v26791_v62 = vadd.f32 %v11502_v59, %v26556_v4  ;;  %15288 = vmatpush1.bf16.msra.mxu0 %v15229_v24  ;;  %v15214_v40 = vsel %vm15209_vm14, %v29220_v11, %v29223_v56  ;;  %v29224_v4 = vld [vmem:[#allocation16_spill] sm:$0xff]  ;;  %v26808_v24 = vpop.permute.xlu1 %16350  ;;  %v26810_v34 = vpop.permute.xlu0 %16348 }
 0x3ba   :  { %15305 = vmatprep.mubr.bf16.mxu0 %v28814_v20  ;;  %v11465_v1 = vpop.f32.mrf.mxu1  ;;  %v11504_v53 = vpop.f32.mrf.mxu0  ;;  %20045 = vmatprep.subr.msk.bf16.mxu0 %vm208_vm1, %v15215_v18  ;;  %v15217_v27 = vsel %vm15209_vm14, %v29225_v51, %v29224_v4 }
 0x3bb   :  { %v26797_v6 = vadd.f32 %v11465_v1, %v26564_v10  ;;  %v26800_v21 = vadd.f32 %v11504_v53, %v26567_v15  ;;  %v26819_v15 = vld [vmem:[%s28592_s1 + $0xd0] sm:$0xff]   ;;  %v15241_v1 = vsel %vm208_vm1, %v15214_v40, 0  ;;  %v29227_v53 = vld [vmem:[#allocation18_spill] sm:$0xff] }
 0x3bc   :  { %18668 = vrot.lane.b32.xlu0 %v26318_v32, %s20839_s30  ;;  %v11506_v10 = vpop.f32.mrf.mxu0  ;;  %v11545_v18 = vpop.f32.mrf.mxu1  ;;  %20473 = vmatmul.mubr.msk.bf16.vlgmr.msra.gmra.mxu1 %vm60_vm2, %v26584_v12 }
 0x3bd   :  { %18670 = vrot.lane.b32.xlu1 %v26329_v0, %s20839_s30  ;;  %v26824_v11 = vadd.f32 %v11506_v10, %v26589_v13  ;;  %v11566_v56 = vadd.f32 %v11545_v18, %v11047_v9  ;;  %15331 = vmatpush1.bf16.msra.mxu1 %v15235_v19  ;;  %v15216_v0 = vsel %vm15209_vm14, %v29222_v60, %v29225_v51  ;;  %v29226_v13 = vld [vmem:[#allocation7_spill] sm:$0xff]  ;;  %v11062_v10 = vld [vmem:[#allocation2 + $0xe8] sm:$0xff]  ;;  %v26849_v60 = vpop.permute.xlu1 %16354  ;;  %v26851_v51 = vpop.permute.xlu0 %16352 }
 0x3be   :  { %15348 = vmatprep.mubr.bf16.mxu1 %v28814_v20  ;;  %v11508_v32 = vpop.f32.mrf.mxu0  ;;  %v20438_v59 = vpop.f32.mrf.mxu1  ;;  %20047 = vmatprep.subr.msk.bf16.mxu1 %vm208_vm1, %v15217_v27  ;;  %v15219_v19 = vsel %vm15209_vm14, %v29227_v53, %v29226_v13 }
 0x3bf   :  { %11596 = vst.msk [vmem:[#allocation2 + $0x70] sm:$0xff] %vm60_vm2, %v11566_v56  ;;  %v26831_v12 = vadd.f32 %v11508_v32, %v26596_v44  ;;  %v15247_v56 = vsel %vm208_vm1, %v15216_v0, 0  ;;  %v29228_v32 = vld [vmem:[#allocation15_spill] sm:$0xff]  ;;  %v29229_v59 = vld [vmem:[#allocation32_spill] sm:$0xff] }
 0x3c0   :  { %18672 = vrot.lane.b32.xlu0 %v26356_v61, %s20839_s30  ;;  %v11548_v40 = vpop.f32.mrf.mxu1  ;;  %v11823_v9 = vpop.f32.mrf.mxu0  ;;  %20042 = vmatmul.mubr.msk.bf16.vlgmr.msra.gmra.mxu0 %vm60_vm2, %v26819_v15 }
 0x3c1   :  { %18674 = vrot.lane.b32.xlu1 %v29211_v55, %s20839_s30  ;;  %v11581_v44 = vadd.f32 %v11548_v40, %v11062_v10  ;;  %v26846_v27 = vadd.f32 %v11823_v9, %v26615_v25  ;;  %15374 = vmatpush1.bf16.msra.mxu0 %v15241_v1  ;;  %v15218_v25 = vsel %vm15209_vm14, %v29224_v4, %v29227_v53 }
 0x3c2   :  { %15391 = vmatprep.mubr.bf16.mxu0 %v28814_v20  ;;  %v20439_v61 = vpop.f32.mrf.mxu1  ;;  %v11825_v18 = vpop.f32.mrf.mxu0  ;;  %20049 = vmatprep.subr.msk.bf16.mxu0 %vm208_vm1, %v15219_v19  ;;  %v15221_v1 = vsel %vm15209_vm14, %v29229_v59, %v29228_v32 }
 0x3c3   :  { %11611 = vst.msk [vmem:[#allocation2 + $0xe8] sm:$0xff] %vm60_vm2, %v11581_v44  ;;  %v26857_v55 = vadd.f32 %v11825_v18, %v26622_v36  ;;  %v20778_v36 = vld [vmem:[%s28591_s0 + $0x40] ss:$0 sps:$4 sm:$0xff]   ;;  %v29231_v44 = vld [vmem:[#allocation13_spill] sm:$0xff]  ;;  %v26895_v18 = vpop.permute.xlu1 %16358 }
 0x3c4   :  { %18676 = vrot.lane.b32.xlu0 %v26389_v38, %s20839_s30  ;;  %v11827_v10 = vpop.f32.mrf.mxu0  ;;  %v11866_v0 = vpop.f32.mrf.mxu1  ;;  %20044 = vmatmul.mubr.msk.bf16.vlgmr.msra.gmra.mxu1 %vm60_vm2, %v26819_v15  ;;  %v15253_v38 = vsel %vm208_vm1, %v15218_v25, 0 }
 0x3c5   :  { %18678 = vrot.lane.b32.xlu1 %v29215_v26, %s20839_s30  ;;  %v26875_v4 = vadd.f32 %v11827_v10, %v26639_v29  ;;  %v26878_v53 = vadd.f32 %v11866_v0, %v26642_v2  ;;  %15417 = vmatpush1.bf16.msra.mxu1 %v15247_v56  ;;  %v15220_v29 = vsel %vm15209_vm14, %v29226_v13, %v29229_v59  ;;  %v29230_v2 = vld [vmem:[#allocation33_spill] sm:$0xff]  ;;  %v26897_v56 = vpop.permute.xlu0 %16356 }
 0x3c6   :  { %15434 = vmatprep.mubr.bf16.mxu1 %v28814_v20  ;;  %v11829_v19 = vpop.f32.mrf.mxu0  ;;  %v11868_v40 = vpop.f32.mrf.mxu1  ;;  %20051 = vmatprep.subr.msk.bf16.mxu1 %vm208_vm1, %v15221_v1  ;;  %v15223_v61 = vsel %vm15209_vm14, %v29231_v44, %v29230_v2  ;;  %v15259_v59 = vsel %vm208_vm1, %v15220_v29, 0 }
 0x3c7   :  { %v26884_v26 = vadd.f32 %v11829_v19, %v26650_v48  ;;  %v26887_v9 = vadd.f32 %v11868_v40, %v26653_v31 }
 0x3c8   :  { %18680 = vrot.lane.b32.xlu0 %v26424_v45, %s20839_s30  ;;  %v11870_v48 = vpop.f32.mrf.mxu1  ;;  %v11909_v25 = vpop.f32.mrf.mxu0  ;;  %20046 = vmatmul.mubr.msk.bf16.vlgmr.msra.gmra.mxu0 %vm60_vm2, %v26819_v15 }
 0x3c9   :  { %18682 = vrot.lane.b32.xlu1 %v20778_v36, %s20839_s30  ;;  %v26905_v31 = vadd.f32 %v11870_v48, %v26671_v37  ;;  %v26908_v13 = vadd.f32 %v11909_v25, %v26674_v52  ;;  %15460 = vmatpush1.bf16.msra.mxu0 %v15253_v38  ;;  %v15222_v37 = vsel %vm15209_vm14, %v29228_v32, %v29231_v44  ;;  %v29233_v48 = vld [vmem:[#allocation35_spill] sm:$0xff] }
 0x3ca   :  { %15477 = vmatprep.mubr.bf16.mxu0 %v28814_v20  ;;  %v11872_v1 = vpop.f32.mrf.mxu1  ;;  %v11911_v45 = vpop.f32.mrf.mxu0  ;;  %20053 = vmatprep.subr.msk.bf16.mxu0 %vm208_vm1, %v15223_v61  ;;  %v15265_v32 = vsel %vm208_vm1, %v15222_v37, 0  ;;  %v15791_v25 = vsel %vm15789_vm15, %v29233_v48, %v26467_v14 }
 0x3cb   :  { %v26914_v10 = vadd.f32 %v11872_v1, %v26682_v47  ;;  %v26917_v0 = vadd.f32 %v11911_v45, %v26685_v41  ;;  %v26931_v47 = vpop.permute.xlu1 %16362  ;;  %v26933_v41 = vpop.permute.xlu0 %16360 }
 0x3cc   :  { %v11913_v52 = vpop.f32.mrf.mxu0  ;;  %v11952_v36 = vpop.f32.mrf.mxu1  ;;  %20048 = vmatmul.mubr.msk.bf16.vlgmr.msra.gmra.mxu1 %vm60_vm2, %v26819_v15 }
 0x3cd   :  { %v26925_v38 = vadd.f32 %v11913_v52, %v26698_v35  ;;  %v26928_v19 = vadd.f32 %v11952_v36, %v26701_v46  ;;  %15503 = vmatpush1.bf16.msra.mxu1 %v15259_v59  ;;  %15520 = vmatprep.mubr.bf16.mxu1 %v28814_v20  ;;  %v29232_v46 = vld [vmem:[#allocation24_spill] sm:$0xff] }
 0x3ce   :  { %v11915_v40 = vpop.f32.mrf.mxu0  ;;  %v11954_v29 = vpop.f32.mrf.mxu1  ;;  %20476 = vmatprep.subr.bf16.mxu1 %v28815_v42  ;;  %v15224_v61 = vsel %vm15209_vm14, %v29230_v2, %v29232_v46 }
 0x3cf   :  { %v26938_v44 = vadd.f32 %v11915_v40, %v26707_v8  ;;  %v26941_v35 = vadd.f32 %v11954_v29, %v26710_v23  ;;  %v15271_v23 = vsel %vm208_vm1, %v15224_v61, 0  ;;  %v29235_v40 = vld [vmem:[#allocation14_spill] sm:$0xff]  ;;  %v26972_v46 = vpop.permute.xlu1 %16366  ;;  %v26974_v61 = vpop.permute.xlu0 %16364 }
 0x3d0   :  { %v11956_v59 = vpop.f32.mrf.mxu1  ;;  %v11995_v1 = vpop.f32.mrf.mxu0  ;;  %20050 = vmatmul.mubr.msk.bf16.vlgmr.msra.gmra.mxu0 %vm60_vm2, %v26819_v15 }
 0x3d1   :  { %v26952_v45 = vadd.f32 %v11956_v59, %v26729_v49  ;;  %v26955_v8 = vadd.f32 %v11995_v1, %v26732_v58  ;;  %15546 = vmatpush1.bf16.msra.mxu0 %v15265_v32  ;;  %15563 = vmatprep.mubr.bf16.mxu0 %v28814_v20  ;;  %v29234_v49 = vld [vmem:[#allocation29_spill] sm:$0xff]  ;;  %v29236_v32 = vld [vmem:[#allocation19_spill] sm:$0xff] }
 0x3d2   :  { %v11958_v2 = vpop.f32.mrf.mxu1  ;;  %v11997_v37 = vpop.f32.mrf.mxu0  ;;  %20074 = vmatprep.subr.msk.bf16.mxu0 %vm208_vm1, %v15791_v25  ;;  %v15790_v58 = vsel %vm15789_vm15, %v29234_v49, %v29233_v48  ;;  %v15793_v29 = vsel %vm15789_vm15, %v29236_v32, %v29235_v40 }
 0x3d3   :  { %v26961_v52 = vadd.f32 %v11958_v2, %v26738_v30  ;;  %v26964_v36 = vadd.f32 %v11997_v37, %v26741_v39  ;;  %v15808_v48 = vsel %vm208_vm1, %v15790_v58, 0 }
 0x3d4   :  { %v11999_v59 = vpop.f32.mrf.mxu0  ;;  %v12038_v25 = vpop.f32.mrf.mxu1  ;;  %20052 = vmatmul.mubr.msk.bf16.vlgmr.msra.gmra.mxu1 %vm60_vm2, %v26819_v15 }
 0x3d5   :  { %v26979_v30 = vadd.f32 %v11999_v59, %v26756_v33  ;;  %v26982_v39 = vadd.f32 %v12038_v25, %v26759_v43  ;;  %20477 = vmatpush3.bf16.msra.mxu1 %v15271_v23  ;;  %20478 = vmatprep.mubr.msk.bf16.mxu1 %vm20812_vm4, %v28815_v42  ;;  %v15792_v33 = vsel %vm15789_vm15, %v26467_v14, %v29236_v32  ;;  %v29237_v43 = vld [vmem:[#allocation22_spill] sm:$0xff]  ;;  %v27000_v59 = vpop.permute.xlu1 %16919  ;;  %v27011_v14 = vpop.permute.xlu0 %16917 }
 0x3d6   :  { %v12001_v1 = vpop.f32.mrf.mxu0  ;;  %v12040_v2 = vpop.f32.mrf.mxu1  ;;  %20076 = vmatprep.subr.msk.bf16.mxu1 %vm208_vm1, %v15793_v29  ;;  %v15795_v23 = vsel %vm15789_vm15, %v29237_v43, %v26528_v22  ;;  %29238 = vst [vmem:[#allocation31_spill] sm:$0xff] %v27011_v14  ;;  %v15814_v32 = vsel %vm208_vm1, %v15792_v33, 0  ;;  %v11626_v33 = vld [vmem:[#allocation2 + $0x70] sm:$0xff] }
 0x3d7   :  { %v26989_v37 = vadd.f32 %v12001_v1, %v26770_v5  ;;  %v26992_v49 = vadd.f32 %v12040_v2, %v26773_v7 }
 0x3d8   :  { %v12042_v58 = vpop.f32.mrf.mxu1  ;;  %v12081_v25 = vpop.f32.mrf.mxu0  ;;  %20054 = vmatmul.mubr.msk.bf16.vlgmr.msra.gmra.mxu0 %vm60_vm2, %v26819_v15 }
 0x3d9   :  { %v27005_v5 = vadd.f32 %v12042_v58, %v26788_v50  ;;  %v27008_v7 = vadd.f32 %v12081_v25, %v26791_v62  ;;  %15867 = vmatpush1.bf16.msra.mxu0 %v15808_v48  ;;  %15884 = vmatprep.mubr.bf16.mxu0 %v28814_v20  ;;  %v15794_v62 = vsel %vm15789_vm15, %v29235_v40, %v29237_v43  ;;  %v29239_v48 = vld [vmem:[#allocation5_spill] sm:$0xff]  ;;  %v27038_v40 = vpop.permute.xlu1 %16923 }
 0x3da   :  { %v12044_v29 = vpop.f32.mrf.mxu1  ;;  %v12083_v1 = vpop.f32.mrf.mxu0  ;;  %20078 = vmatprep.subr.msk.bf16.mxu0 %vm208_vm1, %v15795_v23  ;;  %v15797_v58 = vsel %vm15789_vm15, %v29239_v48, %v26559_v63  ;;  %29240 = vst [vmem:[#allocation12_spill] sm:$0xff] %v27038_v40  ;;  %v15820_v43 = vsel %vm208_vm1, %v15794_v62, 0  ;;  %v11641_v62 = vld [vmem:[#allocation2 + $0xe8] sm:$0xff] }
 0x3db   :  { %v27016_v2 = vadd.f32 %v12044_v29, %v26797_v6  ;;  %v27019_v50 = vadd.f32 %v12083_v1, %v26800_v21  ;;  %v27032_v6 = vld [vmem:[%s28592_s1 + $0xd8] sm:$0xff]  }
 0x3dc   :  { %v12085_v25 = vpop.f32.mrf.mxu0  ;;  %v12124_v14 = vpop.f32.mrf.mxu1  ;;  %20479 = vmatmul.mubr.msk.bf16.vlgmr.msra.gmra.mxu1 %vm60_vm2, %v26819_v15 }
 0x3dd   :  { %v27035_v21 = vadd.f32 %v12085_v25, %v26824_v11  ;;  %v12145_v23 = vadd.f32 %v12124_v14, %v11626_v33  ;;  %15910 = vmatpush1.bf16.msra.mxu1 %v15814_v32  ;;  %15927 = vmatprep.mubr.bf16.mxu1 %v28814_v20  ;;  %v15796_v11 = vsel %vm15789_vm15, %v26528_v22, %v29239_v48  ;;  %v29241_v14 = vld [vmem:[#allocation25_spill] sm:$0xff]  ;;  %v29242_v32 = vld [vmem:[#allocation8_spill] sm:$0xff]  ;;  %v27052_v33 = vpop.permute.xlu0 %16921 }
 0x3de   :  { %v12087_v29 = vpop.f32.mrf.mxu0  ;;  %v20444_v1 = vpop.f32.mrf.mxu1  ;;  %20080 = vmatprep.subr.msk.bf16.mxu1 %vm208_vm1, %v15797_v58  ;;  %v15799_v25 = vsel %vm15789_vm15, %v29242_v32, %v29241_v14  ;;  %v15826_v22 = vsel %vm208_vm1, %v15796_v11, 0 }
 0x3df   :  { %12175 = vst.msk [vmem:[#allocation2 + $0x70] sm:$0xff] %vm60_vm2, %v12145_v23  ;;  %v27044_v15 = vadd.f32 %v12087_v29, %v26831_v12 }
 0x3e0   :  { %v12127_v40 = vpop.f32.mrf.mxu1  ;;  %v12402_v1 = vpop.f32.mrf.mxu0  ;;  %20075 = vmatmul.mubr.msk.bf16.vlgmr.msra.gmra.mxu0 %vm60_vm2, %v27032_v6 }
 0x3e1   :  { %v12160_v58 = vadd.f32 %v12127_v40, %v11641_v62  ;;  %v27057_v12 = vadd.f32 %v12402_v1, %v26846_v27  ;;  %15953 = vmatpush1.bf16.msra.mxu0 %v15820_v43  ;;  %15970 = vmatprep.mubr.bf16.mxu0 %v28814_v20  ;;  %v15798_v40 = vsel %vm15789_vm15, %v26559_v63, %v29242_v32  ;;  %v29243_v27 = vld [vmem:[#allocation11_spill] sm:$0xff]  ;;  %v29244_v62 = vld [vmem:[#allocation36_spill] sm:$0xff]  ;;  %v27072_v1 = vpop.permute.xlu1 %16927  ;;  %v27083_v63 = vpop.permute.xlu0 %16925 }
 0x3e2   :  { %v20445_v48 = vpop.f32.mrf.mxu1  ;;  %v12404_v23 = vpop.f32.mrf.mxu0  ;;  %20082 = vmatprep.subr.msk.bf16.mxu0 %vm208_vm1, %v15799_v25  ;;  %v15801_v43 = vsel %vm15789_vm15, %v29244_v62, %v29243_v27  ;;  %29245 = vst [vmem:[#allocation6_spill] sm:$0xff] %v27072_v1  ;;  %v15832_v32 = vsel %vm208_vm1, %v15798_v40, 0 }
 0x3e3   :  { %12190 = vst.msk [vmem:[#allocation2 + $0xe8] sm:$0xff] %vm60_vm2, %v12160_v58  ;;  %v27064_v29 = vadd.f32 %v12404_v23, %v26857_v55 }
 0x3e4   :  { %v12406_v11 = vpop.f32.mrf.mxu0  ;;  %v12445_v48 = vpop.f32.mrf.mxu1  ;;  %20077 = vmatmul.mubr.msk.bf16.vlgmr.msra.gmra.mxu1 %vm60_vm2, %v27032_v6 }
 0x3e5   :  { %v27077_v25 = vadd.f32 %v12406_v11, %v26875_v4  ;;  %v27080_v55 = vadd.f32 %v12445_v48, %v26878_v53  ;;  %15996 = vmatpush1.bf16.msra.mxu1 %v15826_v22  ;;  %16013 = vmatprep.mubr.bf16.mxu1 %v28814_v20  ;;  %v15800_v53 = vsel %vm15789_vm15, %v29241_v14, %v29244_v62  ;;  %v29246_v22 = vld [vmem:[#allocation17_spill] sm:$0xff] }
 0x3e6   :  { %v12408_v58 = vpop.f32.mrf.mxu0  ;;  %v12447_v23 = vpop.f32.mrf.mxu1  ;;  %20084 = vmatprep.subr.msk.bf16.mxu1 %vm208_vm1, %v15801_v43  ;;  %v15803_v11 = vsel %vm15789_vm15, %v29246_v22, %v26690_v54  ;;  %v15838_v14 = vsel %vm208_vm1, %v15800_v53, 0 }
 0x3e7   :  { %v27088_v1 = vadd.f32 %v12408_v58, %v26884_v26  ;;  %v27091_v4 = vadd.f32 %v12447_v23, %v26887_v9  ;;  %v27108_v9 = vpop.permute.xlu1 %16931 }
 0x3e8   :  { %v12449_v48 = vpop.f32.mrf.mxu1  ;;  %v12488_v40 = vpop.f32.mrf.mxu0  ;;  %20079 = vmatmul.mubr.msk.bf16.vlgmr.msra.gmra.mxu0 %vm60_vm2, %v27032_v6 }
 0x3e9   :  { %v27102_v43 = vadd.f32 %v12449_v48, %v26905_v31  ;;  %v27105_v26 = vadd.f32 %v12488_v40, %v26908_v13  ;;  %16039 = vmatpush1.bf16.msra.mxu0 %v15832_v32  ;;  %16056 = vmatprep.mubr.bf16.mxu0 %v28814_v20  ;;  %v15802_v13 = vsel %vm15789_vm15, %v29243_v27, %v29246_v22  ;;  %v27121_v32 = vpop.permute.xlu0 %16929 }
 0x3ea   :  { %v12451_v62 = vpop.f32.mrf.mxu1  ;;  %v12490_v58 = vpop.f32.mrf.mxu0  ;;  %20086 = vmatprep.subr.msk.bf16.mxu0 %vm208_vm1, %v15803_v11 }
 0x3eb   :  { %v27113_v23 = vadd.f32 %v12451_v62, %v26914_v10  ;;  %v27116_v31 = vadd.f32 %v12490_v58, %v26917_v0  ;;  %v15844_v0 = vsel %vm208_vm1, %v15802_v13, 0 }
 0x3ec   :  { %v12492_v48 = vpop.f32.mrf.mxu0  ;;  %v12531_v40 = vpop.f32.mrf.mxu1  ;;  %20081 = vmatmul.mubr.msk.bf16.vlgmr.msra.gmra.mxu1 %vm60_vm2, %v27032_v6 }
 0x3ed   :  { %v27126_v53 = vadd.f32 %v12492_v48, %v26925_v38  ;;  %v27129_v10 = vadd.f32 %v12531_v40, %v26928_v19  ;;  %16082 = vmatpush1.bf16.msra.mxu1 %v15838_v14  ;;  %16099 = vmatprep.mubr.bf16.mxu1 %v28814_v20  ;;  %v16370_v38 = vsel %vm16368_vm0, %v26720_v3, %v26718_v28  ;;  %v27143_v19 = vpop.permute.xlu1 %16935  ;;  %v15850_v48 = vsel %vm208_vm1, %v26690_v54, 0 }
 0x3ee   :  { %v12494_v27 = vpop.f32.mrf.mxu0  ;;  %v12533_v22 = vpop.f32.mrf.mxu1  ;;  %20482 = vmatprep.subr.bf16.mxu1 %v28815_v42 }
 0x3ef   :  { %v27135_v11 = vadd.f32 %v12494_v27, %v26938_v44  ;;  %v27138_v62 = vadd.f32 %v12533_v22, %v26941_v35  ;;  %v27154_v35 = vpop.permute.xlu0 %16933 }
 0x3f0   :  { %v12535_v14 = vpop.f32.mrf.mxu1  ;;  %v12574_v58 = vpop.f32.mrf.mxu0  ;;  %20083 = vmatmul.mubr.msk.bf16.vlgmr.msra.gmra.mxu0 %vm60_vm2, %v27032_v6 }
 0x3f1   :  { %v27148_v13 = vadd.f32 %v12535_v14, %v26952_v45  ;;  %v27151_v44 = vadd.f32 %v12574_v58, %v26955_v8  ;;  %16125 = vmatpush1.bf16.msra.mxu0 %v15844_v0  ;;  %16142 = vmatprep.mubr.bf16.mxu0 %v28814_v20  ;;  %v16369_v8 = vsel %vm16368_vm0, %v26677_v17, %v26720_v3  ;;  %v27181_v17 = vpop.permute.xlu1 %16939 }
 0x3f2   :  { %v12537_v40 = vpop.f32.mrf.mxu1  ;;  %v12576_v27 = vpop.f32.mrf.mxu0  ;;  %20107 = vmatprep.subr.msk.bf16.mxu0 %vm208_vm1, %v16370_v38  ;;  %v16372_v0 = vsel %vm16368_vm0, %v26765_v57, %v26763_v16  ;;  %v16387_v3 = vsel %vm208_vm1, %v16369_v8, 0 }
 0x3f3   :  { %v27160_v22 = vadd.f32 %v12537_v40, %v26961_v52  ;;  %v27163_v45 = vadd.f32 %v12576_v27, %v26964_v36  ;;  %v27197_v27 = vpop.permute.xlu0 %16937 }
 0x3f4   :  { %v12578_v14 = vpop.f32.mrf.mxu0  ;;  %v12617_v54 = vpop.f32.mrf.mxu1  ;;  %20085 = vmatmul.mubr.msk.bf16.vlgmr.msra.gmra.mxu1 %vm60_vm2, %v27032_v6 }
 0x3f5   :  { %v27174_v38 = vadd.f32 %v12578_v14, %v26979_v30  ;;  %v27177_v52 = vadd.f32 %v12617_v54, %v26982_v39  ;;  %20483 = vmatpush3.bf16.msra.mxu1 %v15850_v48  ;;  %20484 = vmatprep.mubr.msk.bf16.mxu1 %vm20812_vm4, %v28815_v42  ;;  %v16371_v39 = vsel %vm16368_vm0, %v26718_v28, %v26765_v57 }
 0x3f6   :  { %v12580_v36 = vpop.f32.mrf.mxu0  ;;  %v12619_v58 = vpop.f32.mrf.mxu1  ;;  %20109 = vmatprep.subr.msk.bf16.mxu1 %vm208_vm1, %v16372_v0  ;;  %v16374_v48 = vsel %vm16368_vm0, %v26810_v34, %v26808_v24  ;;  %v16393_v28 = vsel %vm208_vm1, %v16371_v39, 0  ;;  %v12205_v39 = vld [vmem:[#allocation2 + $0x70] sm:$0xff] }
 0x3f7   :  { %v27186_v40 = vadd.f32 %v12580_v36, %v26989_v37  ;;  %v27189_v30 = vadd.f32 %v12619_v58, %v26992_v49 }
 0x3f8   :  { %v12621_v8 = vpop.f32.mrf.mxu1  ;;  %v12660_v14 = vpop.f32.mrf.mxu0  ;;  %20087 = vmatmul.mubr.msk.bf16.vlgmr.msra.gmra.mxu0 %vm60_vm2, %v27032_v6 }
 0x3f9   :  { %v27202_v37 = vadd.f32 %v12621_v8, %v27005_v5  ;;  %v27205_v49 = vadd.f32 %v12660_v14, %v27008_v7  ;;  %16446 = vmatpush1.bf16.msra.mxu0 %v16387_v3  ;;  %16463 = vmatprep.mubr.bf16.mxu0 %v28814_v20  ;;  %v16373_v5 = vsel %vm16368_vm0, %v26763_v16, %v26810_v34  ;;  %v27222_v3 = vpop.permute.xlu1 %16943  ;;  %v27235_v34 = vpop.permute.xlu0 %16941 }
 0x3fa   :  { %v12623_v57 = vpop.f32.mrf.mxu1  ;;  %v12662_v0 = vpop.f32.mrf.mxu0  ;;  %20111 = vmatprep.subr.msk.bf16.mxu0 %vm208_vm1, %v16374_v48  ;;  %v16376_v7 = vsel %vm16368_vm0, %v26851_v51, %v26849_v60  ;;  %v16399_v48 = vsel %vm208_vm1, %v16373_v5, 0 }
 0x3fb   :  { %v27211_v54 = vadd.f32 %v12623_v57, %v27016_v2  ;;  %v27214_v36 = vadd.f32 %v12662_v0, %v27019_v50  ;;  %v27229_v2 = vld [vmem:[%s28592_s1 + $0xe0] sm:$0xff]   ;;  %v12220_v0 = vld [vmem:[#allocation2 + $0xe8] sm:$0xff] }
 0x3fc   :  { %v12664_v58 = vpop.f32.mrf.mxu0  ;;  %v12703_v8 = vpop.f32.mrf.mxu1  ;;  %20485 = vmatmul.mubr.msk.bf16.vlgmr.msra.gmra.mxu1 %vm60_vm2, %v27032_v6 }
 0x3fd   :  { %v27232_v50 = vadd.f32 %v12664_v58, %v27035_v21  ;;  %v12724_v16 = vadd.f32 %v12703_v8, %v12205_v39  ;;  %16489 = vmatpush1.bf16.msra.mxu1 %v16393_v28  ;;  %16506 = vmatprep.mubr.bf16.mxu1 %v28814_v20  ;;  %v16375_v21 = vsel %vm16368_vm0, %v26808_v24, %v26851_v51 }
 0x3fe   :  { %v12666_v14 = vpop.f32.mrf.mxu0  ;;  %v20450_v57 = vpop.f32.mrf.mxu1  ;;  %20113 = vmatprep.subr.msk.bf16.mxu1 %vm208_vm1, %v16376_v7  ;;  %v16378_v28 = vsel %vm16368_vm0, %v26897_v56, %v26895_v18  ;;  %v16405_v24 = vsel %vm208_vm1, %v16375_v21, 0 }
 0x3ff   :  { %12754 = vst.msk [vmem:[#allocation2 + $0x70] sm:$0xff] %vm60_vm2, %v12724_v16  ;;  %v27241_v6 = vadd.f32 %v12666_v14, %v27044_v15  ;;  %v27255_v15 = vpop.permute.xlu1 %17496  ;;  %v27269_v14 = vpop.permute.xlu0 %16945 }
 0x400   :  { %v12706_v58 = vpop.f32.mrf.mxu1  ;;  %v12981_v5 = vpop.f32.mrf.mxu0  ;;  %20108 = vmatmul.mubr.msk.bf16.vlgmr.msra.gmra.mxu0 %vm60_vm2, %v27229_v2 }
 0x401   :  { %v12739_v7 = vadd.f32 %v12706_v58, %v12220_v0  ;;  %v27252_v39 = vadd.f32 %v12981_v5, %v27057_v12  ;;  %16532 = vmatpush1.bf16.msra.mxu0 %v16399_v48  ;;  %16549 = vmatprep.mubr.bf16.mxu0 %v28814_v20  ;;  %v16377_v12 = vsel %vm16368_vm0, %v26849_v60, %v26897_v56 }
 0x402   :  { %v20451_v51 = vpop.f32.mrf.mxu1  ;;  %v12983_v8 = vpop.f32.mrf.mxu0  ;;  %20115 = vmatprep.subr.msk.bf16.mxu0 %vm208_vm1, %v16378_v28  ;;  %v16380_v48 = vsel %vm16368_vm0, %v26933_v41, %v26931_v47  ;;  %v16411_v60 = vsel %vm208_vm1, %v16377_v12, 0 }
 0x403   :  { %12769 = vst.msk [vmem:[#allocation2 + $0xe8] sm:$0xff] %vm60_vm2, %v12739_v7  ;;  %v27261_v16 = vadd.f32 %v12983_v8, %v27064_v29  ;;  %v27294_v7 = vpop.permute.xlu1 %17500 }
 0x404   :  { %v12985_v57 = vpop.f32.mrf.mxu0  ;;  %v13024_v21 = vpop.f32.mrf.mxu1  ;;  %20110 = vmatmul.mubr.msk.bf16.vlgmr.msra.gmra.mxu1 %vm60_vm2, %v27229_v2 }
 0x405   :  { %v27274_v28 = vadd.f32 %v12985_v57, %v27077_v25  ;;  %v27277_v29 = vadd.f32 %v13024_v21, %v27080_v55  ;;  %16575 = vmatpush1.bf16.msra.mxu1 %v16405_v24  ;;  %16592 = vmatprep.mubr.bf16.mxu1 %v28814_v20  ;;  %v16379_v25 = vsel %vm16368_vm0, %v26895_v18, %v26933_v41  ;;  %v27296_v24 = vpop.permute.xlu0 %17498 }
 0x406   :  { %v12987_v56 = vpop.f32.mrf.mxu0  ;;  %v13026_v0 = vpop.f32.mrf.mxu1  ;;  %20117 = vmatprep.subr.msk.bf16.mxu1 %vm208_vm1, %v16380_v48  ;;  %v16382_v55 = vsel %vm16368_vm0, %v26974_v61, %v26972_v46  ;;  %v16417_v18 = vsel %vm208_vm1, %v16379_v25, 0 }
 0x407   :  { %v27283_v58 = vadd.f32 %v12987_v56, %v27088_v1  ;;  %v27286_v5 = vadd.f32 %v13026_v0, %v27091_v4 }
 0x408   :  { %v13028_v51 = vpop.f32.mrf.mxu1  ;;  %v13067_v8 = vpop.f32.mrf.mxu0  ;;  %20112 = vmatmul.mubr.msk.bf16.vlgmr.msra.gmra.mxu0 %vm60_vm2, %v27229_v2 }
 0x409   :  { %v27301_v1 = vadd.f32 %v13028_v51, %v27102_v43  ;;  %v27304_v4 = vadd.f32 %v13067_v8, %v27105_v26  ;;  %16618 = vmatpush1.bf16.msra.mxu0 %v16411_v60  ;;  %16635 = vmatprep.mubr.bf16.mxu0 %v28814_v20  ;;  %v16381_v43 = vsel %vm16368_vm0, %v26931_v47, %v26974_v61 }
 0x40a   :  { %v13030_v41 = vpop.f32.mrf.mxu1  ;;  %v13069_v12 = vpop.f32.mrf.mxu0  ;;  %20119 = vmatprep.subr.msk.bf16.mxu0 %vm208_vm1, %v16382_v55  ;;  %v16423_v47 = vsel %vm208_vm1, %v16381_v43, 0 }
 0x40b   :  { %v27310_v48 = vadd.f32 %v13030_v41, %v27113_v23  ;;  %v27313_v57 = vadd.f32 %v13069_v12, %v27116_v31  ;;  %v27327_v23 = vpop.permute.xlu1 %17504  ;;  %v27329_v31 = vpop.permute.xlu0 %17502 }
 0x40c   :  { %v13071_v26 = vpop.f32.mrf.mxu0  ;;  %v13110_v21 = vpop.f32.mrf.mxu1  ;;  %20114 = vmatmul.mubr.msk.bf16.vlgmr.msra.gmra.mxu1 %vm60_vm2, %v27229_v2 }
 0x40d   :  { %v27321_v60 = vadd.f32 %v13071_v26, %v27126_v53  ;;  %v27324_v56 = vadd.f32 %v13110_v21, %v27129_v10  ;;  %16661 = vmatpush1.bf16.msra.mxu1 %v16417_v18  ;;  %16678 = vmatprep.mubr.bf16.mxu1 %v28814_v20  ;;  %v16949_v10 = vsel %vm16947_vm3, %v27000_v59, %v27052_v33  ;;  %v29248_v26 = vld [vmem:[#allocation12_spill] sm:$0xff] }
 0x40e   :  { %v13073_v61 = vpop.f32.mrf.mxu0  ;;  %v13112_v0 = vpop.f32.mrf.mxu1  ;;  %20488 = vmatprep.subr.bf16.mxu1 %v28815_v42  ;;  %v16951_v21 = vsel %vm16947_vm3, %v29248_v26, %v27083_v63 }
 0x40f   :  { %v27334_v25 = vadd.f32 %v13073_v61, %v27135_v11  ;;  %v27337_v53 = vadd.f32 %v13112_v0, %v27138_v62  ;;  %v16429_v11 = vsel %vm208_vm1, %v26972_v46, 0  ;;  %v27368_v46 = vpop.permute.xlu0 %17506 }
 0x410   :  { %v13114_v55 = vpop.f32.mrf.mxu1  ;;  %v13153_v51 = vpop.f32.mrf.mxu0  ;;  %20116 = vmatmul.mubr.msk.bf16.vlgmr.msra.gmra.mxu0 %vm60_vm2, %v27229_v2 }
 0x411   :  { %v27345_v8 = vadd.f32 %v13114_v55, %v27148_v13  ;;  %v27348_v18 = vadd.f32 %v13153_v51, %v27151_v44  ;;  %16704 = vmatpush1.bf16.msra.mxu0 %v16423_v47  ;;  %16721 = vmatprep.mubr.bf16.mxu0 %v28814_v20  ;;  %v29247_v13 = vld [vmem:[#allocation31_spill] sm:$0xff]  ;;  %v27366_v47 = vpop.permute.xlu1 %17508 }
 0x412   :  { %v13116_v62 = vpop.f32.mrf.mxu1  ;;  %v13155_v41 = vpop.f32.mrf.mxu0  ;;  %20140 = vmatprep.subr.msk.bf16.mxu0 %vm208_vm1, %v16949_v10  ;;  %v16948_v44 = vsel %vm16947_vm3, %v29247_v13, %v27000_v59 }
 0x413   :  { %v27355_v12 = vadd.f32 %v13116_v62, %v27160_v22  ;;  %v27358_v43 = vadd.f32 %v13155_v41, %v27163_v45  ;;  %v16966_v59 = vsel %vm208_vm1, %v16948_v44, 0 }
 0x414   :  { %v13157_v61 = vpop.f32.mrf.mxu0  ;;  %v13196_v0 = vpop.f32.mrf.mxu1  ;;  %20118 = vmatmul.mubr.msk.bf16.vlgmr.msra.gmra.mxu1 %vm60_vm2, %v27229_v2 }
 0x415   :  { %v27373_v22 = vadd.f32 %v13157_v61, %v27174_v38  ;;  %v27376_v45 = vadd.f32 %v13196_v0, %v27177_v52  ;;  %20489 = vmatpush3.bf16.msra.mxu1 %v16429_v11  ;;  %20490 = vmatprep.mubr.msk.bf16.mxu1 %vm20812_vm4, %v28815_v42  ;;  %v16950_v38 = vsel %vm16947_vm3, %v27052_v33, %v29248_v26  ;;  %v29249_v52 = vld [vmem:[#allocation6_spill] sm:$0xff]  ;;  %v27405_v33 = vpop.permute.xlu0 %17510 }
 0x416   :  { %v13159_v10 = vpop.f32.mrf.mxu0  ;;  %v13198_v55 = vpop.f32.mrf.mxu1  ;;  %20142 = vmatprep.subr.msk.bf16.mxu1 %vm208_vm1, %v16951_v21  ;;  %v16953_v11 = vsel %vm16947_vm3, %v29249_v52, %v27121_v32  ;;  %v16972_v26 = vsel %vm208_vm1, %v16950_v38, 0 }
 0x417   :  { %v27383_v51 = vadd.f32 %v13159_v10, %v27186_v40  ;;  %v27386_v62 = vadd.f32 %v13198_v55, %v27189_v30  ;;  %v27403_v30 = vpop.permute.xlu1 %17512  ;;  %v12784_v55 = vld [vmem:[#allocation2 + $0x70] sm:$0xff] }
 0x418   :  { %v13200_v41 = vpop.f32.mrf.mxu1  ;;  %v13239_v13 = vpop.f32.mrf.mxu0  ;;  %20120 = vmatmul.mubr.msk.bf16.vlgmr.msra.gmra.mxu0 %vm60_vm2, %v27229_v2 }
 0x419   :  { %v27397_v44 = vadd.f32 %v13200_v41, %v27202_v37  ;;  %v27400_v40 = vadd.f32 %v13239_v13, %v27205_v49  ;;  %17025 = vmatpush1.bf16.msra.mxu0 %v16966_v59  ;;  %17042 = vmatprep.mubr.bf16.mxu0 %v28814_v20  ;;  %v16952_v49 = vsel %vm16947_vm3, %v27083_v63, %v29249_v52 }
 0x41a   :  { %v13202_v21 = vpop.f32.mrf.mxu1  ;;  %v13241_v61 = vpop.f32.mrf.mxu0  ;;  %20144 = vmatprep.subr.msk.bf16.mxu0 %vm208_vm1, %v16953_v11  ;;  %v16955_v59 = vsel %vm16947_vm3, %v27108_v9, %v27154_v35  ;;  %v16978_v63 = vsel %vm208_vm1, %v16952_v49, 0  ;;  %v16957_v13 = vsel %vm16947_vm3, %v27143_v19, %v27197_v27 }
 0x41b   :  { %v27410_v0 = vadd.f32 %v13202_v21, %v27211_v54  ;;  %v27413_v37 = vadd.f32 %v13241_v61, %v27214_v36  ;;  %v27426_v54 = vld [vmem:[%s28592_s1 + $0xe8] sm:$0xff]   ;;  %v27446_v21 = vpop.permute.xlu0 %17514 }
 0x41c   :  { %v13243_v10 = vpop.f32.mrf.mxu0  ;;  %v13282_v38 = vpop.f32.mrf.mxu1  ;;  %20491 = vmatmul.mubr.msk.bf16.vlgmr.msra.gmra.mxu1 %vm60_vm2, %v27229_v2  ;;  %v12799_v61 = vld [vmem:[#allocation2 + $0xe8] sm:$0xff] }
 0x41d   :  { %v27429_v36 = vadd.f32 %v13243_v10, %v27232_v50  ;;  %v13303_v11 = vadd.f32 %v13282_v38, %v12784_v55  ;;  %17068 = vmatpush1.bf16.msra.mxu1 %v16972_v26  ;;  %17085 = vmatprep.mubr.bf16.mxu1 %v28814_v20  ;;  %v16954_v50 = vsel %vm16947_vm3, %v27121_v32, %v27108_v9  ;;  %v27444_v26 = vpop.permute.xlu1 %17516 }
 0x41e   :  { %v13245_v52 = vpop.f32.mrf.mxu0  ;;  %v20456_v41 = vpop.f32.mrf.mxu1  ;;  %20146 = vmatprep.subr.msk.bf16.mxu1 %vm208_vm1, %v16955_v59  ;;  %v16984_v9 = vsel %vm208_vm1, %v16954_v50, 0 }
 0x41f   :  { %13333 = vst.msk [vmem:[#allocation2 + $0x70] sm:$0xff] %vm60_vm2, %v13303_v11  ;;  %v27436_v2 = vadd.f32 %v13245_v52, %v27241_v6  ;;  %v16956_v11 = vsel %vm16947_vm3, %v27154_v35, %v27143_v19  ;;  %v27477_v19 = vpop.permute.xlu0 %17518 }
 0x420   :  { %v13285_v49 = vpop.f32.mrf.mxu1  ;;  %v13560_v59 = vpop.f32.mrf.mxu0  ;;  %20141 = vmatmul.mubr.msk.bf16.vlgmr.msra.gmra.mxu0 %vm60_vm2, %v27426_v54  ;;  %v16990_v35 = vsel %vm208_vm1, %v16956_v11, 0 }
 0x421   :  { %v13318_v6 = vadd.f32 %v13285_v49, %v12799_v61  ;;  %v27451_v10 = vadd.f32 %v13560_v59, %v27252_v39  ;;  %17111 = vmatpush1.bf16.msra.mxu0 %v16978_v63  ;;  %17128 = vmatprep.mubr.bf16.mxu0 %v28814_v20  ;;  %v16959_v39 = vsel %vm16947_vm3, %v27181_v17, %v27235_v34 }
 0x422   :  { %v20457_v32 = vpop.f32.mrf.mxu1  ;;  %v13562_v55 = vpop.f32.mrf.mxu0  ;;  %20148 = vmatprep.subr.msk.bf16.mxu0 %vm208_vm1, %v16957_v13  ;;  %v16961_v59 = vsel %vm16947_vm3, %v27222_v3, %v27269_v14 }
 0x423   :  { %13348 = vst.msk [vmem:[#allocation2 + $0xe8] sm:$0xff] %vm60_vm2, %v13318_v6  ;;  %v27458_v38 = vadd.f32 %v13562_v55, %v27261_v16  ;;  %v27475_v16 = vpop.permute.xlu1 %17520 }
 0x424   :  { %v13564_v63 = vpop.f32.mrf.mxu0  ;;  %v13603_v52 = vpop.f32.mrf.mxu1  ;;  %20143 = vmatmul.mubr.msk.bf16.vlgmr.msra.gmra.mxu1 %vm60_vm2, %v27426_v54 }
 0x425   :  { %v27469_v41 = vadd.f32 %v13564_v63, %v27274_v28  ;;  %v27472_v50 = vadd.f32 %v13603_v52, %v27277_v29  ;;  %17154 = vmatpush1.bf16.msra.mxu1 %v16984_v9  ;;  %17171 = vmatprep.mubr.bf16.mxu1 %v28814_v20  ;;  %v16958_v29 = vsel %vm16947_vm3, %v27197_v27, %v27181_v17 }
 0x426   :  { %v13566_v13 = vpop.f32.mrf.mxu0  ;;  %v13605_v61 = vpop.f32.mrf.mxu1  ;;  %20150 = vmatprep.subr.msk.bf16.mxu1 %vm208_vm1, %v16959_v39  ;;  %v16996_v17 = vsel %vm208_vm1, %v16958_v29, 0 }
 0x427   :  { %v27482_v49 = vadd.f32 %v13566_v13, %v27283_v58  ;;  %v27485_v28 = vadd.f32 %v13605_v61, %v27286_v5  ;;  %v27515_v39 = vpop.permute.xlu0 %17522 }
 0x428   :  { %v13607_v6 = vpop.f32.mrf.mxu1  ;;  %v13646_v9 = vpop.f32.mrf.mxu0  ;;  %20145 = vmatmul.mubr.msk.bf16.vlgmr.msra.gmra.mxu0 %vm60_vm2, %v27426_v54 }
 0x429   :  { %v27496_v32 = vadd.f32 %v13607_v6, %v27301_v1  ;;  %v27499_v58 = vadd.f32 %v13646_v9, %v27304_v4  ;;  %17197 = vmatpush1.bf16.msra.mxu0 %v16990_v35  ;;  %17214 = vmatprep.mubr.bf16.mxu0 %v28814_v20  ;;  %v16960_v1 = vsel %vm16947_vm3, %v27235_v34, %v27222_v3  ;;  %v27513_v4 = vpop.permute.xlu1 %17524  ;;  %v17008_v9 = vsel %vm208_vm1, %v27269_v14, 0 }
 0x42a   :  { %v13609_v27 = vpop.f32.mrf.mxu1  ;;  %v13648_v5 = vpop.f32.mrf.mxu0  ;;  %20152 = vmatprep.subr.msk.bf16.mxu0 %vm208_vm1, %v16961_v59  ;;  %v17002_v3 = vsel %vm208_vm1, %v16960_v1, 0  ;;  %v17530_v1 = vsel %vm17526_vm5, %v27329_v31, %v27327_v23 }
 0x42b   :  { %v27505_v55 = vadd.f32 %v13609_v27, %v27310_v48  ;;  %v27508_v11 = vadd.f32 %v13648_v5, %v27313_v57 }
 0x42c   :  { %v13650_v63 = vpop.f32.mrf.mxu0  ;;  %v13689_v52 = vpop.f32.mrf.mxu1  ;;  %20147 = vmatmul.mubr.msk.bf16.vlgmr.msra.gmra.mxu1 %vm60_vm2, %v27426_v54 }
 0x42d   :  { %v27520_v48 = vadd.f32 %v13650_v63, %v27321_v60  ;;  %v27523_v57 = vadd.f32 %v13689_v52, %v27324_v56  ;;  %17240 = vmatpush1.bf16.msra.mxu1 %v16996_v17  ;;  %17257 = vmatprep.mubr.bf16.mxu1 %v28814_v20  ;;  %v17528_v60 = vsel %vm17526_vm5, %v27296_v24, %v27294_v7  ;;  %v27537_v56 = vpop.permute.xlu1 %18077 }
 0x42e   :  { %v13652_v34 = vpop.f32.mrf.mxu0  ;;  %v13691_v35 = vpop.f32.mrf.mxu1  ;;  %20494 = vmatprep.subr.bf16.mxu1 %v28815_v42 }
 0x42f   :  { %v27529_v13 = vadd.f32 %v13652_v34, %v27334_v25  ;;  %v27532_v61 = vadd.f32 %v13691_v35, %v27337_v53  ;;  %v27548_v53 = vpop.permute.xlu0 %18075  ;;  %v17532_v35 = vsel %vm17526_vm5, %v27368_v46, %v27366_v47 }
 0x430   :  { %v13693_v29 = vpop.f32.mrf.mxu1  ;;  %v13732_v59 = vpop.f32.mrf.mxu0  ;;  %20149 = vmatmul.mubr.msk.bf16.vlgmr.msra.gmra.mxu0 %vm60_vm2, %v27426_v54 }
 0x431   :  { %v27542_v6 = vadd.f32 %v13693_v29, %v27345_v8  ;;  %v27545_v25 = vadd.f32 %v13732_v59, %v27348_v18  ;;  %17283 = vmatpush1.bf16.msra.mxu0 %v17002_v3  ;;  %17300 = vmatprep.mubr.bf16.mxu0 %v28814_v20  ;;  %v17527_v18 = vsel %vm17526_vm5, %v27255_v15, %v27296_v24  ;;  %v27575_v15 = vpop.permute.xlu1 %18081 }
 0x432   :  { %v13695_v17 = vpop.f32.mrf.mxu1  ;;  %v13734_v27 = vpop.f32.mrf.mxu0  ;;  %20173 = vmatprep.subr.msk.bf16.mxu0 %vm208_vm1, %v17528_v60  ;;  %v17545_v24 = vsel %vm208_vm1, %v17527_v18, 0 }
 0x433   :  { %v27554_v5 = vadd.f32 %v13695_v17, %v27355_v12  ;;  %v27557_v8 = vadd.f32 %v13734_v27, %v27358_v43  ;;  %v27591_v60 = vpop.permute.xlu0 %18079 }
 0x434   :  { %v13736_v63 = vpop.f32.mrf.mxu0  ;;  %v13775_v14 = vpop.f32.mrf.mxu1  ;;  %20151 = vmatmul.mubr.msk.bf16.vlgmr.msra.gmra.mxu1 %vm60_vm2, %v27426_v54 }
 0x435   :  { %v27568_v52 = vadd.f32 %v13736_v63, %v27373_v22  ;;  %v27571_v12 = vadd.f32 %v13775_v14, %v27376_v45  ;;  %20495 = vmatpush3.bf16.msra.mxu1 %v17008_v9  ;;  %20496 = vmatprep.mubr.msk.bf16.mxu1 %vm20812_vm4, %v28815_v42  ;;  %v17529_v45 = vsel %vm17526_vm5, %v27294_v7, %v27329_v31  ;;  %v27616_v18 = vpop.permute.xlu1 %18085  ;;  %v13363_v63 = vld [vmem:[#allocation2 + $0x70] sm:$0xff] }
 0x436   :  { %v13738_v43 = vpop.f32.mrf.mxu0  ;;  %v13777_v3 = vpop.f32.mrf.mxu1  ;;  %20175 = vmatprep.subr.msk.bf16.mxu1 %vm208_vm1, %v17530_v1  ;;  %v17551_v7 = vsel %vm208_vm1, %v17529_v45, 0  ;;  %v17536_v45 = vsel %vm17526_vm5, %v27446_v21, %v27444_v26 }
 0x437   :  { %v27580_v34 = vadd.f32 %v13738_v43, %v27383_v51  ;;  %v27583_v22 = vadd.f32 %v13777_v3, %v27386_v62 }
 0x438   :  { %v13779_v29 = vpop.f32.mrf.mxu1  ;;  %v13818_v59 = vpop.f32.mrf.mxu0  ;;  %20153 = vmatmul.mubr.msk.bf16.vlgmr.msra.gmra.mxu0 %vm60_vm2, %v27426_v54 }
 0x439   :  { %v27596_v51 = vadd.f32 %v13779_v29, %v27397_v44  ;;  %v27599_v62 = vadd.f32 %v13818_v59, %v27400_v40  ;;  %17604 = vmatpush1.bf16.msra.mxu0 %v17545_v24  ;;  %17621 = vmatprep.mubr.bf16.mxu0 %v28814_v20  ;;  %v17531_v44 = vsel %vm17526_vm5, %v27327_v23, %v27368_v46  ;;  %v27629_v46 = vpop.permute.xlu0 %18083 }
 0x43a   :  { %v13781_v31 = vpop.f32.mrf.mxu1  ;;  %v13820_v9 = vpop.f32.mrf.mxu0  ;;  %20177 = vmatprep.subr.msk.bf16.mxu0 %vm208_vm1, %v17532_v35  ;;  %v17534_v40 = vsel %vm17526_vm5, %v27405_v33, %v27403_v30  ;;  %v17557_v24 = vsel %vm208_vm1, %v17531_v44, 0  ;;  %v13378_v35 = vld [vmem:[#allocation2 + $0xe8] sm:$0xff] }
 0x43b   :  { %v27605_v17 = vadd.f32 %v13781_v31, %v27410_v0  ;;  %v27608_v27 = vadd.f32 %v13820_v9, %v27413_v37  ;;  %v27623_v0 = vld [vmem:[%s28592_s1 + $0xf0] sm:$0xff]  }
 0x43c   :  { %v13822_v1 = vpop.f32.mrf.mxu0  ;;  %v13861_v14 = vpop.f32.mrf.mxu1  ;;  %20497 = vmatmul.mubr.msk.bf16.vlgmr.msra.gmra.mxu1 %vm60_vm2, %v27426_v54 }
 0x43d   :  { %v27626_v37 = vadd.f32 %v13822_v1, %v27429_v36  ;;  %v13882_v23 = vadd.f32 %v13861_v14, %v13363_v63  ;;  %17647 = vmatpush1.bf16.msra.mxu1 %v17551_v7  ;;  %17664 = vmatprep.mubr.bf16.mxu1 %v28814_v20  ;;  %v17533_v36 = vsel %vm17526_vm5, %v27366_v47, %v27405_v33  ;;  %v27663_v1 = vpop.permute.xlu0 %18087 }
 0x43e   :  { %v13824_v43 = vpop.f32.mrf.mxu0  ;;  %v20462_v3 = vpop.f32.mrf.mxu1  ;;  %20179 = vmatprep.subr.msk.bf16.mxu1 %vm208_vm1, %v17534_v40  ;;  %v17563_v47 = vsel %vm208_vm1, %v17533_v36, 0  ;;  %v17538_v40 = vsel %vm17526_vm5, %v27477_v19, %v27475_v16 }
 0x43f   :  { %13912 = vst.msk [vmem:[#allocation2 + $0x70] sm:$0xff] %vm60_vm2, %v13882_v23  ;;  %v27635_v54 = vadd.f32 %v13824_v43, %v27436_v2  ;;  %v27649_v2 = vpop.permute.xlu1 %18089 }
 0x440   :  { %v13864_v29 = vpop.f32.mrf.mxu1  ;;  %v14139_v59 = vpop.f32.mrf.mxu0  ;;  %20174 = vmatmul.mubr.msk.bf16.vlgmr.msra.gmra.mxu0 %vm60_vm2, %v27623_v0 }
 0x441   :  { %v13897_v7 = vadd.f32 %v13864_v29, %v13378_v35  ;;  %v27646_v31 = vadd.f32 %v14139_v59, %v27451_v10  ;;  %17690 = vmatpush1.bf16.msra.mxu0 %v17557_v24  ;;  %17707 = vmatprep.mubr.bf16.mxu0 %v28814_v20  ;;  %v17535_v10 = vsel %vm17526_vm5, %v27403_v30, %v27446_v21 }
 0x442   :  { %v20463_v33 = vpop.f32.mrf.mxu1  ;;  %v14141_v9 = vpop.f32.mrf.mxu0  ;;  %20181 = vmatprep.subr.msk.bf16.mxu0 %vm208_vm1, %v17536_v45  ;;  %v17569_v30 = vsel %vm208_vm1, %v17535_v10, 0 }
 0x443   :  { %13927 = vst.msk [vmem:[#allocation2 + $0xe8] sm:$0xff] %vm60_vm2, %v13897_v7  ;;  %v27655_v44 = vadd.f32 %v14141_v9, %v27458_v38  ;;  %v27688_v36 = vpop.permute.xlu1 %18093 }
 0x444   :  { %v14143_v63 = vpop.f32.mrf.mxu0  ;;  %v14182_v14 = vpop.f32.mrf.mxu1  ;;  %20176 = vmatmul.mubr.msk.bf16.vlgmr.msra.gmra.mxu1 %vm60_vm2, %v27623_v0 }
 0x445   :  { %v27668_v23 = vadd.f32 %v14143_v63, %v27469_v41  ;;  %v27671_v38 = vadd.f32 %v14182_v14, %v27472_v50  ;;  %17733 = vmatpush1.bf16.msra.mxu1 %v17563_v47  ;;  %17750 = vmatprep.mubr.bf16.mxu1 %v28814_v20  ;;  %v17537_v41 = vsel %vm17526_vm5, %v27444_v26, %v27477_v19  ;;  %v27699_v26 = vpop.permute.xlu0 %18091 }
 0x446   :  { %v14145_v21 = vpop.f32.mrf.mxu0  ;;  %v14184_v24 = vpop.f32.mrf.mxu1  ;;  %20183 = vmatprep.subr.msk.bf16.mxu1 %vm208_vm1, %v17538_v40  ;;  %v17540_v50 = vsel %vm17526_vm5, %v27515_v39, %v27513_v4  ;;  %v17575_v19 = vsel %vm208_vm1, %v17537_v41, 0 }
 0x447   :  { %v27677_v43 = vadd.f32 %v14145_v21, %v27482_v49  ;;  %v27680_v3 = vadd.f32 %v14184_v24, %v27485_v28 }
 0x448   :  { %v14186_v45 = vpop.f32.mrf.mxu1  ;;  %v14225_v35 = vpop.f32.mrf.mxu0  ;;  %20178 = vmatmul.mubr.msk.bf16.vlgmr.msra.gmra.mxu0 %vm60_vm2, %v27623_v0 }
 0x449   :  { %v27693_v49 = vadd.f32 %v14186_v45, %v27496_v32  ;;  %v27696_v28 = vadd.f32 %v14225_v35, %v27499_v58  ;;  %17776 = vmatpush1.bf16.msra.mxu0 %v17569_v30  ;;  %17793 = vmatprep.mubr.bf16.mxu0 %v28814_v20  ;;  %v17539_v58 = vsel %vm17526_vm5, %v27475_v16, %v27515_v39  ;;  %v27734_v63 = vpop.permute.xlu0 %18095 }
 0x44a   :  { %v14188_v29 = vpop.f32.mrf.mxu1  ;;  %v14227_v59 = vpop.f32.mrf.mxu0  ;;  %20185 = vmatprep.subr.msk.bf16.mxu0 %vm208_vm1, %v17540_v50 }
 0x44b   :  { %v27704_v7 = vadd.f32 %v14188_v29, %v27505_v55  ;;  %v27707_v32 = vadd.f32 %v14227_v59, %v27508_v11  ;;  %v27721_v55 = vpop.permute.xlu1 %18097  ;;  %v17581_v11 = vsel %vm208_vm1, %v17539_v58, 0 }
 0x44c   :  { %v14229_v47 = vpop.f32.mrf.mxu0  ;;  %v14268_v33 = vpop.f32.mrf.mxu1  ;;  %20180 = vmatmul.mubr.msk.bf16.vlgmr.msra.gmra.mxu1 %vm60_vm2, %v27623_v0 }
 0x44d   :  { %v27715_v9 = vadd.f32 %v14229_v47, %v27520_v48  ;;  %v27718_v10 = vadd.f32 %v14268_v33, %v27523_v57  ;;  %17819 = vmatpush1.bf16.msra.mxu1 %v17575_v19  ;;  %17836 = vmatprep.mubr.bf16.mxu1 %v28814_v20  ;;  %v18107_v57 = vsel %vm18105_vm6, %v27537_v56, %v27591_v60 }
 0x44e   :  { %v14231_v16 = vpop.f32.mrf.mxu0  ;;  %v14270_v39 = vpop.f32.mrf.mxu1  ;;  %20500 = vmatprep.subr.bf16.mxu1 %v28815_v42  ;;  %v18111_v47 = vsel %vm18105_vm6, %v27616_v18, %v27663_v1 }
 0x44f   :  { %v27726_v40 = vadd.f32 %v14231_v16, %v27529_v13  ;;  %v27729_v48 = vadd.f32 %v14270_v39, %v27532_v61  ;;  %v17587_v61 = vsel %vm208_vm1, %v27513_v4, 0  ;;  %v27760_v35 = vpop.permute.xlu1 %18101 }
 0x450   :  { %v14272_v14 = vpop.f32.mrf.mxu1  ;;  %v14311_v30 = vpop.f32.mrf.mxu0  ;;  %20182 = vmatmul.mubr.msk.bf16.vlgmr.msra.gmra.mxu0 %vm60_vm2, %v27623_v0 }
 0x451   :  { %v27739_v21 = vadd.f32 %v14272_v14, %v27542_v6  ;;  %v27742_v13 = vadd.f32 %v14311_v30, %v27545_v25  ;;  %17862 = vmatpush1.bf16.msra.mxu0 %v17581_v11  ;;  %17879 = vmatprep.mubr.bf16.mxu0 %v28814_v20  ;;  %v18106_v6 = vsel %vm18105_vm6, %v27548_v53, %v27537_v56  ;;  %v27772_v56 = vpop.permute.xlu0 %18099 }
 0x452   :  { %v14274_v24 = vpop.f32.mrf.mxu1  ;;  %v14313_v41 = vpop.f32.mrf.mxu0  ;;  %20206 = vmatprep.subr.msk.bf16.mxu0 %vm208_vm1, %v18107_v57  ;;  %v18109_v25 = vsel %vm18105_vm6, %v27575_v15, %v27629_v46  ;;  %v18124_v53 = vsel %vm208_vm1, %v18106_v6, 0  ;;  %v18113_v14 = vsel %vm18105_vm6, %v27649_v2, %v27699_v26 }
 0x453   :  { %v27749_v50 = vadd.f32 %v14274_v24, %v27554_v5  ;;  %v27752_v45 = vadd.f32 %v14313_v41, %v27557_v8  ;;  %v13942_v24 = vld [vmem:[#allocation2 + $0x70] sm:$0xff] }
 0x454   :  { %v14315_v4 = vpop.f32.mrf.mxu0  ;;  %v14354_v19 = vpop.f32.mrf.mxu1  ;;  %20184 = vmatmul.mubr.msk.bf16.vlgmr.msra.gmra.mxu1 %vm60_vm2, %v27623_v0 }
 0x455   :  { %v27765_v5 = vadd.f32 %v14315_v4, %v27568_v52  ;;  %v27768_v8 = vadd.f32 %v14354_v19, %v27571_v12  ;;  %20501 = vmatpush3.bf16.msra.mxu1 %v17587_v61  ;;  %20502 = vmatprep.mubr.msk.bf16.mxu1 %vm20812_vm4, %v28815_v42  ;;  %v18108_v12 = vsel %vm18105_vm6, %v27591_v60, %v27575_v15  ;;  %v27813_v30 = vpop.permute.xlu0 %18103 }
 0x456   :  { %v14317_v29 = vpop.f32.mrf.mxu0  ;;  %v14356_v59 = vpop.f32.mrf.mxu1  ;;  %20208 = vmatprep.subr.msk.bf16.mxu1 %vm208_vm1, %v18109_v25  ;;  %v18130_v15 = vsel %vm208_vm1, %v18108_v12, 0  ;;  %v18115_v4 = vsel %vm18105_vm6, %v27688_v36, %v27734_v63 }
 0x457   :  { %v27777_v58 = vadd.f32 %v14317_v29, %v27580_v34  ;;  %v27780_v52 = vadd.f32 %v14356_v59, %v27583_v22  ;;  %v27797_v22 = vpop.permute.xlu1 %18654  ;;  %v13957_v29 = vld [vmem:[#allocation2 + $0xe8] sm:$0xff] }
 0x458   :  { %v14358_v33 = vpop.f32.mrf.mxu1  ;;  %v14397_v11 = vpop.f32.mrf.mxu0  ;;  %20186 = vmatmul.mubr.msk.bf16.vlgmr.msra.gmra.mxu0 %vm60_vm2, %v27623_v0 }
 0x459   :  { %v27791_v16 = vadd.f32 %v14358_v33, %v27596_v51  ;;  %v27794_v34 = vadd.f32 %v14397_v11, %v27599_v62  ;;  %18183 = vmatpush1.bf16.msra.mxu0 %v18124_v53  ;;  %18200 = vmatprep.mubr.bf16.mxu0 %v28814_v20  ;;  %v18110_v62 = vsel %vm18105_vm6, %v27629_v46, %v27616_v18  ;;  %v27840_v53 = vpop.permute.xlu0 %18656 }
 0x45a   :  { %v14360_v60 = vpop.f32.mrf.mxu1  ;;  %v14399_v39 = vpop.f32.mrf.mxu0  ;;  %20210 = vmatprep.subr.msk.bf16.mxu0 %vm208_vm1, %v18111_v47  ;;  %v18136_v46 = vsel %vm208_vm1, %v18110_v62, 0 }
 0x45b   :  { %v27802_v57 = vadd.f32 %v14360_v60, %v27605_v17  ;;  %v27805_v51 = vadd.f32 %v14399_v39, %v27608_v27  ;;  %v27820_v17 = vld [vmem:[%s28592_s1 + $0xf8] sm:$0xff]   ;;  %v27838_v19 = vpop.permute.xlu1 %18658 }
 0x45c   :  { %v14401_v61 = vpop.f32.mrf.mxu0  ;;  %v14440_v41 = vpop.f32.mrf.mxu1  ;;  %20503 = vmatmul.mubr.msk.bf16.vlgmr.msra.gmra.mxu1 %vm60_vm2, %v27623_v0 }
 0x45d   :  { %v27823_v27 = vadd.f32 %v14401_v61, %v27626_v37  ;;  %v14461_v18 = vadd.f32 %v14440_v41, %v13942_v24  ;;  %18226 = vmatpush1.bf16.msra.mxu1 %v18130_v15  ;;  %18243 = vmatprep.mubr.bf16.mxu1 %v28814_v20  ;;  %v18112_v37 = vsel %vm18105_vm6, %v27663_v1, %v27649_v2 }
 0x45e   :  { %v14403_v6 = vpop.f32.mrf.mxu0  ;;  %v20468_v25 = vpop.f32.mrf.mxu1  ;;  %20212 = vmatprep.subr.msk.bf16.mxu1 %vm208_vm1, %v18113_v14  ;;  %v18142_v2 = vsel %vm208_vm1, %v18112_v37, 0  ;;  %v18114_v15 = vsel %vm18105_vm6, %v27699_v26, %v27688_v36 }
 0x45f   :  { %14491 = vst.msk [vmem:[#allocation2 + $0x70] sm:$0xff] %vm60_vm2, %v14461_v18  ;;  %v27830_v0 = vadd.f32 %v14403_v6, %v27635_v54  ;;  %v27871_v36 = vpop.permute.xlu0 %18660  ;;  %v18148_v26 = vsel %vm208_vm1, %v18114_v15, 0  ;;  %v18119_v18 = vsel %vm18105_vm6, %v27760_v35, %v27813_v30 }
 0x460   :  { %v14443_v59 = vpop.f32.mrf.mxu1  ;;  %v14723_v12 = vpop.f32.mrf.mxu0  ;;  %20207 = vmatmul.mubr.msk.bf16.vlgmr.msra.gmra.mxu0 %vm60_vm2, %v27820_v17 }
 0x461   :  { %v14476_v54 = vadd.f32 %v14443_v59, %v13957_v29  ;;  %v27845_v47 = vadd.f32 %v14723_v12, %v27646_v31  ;;  %18269 = vmatpush1.bf16.msra.mxu0 %v18136_v46  ;;  %18286 = vmatprep.mubr.bf16.mxu0 %v28814_v20  ;;  %v18117_v31 = vsel %vm18105_vm6, %v27721_v55, %v27772_v56 }
 0x462   :  { %v20469_v1 = vpop.f32.mrf.mxu1  ;;  %v14725_v33 = vpop.f32.mrf.mxu0  ;;  %20214 = vmatprep.subr.msk.bf16.mxu0 %vm208_vm1, %v18115_v4 }
 0x463   :  { %14506 = vst.msk [vmem:[#allocation2 + $0xe8] sm:$0xff] %vm60_vm2, %v14476_v54  ;;  %v27852_v11 = vadd.f32 %v14725_v33, %v27655_v44  ;;  %v27869_v44 = vpop.permute.xlu1 %18662  ;;  %v27909_v29 = vpop.permute.xlu0 %18664 }
 0x464   :  { %v14727_v60 = vpop.f32.mrf.mxu0  ;;  %v14766_v39 = vpop.f32.mrf.mxu1  ;;  %20209 = vmatmul.mubr.msk.bf16.vlgmr.msra.gmra.mxu1 %vm60_vm2, %v27820_v17 }
 0x465   :  { %v27863_v62 = vadd.f32 %v14727_v60, %v27668_v23  ;;  %v27866_v14 = vadd.f32 %v14766_v39, %v27671_v38  ;;  %18312 = vmatpush1.bf16.msra.mxu1 %v18142_v2  ;;  %18329 = vmatprep.mubr.bf16.mxu1 %v28814_v20  ;;  %v18116_v38 = vsel %vm18105_vm6, %v27734_v63, %v27721_v55  ;;  %v18166_v60 = vsel %vm208_vm1, %v27813_v30, 0 }
 0x466   :  { %v14729_v61 = vpop.f32.mrf.mxu0  ;;  %v14768_v24 = vpop.f32.mrf.mxu1  ;;  %20216 = vmatprep.subr.msk.bf16.mxu1 %vm208_vm1, %v18117_v31 }
 0x467   :  { %v27876_v41 = vadd.f32 %v14729_v61, %v27677_v43  ;;  %v27879_v23 = vadd.f32 %v14768_v24, %v27680_v3  ;;  %v18154_v3 = vsel %vm208_vm1, %v18116_v38, 0  ;;  %v18688_v24 = vsel %vm18684_vm7, %v27871_v36, %v27869_v44 }
 0x468   :  { %v14770_v46 = vpop.f32.mrf.mxu1  ;;  %v14809_v6 = vpop.f32.mrf.mxu0  ;;  %20211 = vmatmul.mubr.msk.bf16.vlgmr.msra.gmra.mxu0 %vm60_vm2, %v27820_v17 }
 0x469   :  { %v27890_v25 = vadd.f32 %v14770_v46, %v27693_v49  ;;  %v27893_v43 = vadd.f32 %v14809_v6, %v27696_v28  ;;  %18355 = vmatpush1.bf16.msra.mxu0 %v18148_v26  ;;  %18372 = vmatprep.mubr.bf16.mxu0 %v28814_v20  ;;  %v18118_v49 = vsel %vm18105_vm6, %v27772_v56, %v27760_v35  ;;  %v27907_v28 = vpop.permute.xlu1 %18666 }
 0x46a   :  { %v14772_v55 = vpop.f32.mrf.mxu1  ;;  %v14811_v63 = vpop.f32.mrf.mxu0  ;;  %20218 = vmatprep.subr.msk.bf16.mxu0 %vm208_vm1, %v18119_v18  ;;  %v18160_v35 = vsel %vm208_vm1, %v18118_v49, 0 }
 0x46b   :  { %v27899_v37 = vadd.f32 %v14772_v55, %v27704_v7  ;;  %v27902_v4 = vadd.f32 %v14811_v63, %v27707_v32 }
 0x46c   :  { %v14813_v59 = vpop.f32.mrf.mxu0  ;;  %v14852_v12 = vpop.f32.mrf.mxu1  ;;  %20213 = vmatmul.mubr.msk.bf16.vlgmr.msra.gmra.mxu1 %vm60_vm2, %v27820_v17 }
 0x46d   :  { %v27914_v7 = vadd.f32 %v14813_v59, %v27715_v9  ;;  %v27917_v32 = vadd.f32 %v14852_v12, %v27718_v10  ;;  %18398 = vmatpush1.bf16.msra.mxu1 %v18154_v3  ;;  %18415 = vmatprep.mubr.bf16.mxu1 %v28814_v20  ;;  %v18686_v9 = vsel %vm18684_vm7, %v27840_v53, %v27838_v19 }
 0x46e   :  { %v14815_v56 = vpop.f32.mrf.mxu0  ;;  %v14854_v54 = vpop.f32.mrf.mxu1  ;;  %20506 = vmatprep.subr.bf16.mxu1 %v28815_v42 }
 0x46f   :  { %v27923_v2 = vadd.f32 %v14815_v56, %v27726_v40  ;;  %v27926_v1 = vadd.f32 %v14854_v54, %v27729_v48  ;;  %v27940_v40 = vpop.permute.xlu1 %18670  ;;  %v18669_v48 = vpop.permute.xlu0 %18668  ;;  %v14521_v54 = vld [vmem:[#allocation2 + $0x70] sm:$0xff] }
 0x470   :  { %v14856_v10 = vpop.f32.mrf.mxu1  ;;  %v14895_v33 = vpop.f32.mrf.mxu0  ;;  %20215 = vmatmul.mubr.msk.bf16.vlgmr.msra.gmra.mxu0 %vm60_vm2, %v27820_v17 }
 0x471   :  { %v27934_v15 = vadd.f32 %v14856_v10, %v27739_v21  ;;  %v27937_v31 = vadd.f32 %v14895_v33, %v27742_v13  ;;  %18441 = vmatpush1.bf16.msra.mxu0 %v18160_v35  ;;  %18458 = vmatprep.mubr.bf16.mxu0 %v28814_v20  ;;  %v18685_v13 = vsel %vm18684_vm7, %v27797_v22, %v27840_v53 }
 0x472   :  { %v14858_v39 = vpop.f32.mrf.mxu1  ;;  %v14897_v26 = vpop.f32.mrf.mxu0  ;;  %20239 = vmatprep.subr.msk.bf16.mxu0 %vm208_vm1, %v18686_v9 }
 0x473   :  { %v27946_v61 = vadd.f32 %v14858_v39, %v27749_v50  ;;  %v27949_v21 = vadd.f32 %v14897_v26, %v27752_v45  ;;  %v18703_v45 = vsel %vm208_vm1, %v18685_v13, 0  ;;  %v27981_v3 = vpop.permute.xlu1 %18674  ;;  %v18673_v55 = vpop.permute.xlu0 %18672  ;;  %v14536_v13 = vld [vmem:[#allocation2 + $0xe8] sm:$0xff] }
 0x474   :  { %v14899_v38 = vpop.f32.mrf.mxu0  ;;  %v14938_v30 = vpop.f32.mrf.mxu1  ;;  %20217 = vmatmul.mubr.msk.bf16.vlgmr.msra.gmra.mxu1 %vm60_vm2, %v27820_v17  ;;  %v18694_v26 = vsel %vm18684_vm7, %v18673_v55, %v27981_v3 }
 0x475   :  { %v27960_v18 = vadd.f32 %v14899_v38, %v27765_v5  ;;  %v27963_v50 = vadd.f32 %v14938_v30, %v27768_v8  ;;  %20507 = vmatpush3.bf16.msra.mxu1 %v18166_v60  ;;  %20508 = vmatprep.mubr.msk.bf16.mxu1 %vm20812_vm4, %v28815_v42  ;;  %v18687_v5 = vsel %vm18684_vm7, %v27838_v19, %v27871_v36 }
 0x476   :  { %v14901_v22 = vpop.f32.mrf.mxu0  ;;  %v14940_v53 = vpop.f32.mrf.mxu1  ;;  %20241 = vmatprep.subr.msk.bf16.mxu1 %vm208_vm1, %v18688_v24  ;;  %v18690_v8 = vsel %vm18684_vm7, %v27909_v29, %v27907_v28  ;;  %v18709_v19 = vsel %vm208_vm1, %v18687_v5, 0 }
 0x477   :  { %v27970_v46 = vadd.f32 %v14901_v22, %v27777_v58  ;;  %v27973_v6 = vadd.f32 %v14940_v53, %v27780_v52  ;;  %v18693_v53 = vsel %vm18684_vm7, %v27940_v40, %v18673_v55 }
 0x478   :  { %v14942_v63 = vpop.f32.mrf.mxu1  ;;  %v14981_v49 = vpop.f32.mrf.mxu0  ;;  %20219 = vmatmul.mubr.msk.bf16.vlgmr.msra.gmra.mxu0 %vm60_vm2, %v27820_v17 }
 0x479   :  { %v27986_v58 = vadd.f32 %v14942_v63, %v27791_v16  ;;  %v27989_v52 = vadd.f32 %v14981_v49, %v27794_v34  ;;  %18762 = vmatpush1.bf16.msra.mxu0 %v18703_v45  ;;  %18779 = vmatprep.mubr.bf16.mxu0 %v28814_v20  ;;  %v18689_v16 = vsel %vm18684_vm7, %v27869_v44, %v27909_v29  ;;  %v18679_v44 = vpop.permute.xlu1 %18678  ;;  %v18677_v29 = vpop.permute.xlu0 %18676 }
 0x47a   :  { %v14944_v36 = vpop.f32.mrf.mxu1  ;;  %v14983_v59 = vpop.f32.mrf.mxu0  ;;  %20243 = vmatprep.subr.msk.bf16.mxu0 %vm208_vm1, %v18690_v8  ;;  %v18692_v34 = vsel %vm18684_vm7, %v18669_v48, %v27940_v40  ;;  %v18715_v33 = vsel %vm208_vm1, %v18689_v16, 0 }
 0x47b   :  { %v27995_v12 = vadd.f32 %v14944_v36, %v27802_v57  ;;  %v27998_v35 = vadd.f32 %v14983_v59, %v27805_v51  ;;  %v28010_v57 = vld [vmem:[%s28592_s1 + $0x100] sm:$0xff]   ;;  %s20840_s1 = smov [#allocation2]  }
 0x47c   :  { %v14985_v56 = vpop.f32.mrf.mxu0  ;;  %v15024_v9 = vpop.f32.mrf.mxu1  ;;  %20509 = vmatmul.mubr.msk.bf16.vlgmr.msra.gmra.mxu1 %vm60_vm2, %v27820_v17  ;;  %s19154_s18 = sshll.u32 %s20840_s1, 4  ;;  %s19155_s18 = int_to_ptr.vmem [resolvable:$true] %s19154_s18 }
 0x47d   :  { %v28013_v51 = vadd.f32 %v14985_v56, %v27823_v27  ;;  %v15045_v10 = vadd.f32 %v15024_v9, %v14521_v54  ;;  %18805 = vmatpush1.bf16.msra.mxu1 %v18709_v19  ;;  %18822 = vmatprep.mubr.bf16.mxu1 %v28814_v20  ;;  %v18691_v27 = vsel %vm18684_vm7, %v27907_v28, %v18669_v48  ;;  %v18683_v5 = vpop.permute.xlu1 %18682  ;;  %v18681_v8 = vpop.permute.xlu0 %18680  ;;  %s20783_s19 = scalar_lea.vmem %s19155_s18, 3840  ;;  %p20788_p1 = scmp.lt.s32.totalorder %s19155_s18, %s19155_s18 }
 0x47e   :  { %v14987_v60 = vpop.f32.mrf.mxu0  ;;  %v20474_v39 = vpop.f32.mrf.mxu1  ;;  %20245 = vmatprep.subr.msk.bf16.mxu1 %vm208_vm1, %v18692_v34  ;;  %p20784_p0 = scmp.ne.s32.totalorder %s19155_s18, %s20783_s19  ;;  %p20789_p2 = scmp.lt.s32.totalorder %s20783_s19, %s20783_s19 }
 0x47f   :  { %15075 = vst.msk [vmem:[#allocation2 + $0x70] sm:$0xff] %vm60_vm2, %v15045_v10  ;;  %v28020_v17 = vadd.f32 %v14987_v60, %v27830_v0  ;;  %v18721_v0 = vsel %vm208_vm1, %v18691_v27, 0 }
 0x480   :  { %v15027_v24 = vpop.f32.mrf.mxu1  ;;  %v15307_v38 = vpop.f32.mrf.mxu0  ;;  %20240 = vmatmul.mubr.msk.bf16.vlgmr.msra.gmra.mxu0 %vm60_vm2, %v28010_v57  ;;  %p20790_p3 = por %p20789_p2, %p20788_p1 }
 0x481   :  { %v15060_v30 = vadd.f32 %v15027_v24, %v14536_v13  ;;  %v28029_v45 = vadd.f32 %v15307_v38, %v27845_v47  ;;  %18848 = vmatpush1.bf16.msra.mxu0 %v18715_v33  ;;  %18865 = vmatprep.mubr.bf16.mxu0 %v28814_v20  ;;  %v18696_v47 = vsel %vm18684_vm7, %v18677_v29, %v18679_v44 }
 0x482   :  { %v20475_v22 = vpop.f32.mrf.mxu1  ;;  %v15309_v28 = vpop.f32.mrf.mxu0  ;;  %20247 = vmatprep.subr.msk.bf16.mxu0 %vm208_vm1, %v18694_v26  ;;  %p20791_p4 = pnand %p20790_p3, %p20784_p0 }
 0x483   :  { %15090 = vst.msk [vmem:[#allocation2 + $0xe8] sm:$0xff] %vm60_vm2, %v15060_v30  ;;  %v28036_v48 = vadd.f32 %v15309_v28, %v27852_v11  ;;  %v18727_v11 = vsel %vm208_vm1, %v18693_v53, 0 }
 0x484   :  { %v15311_v63 = vpop.f32.mrf.mxu0  ;;  %v15350_v49 = vpop.f32.mrf.mxu1  ;;  %20242 = vmatmul.mubr.msk.bf16.vlgmr.msra.gmra.mxu1 %vm60_vm2, %v28010_v57 }
 0x485   :  { %v28044_v19 = vadd.f32 %v15311_v63, %v27863_v62  ;;  %v28047_v36 = vadd.f32 %v15350_v49, %v27866_v14  ;;  %18891 = vmatpush1.bf16.msra.mxu1 %v18721_v0  ;;  %18908 = vmatprep.mubr.bf16.mxu1 %v28814_v20  ;;  %v18695_v62 = vsel %vm18684_vm7, %v27981_v3, %v18677_v29 }
 0x486   :  { %v15313_v40 = vpop.f32.mrf.mxu0  ;;  %v15352_v55 = vpop.f32.mrf.mxu1  ;;  %20249 = vmatprep.subr.msk.bf16.mxu1 %vm208_vm1, %v18696_v47  ;;  %v18698_v14 = vsel %vm18684_vm7, %v18681_v8, %v18683_v5  ;;  %v15105_v49 = vld [vmem:[#allocation2 + $0x70] sm:$0xff] }
 0x487   :  { %v28053_v59 = vadd.f32 %v15313_v40, %v27876_v41  ;;  %v28056_v16 = vadd.f32 %v15352_v55, %v27879_v23  ;;  %v18733_v41 = vsel %vm208_vm1, %v18695_v62, 0 }
 0x488   :  { %v15354_v34 = vpop.f32.mrf.mxu1  ;;  %v15393_v56 = vpop.f32.mrf.mxu0  ;;  %20244 = vmatmul.mubr.msk.bf16.vlgmr.msra.gmra.mxu0 %vm60_vm2, %v28010_v57 }
 0x489   :  { %v28064_v54 = vadd.f32 %v15354_v34, %v27890_v25  ;;  %v28067_v9 = vadd.f32 %v15393_v56, %v27893_v43  ;;  %18934 = vmatpush1.bf16.msra.mxu0 %v18727_v11  ;;  %18951 = vmatprep.mubr.bf16.mxu0 %v28814_v20  ;;  %v18697_v25 = vsel %vm18684_vm7, %v18679_v44, %v18681_v8 }
 0x48a   :  { %v15356_v23 = vpop.f32.mrf.mxu1  ;;  %v15395_v3 = vpop.f32.mrf.mxu0  ;;  %20251 = vmatprep.subr.msk.bf16.mxu0 %vm208_vm1, %v18698_v14  ;;  %v15120_v62 = vld [vmem:[#allocation2 + $0xe8] sm:$0xff] }
 0x48b   :  { %v28073_v10 = vadd.f32 %v15356_v23, %v27899_v37  ;;  %v28076_v29 = vadd.f32 %v15395_v3, %v27902_v4  ;;  %v18739_v37 = vsel %vm208_vm1, %v18697_v25, 0 }
 0x48c   :  { %v15397_v33 = vpop.f32.mrf.mxu0  ;;  %v15436_v43 = vpop.f32.mrf.mxu1  ;;  %20246 = vmatmul.mubr.msk.bf16.vlgmr.msra.gmra.mxu1 %vm60_vm2, %v28010_v57 }
 0x48d   :  { %v28082_v60 = vadd.f32 %v15397_v33, %v27914_v7  ;;  %v28085_v39 = vadd.f32 %v15436_v43, %v27917_v32  ;;  %18977 = vmatpush1.bf16.msra.mxu1 %v18733_v41  ;;  %18994 = vmatprep.mubr.bf16.mxu1 %v28814_v20 }
 0x48e   :  { %v15399_v4 = vpop.f32.mrf.mxu0  ;;  %v15438_v27 = vpop.f32.mrf.mxu1  ;;  %20512 = vmatprep.subr.bf16.mxu1 %v28815_v42 }
 0x48f   :  { %v28091_v44 = vadd.f32 %v15399_v4, %v27923_v2  ;;  %v28094_v26 = vadd.f32 %v15438_v27, %v27926_v1  ;;  %v18745_v2 = vsel %vm208_vm1, %v18683_v5, 0 }
 0x490   :  { %v15440_v7 = vpop.f32.mrf.mxu1  ;;  %v15479_v13 = vpop.f32.mrf.mxu0  ;;  %20248 = vmatmul.mubr.msk.bf16.vlgmr.msra.gmra.mxu0 %vm60_vm2, %v28010_v57 }
 0x491   :  { %v28099_v32 = vadd.f32 %v15440_v7, %v27934_v15  ;;  %v28102_v24 = vadd.f32 %v15479_v13, %v27937_v31  ;;  %19020 = vmatpush1.bf16.msra.mxu0 %v18739_v37  ;;  %19037 = vmatprep.mubr.bf16.mxu0 %v28814_v20 }
 0x492   :  { %v15442_v38 = vpop.f32.mrf.mxu1  ;;  %v15481_v30 = vpop.f32.mrf.mxu0 }
 0x493   :  { %v28107_v1 = vadd.f32 %v15442_v38, %v27946_v61  ;;  %v28110_v0 = vadd.f32 %v15481_v30, %v27949_v21 }
 0x494   :  { %v15483_v22 = vpop.f32.mrf.mxu0  ;;  %v15522_v28 = vpop.f32.mrf.mxu1  ;;  %20250 = vmatmul.mubr.msk.bf16.vlgmr.msra.gmra.mxu1 %vm60_vm2, %v28010_v57 }
 0x495   :  { %v28115_v15 = vadd.f32 %v15483_v22, %v27960_v18  ;;  %v28118_v20 = vadd.f32 %v15522_v28, %v27963_v50  ;;  %20513 = vmatpush3.bf16.msra.mxu1 %v18745_v2  ;;  %20514 = vmatprep.mubr.msk.bf16.mxu1 %vm20812_vm4, %v28815_v42 }
 0x496   :  { %v15485_v31 = vpop.f32.mrf.mxu0  ;;  %v15524_v61 = vpop.f32.mrf.mxu1 }
 0x497   :  { %v28123_v21 = vadd.f32 %v15485_v31, %v27970_v46  ;;  %v28126_v53 = vadd.f32 %v15524_v61, %v27973_v6 }
 0x498   :  { %v15526_v47 = vpop.f32.mrf.mxu1  ;;  %v15565_v5 = vpop.f32.mrf.mxu0  ;;  %20252 = vmatmul.mubr.msk.bf16.vlgmr.msra.gmra.mxu0 %vm60_vm2, %v28010_v57 }
 0x499   :  { %v28131_v18 = vadd.f32 %v15526_v47, %v27986_v58  ;;  %v28134_v50 = vadd.f32 %v15565_v5, %v27989_v52 }
 0x49a   :  { %v15528_v42 = vpop.f32.mrf.mxu1  ;;  %v15567_v8 = vpop.f32.mrf.mxu0 }
 0x49b   :  { %v28137_v63 = vadd.f32 %v15528_v42, %v27995_v12  ;;  %v28140_v46 = vadd.f32 %v15567_v8, %v27998_v35 }
 0x49c   :  { %v15569_v6 = vpop.f32.mrf.mxu0  ;;  %v15608_v11 = vpop.f32.mrf.mxu1  ;;  %20515 = vmatmul.mubr.msk.bf16.vlgmr.msra.gmra.mxu1 %vm60_vm2, %v28010_v57 }
 0x49d   :  { %v28145_v58 = vadd.f32 %v15569_v6, %v28013_v51  ;;  %v15629_v40 = vadd.f32 %v15608_v11, %v15105_v49 }
 0x49e   :  { %v15571_v52 = vpop.f32.mrf.mxu0  ;;  %v20480_v55 = vpop.f32.mrf.mxu1 }
 0x49f   :  { %15659 = vst.msk [vmem:[#allocation2 + $0x70] sm:$0xff] %vm60_vm2, %v15629_v40  ;;  %v28149_v12 = vadd.f32 %v15571_v52, %v28020_v17 }
 0x4a0   :  { %v15611_v35 = vpop.f32.mrf.mxu1  ;;  %v15886_v14 = vpop.f32.mrf.mxu0 }
 0x4a1   :  { %v15644_v34 = vadd.f32 %v15611_v35, %v15120_v62  ;;  %v28152_v56 = vadd.f32 %v15886_v14, %v28029_v45 }
 0x4a2   :  { %v20481_v41 = vpop.f32.mrf.mxu1  ;;  %v15888_v57 = vpop.f32.mrf.mxu0 }
 0x4a3   :  { %15674 = vst.msk [vmem:[#allocation2 + $0xe8] sm:$0xff] %vm60_vm2, %v15644_v34  ;;  %v28156_v51 = vadd.f32 %v15888_v57, %v28036_v48 }
 0x4a4   :  { %v15890_v23 = vpop.f32.mrf.mxu0  ;;  %v15929_v3 = vpop.f32.mrf.mxu1 }
 0x4a5   :  { %v28159_v25 = vadd.f32 %v15890_v23, %v28044_v19  ;;  %v28162_v17 = vadd.f32 %v15929_v3, %v28047_v36 }
 0x4a6   :  { %v15892_v33 = vpop.f32.mrf.mxu0  ;;  %v15931_v43 = vpop.f32.mrf.mxu1  ;;  %v15689_v62 = vld [vmem:[#allocation2 + $0x70] sm:$0xff] }
 0x4a7   :  { %v28165_v45 = vadd.f32 %v15892_v33, %v28053_v59  ;;  %v28168_v37 = vadd.f32 %v15931_v43, %v28056_v16 }
 0x4a8   :  { %v15933_v4 = vpop.f32.mrf.mxu1  ;;  %v15972_v27 = vpop.f32.mrf.mxu0 }
 0x4a9   :  { %v28171_v48 = vadd.f32 %v15933_v4, %v28064_v54  ;;  %v28174_v7 = vadd.f32 %v15972_v27, %v28067_v9 }
 0x4aa   :  { %v15935_v19 = vpop.f32.mrf.mxu1  ;;  %v15974_v13 = vpop.f32.mrf.mxu0  ;;  %v15704_v41 = vld [vmem:[#allocation2 + $0xe8] sm:$0xff] }
 0x4ab   :  { %v28177_v36 = vadd.f32 %v15935_v19, %v28073_v10  ;;  %v28180_v2 = vadd.f32 %v15974_v13, %v28076_v29 }
 0x4ac   :  { %v15976_v59 = vpop.f32.mrf.mxu0  ;;  %v16015_v38 = vpop.f32.mrf.mxu1 }
 0x4ad   :  { %v28183_v16 = vadd.f32 %v15976_v59, %v28082_v60  ;;  %v28186_v30 = vadd.f32 %v16015_v38, %v28085_v39 }
 0x4ae   :  { %v15978_v54 = vpop.f32.mrf.mxu0  ;;  %v16017_v22 = vpop.f32.mrf.mxu1 }
 0x4af   :  { %v28189_v9 = vadd.f32 %v15978_v54, %v28091_v44  ;;  %v28192_v28 = vadd.f32 %v16017_v22, %v28094_v26 }
 0x4b0   :  { %v16019_v10 = vpop.f32.mrf.mxu1  ;;  %v16058_v31 = vpop.f32.mrf.mxu0 }
 0x4b1   :  { %v28195_v29 = vadd.f32 %v16019_v10, %v28099_v32  ;;  %v28198_v61 = vadd.f32 %v16058_v31, %v28102_v24 }
 0x4b2   :  { %v16021_v60 = vpop.f32.mrf.mxu1  ;;  %v16060_v47 = vpop.f32.mrf.mxu0 }
 0x4b3   :  { %v28201_v39 = vadd.f32 %v16021_v60, %v28107_v1  ;;  %v28204_v5 = vadd.f32 %v16060_v47, %v28110_v0 }
 0x4b4   :  { %v16062_v44 = vpop.f32.mrf.mxu0  ;;  %v16101_v42 = vpop.f32.mrf.mxu1 }
 0x4b5   :  { %v28207_v26 = vadd.f32 %v16062_v44, %v28115_v15  ;;  %v28210_v8 = vadd.f32 %v16101_v42, %v28118_v20 }
 0x4b6   :  { %v16064_v32 = vpop.f32.mrf.mxu0  ;;  %v16103_v6 = vpop.f32.mrf.mxu1 }
 0x4b7   :  { %v28213_v24 = vadd.f32 %v16064_v32, %v28123_v21  ;;  %v28216_v49 = vadd.f32 %v16103_v6, %v28126_v53 }
 0x4b8   :  { %v16105_v1 = vpop.f32.mrf.mxu1  ;;  %v16144_v11 = vpop.f32.mrf.mxu0 }
 0x4b9   :  { %v28219_v0 = vadd.f32 %v16105_v1, %v28131_v18  ;;  %v28222_v40 = vadd.f32 %v16144_v11, %v28134_v50 }
 0x4ba   :  { %v16107_v15 = vpop.f32.mrf.mxu1  ;;  %v16146_v52 = vpop.f32.mrf.mxu0 }
 0x4bb   :  { %v28225_v20 = vadd.f32 %v16107_v15, %v28137_v63  ;;  %v28228_v55 = vadd.f32 %v16146_v52, %v28140_v46 }
 0x4bc   :  { %v16148_v21 = vpop.f32.mrf.mxu0  ;;  %v16187_v53 = vpop.f32.mrf.mxu1 }
 0x4bd   :  { %v28231_v35 = vadd.f32 %v16148_v21, %v28145_v58  ;;  %v16208_v14 = vadd.f32 %v16187_v53, %v15689_v62 }
 0x4be   :  { %v16150_v18 = vpop.f32.mrf.mxu0  ;;  %v20486_v34 = vpop.f32.mrf.mxu1 }
 0x4bf   :  { %16238 = vst.msk [vmem:[#allocation2 + $0x70] sm:$0xff] %vm60_vm2, %v16208_v14  ;;  %v28235_v50 = vadd.f32 %v16150_v18, %v28149_v12 }
 0x4c0   :  { %v16190_v63 = vpop.f32.mrf.mxu1  ;;  %v16465_v57 = vpop.f32.mrf.mxu0 }
 0x4c1   :  { %v16223_v23 = vadd.f32 %v16190_v63, %v15704_v41  ;;  %v28238_v46 = vadd.f32 %v16465_v57, %v28152_v56 }
 0x4c2   :  { %v20487_v3 = vpop.f32.mrf.mxu1  ;;  %v16467_v33 = vpop.f32.mrf.mxu0 }
 0x4c3   :  { %16253 = vst.msk [vmem:[#allocation2 + $0xe8] sm:$0xff] %vm60_vm2, %v16223_v23  ;;  %v28242_v58 = vadd.f32 %v16467_v33, %v28156_v51 }
 0x4c4   :  { %v16469_v43 = vpop.f32.mrf.mxu0  ;;  %v16508_v4 = vpop.f32.mrf.mxu1 }
 0x4c5   :  { %v28245_v27 = vadd.f32 %v16469_v43, %v28159_v25  ;;  %v28248_v12 = vadd.f32 %v16508_v4, %v28162_v17 }
 0x4c6   :  { %v16471_v19 = vpop.f32.mrf.mxu0  ;;  %v16510_v13 = vpop.f32.mrf.mxu1  ;;  %v16268_v41 = vld [vmem:[#allocation2 + $0x70] sm:$0xff] }
 0x4c7   :  { %v28251_v56 = vadd.f32 %v16471_v19, %v28165_v45  ;;  %v28254_v59 = vadd.f32 %v16510_v13, %v28168_v37 }
 0x4c8   :  { %v16512_v38 = vpop.f32.mrf.mxu1  ;;  %v16551_v54 = vpop.f32.mrf.mxu0 }
 0x4c9   :  { %v28257_v51 = vadd.f32 %v16512_v38, %v28171_v48  ;;  %v28260_v22 = vadd.f32 %v16551_v54, %v28174_v7 }
 0x4ca   :  { %v16514_v25 = vpop.f32.mrf.mxu1  ;;  %v16553_v10 = vpop.f32.mrf.mxu0  ;;  %v16283_v3 = vld [vmem:[#allocation2 + $0xe8] sm:$0xff] }
 0x4cb   :  { %v28263_v17 = vadd.f32 %v16514_v25, %v28177_v36  ;;  %v28266_v31 = vadd.f32 %v16553_v10, %v28180_v2 }
 0x4cc   :  { %v16555_v45 = vpop.f32.mrf.mxu0  ;;  %v16594_v60 = vpop.f32.mrf.mxu1 }
 0x4cd   :  { %v28269_v37 = vadd.f32 %v16555_v45, %v28183_v16  ;;  %v28272_v47 = vadd.f32 %v16594_v60, %v28186_v30 }
 0x4ce   :  { %v16557_v48 = vpop.f32.mrf.mxu0  ;;  %v16596_v44 = vpop.f32.mrf.mxu1 }
 0x4cf   :  { %v28275_v7 = vadd.f32 %v16557_v48, %v28189_v9  ;;  %v28278_v42 = vadd.f32 %v16596_v44, %v28192_v28 }
 0x4d0   :  { %v16598_v36 = vpop.f32.mrf.mxu1  ;;  %v16637_v32 = vpop.f32.mrf.mxu0 }
 0x4d1   :  { %v28281_v2 = vadd.f32 %v16598_v36, %v28195_v29  ;;  %v28284_v6 = vadd.f32 %v16637_v32, %v28198_v61 }
 0x4d2   :  { %v16600_v16 = vpop.f32.mrf.mxu1  ;;  %v16639_v1 = vpop.f32.mrf.mxu0 }
 0x4d3   :  { %v28287_v30 = vadd.f32 %v16600_v16, %v28201_v39  ;;  %v28290_v11 = vadd.f32 %v16639_v1, %v28204_v5 }
 0x4d4   :  { %v16641_v9 = vpop.f32.mrf.mxu0  ;;  %v16680_v15 = vpop.f32.mrf.mxu1 }
 0x4d5   :  { %v28293_v28 = vadd.f32 %v16641_v9, %v28207_v26  ;;  %v28296_v52 = vadd.f32 %v16680_v15, %v28210_v8 }
 0x4d6   :  { %v16643_v29 = vpop.f32.mrf.mxu0  ;;  %v16682_v21 = vpop.f32.mrf.mxu1 }
 0x4d7   :  { %v28299_v61 = vadd.f32 %v16643_v29, %v28213_v24  ;;  %v28302_v62 = vadd.f32 %v16682_v21, %v28216_v49 }
 0x4d8   :  { %v16684_v39 = vpop.f32.mrf.mxu1  ;;  %v16723_v53 = vpop.f32.mrf.mxu0 }
 0x4d9   :  { %v28305_v5 = vadd.f32 %v16684_v39, %v28219_v0  ;;  %v28308_v14 = vadd.f32 %v16723_v53, %v28222_v40 }
 0x4da   :  { %v16686_v26 = vpop.f32.mrf.mxu1  ;;  %v16725_v18 = vpop.f32.mrf.mxu0 }
 0x4db   :  { %v28311_v8 = vadd.f32 %v16686_v26, %v28225_v20  ;;  %v28314_v34 = vadd.f32 %v16725_v18, %v28228_v55 }
 0x4dc   :  { %v16727_v24 = vpop.f32.mrf.mxu0  ;;  %v16766_v49 = vpop.f32.mrf.mxu1 }
 0x4dd   :  { %v28317_v63 = vadd.f32 %v16727_v24, %v28231_v35  ;;  %v16787_v57 = vadd.f32 %v16766_v49, %v16268_v41 }
 0x4de   :  { %v16729_v0 = vpop.f32.mrf.mxu0  ;;  %v20492_v23 = vpop.f32.mrf.mxu1 }
 0x4df   :  { %16817 = vst.msk [vmem:[#allocation2 + $0x70] sm:$0xff] %vm60_vm2, %v16787_v57  ;;  %v28321_v40 = vadd.f32 %v16729_v0, %v28235_v50 }
 0x4e0   :  { %v16769_v20 = vpop.f32.mrf.mxu1  ;;  %v17044_v33 = vpop.f32.mrf.mxu0 }
 0x4e1   :  { %v16802_v43 = vadd.f32 %v16769_v20, %v16283_v3  ;;  %v28324_v55 = vadd.f32 %v17044_v33, %v28238_v46 }
 0x4e2   :  { %v20493_v4 = vpop.f32.mrf.mxu1  ;;  %v17046_v19 = vpop.f32.mrf.mxu0 }
 0x4e3   :  { %16832 = vst.msk [vmem:[#allocation2 + $0xe8] sm:$0xff] %vm60_vm2, %v16802_v43  ;;  %v28328_v35 = vadd.f32 %v17046_v19, %v28242_v58 }
 0x4e4   :  { %v17048_v13 = vpop.f32.mrf.mxu0  ;;  %v17087_v38 = vpop.f32.mrf.mxu1 }
 0x4e5   :  { %v28331_v54 = vadd.f32 %v17048_v13, %v28245_v27  ;;  %v28334_v50 = vadd.f32 %v17087_v38, %v28248_v12 }
 0x4e6   :  { %v17050_v25 = vpop.f32.mrf.mxu0  ;;  %v17089_v10 = vpop.f32.mrf.mxu1  ;;  %v16847_v3 = vld [vmem:[#allocation2 + $0x70] sm:$0xff] }
 0x4e7   :  { %v28337_v46 = vadd.f32 %v17050_v25, %v28251_v56  ;;  %v28340_v45 = vadd.f32 %v17089_v10, %v28254_v59 }
 0x4e8   :  { %v17091_v60 = vpop.f32.mrf.mxu1  ;;  %v17130_v48 = vpop.f32.mrf.mxu0 }
 0x4e9   :  { %v28343_v58 = vadd.f32 %v17091_v60, %v28257_v51  ;;  %v28346_v44 = vadd.f32 %v17130_v48, %v28260_v22 }
 0x4ea   :  { %v17093_v27 = vpop.f32.mrf.mxu1  ;;  %v17132_v36 = vpop.f32.mrf.mxu0  ;;  %v16862_v4 = vld [vmem:[#allocation2 + $0xe8] sm:$0xff] }
 0x4eb   :  { %v28349_v12 = vadd.f32 %v17093_v27, %v28263_v17  ;;  %v28352_v32 = vadd.f32 %v17132_v36, %v28266_v31 }
 0x4ec   :  { %v17134_v56 = vpop.f32.mrf.mxu0  ;;  %v17173_v16 = vpop.f32.mrf.mxu1 }
 0x4ed   :  { %v28355_v59 = vadd.f32 %v17134_v56, %v28269_v37  ;;  %v28358_v1 = vadd.f32 %v17173_v16, %v28272_v47 }
 0x4ee   :  { %v17136_v51 = vpop.f32.mrf.mxu0  ;;  %v17175_v9 = vpop.f32.mrf.mxu1 }
 0x4ef   :  { %v28361_v22 = vadd.f32 %v17136_v51, %v28275_v7  ;;  %v28364_v15 = vadd.f32 %v17175_v9, %v28278_v42 }
 0x4f0   :  { %v17177_v17 = vpop.f32.mrf.mxu1  ;;  %v17216_v29 = vpop.f32.mrf.mxu0 }
 0x4f1   :  { %v28367_v31 = vadd.f32 %v17177_v17, %v28281_v2  ;;  %v28370_v21 = vadd.f32 %v17216_v29, %v28284_v6 }
 0x4f2   :  { %v17179_v37 = vpop.f32.mrf.mxu1  ;;  %v17218_v39 = vpop.f32.mrf.mxu0 }
 0x4f3   :  { %v28373_v47 = vadd.f32 %v17179_v37, %v28287_v30  ;;  %v28376_v53 = vadd.f32 %v17218_v39, %v28290_v11 }
 0x4f4   :  { %v17220_v7 = vpop.f32.mrf.mxu0  ;;  %v17259_v26 = vpop.f32.mrf.mxu1 }
 0x4f5   :  { %v28379_v42 = vadd.f32 %v17220_v7, %v28293_v28  ;;  %v28382_v18 = vadd.f32 %v17259_v26, %v28296_v52 }
 0x4f6   :  { %v17222_v2 = vpop.f32.mrf.mxu0  ;;  %v17261_v24 = vpop.f32.mrf.mxu1 }
 0x4f7   :  { %29250 = vst [vmem:[#allocation34_spill] sm:$0xff] %v28379_v42  ;;  %29251 = vst [vmem:[#allocation26_spill] sm:$0xff] %v28382_v18  ;;  %v28385_v6 = vadd.f32 %v17222_v2, %v28299_v61  ;;  %v28388_v41 = vadd.f32 %v17261_v24, %v28302_v62 }
 0x4f8   :  { %v17263_v30 = vpop.f32.mrf.mxu1  ;;  %v17302_v49 = vpop.f32.mrf.mxu0 }
 0x4f9   :  { %29252 = vst [vmem:[#allocation21_spill] sm:$0xff] %v28385_v6  ;;  %29253 = vst [vmem:[#allocation27_spill] sm:$0xff] %v28388_v41  ;;  %v28391_v11 = vadd.f32 %v17263_v30, %v28305_v5  ;;  %v28394_v57 = vadd.f32 %v17302_v49, %v28308_v14 }
 0x4fa   :  { %v17265_v28 = vpop.f32.mrf.mxu1  ;;  %v17304_v0 = vpop.f32.mrf.mxu0 }
 0x4fb   :  { %29254 = vst [vmem:[#allocation28_spill] sm:$0xff] %v28391_v11  ;;  %29255 = vst [vmem:[#allocation30_spill] sm:$0xff] %v28394_v57  ;;  %v28397_v52 = vadd.f32 %v17265_v28, %v28311_v8  ;;  %v28400_v23 = vadd.f32 %v17304_v0, %v28314_v34 }
 0x4fc   :  { %v17306_v61 = vpop.f32.mrf.mxu0  ;;  %v17345_v62 = vpop.f32.mrf.mxu1 }
 0x4fd   :  { %29256 = vst [vmem:[#allocation10_spill] sm:$0xff] %v28397_v52  ;;  %29257 = vst [vmem:[#allocation23_spill] sm:$0xff] %v28400_v23  ;;  %v28403_v20 = vadd.f32 %v17306_v61, %v28317_v63  ;;  %v17366_v33 = vadd.f32 %v17345_v62, %v16847_v3 }
 0x4fe   :  { %v17308_v5 = vpop.f32.mrf.mxu0  ;;  %v20498_v43 = vpop.f32.mrf.mxu1 }
 0x4ff   :  { %29258 = vst [vmem:[#allocation20_spill] sm:$0xff] %v28403_v20  ;;  %17396 = vst.msk [vmem:[#allocation2 + $0x70] sm:$0xff] %vm60_vm2, %v17366_v33  ;;  %v28407_v14 = vadd.f32 %v17308_v5, %v28321_v40 }
 0x500   :  { %v17348_v8 = vpop.f32.mrf.mxu1  ;;  %v28409_v19 = vpop.f32.mrf.mxu0 }
 0x501   :  { %29259 = vst [vmem:[#allocation16_spill] sm:$0xff] %v28407_v14  ;;  %v17381_v34 = vadd.f32 %v17348_v8, %v16862_v4 }
 0x502   :  { %v20499_v13 = vpop.f32.mrf.mxu1  ;;  %v28411_v38 = vpop.f32.mrf.mxu0 }
 0x503   :  { %17411 = vst.msk [vmem:[#allocation2 + $0xe8] sm:$0xff] %vm60_vm2, %v17381_v34 }
 0x504   :  { %v28414_v63 = vpop.f32.mrf.mxu0  ;;  %v28416_v25 = vpop.f32.mrf.mxu1 }
 0x506   :  { %v28418_v10 = vpop.f32.mrf.mxu0  ;;  %v28420_v60 = vpop.f32.mrf.mxu1  ;;  %v17426_v3 = vld [vmem:[#allocation2 + $0x70] sm:$0xff] }
 0x508   :  { %v28422_v40 = vpop.f32.mrf.mxu1  ;;  %v28424_v48 = vpop.f32.mrf.mxu0 }
 0x50a   :  { %v28426_v27 = vpop.f32.mrf.mxu1  ;;  %v28428_v36 = vpop.f32.mrf.mxu0  ;;  %v17441_v4 = vld [vmem:[#allocation2 + $0xe8] sm:$0xff] }
 0x50c   :  { %v28430_v56 = vpop.f32.mrf.mxu0  ;;  %v28432_v16 = vpop.f32.mrf.mxu1 }
 0x50e   :  { %v28434_v51 = vpop.f32.mrf.mxu0  ;;  %v28436_v9 = vpop.f32.mrf.mxu1 }
 0x510   :  { %v28438_v17 = vpop.f32.mrf.mxu1  ;;  %v28440_v29 = vpop.f32.mrf.mxu0 }
 0x512   :  { %v28442_v37 = vpop.f32.mrf.mxu1  ;;  %v28444_v39 = vpop.f32.mrf.mxu0 }
 0x514   :  { %v28446_v7 = vpop.f32.mrf.mxu0  ;;  %v28448_v26 = vpop.f32.mrf.mxu1 }
 0x515   :  { %29260 = vst [vmem:[#allocation9_spill] sm:$0xff] %v28446_v7  ;;  %29261 = vst [vmem:[#allocation7_spill] sm:$0xff] %v28448_v26 }
 0x516   :  { %v28450_v2 = vpop.f32.mrf.mxu0  ;;  %v28452_v24 = vpop.f32.mrf.mxu1 }
 0x517   :  { %29262 = vst [vmem:[#allocation18_spill] sm:$0xff] %v28450_v2  ;;  %29263 = vst [vmem:[#allocation15_spill] sm:$0xff] %v28452_v24 }
 0x518   :  { %v28454_v30 = vpop.f32.mrf.mxu1  ;;  %v28456_v49 = vpop.f32.mrf.mxu0 }
 0x519   :  { %29264 = vst [vmem:[#allocation32_spill] sm:$0xff] %v28454_v30  ;;  %29265 = vst [vmem:[#allocation33_spill] sm:$0xff] %v28456_v49 }
 0x51a   :  { %v28458_v28 = vpop.f32.mrf.mxu1  ;;  %v28460_v0 = vpop.f32.mrf.mxu0 }
 0x51b   :  { %29266 = vst [vmem:[#allocation13_spill] sm:$0xff] %v28458_v28  ;;  %29267 = vst [vmem:[#allocation24_spill] sm:$0xff] %v28460_v0 }
 0x51c   :  { %v28462_v61 = vpop.f32.mrf.mxu0  ;;  %v17924_v62 = vpop.f32.mrf.mxu1 }
 0x51d   :  { %29268 = vst [vmem:[#allocation35_spill] sm:$0xff] %v28462_v61  ;;  %v17945_v33 = vadd.f32 %v17924_v62, %v17426_v3 }
 0x51e   :  { %v28464_v5 = vpop.f32.mrf.mxu0  ;;  %v20504_v43 = vpop.f32.mrf.mxu1 }
 0x51f   :  { %29269 = vst [vmem:[#allocation29_spill] sm:$0xff] %v28464_v5  ;;  %17975 = vst.msk [vmem:[#allocation2 + $0x70] sm:$0xff] %vm60_vm2, %v17945_v33 }
 0x520   :  { %v17927_v8 = vpop.f32.mrf.mxu1  ;;  %v18202_v34 = vpop.f32.mrf.mxu0 }
 0x521   :  { %v17960_v13 = vadd.f32 %v17927_v8, %v17441_v4 }
 0x522   :  { %v20505_v14 = vpop.f32.mrf.mxu1  ;;  %v18204_v20 = vpop.f32.mrf.mxu0 }
 0x523   :  { %17990 = vst.msk [vmem:[#allocation2 + $0xe8] sm:$0xff] %vm60_vm2, %v17960_v13 }
 0x524   :  { %v18206_v23 = vpop.f32.mrf.mxu0  ;;  %v18245_v0 = vpop.f32.mrf.mxu1 }
 0x526   :  { %v18208_v28 = vpop.f32.mrf.mxu0  ;;  %v18247_v61 = vpop.f32.mrf.mxu1 }
 0x528   :  { %v18249_v52 = vpop.f32.mrf.mxu1  ;;  %v18288_v49 = vpop.f32.mrf.mxu0 }
 0x52a   :  { %v28468_v3 = vpop.f32.mrf.mxu1  ;;  %v28470_v62 = vpop.f32.mrf.mxu0 }
 0x52c   :  { %v28472_v43 = vpop.f32.mrf.mxu0  ;;  %v28474_v33 = vpop.f32.mrf.mxu1 }
 0x52e   :  { %v28476_v5 = vpop.f32.mrf.mxu0  ;;  %v28478_v14 = vpop.f32.mrf.mxu1 }
 0x530   :  { %v28480_v4 = vpop.f32.mrf.mxu1  ;;  %v28482_v8 = vpop.f32.mrf.mxu0 }
 0x531   :  { %29270 = vst [vmem:[#allocation14_spill] sm:$0xff] %v28482_v8  ;;  %v17933_v8 = vadd.f32 %v28416_v25, %v28334_v50  ;;  %v17948_v50 = vadd.f32 %v28422_v40, %v28343_v58 }
 0x532   :  { %v28484_v13 = vpop.f32.mrf.mxu1  ;;  %v28486_v57 = vpop.f32.mrf.mxu0 }
 0x533   :  { %29271 = vst [vmem:[#allocation19_spill] sm:$0xff] %v28484_v13  ;;  %29272 = vst [vmem:[#allocation22_spill] sm:$0xff] %v28486_v57  ;;  %v18005_v13 = vld [vmem:[#allocation2 + $0x70] sm:$0xff] }
 0x534   :  { %v28488_v30 = vpop.f32.mrf.mxu0  ;;  %v28490_v11 = vpop.f32.mrf.mxu1 }
 0x535   :  { %29273 = vst [vmem:[#allocation5_spill] sm:$0xff] %v28488_v30  ;;  %29274 = vst [vmem:[#allocation25_spill] sm:$0xff] %v28490_v11  ;;  %v17931_v30 = vadd.f32 %v28409_v19, %v28324_v55 }
 0x536   :  { %v28492_v24 = vpop.f32.mrf.mxu0  ;;  %v28494_v41 = vpop.f32.mrf.mxu1 }
 0x537   :  { %29275 = vst [vmem:[#allocation8_spill] sm:$0xff] %v28492_v24  ;;  %29276 = vst [vmem:[#allocation11_spill] sm:$0xff] %v28494_v41  ;;  %v18510_v41 = vadd.f32 %v18202_v34, %v17931_v30  ;;  %v18512_v30 = vadd.f32 %v18245_v0, %v17933_v8  ;;  %v17952_v34 = vadd.f32 %v28438_v17, %v28367_v31 }
 0x538   :  { %v28496_v2 = vpop.f32.mrf.mxu1  ;;  %v28498_v6 = vpop.f32.mrf.mxu0  ;;  %v17940_v8 = vadd.f32 %v28444_v39, %v28376_v53 }
 0x539   :  { %29277 = vst [vmem:[#allocation36_spill] sm:$0xff] %v28496_v2  ;;  %29278 = vst [vmem:[#allocation17_spill] sm:$0xff] %v28498_v6  ;;  %v17932_v2 = vadd.f32 %v28411_v38, %v28328_v35 }
 0x53a   :  { %v28500_v26 = vpop.f32.mrf.mxu1  ;;  %v28502_v18 = vpop.f32.mrf.mxu0  ;;  %v29288_v39 = vld [vmem:[#allocation22_spill] sm:$0xff] }
 0x53b   :  { %29279 = vst [vmem:[#allocation31_spill] sm:$0xff] %v28500_v26  ;;  %29280 = vst [vmem:[#allocation12_spill] sm:$0xff] %v28502_v18  ;;  %v17946_v18 = vadd.f32 %v28414_v63, %v28331_v54  ;;  %v18020_v26 = vld [vmem:[#allocation2 + $0xe8] sm:$0xff]  ;;  %v18511_v55 = vadd.f32 %v18204_v20, %v17932_v2 }
 0x53c   :  { %v28504_v7 = vpop.f32.mrf.mxu0  ;;  %v18503_v57 = vpop.f32.mrf.mxu1 }
 0x53d   :  { %29281 = vst [vmem:[#allocation6_spill] sm:$0xff] %v28504_v7  ;;  %v18524_v11 = vadd.f32 %v18503_v57, %v18005_v13  ;;  %v18525_v38 = vadd.f32 %v18206_v23, %v17946_v18  ;;  %v17936_v18 = vadd.f32 %v28428_v36, %v28352_v32  ;;  %v17951_v36 = vadd.f32 %v28434_v51, %v28361_v22 }
 0x53e   :  { %v28508_v42 = vpop.f32.mrf.mxu0  ;;  %v20510_v24 = vpop.f32.mrf.mxu1 }
 0x53f   :  { %18554 = vst.msk [vmem:[#allocation2 + $0x70] sm:$0xff] %vm60_vm2, %v18524_v11  ;;  %v17947_v24 = vadd.f32 %v28418_v10, %v28337_v46  ;;  %v17934_v11 = vadd.f32 %v28420_v60, %v28340_v45  ;;  %v17949_v45 = vadd.f32 %v28426_v27, %v28349_v12  ;;  %v18515_v32 = vadd.f32 %v28470_v62, %v17936_v18 }
 0x540   :  { %v18506_v7 = vpop.f32.mrf.mxu1  ;;  %v18781_v6 = vpop.f32.mrf.mxu0 }
 0x541   :  { %v18539_v57 = vadd.f32 %v18506_v7, %v18020_v26  ;;  %v19089_v19 = vadd.f32 %v18781_v6, %v18510_v41  ;;  %v17935_v6 = vadd.f32 %v28424_v48, %v28346_v44  ;;  %v18526_v46 = vadd.f32 %v18208_v28, %v17947_v24 }
 0x542   :  { %v20511_v13 = vpop.f32.mrf.mxu1  ;;  %v18783_v35 = vpop.f32.mrf.mxu0  ;;  %v18513_v63 = vadd.f32 %v18247_v61, %v17934_v11  ;;  %v18527_v7 = vadd.f32 %v18249_v52, %v17948_v50  ;;  %v17950_v48 = vadd.f32 %v28430_v56, %v28355_v59  ;;  %v17937_v26 = vadd.f32 %v28432_v16, %v28358_v1  ;;  %v29289_v50 = vld [vmem:[#allocation21_spill] sm:$0xff] }
 0x543   :  { %18569 = vst.msk [vmem:[#allocation2 + $0xe8] sm:$0xff] %vm60_vm2, %v18539_v57  ;;  %19119 = vst [vmem:[#allocation2] sm:$0xff] %v19089_v19  ;;  %v19090_v54 = vadd.f32 %v18783_v35, %v18511_v55  ;;  %v18514_v58 = vadd.f32 %v18288_v49, %v17935_v6  ;;  %v18528_v12 = vadd.f32 %v28468_v3, %v17949_v45  ;;  %v29283_v57 = vld [vmem:[#allocation34_spill] sm:$0xff]  ;;  %v29284_v19 = vld [vmem:[#allocation9_spill] sm:$0xff] }
 0x544   :  { %v18785_v41 = vpop.f32.mrf.mxu0  ;;  %v18824_v20 = vpop.f32.mrf.mxu1  ;;  %v17938_v49 = vadd.f32 %v28436_v9, %v28364_v15  ;;  %v18529_v1 = vadd.f32 %v28472_v43, %v17950_v48  ;;  %v18516_v16 = vadd.f32 %v28474_v33, %v17937_v26  ;;  %v17939_v3 = vadd.f32 %v28440_v29, %v28370_v21  ;;  %v29282_v29 = vld [vmem:[#allocation14_spill] sm:$0xff]  ;;  %v29286_v35 = vld [vmem:[#allocation7_spill] sm:$0xff]  ;;  %v29293_v45 = vld [vmem:[#allocation5_spill] sm:$0xff] }
 0x545   :  { %19120 = vst [vmem:[#allocation2 + $0x8] sm:$0xff] %v19090_v54  ;;  %v19104_v25 = vadd.f32 %v18785_v41, %v18525_v38  ;;  %v19091_v10 = vadd.f32 %v18824_v20, %v18512_v30  ;;  %v18530_v15 = vadd.f32 %v28476_v5, %v17951_v36  ;;  %v17953_v33 = vadd.f32 %v28442_v37, %v28373_v47  ;;  %v29285_v13 = vld [vmem:[#allocation26_spill] sm:$0xff]  ;;  %v29287_v38 = vld [vmem:[#allocation19_spill] sm:$0xff] }
 0x546   :  { %v18787_v23 = vpop.f32.mrf.mxu0  ;;  %v18826_v60 = vpop.f32.mrf.mxu1  ;;  %v18517_v9 = vadd.f32 %v28478_v14, %v17938_v49  ;;  %v18531_v21 = vadd.f32 %v28480_v4, %v17952_v34  ;;  %v18518_v55 = vadd.f32 %v29282_v29, %v17939_v3  ;;  %v17954_v24 = vadd.f32 %v29284_v19, %v29283_v57  ;;  %v29290_v6 = vld [vmem:[#allocation18_spill] sm:$0xff]  ;;  %v29291_v20 = vld [vmem:[#allocation27_spill] sm:$0xff]  ;;  %v29304_v34 = vld [vmem:[#allocation24_spill] sm:$0xff] }
 0x547   :  { %19134 = vst [vmem:[#allocation2 + $0x78] sm:$0xff] %v19104_v25  ;;  %19121 = vst [vmem:[#allocation2 + $0x10] sm:$0xff] %v19091_v10  ;;  %v19105_v44 = vadd.f32 %v18787_v23, %v18526_v46  ;;  %v19092_v40 = vadd.f32 %v18826_v60, %v18513_v63  ;;  %v17941_v11 = vadd.f32 %v29286_v35, %v29285_v13  ;;  %v29292_v46 = vld [vmem:[#allocation15_spill] sm:$0xff]  ;;  %v29294_v23 = vld [vmem:[#allocation25_spill] sm:$0xff] }
 0x548   :  { %v18828_v2 = vpop.f32.mrf.mxu1  ;;  %v18867_v28 = vpop.f32.mrf.mxu0  ;;  %v18532_v53 = vadd.f32 %v29287_v38, %v17953_v33  ;;  %v18519_v30 = vadd.f32 %v29288_v39, %v17940_v8  ;;  %v17955_v41 = vadd.f32 %v29290_v6, %v29289_v50  ;;  %v17942_v63 = vadd.f32 %v29292_v46, %v29291_v20  ;;  %v29297_v26 = vld [vmem:[#allocation30_spill] sm:$0xff]  ;;  %v29300_v36 = vld [vmem:[#allocation11_spill] sm:$0xff]  ;;  %v29310_v57 = vld [vmem:[#allocation12_spill] sm:$0xff] }
 0x549   :  { %19135 = vst [vmem:[#allocation2 + $0x80] sm:$0xff] %v19105_v44  ;;  %19122 = vst [vmem:[#allocation2 + $0x18] sm:$0xff] %v19092_v40  ;;  %v19106_v52 = vadd.f32 %v18828_v2, %v18527_v7  ;;  %v19093_v27 = vadd.f32 %v18867_v28, %v18514_v58  ;;  %v18533_v18 = vadd.f32 %v29293_v45, %v17954_v24  ;;  %v29295_v44 = vld [vmem:[#allocation28_spill] sm:$0xff]  ;;  %v29298_v2 = vld [vmem:[#allocation33_spill] sm:$0xff] }
 0x54a   :  { %v18830_v59 = vpop.f32.mrf.mxu1  ;;  %v18869_v56 = vpop.f32.mrf.mxu0  ;;  %v18520_v60 = vadd.f32 %v29294_v23, %v17941_v11  ;;  %v29296_v40 = vld [vmem:[#allocation32_spill] sm:$0xff]  ;;  %v17943_v28 = vadd.f32 %v29298_v2, %v29297_v26  ;;  %v18521_v49 = vadd.f32 %v29300_v36, %v17942_v63  ;;  %v18584_v50 = vld [vmem:[#allocation2 + $0x70] sm:$0xff] }
 0x54b   :  { %19136 = vst [vmem:[#allocation2 + $0x88] sm:$0xff] %v19106_v52  ;;  %19123 = vst [vmem:[#allocation2 + $0x20] sm:$0xff] %v19093_v27  ;;  %v19107_v0 = vadd.f32 %v18830_v59, %v18528_v12  ;;  %v19094_v61 = vadd.f32 %v18869_v56, %v18515_v32  ;;  %v17956_v48 = vadd.f32 %v29296_v40, %v29295_v44  ;;  %v29299_v52 = vld [vmem:[#allocation8_spill] sm:$0xff] }
 0x54c   :  { %v18871_v22 = vpop.f32.mrf.mxu0  ;;  %v18910_v51 = vpop.f32.mrf.mxu1  ;;  %v18534_v27 = vadd.f32 %v29299_v52, %v17955_v41  ;;  %v18599_v45 = vld [vmem:[#allocation2 + $0xe8] sm:$0xff] }
 0x54d   :  { %19137 = vst [vmem:[#allocation2 + $0x90] sm:$0xff] %v19107_v0  ;;  %19124 = vst [vmem:[#allocation2 + $0x28] sm:$0xff] %v19094_v61  ;;  %v19108_v62 = vadd.f32 %v18871_v22, %v18529_v1  ;;  %v19095_v43 = vadd.f32 %v18910_v51, %v18516_v16  ;;  %v29301_v1 = vld [vmem:[#allocation10_spill] sm:$0xff]  ;;  %v29302_v16 = vld [vmem:[#allocation13_spill] sm:$0xff] }
 0x54e   :  { %v18873_v31 = vpop.f32.mrf.mxu0  ;;  %v18912_v17 = vpop.f32.mrf.mxu1  ;;  %v17957_v0 = vadd.f32 %v29302_v16, %v29301_v1  ;;  %v29303_v61 = vld [vmem:[#allocation23_spill] sm:$0xff] }
 0x54f   :  { %19138 = vst [vmem:[#allocation2 + $0x98] sm:$0xff] %v19108_v62  ;;  %19125 = vst [vmem:[#allocation2 + $0x30] sm:$0xff] %v19095_v43  ;;  %v19109_v5 = vadd.f32 %v18873_v31, %v18530_v15  ;;  %v19096_v14 = vadd.f32 %v18912_v17, %v18517_v9  ;;  %v17944_v3 = vadd.f32 %v29304_v34, %v29303_v61  ;;  %v29305_v15 = vld [vmem:[#allocation36_spill] sm:$0xff]  ;;  %v29306_v62 = vld [vmem:[#allocation17_spill] sm:$0xff] }
 0x550   :  { %v18914_v47 = vpop.f32.mrf.mxu1  ;;  %v18953_v37 = vpop.f32.mrf.mxu0  ;;  %v18535_v9 = vadd.f32 %v29305_v15, %v17956_v48  ;;  %v18522_v43 = vadd.f32 %v29306_v62, %v17943_v28  ;;  %v29307_v31 = vld [vmem:[#allocation20_spill] sm:$0xff]  ;;  %v29308_v17 = vld [vmem:[#allocation35_spill] sm:$0xff] }
 0x551   :  { %19139 = vst [vmem:[#allocation2 + $0xa0] sm:$0xff] %v19109_v5  ;;  %19126 = vst [vmem:[#allocation2 + $0x38] sm:$0xff] %v19096_v14  ;;  %v19110_v4 = vadd.f32 %v18914_v47, %v18531_v21  ;;  %v19097_v54 = vadd.f32 %v18953_v37, %v18518_v55  ;;  %v17958_v21 = vadd.f32 %v29308_v17, %v29307_v31  ;;  %v29309_v5 = vld [vmem:[#allocation31_spill] sm:$0xff]  ;;  %v29311_v47 = vld [vmem:[#allocation16_spill] sm:$0xff] }
 0x552   :  { %v18916_v25 = vpop.f32.mrf.mxu1  ;;  %v18955_v10 = vpop.f32.mrf.mxu0  ;;  %v18536_v14 = vadd.f32 %v29309_v5, %v17957_v0  ;;  %v18523_v19 = vadd.f32 %v29310_v57, %v17944_v3  ;;  %v29312_v37 = vld [vmem:[#allocation29_spill] sm:$0xff] }
 0x553   :  { %19140 = vst [vmem:[#allocation2 + $0xa8] sm:$0xff] %v19110_v4  ;;  %19127 = vst [vmem:[#allocation2 + $0x40] sm:$0xff] %v19097_v54  ;;  %v19111_v7 = vadd.f32 %v18916_v25, %v18532_v53  ;;  %v19098_v58 = vadd.f32 %v18955_v10, %v18519_v30  ;;  %v17959_v38 = vadd.f32 %v29312_v37, %v29311_v47  ;;  %v29313_v53 = vld [vmem:[#allocation6_spill] sm:$0xff] }
 0x554   :  { %v18957_v12 = vpop.f32.mrf.mxu0  ;;  %v18996_v32 = vpop.f32.mrf.mxu1  ;;  %v18537_v39 = vadd.f32 %v29313_v53, %v17958_v21 }
 0x555   :  { %19141 = vst [vmem:[#allocation2 + $0xb0] sm:$0xff] %v19111_v7  ;;  %19128 = vst [vmem:[#allocation2 + $0x48] sm:$0xff] %v19098_v58  ;;  %v19112_v59 = vadd.f32 %v18957_v12, %v18533_v18  ;;  %v19099_v56 = vadd.f32 %v18996_v32, %v18520_v60  ;;  %v18538_v41 = vadd.f32 %v28508_v42, %v17959_v38 }
 0x556   :  { %v18959_v22 = vpop.f32.mrf.mxu0  ;;  %v18998_v51 = vpop.f32.mrf.mxu1 }
 0x557   :  { %19142 = vst [vmem:[#allocation2 + $0xb8] sm:$0xff] %v19112_v59  ;;  %19129 = vst [vmem:[#allocation2 + $0x50] sm:$0xff] %v19099_v56  ;;  %v19113_v33 = vadd.f32 %v18959_v22, %v18534_v27  ;;  %v19100_v8 = vadd.f32 %v18998_v51, %v18521_v49 }
 0x558   :  { %v19000_v29 = vpop.f32.mrf.mxu1  ;;  %v19039_v55 = vpop.f32.mrf.mxu0 }
 0x559   :  { %19143 = vst [vmem:[#allocation2 + $0xc0] sm:$0xff] %v19113_v33  ;;  %19130 = vst [vmem:[#allocation2 + $0x58] sm:$0xff] %v19100_v8  ;;  %v19114_v24 = vadd.f32 %v19000_v29, %v18535_v9  ;;  %v19101_v13 = vadd.f32 %v19039_v55, %v18522_v43 }
 0x55a   :  { %v19002_v35 = vpop.f32.mrf.mxu1  ;;  %v19041_v11 = vpop.f32.mrf.mxu0 }
 0x55b   :  { %19144 = vst [vmem:[#allocation2 + $0xc8] sm:$0xff] %v19114_v24  ;;  %19131 = vst [vmem:[#allocation2 + $0x60] sm:$0xff] %v19101_v13  ;;  %v19115_v30 = vadd.f32 %v19002_v35, %v18536_v14  ;;  %v19102_v4 = vadd.f32 %v19041_v11, %v18523_v19 }
 0x55c   :  { %v19043_v54 = vpop.f32.mrf.mxu0  ;;  %v19082_v6 = vpop.f32.mrf.mxu1 }
 0x55d   :  { %19145 = vst [vmem:[#allocation2 + $0xd0] sm:$0xff] %v19115_v30  ;;  %19132 = vst [vmem:[#allocation2 + $0x68] sm:$0xff] %v19102_v4  ;;  %v19116_v20 = vadd.f32 %v19043_v54, %v18537_v39  ;;  %v19103_v46 = vadd.f32 %v19082_v6, %v18584_v50 }
 0x55e   :  { %v19045_v63 = vpop.f32.mrf.mxu0  ;;  %v20516_v25 = vpop.f32.mrf.mxu1 }
 0x55f   :  { %19146 = vst [vmem:[#allocation2 + $0xd8] sm:$0xff] %v19116_v20  ;;  %19133 = vst.msk [vmem:[#allocation2 + $0x70] sm:$0xff] %vm60_vm2, %v19103_v46  ;;  %v19117_v10 = vadd.f32 %v19045_v63, %v18538_v41 }
 0x560   :  { %v19085_v18 = vpop.f32.mrf.mxu1 }
 0x561   :  { %19147 = vst [vmem:[#allocation2 + $0xe0] sm:$0xff] %v19117_v10  ;;  %v19118_v23 = vadd.f32 %v19085_v18, %v18599_v45 }
 0x562   :  { %v20517_v60 = vpop.f32.mrf.mxu1 }
 0x563   :  { %19148 = vst.msk [vmem:[#allocation2 + $0xe8] sm:$0xff] %vm60_vm2, %v19118_v23 }
 0x564   :  { %20794 = shalt.err (!%p20791_p4)
}
 0x565   :  { %s20841_s20 = smov 1920   ;;  %s20842_s21 = smov 120  }
 0x566   :  { %19160 = dma.vmem_to_hbm [thread:$0]  %s19155_s18, 3840, %s28594_s3, [#allocation3], %s20841_s20, %s20841_s20, %s20842_s21  }
 0x567   :  { %20803 = dma.done.wait [#allocation3], 3840  }
 0x568   :  { %20804 = vsyncadd [#allocation3], 4294963456 }
 0x569   :  { %19164 = vsyncpa [#allocation3], 1 }

</bundles_post_ra>
